<compile_context>
chip_gen: v7x
topology: tpu7x:2x2x1
jax: 0.10.0
libtpu: 0.0.40
codegen_flags: <defaults>
</compile_context>

<pallas_src>
import itertools

import jax
import jax.numpy as jnp
from jax import lax
from jax.experimental import pallas as pl
from jax.experimental.pallas import tpu as pltpu

# Problem sizes (small, consistent with a C3D first block).
N, C_IN, D, H, W = 2, 4, 8, 16, 16
C_OUT = 8
KD = KH = KW = 3
PAD = 1  # "same" padding for stride-1 3x3x3 conv


def conv3d_pallas(x_ncdhw, weight_oidhw, bias):
    """3D convolution, stride 1, padding PAD, PyTorch nn.Conv3d semantics.

    x_ncdhw:      (N, C_in, D, H, W)
    weight_oidhw: (C_out, C_in, KD, KH, KW)
    bias:         (C_out,)
    returns:      (N, C_out, D, H, W)
    """
    n, c_in, d, h, w = x_ncdhw.shape
    c_out, _, kd, kh, kw = weight_oidhw.shape
    s = d * h * w                        # spatial (lane) extent of the GEMM
    k_real = kd * kh * kw * c_in         # real contraction extent (27 * C_in)
    k_pad = pl.cdiv(k_real, 128) * 128   # one full MXU depth pass

    # In-kernel flat-index decomposition uses shifts/ands -> powers of two.
    assert (w & (w - 1)) == 0 and (h & (h - 1)) == 0, "H, W must be pow2"
    lg_w = w.bit_length() - 1
    lg_hw = (h * w).bit_length() - 1

    taps = list(itertools.product(range(kd), range(kh), range(kw)))

    def axis_mask(idx, z, extent):
        """Validity mask of tap offset z along one spatial axis (None == all)."""
        lo = PAD - z                 # need idx >= lo
        hi = extent + PAD - z        # need idx <  hi
        m = None
        if lo > 0:
            m = idx >= lo
        if hi < extent:
            mm = idx < hi
            m = mm if m is None else jnp.logical_and(m, mm)
        return m

    def combine(a, b):
        if a is None:
            return b
        if b is None:
            return a
        return jnp.logical_and(a, b)

    def kernel(x_ref, w_ref, b_ref, o_ref, xx_ref, p_ref):
        # x_ref : (C_in, S)       one sample, spatial flattened on lanes
        # w_ref : (C_out, K_pad)  folded + zero-padded weights (grid-resident)
        # b_ref : (C_out, 1)      bias column (grid-resident)
        # o_ref : (C_out, S)      lane-dense output slab for this sample
        # xx_ref: (C_in, 2*S)     VMEM scratch: [x | x] for wrap-free shifts
        # p_ref : (K_pad, S)      VMEM scratch: im2col patch slab
        x = x_ref[...]
        xx_ref[:, 0:s] = x
        xx_ref[:, s:2 * s] = x

        # Decompose the flat lane index s0 -> (d0, h0, w0).
        s_idx = lax.broadcasted_iota(jnp.int32, (c_in, s), 1)
        w_idx = s_idx & (w - 1)
        h_idx = (s_idx >> lg_w) & (h - 1)
        d_idx = s_idx >> lg_hw

        d_masks = [axis_mask(d_idx, z, d) for z in range(kd)]
        hw_masks = {(zh, zw): combine(axis_mask(h_idx, zh, h),
                                      axis_mask(w_idx, zw, w))
                    for zh in range(kh) for zw in range(kw)}

        # Build the patch slab: rows [t*C_in, (t+1)*C_in) hold tap t.
        for t, (zd, zh, zw) in enumerate(taps):
            off = (zd - PAD) * h * w + (zh - PAD) * w + (zw - PAD)
            start = off % s
            # shifted[:, i] == x[:, (i + off) mod S]; wrapped lanes are masked.
            shifted = x if start == 0 else xx_ref[:, pl.ds(start, s)]
            m = combine(d_masks[zd], hw_masks[(zh, zw)])
            val = shifted if m is None else jnp.where(m, shifted, 0.0)
            p_ref[pl.ds(t * c_in, c_in), :] = val

        # Zero the K-padding rows (weight pad columns are zero, but
        # 0 * uninitialized-VMEM could be NaN, so pad rows must be zeroed too).
        if k_pad > k_real:
            p_ref[pl.ds(k_real, k_pad - k_real), :] = jnp.zeros(
                (k_pad - k_real, s), jnp.float32)

        # One MXU GEMM per sample: (C_out, K_pad) x (K_pad, S), f32 accumulate.
        acc = jnp.dot(w_ref[...], p_ref[...],
                      preferred_element_type=jnp.float32)
        o_ref[...] = (acc + b_ref[...]).astype(o_ref.dtype)

    # ---- wrapper-side (tiny) layout plumbing ------------------------------
    x_flat = x_ncdhw.reshape(n, c_in, s)                       # free reshape
    # (C_out, C_in, KD, KH, KW) -> (C_out, KD, KH, KW, C_in) -> (C_out, K)
    w_mat = jnp.transpose(weight_oidhw, (0, 2, 3, 4, 1)).reshape(c_out, k_real)
    w_mat = jnp.pad(w_mat, ((0, 0), (0, k_pad - k_real)))      # zero pad cols
    b_col = bias.reshape(c_out, 1)

    cost = pl.CostEstimate(
        flops=2 * n * c_out * k_real * s,
        transcendentals=0,
        bytes_accessed=4 * (n * c_in * s + c_out * k_pad + c_out
                            + n * c_out * s),
    )

    out_flat = pl.pallas_call(
        kernel,
        out_shape=jax.ShapeDtypeStruct((n, c_out, s), x_ncdhw.dtype),
        grid_spec=pltpu.PrefetchScalarGridSpec(
            num_scalar_prefetch=0,
            grid=(n,),
            in_specs=[
                # Per-sample activation, spatial on lanes; batch squeezed.
                pl.BlockSpec((pl.Squeezed(), c_in, s), lambda i: (i, 0, 0)),
                # Folded weights, resident across the grid.
                pl.BlockSpec((c_out, k_pad), lambda i: (0, 0)),
                # Bias column, resident across the grid.
                pl.BlockSpec((c_out, 1), lambda i: (0, 0)),
            ],
            out_specs=pl.BlockSpec((pl.Squeezed(), c_out, s),
                                   lambda i: (i, 0, 0)),
            scratch_shapes=[
                pltpu.VMEM((c_in, 2 * s), jnp.float32),   # [x | x]
                pltpu.VMEM((k_pad, s), jnp.float32),      # im2col slab
            ],
        ),
        compiler_params=pltpu.CompilerParams(
            dimension_semantics=("parallel",),  # batch-parallel (v7x megacore)
        ),
        cost_estimate=cost,
    )(x_flat, w_mat, b_col)

    # Back to PyTorch layout NCDHW: pure reshape, no transpose needed.
    return out_flat.reshape(n, c_out, d, h, w)


if __name__ == "__main__":
    key = jax.random.PRNGKey(0)
    kx, kw_, kb = jax.random.split(key, 3)

    x = jax.random.normal(kx, (N, C_IN, D, H, W), dtype=jnp.float32)
    # Deterministic parameter init (Kaiming-uniform-ish scale, fixed key).
    fan_in = C_IN * KD * KH * KW
    bound = 1.0 / (fan_in ** 0.5)
    weight = jax.random.uniform(
        kw_, (C_OUT, C_IN, KD, KH, KW), minval=-bound, maxval=bound,
        dtype=jnp.float32)
    bias = jax.random.uniform(
        kb, (C_OUT,), minval=-bound, maxval=bound, dtype=jnp.float32)

    out = jax.jit(conv3d_pallas)(x, weight, bias)
    out = jax.block_until_ready(out)

    # Reference check against XLA's conv (same semantics as torch.nn.Conv3d).
    ref = lax.conv_general_dilated(
        x, weight, window_strides=(1, 1, 1),
        padding=((PAD, PAD), (PAD, PAD), (PAD, PAD)),
        dimension_numbers=("NCDHW", "OIDHW", "NCDHW"),
    ) + bias.reshape(1, C_OUT, 1, 1, 1)
    ref = jax.block_until_ready(ref)

    assert out.shape == (N, C_OUT, D, H, W)
    assert jnp.allclose(out, ref, atol=1e-4, rtol=1e-4)
    print("KERNEL_OK")
</pallas_src>

<mosaic_0001>
module attributes {stable_mosaic.version = 11 : i64} {
  func.func @kernel(%arg0: i32, %arg1: memref<1x4x2048xf32, #tpu.memory_space<vmem>>, %arg2: memref<8x128xf32, #tpu.memory_space<vmem>>, %arg3: memref<8x1xf32, #tpu.memory_space<vmem>>, %arg4: memref<1x8x2048xf32, #tpu.memory_space<vmem>>, %arg5: memref<4x4096xf32, #tpu.memory_space<vmem>>, %arg6: memref<128x2048xf32, #tpu.memory_space<vmem>>) attributes {dimension_semantics = [#tpu.dimension_semantics<parallel>], iteration_bounds = array<i64: 2>, scalar_prefetch = 0 : i64, scratch_operands = 2 : i64, tpu.core_type = #tpu.core_type<tc>, window_params = [{transform_indices = @transform_0, window_bounds = array<i64: 1, 4, 2048>}, {pipeline_mode = #tpu.pipeline_mode<synchronous>, transform_indices = @transform_1, window_bounds = array<i64: 8, 128>}, {pipeline_mode = #tpu.pipeline_mode<synchronous>, transform_indices = @transform_2, window_bounds = array<i64: 8, 1>}, {transform_indices = @transform_3, window_bounds = array<i64: 1, 8, 2048>}]} {
    %c0 = arith.constant 0 : index
    %c0_0 = arith.constant 0 : index
    %c0_1 = arith.constant 0 : index
    %0 = vector.load %arg1[%c0, %c0_0, %c0_1] : memref<1x4x2048xf32, #tpu.memory_space<vmem>>, vector<1x4x2048xf32>
    %1 = vector.shape_cast %0 : vector<1x4x2048xf32> to vector<4x2048xf32>
    %c0_2 = arith.constant 0 : index
    %c0_3 = arith.constant 0 : index
    %2 = vector.load %arg5[%c0_2, %c0_3] : memref<4x4096xf32, #tpu.memory_space<vmem>>, vector<4x2048xf32>
    tpu.vector_store %arg5[%c0_2, %c0_3], %1 {strides = array<i32>} : memref<4x4096xf32, #tpu.memory_space<vmem>>, vector<4x2048xf32>,
    %c0_4 = arith.constant 0 : index
    %c2048 = arith.constant 2048 : index
    %3 = vector.load %arg5[%c0_4, %c2048] : memref<4x4096xf32, #tpu.memory_space<vmem>>, vector<4x2048xf32>
    tpu.vector_store %arg5[%c0_4, %c2048], %1 {strides = array<i32>} : memref<4x4096xf32, #tpu.memory_space<vmem>>, vector<4x2048xf32>,
    %4 = tpu.iota {dimensions = array<i32: 1>} : vector<4x2048xi32>
    %c15_i32 = arith.constant 15 : i32
    %5 = vector.broadcast %c15_i32 : i32 to vector<4x2048xi32>
    %6 = arith.andi %4, %5 : vector<4x2048xi32>
    %c4_i32 = arith.constant 4 : i32
    %7 = vector.broadcast %c4_i32 : i32 to vector<4x2048xi32>
    %8 = arith.shrsi %4, %7 : vector<4x2048xi32>
    %c15_i32_5 = arith.constant 15 : i32
    %9 = vector.broadcast %c15_i32_5 : i32 to vector<4x2048xi32>
    %10 = arith.andi %8, %9 : vector<4x2048xi32>
    %c8_i32 = arith.constant 8 : i32
    %11 = vector.broadcast %c8_i32 : i32 to vector<4x2048xi32>
    %12 = arith.shrsi %4, %11 : vector<4x2048xi32>
    %c1_i32 = arith.constant 1 : i32
    %13 = vector.broadcast %c1_i32 : i32 to vector<4x2048xi32>
    %14 = arith.cmpi sge, %12, %13 : vector<4x2048xi32>
    %c7_i32 = arith.constant 7 : i32
    %15 = vector.broadcast %c7_i32 : i32 to vector<4x2048xi32>
    %16 = arith.cmpi slt, %12, %15 : vector<4x2048xi32>
    %c1_i32_6 = arith.constant 1 : i32
    %17 = vector.broadcast %c1_i32_6 : i32 to vector<4x2048xi32>
    %18 = arith.cmpi sge, %10, %17 : vector<4x2048xi32>
    %c1_i32_7 = arith.constant 1 : i32
    %19 = vector.broadcast %c1_i32_7 : i32 to vector<4x2048xi32>
    %20 = arith.cmpi sge, %6, %19 : vector<4x2048xi32>
    %21 = arith.andi %18, %20 : vector<4x2048xi1>
    %c1_i32_8 = arith.constant 1 : i32
    %22 = vector.broadcast %c1_i32_8 : i32 to vector<4x2048xi32>
    %23 = arith.cmpi sge, %10, %22 : vector<4x2048xi32>
    %c1_i32_9 = arith.constant 1 : i32
    %24 = vector.broadcast %c1_i32_9 : i32 to vector<4x2048xi32>
    %25 = arith.cmpi sge, %10, %24 : vector<4x2048xi32>
    %c15_i32_10 = arith.constant 15 : i32
    %26 = vector.broadcast %c15_i32_10 : i32 to vector<4x2048xi32>
    %27 = arith.cmpi slt, %6, %26 : vector<4x2048xi32>
    %28 = arith.andi %25, %27 : vector<4x2048xi1>
    %c1_i32_11 = arith.constant 1 : i32
    %29 = vector.broadcast %c1_i32_11 : i32 to vector<4x2048xi32>
    %30 = arith.cmpi sge, %6, %29 : vector<4x2048xi32>
    %c15_i32_12 = arith.constant 15 : i32
    %31 = vector.broadcast %c15_i32_12 : i32 to vector<4x2048xi32>
    %32 = arith.cmpi slt, %6, %31 : vector<4x2048xi32>
    %c15_i32_13 = arith.constant 15 : i32
    %33 = vector.broadcast %c15_i32_13 : i32 to vector<4x2048xi32>
    %34 = arith.cmpi slt, %10, %33 : vector<4x2048xi32>
    %c1_i32_14 = arith.constant 1 : i32
    %35 = vector.broadcast %c1_i32_14 : i32 to vector<4x2048xi32>
    %36 = arith.cmpi sge, %6, %35 : vector<4x2048xi32>
    %37 = arith.andi %34, %36 : vector<4x2048xi1>
    %c15_i32_15 = arith.constant 15 : i32
    %38 = vector.broadcast %c15_i32_15 : i32 to vector<4x2048xi32>
    %39 = arith.cmpi slt, %10, %38 : vector<4x2048xi32>
    %c15_i32_16 = arith.constant 15 : i32
    %40 = vector.broadcast %c15_i32_16 : i32 to vector<4x2048xi32>
    %41 = arith.cmpi slt, %10, %40 : vector<4x2048xi32>
    %c15_i32_17 = arith.constant 15 : i32
    %42 = vector.broadcast %c15_i32_17 : i32 to vector<4x2048xi32>
    %43 = arith.cmpi slt, %6, %42 : vector<4x2048xi32>
    %44 = arith.andi %41, %43 : vector<4x2048xi1>
    %c0_18 = arith.constant 0 : index
    %c1775 = arith.constant 1775 : index
    %45 = vector.load %arg5[%c0_18, %c1775] : memref<4x4096xf32, #tpu.memory_space<vmem>>, vector<4x2048xf32>
    %46 = arith.andi %14, %21 : vector<4x2048xi1>
    %cst = arith.constant 0.000000e+00 : f32
    %47 = vector.broadcast %cst : f32 to vector<4x2048xf32>
    %48 = arith.select %46, %45, %47 : vector<4x2048xi1>, vector<4x2048xf32>
    %c0_19 = arith.constant 0 : index
    %c0_20 = arith.constant 0 : index
    %49 = vector.load %arg6[%c0_19, %c0_20] : memref<128x2048xf32, #tpu.memory_space<vmem>>, vector<4x2048xf32>
    tpu.vector_store %arg6[%c0_19, %c0_20], %48 {strides = array<i32>} : memref<128x2048xf32, #tpu.memory_space<vmem>>, vector<4x2048xf32>,
    %c0_21 = arith.constant 0 : index
    %c1776 = arith.constant 1776 : index
    %50 = vector.load %arg5[%c0_21, %c1776] : memref<4x4096xf32, #tpu.memory_space<vmem>>, vector<4x2048xf32>
    %51 = arith.andi %14, %23 : vector<4x2048xi1>
    %cst_22 = arith.constant 0.000000e+00 : f32
    %52 = vector.broadcast %cst_22 : f32 to vector<4x2048xf32>
    %53 = arith.select %51, %50, %52 : vector<4x2048xi1>, vector<4x2048xf32>
    %c4 = arith.constant 4 : index
    %c0_23 = arith.constant 0 : index
    %54 = vector.load %arg6[%c4, %c0_23] : memref<128x2048xf32, #tpu.memory_space<vmem>>, vector<4x2048xf32>
    tpu.vector_store %arg6[%c4, %c0_23], %53 {strides = array<i32>} : memref<128x2048xf32, #tpu.memory_space<vmem>>, vector<4x2048xf32>,
    %c0_24 = arith.constant 0 : index
    %c1777 = arith.constant 1777 : index
    %55 = vector.load %arg5[%c0_24, %c1777] : memref<4x4096xf32, #tpu.memory_space<vmem>>, vector<4x2048xf32>
    %56 = arith.andi %14, %28 : vector<4x2048xi1>
    %cst_25 = arith.constant 0.000000e+00 : f32
    %57 = vector.broadcast %cst_25 : f32 to vector<4x2048xf32>
    %58 = arith.select %56, %55, %57 : vector<4x2048xi1>, vector<4x2048xf32>
    %c8 = arith.constant 8 : index
    %c0_26 = arith.constant 0 : index
    %59 = vector.load %arg6[%c8, %c0_26] : memref<128x2048xf32, #tpu.memory_space<vmem>>, vector<4x2048xf32>
    tpu.vector_store %arg6[%c8, %c0_26], %58 {strides = array<i32>} : memref<128x2048xf32, #tpu.memory_space<vmem>>, vector<4x2048xf32>,
    %c0_27 = arith.constant 0 : index
    %c1791 = arith.constant 1791 : index
    %60 = vector.load %arg5[%c0_27, %c1791] : memref<4x4096xf32, #tpu.memory_space<vmem>>, vector<4x2048xf32>
    %61 = arith.andi %14, %30 : vector<4x2048xi1>
    %cst_28 = arith.constant 0.000000e+00 : f32
    %62 = vector.broadcast %cst_28 : f32 to vector<4x2048xf32>
    %63 = arith.select %61, %60, %62 : vector<4x2048xi1>, vector<4x2048xf32>
    %c12 = arith.constant 12 : index
    %c0_29 = arith.constant 0 : index
    %64 = vector.load %arg6[%c12, %c0_29] : memref<128x2048xf32, #tpu.memory_space<vmem>>, vector<4x2048xf32>
    tpu.vector_store %arg6[%c12, %c0_29], %63 {strides = array<i32>} : memref<128x2048xf32, #tpu.memory_space<vmem>>, vector<4x2048xf32>,
    %c0_30 = arith.constant 0 : index
    %c1792 = arith.constant 1792 : index
    %65 = vector.load %arg5[%c0_30, %c1792] : memref<4x4096xf32, #tpu.memory_space<vmem>>, vector<4x2048xf32>
    %cst_31 = arith.constant 0.000000e+00 : f32
    %66 = vector.broadcast %cst_31 : f32 to vector<4x2048xf32>
    %67 = arith.select %14, %65, %66 : vector<4x2048xi1>, vector<4x2048xf32>
    %c16 = arith.constant 16 : index
    %c0_32 = arith.constant 0 : index
    %68 = vector.load %arg6[%c16, %c0_32] : memref<128x2048xf32, #tpu.memory_space<vmem>>, vector<4x2048xf32>
    tpu.vector_store %arg6[%c16, %c0_32], %67 {strides = array<i32>} : memref<128x2048xf32, #tpu.memory_space<vmem>>, vector<4x2048xf32>,
    %c0_33 = arith.constant 0 : index
    %c1793 = arith.constant 1793 : index
    %69 = vector.load %arg5[%c0_33, %c1793] : memref<4x4096xf32, #tpu.memory_space<vmem>>, vector<4x2048xf32>
    %70 = arith.andi %14, %32 : vector<4x2048xi1>
    %cst_34 = arith.constant 0.000000e+00 : f32
    %71 = vector.broadcast %cst_34 : f32 to vector<4x2048xf32>
    %72 = arith.select %70, %69, %71 : vector<4x2048xi1>, vector<4x2048xf32>
    %c20 = arith.constant 20 : index
    %c0_35 = arith.constant 0 : index
    %73 = vector.load %arg6[%c20, %c0_35] : memref<128x2048xf32, #tpu.memory_space<vmem>>, vector<4x2048xf32>
    tpu.vector_store %arg6[%c20, %c0_35], %72 {strides = array<i32>} : memref<128x2048xf32, #tpu.memory_space<vmem>>, vector<4x2048xf32>,
    %c0_36 = arith.constant 0 : index
    %c1807 = arith.constant 1807 : index
    %74 = vector.load %arg5[%c0_36, %c1807] : memref<4x4096xf32, #tpu.memory_space<vmem>>, vector<4x2048xf32>
    %75 = arith.andi %14, %37 : vector<4x2048xi1>
    %cst_37 = arith.constant 0.000000e+00 : f32
    %76 = vector.broadcast %cst_37 : f32 to vector<4x2048xf32>
    %77 = arith.select %75, %74, %76 : vector<4x2048xi1>, vector<4x2048xf32>
    %c24 = arith.constant 24 : index
    %c0_38 = arith.constant 0 : index
    %78 = vector.load %arg6[%c24, %c0_38] : memref<128x2048xf32, #tpu.memory_space<vmem>>, vector<4x2048xf32>
    tpu.vector_store %arg6[%c24, %c0_38], %77 {strides = array<i32>} : memref<128x2048xf32, #tpu.memory_space<vmem>>, vector<4x2048xf32>,
    %c0_39 = arith.constant 0 : index
    %c1808 = arith.constant 1808 : index
    %79 = vector.load %arg5[%c0_39, %c1808] : memref<4x4096xf32, #tpu.memory_space<vmem>>, vector<4x2048xf32>
    %80 = arith.andi %14, %39 : vector<4x2048xi1>
    %cst_40 = arith.constant 0.000000e+00 : f32
    %81 = vector.broadcast %cst_40 : f32 to vector<4x2048xf32>
    %82 = arith.select %80, %79, %81 : vector<4x2048xi1>, vector<4x2048xf32>
    %c28 = arith.constant 28 : index
    %c0_41 = arith.constant 0 : index
    %83 = vector.load %arg6[%c28, %c0_41] : memref<128x2048xf32, #tpu.memory_space<vmem>>, vector<4x2048xf32>
    tpu.vector_store %arg6[%c28, %c0_41], %82 {strides = array<i32>} : memref<128x2048xf32, #tpu.memory_space<vmem>>, vector<4x2048xf32>,
    %c0_42 = arith.constant 0 : index
    %c1809 = arith.constant 1809 : index
    %84 = vector.load %arg5[%c0_42, %c1809] : memref<4x4096xf32, #tpu.memory_space<vmem>>, vector<4x2048xf32>
    %85 = arith.andi %14, %44 : vector<4x2048xi1>
    %cst_43 = arith.constant 0.000000e+00 : f32
    %86 = vector.broadcast %cst_43 : f32 to vector<4x2048xf32>
    %87 = arith.select %85, %84, %86 : vector<4x2048xi1>, vector<4x2048xf32>
    %c32 = arith.constant 32 : index
    %c0_44 = arith.constant 0 : index
    %88 = vector.load %arg6[%c32, %c0_44] : memref<128x2048xf32, #tpu.memory_space<vmem>>, vector<4x2048xf32>
    tpu.vector_store %arg6[%c32, %c0_44], %87 {strides = array<i32>} : memref<128x2048xf32, #tpu.memory_space<vmem>>, vector<4x2048xf32>,
    %c0_45 = arith.constant 0 : index
    %c2031 = arith.constant 2031 : index
    %89 = vector.load %arg5[%c0_45, %c2031] : memref<4x4096xf32, #tpu.memory_space<vmem>>, vector<4x2048xf32>
    %cst_46 = arith.constant 0.000000e+00 : f32
    %90 = vector.broadcast %cst_46 : f32 to vector<4x2048xf32>
    %91 = arith.select %21, %89, %90 : vector<4x2048xi1>, vector<4x2048xf32>
    %c36 = arith.constant 36 : index
    %c0_47 = arith.constant 0 : index
    %92 = vector.load %arg6[%c36, %c0_47] : memref<128x2048xf32, #tpu.memory_space<vmem>>, vector<4x2048xf32>
    tpu.vector_store %arg6[%c36, %c0_47], %91 {strides = array<i32>} : memref<128x2048xf32, #tpu.memory_space<vmem>>, vector<4x2048xf32>,
    %c0_48 = arith.constant 0 : index
    %c2032 = arith.constant 2032 : index
    %93 = vector.load %arg5[%c0_48, %c2032] : memref<4x4096xf32, #tpu.memory_space<vmem>>, vector<4x2048xf32>
    %cst_49 = arith.constant 0.000000e+00 : f32
    %94 = vector.broadcast %cst_49 : f32 to vector<4x2048xf32>
    %95 = arith.select %23, %93, %94 : vector<4x2048xi1>, vector<4x2048xf32>
    %c40 = arith.constant 40 : index
    %c0_50 = arith.constant 0 : index
    %96 = vector.load %arg6[%c40, %c0_50] : memref<128x2048xf32, #tpu.memory_space<vmem>>, vector<4x2048xf32>
    tpu.vector_store %arg6[%c40, %c0_50], %95 {strides = array<i32>} : memref<128x2048xf32, #tpu.memory_space<vmem>>, vector<4x2048xf32>,
    %c0_51 = arith.constant 0 : index
    %c2033 = arith.constant 2033 : index
    %97 = vector.load %arg5[%c0_51, %c2033] : memref<4x4096xf32, #tpu.memory_space<vmem>>, vector<4x2048xf32>
    %cst_52 = arith.constant 0.000000e+00 : f32
    %98 = vector.broadcast %cst_52 : f32 to vector<4x2048xf32>
    %99 = arith.select %28, %97, %98 : vector<4x2048xi1>, vector<4x2048xf32>
    %c44 = arith.constant 44 : index
    %c0_53 = arith.constant 0 : index
    %100 = vector.load %arg6[%c44, %c0_53] : memref<128x2048xf32, #tpu.memory_space<vmem>>, vector<4x2048xf32>
    tpu.vector_store %arg6[%c44, %c0_53], %99 {strides = array<i32>} : memref<128x2048xf32, #tpu.memory_space<vmem>>, vector<4x2048xf32>,
    %c0_54 = arith.constant 0 : index
    %c2047 = arith.constant 2047 : index
    %101 = vector.load %arg5[%c0_54, %c2047] : memref<4x4096xf32, #tpu.memory_space<vmem>>, vector<4x2048xf32>
    %cst_55 = arith.constant 0.000000e+00 : f32
    %102 = vector.broadcast %cst_55 : f32 to vector<4x2048xf32>
    %103 = arith.select %30, %101, %102 : vector<4x2048xi1>, vector<4x2048xf32>
    %c48 = arith.constant 48 : index
    %c0_56 = arith.constant 0 : index
    %104 = vector.load %arg6[%c48, %c0_56] : memref<128x2048xf32, #tpu.memory_space<vmem>>, vector<4x2048xf32>
    tpu.vector_store %arg6[%c48, %c0_56], %103 {strides = array<i32>} : memref<128x2048xf32, #tpu.memory_space<vmem>>, vector<4x2048xf32>,
    %c52 = arith.constant 52 : index
    %c0_57 = arith.constant 0 : index
    %105 = vector.load %arg6[%c52, %c0_57] : memref<128x2048xf32, #tpu.memory_space<vmem>>, vector<4x2048xf32>
    tpu.vector_store %arg6[%c52, %c0_57], %1 {strides = array<i32>} : memref<128x2048xf32, #tpu.memory_space<vmem>>, vector<4x2048xf32>,
    %c0_58 = arith.constant 0 : index
    %c1 = arith.constant 1 : index
    %106 = vector.load %arg5[%c0_58, %c1] : memref<4x4096xf32, #tpu.memory_space<vmem>>, vector<4x2048xf32>
    %cst_59 = arith.constant 0.000000e+00 : f32
    %107 = vector.broadcast %cst_59 : f32 to vector<4x2048xf32>
    %108 = arith.select %32, %106, %107 : vector<4x2048xi1>, vector<4x2048xf32>
    %c56 = arith.constant 56 : index
    %c0_60 = arith.constant 0 : index
    %109 = vector.load %arg6[%c56, %c0_60] : memref<128x2048xf32, #tpu.memory_space<vmem>>, vector<4x2048xf32>
    tpu.vector_store %arg6[%c56, %c0_60], %108 {strides = array<i32>} : memref<128x2048xf32, #tpu.memory_space<vmem>>, vector<4x2048xf32>,
    %c0_61 = arith.constant 0 : index
    %c15 = arith.constant 15 : index
    %110 = vector.load %arg5[%c0_61, %c15] : memref<4x4096xf32, #tpu.memory_space<vmem>>, vector<4x2048xf32>
    %cst_62 = arith.constant 0.000000e+00 : f32
    %111 = vector.broadcast %cst_62 : f32 to vector<4x2048xf32>
    %112 = arith.select %37, %110, %111 : vector<4x2048xi1>, vector<4x2048xf32>
    %c60 = arith.constant 60 : index
    %c0_63 = arith.constant 0 : index
    %113 = vector.load %arg6[%c60, %c0_63] : memref<128x2048xf32, #tpu.memory_space<vmem>>, vector<4x2048xf32>
    tpu.vector_store %arg6[%c60, %c0_63], %112 {strides = array<i32>} : memref<128x2048xf32, #tpu.memory_space<vmem>>, vector<4x2048xf32>,
    %c0_64 = arith.constant 0 : index
    %c16_65 = arith.constant 16 : index
    %114 = vector.load %arg5[%c0_64, %c16_65] : memref<4x4096xf32, #tpu.memory_space<vmem>>, vector<4x2048xf32>
    %cst_66 = arith.constant 0.000000e+00 : f32
    %115 = vector.broadcast %cst_66 : f32 to vector<4x2048xf32>
    %116 = arith.select %39, %114, %115 : vector<4x2048xi1>, vector<4x2048xf32>
    %c64 = arith.constant 64 : index
    %c0_67 = arith.constant 0 : index
    %117 = vector.load %arg6[%c64, %c0_67] : memref<128x2048xf32, #tpu.memory_space<vmem>>, vector<4x2048xf32>
    tpu.vector_store %arg6[%c64, %c0_67], %116 {strides = array<i32>} : memref<128x2048xf32, #tpu.memory_space<vmem>>, vector<4x2048xf32>,
    %c0_68 = arith.constant 0 : index
    %c17 = arith.constant 17 : index
    %118 = vector.load %arg5[%c0_68, %c17] : memref<4x4096xf32, #tpu.memory_space<vmem>>, vector<4x2048xf32>
    %cst_69 = arith.constant 0.000000e+00 : f32
    %119 = vector.broadcast %cst_69 : f32 to vector<4x2048xf32>
    %120 = arith.select %44, %118, %119 : vector<4x2048xi1>, vector<4x2048xf32>
    %c68 = arith.constant 68 : index
    %c0_70 = arith.constant 0 : index
    %121 = vector.load %arg6[%c68, %c0_70] : memref<128x2048xf32, #tpu.memory_space<vmem>>, vector<4x2048xf32>
    tpu.vector_store %arg6[%c68, %c0_70], %120 {strides = array<i32>} : memref<128x2048xf32, #tpu.memory_space<vmem>>, vector<4x2048xf32>,
    %c0_71 = arith.constant 0 : index
    %c239 = arith.constant 239 : index
    %122 = vector.load %arg5[%c0_71, %c239] : memref<4x4096xf32, #tpu.memory_space<vmem>>, vector<4x2048xf32>
    %123 = arith.andi %16, %21 : vector<4x2048xi1>
    %cst_72 = arith.constant 0.000000e+00 : f32
    %124 = vector.broadcast %cst_72 : f32 to vector<4x2048xf32>
    %125 = arith.select %123, %122, %124 : vector<4x2048xi1>, vector<4x2048xf32>
    %c72 = arith.constant 72 : index
    %c0_73 = arith.constant 0 : index
    %126 = vector.load %arg6[%c72, %c0_73] : memref<128x2048xf32, #tpu.memory_space<vmem>>, vector<4x2048xf32>
    tpu.vector_store %arg6[%c72, %c0_73], %125 {strides = array<i32>} : memref<128x2048xf32, #tpu.memory_space<vmem>>, vector<4x2048xf32>,
    %c0_74 = arith.constant 0 : index
    %c240 = arith.constant 240 : index
    %127 = vector.load %arg5[%c0_74, %c240] : memref<4x4096xf32, #tpu.memory_space<vmem>>, vector<4x2048xf32>
    %128 = arith.andi %16, %23 : vector<4x2048xi1>
    %cst_75 = arith.constant 0.000000e+00 : f32
    %129 = vector.broadcast %cst_75 : f32 to vector<4x2048xf32>
    %130 = arith.select %128, %127, %129 : vector<4x2048xi1>, vector<4x2048xf32>
    %c76 = arith.constant 76 : index
    %c0_76 = arith.constant 0 : index
    %131 = vector.load %arg6[%c76, %c0_76] : memref<128x2048xf32, #tpu.memory_space<vmem>>, vector<4x2048xf32>
    tpu.vector_store %arg6[%c76, %c0_76], %130 {strides = array<i32>} : memref<128x2048xf32, #tpu.memory_space<vmem>>, vector<4x2048xf32>,
    %c0_77 = arith.constant 0 : index
    %c241 = arith.constant 241 : index
    %132 = vector.load %arg5[%c0_77, %c241] : memref<4x4096xf32, #tpu.memory_space<vmem>>, vector<4x2048xf32>
    %133 = arith.andi %16, %28 : vector<4x2048xi1>
    %cst_78 = arith.constant 0.000000e+00 : f32
    %134 = vector.broadcast %cst_78 : f32 to vector<4x2048xf32>
    %135 = arith.select %133, %132, %134 : vector<4x2048xi1>, vector<4x2048xf32>
    %c80 = arith.constant 80 : index
    %c0_79 = arith.constant 0 : index
    %136 = vector.load %arg6[%c80, %c0_79] : memref<128x2048xf32, #tpu.memory_space<vmem>>, vector<4x2048xf32>
    tpu.vector_store %arg6[%c80, %c0_79], %135 {strides = array<i32>} : memref<128x2048xf32, #tpu.memory_space<vmem>>, vector<4x2048xf32>,
    %c0_80 = arith.constant 0 : index
    %c255 = arith.constant 255 : index
    %137 = vector.load %arg5[%c0_80, %c255] : memref<4x4096xf32, #tpu.memory_space<vmem>>, vector<4x2048xf32>
    %138 = arith.andi %16, %30 : vector<4x2048xi1>
    %cst_81 = arith.constant 0.000000e+00 : f32
    %139 = vector.broadcast %cst_81 : f32 to vector<4x2048xf32>
    %140 = arith.select %138, %137, %139 : vector<4x2048xi1>, vector<4x2048xf32>
    %c84 = arith.constant 84 : index
    %c0_82 = arith.constant 0 : index
    %141 = vector.load %arg6[%c84, %c0_82] : memref<128x2048xf32, #tpu.memory_space<vmem>>, vector<4x2048xf32>
    tpu.vector_store %arg6[%c84, %c0_82], %140 {strides = array<i32>} : memref<128x2048xf32, #tpu.memory_space<vmem>>, vector<4x2048xf32>,
    %c0_83 = arith.constant 0 : index
    %c256 = arith.constant 256 : index
    %142 = vector.load %arg5[%c0_83, %c256] : memref<4x4096xf32, #tpu.memory_space<vmem>>, vector<4x2048xf32>
    %cst_84 = arith.constant 0.000000e+00 : f32
    %143 = vector.broadcast %cst_84 : f32 to vector<4x2048xf32>
    %144 = arith.select %16, %142, %143 : vector<4x2048xi1>, vector<4x2048xf32>
    %c88 = arith.constant 88 : index
    %c0_85 = arith.constant 0 : index
    %145 = vector.load %arg6[%c88, %c0_85] : memref<128x2048xf32, #tpu.memory_space<vmem>>, vector<4x2048xf32>
    tpu.vector_store %arg6[%c88, %c0_85], %144 {strides = array<i32>} : memref<128x2048xf32, #tpu.memory_space<vmem>>, vector<4x2048xf32>,
    %c0_86 = arith.constant 0 : index
    %c257 = arith.constant 257 : index
    %146 = vector.load %arg5[%c0_86, %c257] : memref<4x4096xf32, #tpu.memory_space<vmem>>, vector<4x2048xf32>
    %147 = arith.andi %16, %32 : vector<4x2048xi1>
    %cst_87 = arith.constant 0.000000e+00 : f32
    %148 = vector.broadcast %cst_87 : f32 to vector<4x2048xf32>
    %149 = arith.select %147, %146, %148 : vector<4x2048xi1>, vector<4x2048xf32>
    %c92 = arith.constant 92 : index
    %c0_88 = arith.constant 0 : index
    %150 = vector.load %arg6[%c92, %c0_88] : memref<128x2048xf32, #tpu.memory_space<vmem>>, vector<4x2048xf32>
    tpu.vector_store %arg6[%c92, %c0_88], %149 {strides = array<i32>} : memref<128x2048xf32, #tpu.memory_space<vmem>>, vector<4x2048xf32>,
    %c0_89 = arith.constant 0 : index
    %c271 = arith.constant 271 : index
    %151 = vector.load %arg5[%c0_89, %c271] : memref<4x4096xf32, #tpu.memory_space<vmem>>, vector<4x2048xf32>
    %152 = arith.andi %16, %37 : vector<4x2048xi1>
    %cst_90 = arith.constant 0.000000e+00 : f32
    %153 = vector.broadcast %cst_90 : f32 to vector<4x2048xf32>
    %154 = arith.select %152, %151, %153 : vector<4x2048xi1>, vector<4x2048xf32>
    %c96 = arith.constant 96 : index
    %c0_91 = arith.constant 0 : index
    %155 = vector.load %arg6[%c96, %c0_91] : memref<128x2048xf32, #tpu.memory_space<vmem>>, vector<4x2048xf32>
    tpu.vector_store %arg6[%c96, %c0_91], %154 {strides = array<i32>} : memref<128x2048xf32, #tpu.memory_space<vmem>>, vector<4x2048xf32>,
    %c0_92 = arith.constant 0 : index
    %c272 = arith.constant 272 : index
    %156 = vector.load %arg5[%c0_92, %c272] : memref<4x4096xf32, #tpu.memory_space<vmem>>, vector<4x2048xf32>
    %157 = arith.andi %16, %39 : vector<4x2048xi1>
    %cst_93 = arith.constant 0.000000e+00 : f32
    %158 = vector.broadcast %cst_93 : f32 to vector<4x2048xf32>
    %159 = arith.select %157, %156, %158 : vector<4x2048xi1>, vector<4x2048xf32>
    %c100 = arith.constant 100 : index
    %c0_94 = arith.constant 0 : index
    %160 = vector.load %arg6[%c100, %c0_94] : memref<128x2048xf32, #tpu.memory_space<vmem>>, vector<4x2048xf32>
    tpu.vector_store %arg6[%c100, %c0_94], %159 {strides = array<i32>} : memref<128x2048xf32, #tpu.memory_space<vmem>>, vector<4x2048xf32>,
    %c0_95 = arith.constant 0 : index
    %c273 = arith.constant 273 : index
    %161 = vector.load %arg5[%c0_95, %c273] : memref<4x4096xf32, #tpu.memory_space<vmem>>, vector<4x2048xf32>
    %162 = arith.andi %16, %44 : vector<4x2048xi1>
    %cst_96 = arith.constant 0.000000e+00 : f32
    %163 = vector.broadcast %cst_96 : f32 to vector<4x2048xf32>
    %164 = arith.select %162, %161, %163 : vector<4x2048xi1>, vector<4x2048xf32>
    %c104 = arith.constant 104 : index
    %c0_97 = arith.constant 0 : index
    %165 = vector.load %arg6[%c104, %c0_97] : memref<128x2048xf32, #tpu.memory_space<vmem>>, vector<4x2048xf32>
    tpu.vector_store %arg6[%c104, %c0_97], %164 {strides = array<i32>} : memref<128x2048xf32, #tpu.memory_space<vmem>>, vector<4x2048xf32>,
    %cst_98 = arith.constant 0.000000e+00 : f32
    %166 = vector.broadcast %cst_98 : f32 to vector<20x2048xf32>
    %c108 = arith.constant 108 : index
    %c0_99 = arith.constant 0 : index
    %167 = vector.load %arg6[%c108, %c0_99] : memref<128x2048xf32, #tpu.memory_space<vmem>>, vector<20x2048xf32>
    tpu.vector_store %arg6[%c108, %c0_99], %166 {strides = array<i32>} : memref<128x2048xf32, #tpu.memory_space<vmem>>, vector<20x2048xf32>,
    %c0_100 = arith.constant 0 : index
    %c0_101 = arith.constant 0 : index
    %168 = vector.load %arg2[%c0_100, %c0_101] : memref<8x128xf32, #tpu.memory_space<vmem>>, vector<8x128xf32>
    %c0_102 = arith.constant 0 : index
    %c0_103 = arith.constant 0 : index
    %169 = vector.load %arg6[%c0_102, %c0_103] : memref<128x2048xf32, #tpu.memory_space<vmem>>, vector<128x2048xf32>
    %cst_104 = arith.constant dense<0.000000e+00> : vector<8x2048xf32>
    %170 = tpu.matmul %168, %169, %cst_104 {dimension_numbers = #tpu.dot_dimension_numbers<[1], [0], [0], [1], [0, 0, 1, 1], [], []>} : vector<8x128xf32>, vector<128x2048xf32>, vector<8x2048xf32> -> vector<8x2048xf32>
    %c0_105 = arith.constant 0 : index
    %c0_106 = arith.constant 0 : index
    %171 = vector.load %arg3[%c0_105, %c0_106] : memref<8x1xf32, #tpu.memory_space<vmem>>, vector<8x1xf32>
    %172 = vector.broadcast %171 : vector<8x1xf32> to vector<8x2048xf32>
    %173 = arith.addf %170, %172 : vector<8x2048xf32>
    %c0_107 = arith.constant 0 : index
    %c0_108 = arith.constant 0 : index
    %c0_109 = arith.constant 0 : index
    %174 = vector.load %arg4[%c0_107, %c0_108, %c0_109] : memref<1x8x2048xf32, #tpu.memory_space<vmem>>, vector<1x8x2048xf32>
    %175 = vector.shape_cast %174 : vector<1x8x2048xf32> to vector<8x2048xf32>
    %176 = vector.shape_cast %173 : vector<8x2048xf32> to vector<1x8x2048xf32>
    tpu.vector_store %arg4[%c0_107, %c0_108, %c0_109], %176 {strides = array<i32>} : memref<1x8x2048xf32, #tpu.memory_space<vmem>>, vector<1x8x2048xf32>,
    return
  }
  func.func @transform_0(%arg0: i32) -> (i32, i32, i32) {
    %c0_i32 = arith.constant 0 : i32
    %c0_i32_0 = arith.constant 0 : i32
    %c0_i32_1 = arith.constant 0 : i32
    return %arg0, %c0_i32, %c0_i32_0 : i32, i32, i32
  }
  func.func @transform_1(%arg0: i32) -> (i32, i32) {
    %c0_i32 = arith.constant 0 : i32
    %c0_i32_0 = arith.constant 0 : i32
    %c0_i32_1 = arith.constant 0 : i32
    return %c0_i32, %c0_i32_0 : i32, i32
  }
  func.func @transform_2(%arg0: i32) -> (i32, i32) {
    %c0_i32 = arith.constant 0 : i32
    %c0_i32_0 = arith.constant 0 : i32
    %c0_i32_1 = arith.constant 0 : i32
    return %c0_i32, %c0_i32_0 : i32, i32
  }
  func.func @transform_3(%arg0: i32) -> (i32, i32, i32) {
    %c0_i32 = arith.constant 0 : i32
    %c0_i32_0 = arith.constant 0 : i32
    %c0_i32_1 = arith.constant 0 : i32
    return %arg0, %c0_i32, %c0_i32_0 : i32, i32, i32
  }
}

</mosaic_0001>

<bundles_post_ra>
// kernel: conv3d_pallas.1
= control target key start
LH: loop header
LB: loop body
LE: loop exit
PB: predicated region body
PF: predicated region fallthrough
CT: control target
= control target key end

     0   :  { %s5779_s12 = smov 0   ;;  %s10488_s0 = inlined_call_operand.vmem [shape: f32[2,4,2048], index: 0, kind: input, shape index: {}]   ;;  %s10489_s1 = inlined_call_operand.vmem [shape: f32[8,128], index: 1, kind: input, shape index: {}]   ;;  %s10490_s2 = inlined_call_operand.vmem [shape: f32[8,1], index: 2, kind: input, shape index: {}]   ;;  %s10491_s3 = inlined_call_operand.vmem [shape: f32[2,8,2048], index: 3, kind: output, shape index: {}]  }
   0x1 LB: > { %s5370_s13 = sadd.s32 4294967295, %s5746_s12   ;;  %p5374_p0 = scmp.ge.s32.totalorder %s5746_s12, 1  ;;  %s5746_s12 = sphi %s5779_s12, %s13_s12  }
   0x2   : > { %p137_p1 = scmp.lt.s32.totalorder %s5746_s12, 3 }
   0x4   : > { %p138_p2 = pnand %p5374_p0, %p137_p1 }
   0x6   : > { %141 = sbr.rel (%p138_p2) target bundleno = 1237 (0x4d5), region = 32 }
   0xd   : > { %p161_p3 = scmp.lt.s32.totalorder %s5370_s13, 1  ;;  %s5748_s18 = smov 17   ;;  %v195_v28 = vlaneseq  ;;  %v11066_v48 = vmov 0  ;;  %v11069_v51 = vmov 0  ;;  %v11071_v52 = vmov 0 }
   0xe   : > { %s5749_s19 = smov 16   ;;  %s5750_s20 = smov 15   ;;  %v11075_v55 = vmov 0  ;;  %v11079_v59 = vmov 0  ;;  %v11082_v61 = vmov 0  ;;  %v11084_v62 = vmov 0 }
   0xf   : > { %s12667_s13 = smov (!%p161_p3, %s5370_s13), 1  ;;  %v5975_v29 = vand.u32 127, %v195_v28  ;;  %s5751_s21 = smov 1  }
  0x10   : > { %s5381_s14 = sshll.u32 %s12667_s13, 6  ;;  %s5752_s22 = smov 127  }
  0x11   : > { %s165_s17 = scalar_lea.vmem %s10488_s0, %s5381_s14  ;;  %11057 = vst [vmem:[#allocation4_spill] sm:$0xff] %v5975_v29  ;;  %v5982_v30 = vadd.s32 256, %v5975_v29  ;;  %v5985_v31 = vadd.s32 384, %v5975_v29  ;;  %v5993_v34 = vadd.s32 512, %v5975_v29  ;;  %v5997_v36 = vadd.s32 640, %v5975_v29  ;;  %s5753_s23 = smov 113  }
  0x12   : > { %v5793_v0 = vld [vmem:[%s165_s17 + $0x30] sm:$0xff]  ;;  %v5795_v1 = vld [vmem:[%s165_s17 + $0x38] sm:$0xff]  ;;  %v5797_v2 = vld [vmem:[%s165_s17] sm:$0xff]  ;;  %v6010_v43 = vadd.s32 768, %v5975_v29  ;;  %v6017_v47 = vadd.s32 896, %v5975_v29  ;;  %v6045_v54 = vadd.s32 128, %v5975_v29 }
  0x13   : > { %185 = vst [vmem:[#allocation2 + $0x30] sm:$0xff] %v5793_v0  ;;  %186 = vst [vmem:[#allocation2 + $0x38] sm:$0xff] %v5795_v1  ;;  %v2426_v3 = vcombine.low %v5793_v0, %v5793_v0  ;;  %v2427_v4 = vcombine.low %v5795_v1, %v5795_v1  ;;  %v5812_v5 = vld [vmem:[%s165_s17 + $0x8] sm:$0xff]  ;;  %v5814_v6 = vld [vmem:[%s165_s17 + $0x10] sm:$0xff]  ;;  %v230_v33 = vshra.s32 %v5982_v30, 4  ;;  %v231_v35 = vshra.s32 %v5985_v31, 4 }
  0x14   : > { %193 = vst [vmem:[#allocation2 + $0x70] sm:$0xff] %v5793_v0  ;;  %194 = vst [vmem:[#allocation2 + $0x78] sm:$0xff] %v5795_v1  ;;  %v5816_v7 = vld [vmem:[%s165_s17 + $0x18] sm:$0xff]  ;;  %v5827_v8 = vld [vmem:[%s165_s17 + $0x20] sm:$0xff]  ;;  %v10513_v37 = vand.u32 15, %v5982_v30  ;;  %v10512_v38 = vand.u32 15, %v5985_v31 }
  0x15   : > { %2449 = vst [vmem:[#allocation3 + $0x368] sm:$0xf0] %v5793_v0  ;;  %2451 = vst [vmem:[#allocation3 + $0x378] sm:$0xf0] %v5795_v1  ;;  %v5829_v9 = vld [vmem:[%s165_s17 + $0x28] sm:$0xff]  ;;  %v10500_v39 = vshra.s32 %v5982_v30, 8 }
  0x16   : > { %187 = vst [vmem:[#allocation2 + $0x40] sm:$0xff] %v5797_v2  ;;  %179 = vst [vmem:[#allocation2] sm:$0xff] %v5797_v2  ;;  %v6005_v40 = vand.u32 15, %v230_v33  ;;  %v10496_v41 = vshra.s32 %v5985_v31, 8  ;;  %v232_v42 = vshra.s32 %v5993_v34, 4  ;;  %v6012_v44 = vand.u32 15, %v231_v35 }
  0x17   : > { %2437 = vst [vmem:[#allocation3 + $0x308] sm:$0xf0] %v5797_v2  ;;  %188 = vst [vmem:[#allocation2 + $0x48] sm:$0xff] %v5812_v5  ;;  %v10511_v45 = vand.u32 15, %v5993_v34  ;;  %v233_v46 = vshra.s32 %v5997_v36, 4  ;;  %vm6021_vm0 = vcmp.ge.s32.totalorder %v10513_v37, 1 }
  0x18   : > { %180 = vst [vmem:[#allocation2 + $0x8] sm:$0xff] %v5812_v5  ;;  %2439 = vst [vmem:[#allocation3 + $0x318] sm:$0xf0] %v5812_v5  ;;  %v11067_v48 = vsel %vm6021_vm0, 4294967295, %v11066_v48  ;;  %v10509_v49 = vand.u32 15, %v5997_v36  ;;  %v10495_v50 = vshra.s32 %v5993_v34, 8 }
  0x19   : > { %189 = vst [vmem:[#allocation2 + $0x50] sm:$0xff] %v5814_v6  ;;  %181 = vst [vmem:[#allocation2 + $0x10] sm:$0xff] %v5814_v6  ;;  %vm6033_vm1 = vcmp.ge.s32.totalorder %v10500_v39, 1  ;;  %vm6039_vm2 = vcmp.ge.s32.totalorder %v10512_v38, 1  ;;  %v10494_v53 = vshra.s32 %v5997_v36, 8  ;;  %vm6049_vm3 = vcmp.ge.s32.totalorder %v10496_v41, 1 }
  0x1a   : > { %2441 = vst [vmem:[#allocation3 + $0x328] sm:$0xf0] %v5814_v6  ;;  %190 = vst [vmem:[#allocation2 + $0x58] sm:$0xff] %v5816_v7  ;;  %v5837_v10 = vld [vmem:[#allocation2 + $0x34] sm:$0xff]  ;;  %v11070_v51 = vsel %vm6033_vm1, 4294967295, %v11069_v51  ;;  %v11072_v52 = vsel %vm6039_vm2, 4294967295, %v11071_v52 }
  0x1b   : > { %182 = vst [vmem:[#allocation2 + $0x18] sm:$0xff] %v5816_v7  ;;  %2443 = vst [vmem:[#allocation3 + $0x338] sm:$0xf0] %v5816_v7  ;;  %478 = vrot.lane.b32.xlu0 %v5837_v10, %s5748_s18  ;;  %v5873_v18 = vcombine.high %v5837_v10, %v5837_v10  ;;  %v444_v26 = vld [vmem:[#allocation2 + $0x74] sm:$0xf]  ;;  %v11076_v55 = vsel %vm6049_vm3, 4294967295, %v11075_v55 }
  0x1c   : > { %2448 = vst [vmem:[#allocation3 + $0x360] sm:$0xf0] %v2426_v3  ;;  %2450 = vst [vmem:[#allocation3 + $0x370] sm:$0xf0] %v2427_v4  ;;  %v585_v27 = vld [vmem:[#allocation2 + $0x74] sm:$0xf] }
  0x1d   : > { %191 = vst [vmem:[#allocation2 + $0x60] sm:$0xff] %v5827_v8  ;;  %183 = vst [vmem:[#allocation2 + $0x20] sm:$0xff] %v5827_v8  ;;  %v5839_v11 = vld [vmem:[#allocation2 + $0x3c] sm:$0xff]  ;;  %v774_v32 = vld [vmem:[#allocation2 + $0x74] sm:$0xf]  ;;  %vm10492_vm4 = vcmp.ge.s32.totalorder %v6005_v40, 1 }
  0x1e   : > { %2445 = vst [vmem:[#allocation3 + $0x348] sm:$0xf0] %v5827_v8  ;;  %192 = vst [vmem:[#allocation2 + $0x68] sm:$0xff] %v5829_v9  ;;  %482 = vrot.lane.b32.xlu1 %v5839_v11, %s5748_s18  ;;  %v5847_v12 = vcombine.high %v5839_v11, %v5839_v11  ;;  %v5849_v13 = vld [vmem:[#allocation2 + $0x44] sm:$0xff]  ;;  %v6054_v56 = vand.u32 15, %v232_v42  ;;  %v234_v57 = vshra.s32 %v6010_v43, 4 }
  0x1f   : > { %184 = vst [vmem:[#allocation2 + $0x28] sm:$0xff] %v5829_v9  ;;  %2447 = vst [vmem:[#allocation3 + $0x358] sm:$0xf0] %v5829_v9  ;;  %486 = vrot.lane.b32.xlu0 %v5849_v13, %s5748_s18  ;;  %v5855_v14 = vcombine.high %v5849_v13, %v5849_v13  ;;  %vm10493_vm5 = vcmp.ge.s32.totalorder %v6012_v44, 1  ;;  %v6058_v58 = vand.u32 15, %v233_v46  ;;  %vm6062_vm6 = vcmp.ge.s32.totalorder %v10511_v45, 1 }
  0x20   : > { %v5859_v15 = vld [vmem:[#allocation2 + $0x4c] sm:$0xff]  ;;  %11058 = vst [vmem:[#allocation5_spill] sm:$0xff] %v5982_v30  ;;  %11059 = vst [vmem:[#allocation6_spill] sm:$0xff] %v5985_v31  ;;  %v11080_v59 = vsel %vm6062_vm6, 4294967295, %v11079_v59  ;;  %v235_v60 = vshra.s32 %v6017_v47, 4  ;;  %vm6069_vm7 = vcmp.ge.s32.totalorder %v10495_v50, 1 }
  0x21   : > { %v5863_v16 = vcombine.high %v5859_v15, %v5859_v15  ;;  %v5869_v17 = vld [vmem:[#allocation2 + $0x54] sm:$0xff]  ;;  %11060 = vst [vmem:[#allocation7_spill] sm:$0xff] %v5993_v34  ;;  %11061 = vst [vmem:[#allocation8_spill] sm:$0xff] %v5997_v36  ;;  %v11083_v61 = vsel %vm6069_vm7, 4294967295, %v11082_v61  ;;  %vm6075_vm8 = vcmp.ge.s32.totalorder %v10509_v49, 1  ;;  %v10508_v63 = vand.u32 15, %v6010_v43 }
  0x22   : > { %484 = vrot.lane.b32.xlu1 %v5847_v12, %s5748_s18  ;;  %v5877_v19 = vcombine.high %v5869_v17, %v5869_v17  ;;  %11062 = vst [vmem:[#allocation9_spill] sm:$0xff] %v6005_v40  ;;  %11063 = vst [vmem:[#allocation10_spill] sm:$0xff] %v6010_v43  ;;  %v11085_v62 = vsel %vm6075_vm8, 4294967295, %v11084_v62  ;;  %v10501_v3 = vand.u32 15, %v6017_v47  ;;  %vm6087_vm10 = vcmp.ge.s32.totalorder %v10494_v53, 1  ;;  %s5754_s24 = smov 112  }
  0x23   : > { %490 = vrot.lane.b32.xlu0 %v5859_v15, %s5748_s18  ;;  %11064 = vst [vmem:[#allocation11_spill] sm:$0xff] %v6012_v44  ;;  %11065 = vst [vmem:[#allocation12_spill] sm:$0xff] %v6017_v47  ;;  %v11087_v4 = vmov 0  ;;  %vm10502_vm12 = vcmp.ge.s32.totalorder %v6054_v56, 1  ;;  %v6110_v28 = vand.u32 15, %v235_v60  ;;  %v6114_v33 = vadd.s32 1152, %v5975_v29 }
  0x24   : > { %v5883_v20 = vld [vmem:[#allocation2 + $0x5c] sm:$0xff]  ;;  %11068 = vst [vmem:[#allocation13_spill] sm:$0xff] %v11067_v48  ;;  %11073 = vst [vmem:[#allocation14_spill] sm:$0xff] %v11072_v52  ;;  %v11088_v4 = vsel %vm6087_vm10, 4294967295, %v11087_v4  ;;  %v11096_v35 = vmov 0  ;;  %vm6126_vm15 = vcmp.ge.s32.totalorder %v10508_v63, 1 }
  0x25   : > { %v5891_v21 = vcombine.high %v5883_v20, %v5883_v20  ;;  %v5893_v22 = vld [vmem:[#allocation2 + $0x64] sm:$0xff]  ;;  %v5903_v24 = vld [vmem:[#allocation2 + $0x6c] sm:$0xff]  ;;  %11074 = vst [vmem:[#allocation15_spill] sm:$0xff] %v6045_v54  ;;  %11077 = vst [vmem:[#allocation16_spill] sm:$0xff] %v6054_v56  ;;  %v11099_v42 = vmov 0  ;;  %v11102_v46 = vmov 0 }
  0x26   : > { %488 = vrot.lane.b32.xlu1 %v5855_v14, %s5748_s18  ;;  %v5901_v23 = vcombine.high %v5893_v22, %v5893_v22  ;;  %v5911_v25 = vcombine.high %v5903_v24, %v5903_v24  ;;  %11078 = vst [vmem:[#allocation17_spill] sm:$0xff] %v6058_v58  ;;  %11081 = vst [vmem:[#allocation18_spill] sm:$0xff] %v11080_v59  ;;  %v11100_v42 = vsel %vm6126_vm15, 4294967295, %v11099_v42  ;;  %v10517_v60 = vshra.s32 %v5975_v29, 8  ;;  %s5755_s25 = smov 111   ;;  %s5382_s5 = sshll.u32 %s12667_s13, 7 }
  0x27   : > { %494 = vrot.lane.b32.xlu0 %v5869_v17, %s5748_s18  ;;  %11086 = vst [vmem:[#allocation19_spill] sm:$0xff] %v11085_v62  ;;  %vm6098_vm11 = vmand %vm10492_vm4, %vm6021_vm0  ;;  %vm6132_vm4 = vcmp.ge.s32.totalorder %v10501_v3, 1  ;;  %v11105_v53 = vmov 0  ;;  %v237_v49 = vshra.s32 %v6114_v33, 4  ;;  %v11120_v45 = vmov 0  ;;  %s10461_s8 = scalar_lea.vmem %s10491_s3, %s5382_s5 }
  0x28   : > { %11094 = vst [vmem:[#allocation23_spill] sm:$0xff] %v6110_v28  ;;  %11095 = vst [vmem:[#allocation24_spill] sm:$0xff] %v6114_v33  ;;  %v11103_v46 = vsel %vm6132_vm4, 4294967295, %v11102_v46  ;;  %v11123_v38 = vmov 0  ;;  %v11125_v37 = vmov 0  ;;  %v6244_v63 = vadd.s32 1408, %v5975_v29 }
  0x29   : > { %vm6120_vm14 = vmand %vm10493_vm5, %vm6039_vm2  ;;  %11101 = vst [vmem:[#allocation26_spill] sm:$0xff] %v11100_v42  ;;  %vm11119_vm2 = vcmp.ge.s32.totalorder %v6058_v58, 1  ;;  %v6259_v59 = vand.u32 15, %v237_v49  ;;  %v11149_v36 = vmov 0  ;;  %v11152_v52 = vshra.s32 %v6114_v33, 8 }
  0x2a   : > { %492 = vrot.lane.b32.xlu1 %v5863_v16, %s5748_s18  ;;  %v11097_v35 = vsel %vm6120_vm14, 4294967295, %v11096_v35  ;;  %11104 = vst [vmem:[#allocation27_spill] sm:$0xff] %v11103_v46  ;;  %vm6161_vm13 = vmand %vm10502_vm12, %vm6062_vm6  ;;  %vm6203_vm12 = vcmp.ge.s32.totalorder %v10517_v60, 1  ;;  %v11128_v60 = vmov 0  ;;  %v11153_v48 = vmov 0 }
  0x2b   : > { %480 = vrot.lane.b32.xlu0 %v5873_v18, %s5748_s18  ;;  %11098 = vst [vmem:[#allocation25_spill] sm:$0xff] %v11097_v35  ;;  %v11124_v38 = vsel %vm6203_vm12, 4294967295, %v11123_v38  ;;  %11135 = vst [vmem:[#allocation38_spill] sm:$0xff] %v6244_v63  ;;  %v6359_v31 = vadd.s32 1792, %v5975_v29 }
  0x2c   : > { %11141 = vst [vmem:[#allocation41_spill] sm:$0xff] %v6259_v59 }
  0x2d   : > { %11184 = vst [vmem:[#allocation50_spill] sm:$0xff] %v6359_v31  ;;  %v242_v30 = vshra.s32 %v6359_v31, 4 }
  0x2e   : > { %496 = vrot.lane.b32.xlu1 %v5877_v19, %s5748_s18 }
  0x2f   : > { %498 = vrot.lane.b32.xlu0 %v5883_v20, %s5748_s18 }
  0x32   : > { %500 = vrot.lane.b32.xlu1 %v5891_v21, %s5748_s18 }
  0x33   : > { %502 = vrot.lane.b32.xlu0 %v5893_v22, %s5748_s18 }
  0x36   : > { %504 = vrot.lane.b32.xlu1 %v5901_v23, %s5748_s18 }
  0x37   : > { %506 = vrot.lane.b32.xlu0 %v5903_v24, %s5748_s18 }
  0x3a   : > { %508 = vrot.lane.b32.xlu1 %v5911_v25, %s5748_s18 }
  0x3b   : > { %510 = vrot.lane.b32.xlu0 %v444_v26, %s5748_s18  ;;  %v10507_v26 = vshra.s32 %v6017_v47, 8 }
  0x3d   : > { %vm6167_vm5 = vcmp.ge.s32.totalorder %v10507_v26, 1  ;;  %v11116_v26 = vmov 0 }
  0x3e   : > { %619 = vrot.lane.b32.xlu1 %v5837_v10, %s5749_s19 }
  0x3f   : > { %621 = vrot.lane.b32.xlu0 %v5873_v18, %s5749_s19 }
  0x42   : > { %623 = vrot.lane.b32.xlu1 %v5839_v11, %s5749_s19 }
  0x43   : > { %625 = vrot.lane.b32.xlu0 %v5847_v12, %s5749_s19 }
  0x46   : > { %627 = vrot.lane.b32.xlu1 %v5849_v13, %s5749_s19 }
  0x47   : > { %629 = vrot.lane.b32.xlu0 %v5855_v14, %s5749_s19 }
  0x4a   : > { %631 = vrot.lane.b32.xlu1 %v5859_v15, %s5749_s19 }
  0x4b   : > { %633 = vrot.lane.b32.xlu0 %v5863_v16, %s5749_s19 }
  0x4e   : > { %635 = vrot.lane.b32.xlu1 %v5869_v17, %s5749_s19 }
  0x4f   : > { %637 = vrot.lane.b32.xlu0 %v5877_v19, %s5749_s19 }
  0x52   : > { %639 = vrot.lane.b32.xlu1 %v5883_v20, %s5749_s19 }
  0x53   : > { %641 = vrot.lane.b32.xlu0 %v5891_v21, %s5749_s19 }
  0x56   : > { %643 = vrot.lane.b32.xlu1 %v5893_v22, %s5749_s19 }
  0x57   : > { %645 = vrot.lane.b32.xlu0 %v5901_v23, %s5749_s19 }
  0x5a   : > { %647 = vrot.lane.b32.xlu1 %v5903_v24, %s5749_s19 }
  0x5b   : > { %649 = vrot.lane.b32.xlu0 %v5911_v25, %s5749_s19 }
  0x5e   : > { %651 = vrot.lane.b32.xlu1 %v585_v27, %s5749_s19  ;;  %v6107_v27 = vadd.s32 1024, %v5975_v29 }
  0x5f   : > { %808 = vrot.lane.b32.xlu0 %v5837_v10, %s5750_s20 }
  0x60   : > { %11093 = vst [vmem:[#allocation22_spill] sm:$0xff] %v6107_v27  ;;  %v11137_v42 = vshra.s32 %v6107_v27, 8  ;;  %v11148_v49 = vand.u32 15, %v6107_v27 }
  0x62   : > { %810 = vrot.lane.b32.xlu1 %v5873_v18, %s5750_s20 }
  0x63   : > { %812 = vrot.lane.b32.xlu0 %v5839_v11, %s5750_s20 }
  0x66   : > { %814 = vrot.lane.b32.xlu1 %v5847_v12, %s5750_s20 }
  0x67   : > { %816 = vrot.lane.b32.xlu0 %v5849_v13, %s5750_s20 }
  0x6a   : > { %818 = vrot.lane.b32.xlu1 %v5855_v14, %s5750_s20 }
  0x6b   : > { %820 = vrot.lane.b32.xlu0 %v5859_v15, %s5750_s20 }
  0x6e   : > { %822 = vrot.lane.b32.xlu1 %v5863_v16, %s5750_s20 }
  0x6f   : > { %824 = vrot.lane.b32.xlu0 %v5869_v17, %s5750_s20 }
  0x72   : > { %826 = vrot.lane.b32.xlu1 %v5877_v19, %s5750_s20 }
  0x73   : > { %828 = vrot.lane.b32.xlu0 %v5883_v20, %s5750_s20 }
  0x76   : > { %830 = vrot.lane.b32.xlu1 %v5891_v21, %s5750_s20 }
  0x77   : > { %832 = vrot.lane.b32.xlu0 %v5893_v22, %s5750_s20 }
  0x7a   : > { %834 = vrot.lane.b32.xlu1 %v5901_v23, %s5750_s20 }
  0x7b   : > { %836 = vrot.lane.b32.xlu0 %v5903_v24, %s5750_s20 }
  0x7e   : > { %838 = vrot.lane.b32.xlu1 %v5911_v25, %s5750_s20 }
  0x7f   : > { %840 = vrot.lane.b32.xlu0 %v774_v32, %s5750_s20  ;;  %v10514_v32 = vand.u32 15, %v5975_v29 }
  0x81   : > { %vm6187_vm0 = vcmp.ge.s32.totalorder %v10514_v32, 1  ;;  %v6247_v32 = vadd.s32 1536, %v5975_v29 }
  0x82   : > { %949 = vrot.lane.b32.xlu1 %v5837_v10, %s5751_s21  ;;  %v10497_v10 = vshra.s32 %v6010_v43, 8  ;;  %v11117_v26 = vsel %vm6187_vm0, 4294967295, %v11116_v26 }
  0x83   : > { %951 = vrot.lane.b32.xlu0 %v5873_v18, %s5751_s21  ;;  %v229_v18 = vshra.s32 %v6045_v54, 4  ;;  %11118 = vst [vmem:[#allocation33_spill] sm:$0xff] %v11117_v26  ;;  %11136 = vst [vmem:[#allocation39_spill] sm:$0xff] %v6247_v32  ;;  %v240_v35 = vshra.s32 %v6247_v32, 4 }
  0x84   : > { %vm6148_vm9 = vcmp.ge.s32.totalorder %v10497_v10, 1  ;;  %v11112_v10 = vmov 0 }
  0x85   : > { %v11106_v53 = vsel %vm6148_vm9, 4294967295, %v11105_v53  ;;  %v6154_v41 = vand.u32 15, %v229_v18  ;;  %v11113_v10 = vsel %vm6167_vm5, 4294967295, %v11112_v10  ;;  %v6174_v18 = vadd.s32 1280, %v5975_v29  ;;  %vm6197_vm5 = vmand %vm11119_vm2, %vm6075_vm8 }
  0x86   : > { %953 = vrot.lane.b32.xlu1 %v5839_v11, %s5751_s21  ;;  %v228_v11 = vshra.s32 %v5975_v29, 4  ;;  %11114 = vst [vmem:[#allocation31_spill] sm:$0xff] %v11113_v10  ;;  %v11121_v45 = vsel %vm6197_vm5, 4294967295, %v11120_v45  ;;  %vm6255_vm2 = vcmp.ge.s32.totalorder %v11137_v42, 1  ;;  %v11145_v42 = vmov 0 }
  0x87   : > { %955 = vrot.lane.b32.xlu0 %v5847_v12, %s5751_s21  ;;  %v11089_v12 = vmov 0  ;;  %11108 = vst [vmem:[#allocation29_spill] sm:$0xff] %v6154_v41  ;;  %11115 = vst [vmem:[#allocation32_spill] sm:$0xff] %v6174_v18 }
  0x88   : > { %v11090_v12 = vsel %vm6098_vm11, 4294967295, %v11089_v12  ;;  %v6152_v50 = vand.u32 15, %v228_v11  ;;  %v236_v11 = vshra.s32 %v6107_v27, 4  ;;  %11122 = vst [vmem:[#allocation34_spill] sm:$0xff] %v11121_v45 }
  0x89   : > { %11091 = vst [vmem:[#allocation20_spill] sm:$0xff] %v11090_v12  ;;  %v6327_v12 = vadd.s32 1664, %v5975_v29 }
  0x8a   : > { %957 = vrot.lane.b32.xlu1 %v5849_v13, %s5751_s21  ;;  %v6103_v13 = vand.u32 15, %v234_v57  ;;  %v10522_v57 = vand.u32 15, %v6045_v54  ;;  %11107 = vst [vmem:[#allocation28_spill] sm:$0xff] %v6152_v50 }
  0x8b   : > { %959 = vrot.lane.b32.xlu0 %v5855_v14, %s5751_s21  ;;  %v10523_v14 = vshra.s32 %v6045_v54, 8  ;;  %11168 = vst [vmem:[#allocation47_spill] sm:$0xff] %v6327_v12 }
  0x8c   : > { %11092 = vst [vmem:[#allocation21_spill] sm:$0xff] %v6103_v13  ;;  %vm6209_vm6 = vcmp.ge.s32.totalorder %v10522_v57, 1  ;;  %vm11130_vm0 = vcmp.ge.s32.totalorder %v6103_v13, 1  ;;  %v6240_v57 = vand.u32 15, %v236_v11  ;;  %v11138_v11 = vmov 0 }
  0x8d   : > { %v6176_v39 = vpop.permute.xlu0 %478  ;;  %v11126_v37 = vsel %vm6209_vm6, 4294967295, %v11125_v37  ;;  %vm6225_vm8 = vcmp.ge.s32.totalorder %v10523_v14, 1  ;;  %vm6236_vm9 = vmand %vm11130_vm0, %vm6126_vm15  ;;  %v238_v14 = vshra.s32 %v6174_v18, 4  ;;  %v11139_v11 = vsel %vm6255_vm2, 4294967295, %v11138_v11 }
  0x8e   : > { %961 = vrot.lane.b32.xlu1 %v5859_v15, %s5751_s21  ;;  %v11109_v15 = vmov 0  ;;  %11127 = vst [vmem:[#allocation35_spill] sm:$0xff] %v11126_v37  ;;  %v11129_v60 = vsel %vm6225_vm8, 4294967295, %v11128_v60  ;;  %11134 = vst [vmem:[#allocation37_spill] sm:$0xff] %v6240_v57  ;;  %vm11142_vm6 = vcmask 138240   ;;  %vm11144_vm0 = vcmp.ge.s32.totalorder %v6110_v28, 1 }
  0x8f   : > { %v11110_v15 = vsel %vm6161_vm13, 4294967295, %v11109_v15  ;;  %963 = vrot.lane.b32.xlu0 %v5863_v16, %s5751_s21  ;;  %11140 = vst [vmem:[#allocation40_spill] sm:$0xff] %v11139_v11  ;;  %vm11143_vm12 = vmmov %vm11142_vm6  ;;  %vm6276_vm2 = vcmp.ge.s32.totalorder %v11148_v49, 1  ;;  %vm6282_vm8 = vcmp.ge.s32.totalorder %v11152_v52, 1  ;;  %v11158_v52 = vand.u32 15, %v6114_v33 }
  0x90   : > { %11111 = vst [vmem:[#allocation30_spill] sm:$0xff] %v11110_v15  ;;  %v6178_v3 = vpop.permute.xlu1 %482  ;;  %vm6270_vm15 = vmand %vm11144_vm0, %vm6132_vm4  ;;  %v11150_v36 = vsel %vm6276_vm2, 4294967295, %v11149_v36  ;;  %v11154_v48 = vsel %vm6282_vm8, 4294967295, %v11153_v48  ;;  %vm11157_vm0 = vnez %v11106_v53  ;;  %vm11169_vm4 = vnez %v11126_v37 }
  0x91   : > { %v487_v62 = vpop.permute.xlu0 %486  ;;  %v11146_v42 = vsel %vm6270_vm15, 4294967295, %v11145_v42  ;;  %11151 = vst [vmem:[#allocation43_spill] sm:$0xff] %v11150_v36  ;;  %v11177_v33 = vand.u32 15, %v6174_v18  ;;  %v11178_v37 = vmov 0 }
  0x92   : > { %965 = vrot.lane.b32.xlu1 %v5869_v17, %s5751_s21  ;;  %v11131_v17 = vmov 0  ;;  %11147 = vst [vmem:[#allocation42_spill] sm:$0xff] %v11146_v42  ;;  %v11213_v42 = vmov 0 }
  0x93   : > { %v11132_v17 = vsel %vm6236_vm9, 4294967295, %v11131_v17  ;;  %967 = vrot.lane.b32.xlu0 %v5877_v19, %s5751_s21  ;;  %v11164_v19 = vmov 0  ;;  %vm6347_vm9 = vcmp.ge.s32.totalorder %v11177_v33, 1 }
  0x94   : > { %11133 = vst [vmem:[#allocation36_spill] sm:$0xff] %v11132_v17  ;;  %v485_v16 = vpop.permute.xlu1 %484  ;;  %v11179_v37 = vsel %vm6347_vm9, 4294967295, %v11178_v37 }
  0x95   : > { %v515_v47 = vsel %vm11142_vm6, %v6178_v3, %v485_v16  ;;  %v516_v43 = vsel %vm11143_vm12, %v485_v16, %v487_v62  ;;  %vm11155_vm6 = vmand %vm6033_vm1, %vm6098_vm11  ;;  %v491_v46 = vpop.permute.xlu0 %490  ;;  %11180 = vst [vmem:[#allocation49_spill] sm:$0xff] %v11179_v37 }
  0x96   : > { %v547_v16 = vsel %vm11155_vm6, %v515_v47, 0.0  ;;  %vm11156_vm12 = vmand %vm6049_vm3, %vm6120_vm14  ;;  %969 = vrot.lane.b32.xlu1 %v5883_v20, %s5751_s21  ;;  %vm6306_vm6 = vcmp.ge.s32.totalorder %v11158_v52, 1  ;;  %v11159_v47 = vmov 0  ;;  %vm11163_vm14 = vcmp.ge.s32.totalorder %v6152_v50, 1 }
  0x97   : > { %v548_v49 = vsel %vm11156_vm12, %v516_v43, 0.0  ;;  %v11160_v47 = vsel %vm6306_vm6, 4294967295, %v11159_v47  ;;  %v6312_v43 = vcombine.high %v5795_v1, %v5795_v1  ;;  %563 = vst [vmem:[#allocation3 + $0x10] sm:$0xf] %v547_v16  ;;  %vm11162_vm12 = vnez %v11117_v26  ;;  %971 = vrot.lane.b32.xlu0 %v5891_v21, %s5751_s21 }
  0x98   : > { %11161 = vst [vmem:[#allocation44_spill] sm:$0xff] %v11160_v47  ;;  %564 = vst [vmem:[#allocation3 + $0x18] sm:$0xf] %v548_v49  ;;  %v6322_v20 = vand.u32 15, %v238_v14  ;;  %v239_v52 = vshra.s32 %v6244_v63, 4  ;;  %v489_v16 = vpop.permute.xlu1 %488  ;;  %vm11170_vm3 = vcmp.ge.s32.totalorder %v6154_v41, 1 }
  0x99   : > { %vm6318_vm11 = vmand %vm11163_vm14, %vm11162_vm12  ;;  %v11171_v49 = vmov 0  ;;  %v11174_v14 = vshra.s32 %v6174_v18, 8  ;;  %v11175_v26 = vmov 0  ;;  %vm11183_vm12 = vnez %v11113_v10  ;;  %v495_v45 = vpop.permute.xlu0 %494 }
  0x9a   : > { %v11165_v19 = vsel %vm6318_vm11, 4294967295, %v11164_v19  ;;  %11167 = vst [vmem:[#allocation46_spill] sm:$0xff] %v6322_v20  ;;  %vm6333_vm1 = vmand %vm11170_vm3, %vm11169_vm4  ;;  %vm11181_vm3 = vcmask 138240   ;;  %973 = vrot.lane.b32.xlu1 %v5893_v22, %s5751_s21  ;;  %v6386_v21 = vand.u32 15, %v239_v52  ;;  %v6388_v22 = vand.u32 15, %v240_v35 }
  0x9b   : > { %11166 = vst [vmem:[#allocation45_spill] sm:$0xff] %v11165_v19  ;;  %v11172_v49 = vsel %vm6333_vm1, 4294967295, %v11171_v49  ;;  %vm6341_vm8 = vcmp.ge.s32.totalorder %v11174_v14, 1  ;;  %v517_v27 = vsel %vm11181_vm3, %v487_v62, %v489_v16  ;;  %vm11182_vm4 = vmmov %vm11181_vm3  ;;  %vm11187_vm3 = vnez %v11124_v38  ;;  %v1096_v14 = vld [vmem:[#allocation2 + $0x38] sm:$0xff]  ;;  %975 = vrot.lane.b32.xlu0 %v5901_v23, %s5751_s21 }
  0x9c   : > { %11173 = vst [vmem:[#allocation48_spill] sm:$0xff] %v11172_v49  ;;  %v11176_v26 = vsel %vm6341_vm8, 4294967295, %v11175_v26  ;;  %v518_v34 = vsel %vm11182_vm4, %v489_v16, %v491_v46  ;;  %vm11185_vm8 = vmand %vm6069_vm7, %vm6161_vm13  ;;  %v493_v16 = vpop.permute.xlu1 %492  ;;  %vm11191_vm14 = vcmp.ge.s32.totalorder %v6240_v57, 1  ;;  %v6402_v35 = vadd.s32 1920, %v5975_v29 }
  0x9d   : > { %v549_v33 = vsel %vm11185_vm8, %v517_v27, 0.0  ;;  %vm11186_vm4 = vmand %vm6087_vm10, %vm6197_vm5  ;;  %vm11188_vm8 = vnez %v11129_v60  ;;  %11189 = vst [vmem:[#allocation51_spill] sm:$0xff] %v6386_v21  ;;  %v1128_v27 = vsel %vm11187_vm3, %v1096_v14, 0.0  ;;  %v11199_v18 = vmov 0 }
  0x9e   : > { %v550_v62 = vsel %vm11186_vm4, %v518_v34, 0.0  ;;  %565 = vst [vmem:[#allocation3 + $0x20] sm:$0xf] %v549_v33  ;;  %11190 = vst [vmem:[#allocation52_spill] sm:$0xff] %v6388_v22  ;;  %v241_v34 = vshra.s32 %v6327_v12, 4  ;;  %v11192_v33 = vmov 0  ;;  %977 = vrot.lane.b32.xlu1 %v5903_v24, %s5751_s21 }
  0x9f   : > { %566 = vst [vmem:[#allocation3 + $0x28] sm:$0xf] %v550_v62  ;;  %vm6395_vm13 = vmand %vm11191_vm14, %vm6276_vm2  ;;  %vm11196_vm4 = vcmask 138240   ;;  %vm11198_vm14 = vcmp.ge.s32.totalorder %v6259_v59, 1  ;;  %v11202_v52 = vshra.s32 %v6244_v63, 8  ;;  %v11203_v62 = vmov 0  ;;  %979 = vrot.lane.b32.xlu0 %v5911_v25, %s5751_s21 }
  0xa0   : > { %v11193_v33 = vsel %vm6395_vm13, 4294967295, %v11192_v33  ;;  %11195 = vst [vmem:[#allocation54_spill] sm:$0xff] %v6402_v35  ;;  %v519_v15 = vsel %vm11196_vm4, %v491_v46, %v493_v16  ;;  %vm11197_vm5 = vmmov %vm11196_vm4  ;;  %v11217_v23 = vand.u32 15, %v6247_v32  ;;  %v11218_v24 = vmov 0 }
  0xa1   : > { %11194 = vst [vmem:[#allocation53_spill] sm:$0xff] %v11193_v33  ;;  %v520_v36 = vsel %vm11197_vm5, %v493_v16, %v495_v45  ;;  %vm6412_vm2 = vmand %vm11198_vm14, %vm6306_vm6  ;;  %vm6418_vm10 = vcmp.ge.s32.totalorder %v11202_v52, 1  ;;  %vm11205_vm5 = vnez %v11132_v17  ;;  %v915_v52 = vld [vmem:[#allocation2 + $0x74] sm:$0xf]  ;;  %vm11208_vm6 = vcmp.ge.s32.totalorder %v6322_v20, 1 }
  0xa2   : > { %v11200_v18 = vsel %vm6412_vm2, 4294967295, %v11199_v18  ;;  %v11204_v62 = vsel %vm6418_vm10, 4294967295, %v11203_v62  ;;  %1144 = vst [vmem:[#allocation3 + $0x100] sm:$0xf] %v1128_v27  ;;  %vm11206_vm4 = vmand %vm11157_vm0, %vm11205_vm5  ;;  %v11209_v27 = vmov 0  ;;  %v243_v37 = vshra.s32 %v6402_v35, 4  ;;  %981 = vrot.lane.b32.xlu1 %v915_v52, %s5751_s21 }
  0xa3   : > { %11201 = vst [vmem:[#allocation55_spill] sm:$0xff] %v11200_v18  ;;  %v551_v46 = vsel %vm11206_vm4, %v519_v15, 0.0  ;;  %vm11207_vm14 = vmand %vm11183_vm12, %vm6270_vm15  ;;  %v11212_v15 = vand.u32 15, %v6244_v63  ;;  %vm11222_vm12 = vnez %v11154_v48  ;;  %vm11224_vm5 = vcmask 138240   ;;  %1202 = vrot.lane.b32.xlu0 %v5795_v1, %s5752_s22 }
  0xa4   : > { %v552_v16 = vsel %vm11207_vm14, %v520_v36, 0.0  ;;  %vm6441_vm7 = vmand %vm11208_vm6, %vm6347_vm9  ;;  %v1112_v36 = vcombine.high %v1096_v14, %v1096_v14  ;;  %567 = vst [vmem:[#allocation3 + $0x30] sm:$0xf] %v551_v46  ;;  %vm11216_vm14 = vnez %v11139_v11  ;;  %vm6459_vm9 = vcmp.ge.s32.totalorder %v11217_v23, 1  ;;  %v1097_v14 = vld [vmem:[#allocation2 + $0x40] sm:$0xff]  ;;  %v481_v46 = vpop.permute.xlu0 %480 }
  0xa5   : > { %v11210_v27 = vsel %vm6441_vm7, 4294967295, %v11209_v27  ;;  %vm6447_vm4 = vcmp.ge.s32.totalorder %v11212_v15, 1  ;;  %568 = vst [vmem:[#allocation3 + $0x38] sm:$0xf] %v552_v16  ;;  %v11219_v24 = vsel %vm6459_vm9, 4294967295, %v11218_v24  ;;  %v6463_v15 = vand.u32 15, %v241_v34  ;;  %v497_v16 = vpop.permute.xlu1 %496  ;;  %vm11225_vm0 = vmmov %vm11224_vm5 }
  0xa6   : > { %11211 = vst [vmem:[#allocation56_spill] sm:$0xff] %v11210_v27  ;;  %v11214_v42 = vsel %vm6447_vm4, 4294967295, %v11213_v42  ;;  %11220 = vst [vmem:[#allocation58_spill] sm:$0xff] %v11219_v24  ;;  %v1129_v23 = vsel %vm11188_vm8, %v1112_v36, 0.0  ;;  %vm11223_vm6 = vnez %v11070_v51  ;;  %v513_v34 = vsel %vm11224_vm5, %v6176_v39, %v481_v46  ;;  %1204 = vrot.lane.b32.xlu1 %v6312_v43, %s5752_s22 }
  0xa7   : > { %11215 = vst [vmem:[#allocation57_spill] sm:$0xff] %v11214_v42  ;;  %11221 = vst [vmem:[#allocation59_spill] sm:$0xff] %v6463_v15  ;;  %v1130_v47 = vsel %vm11223_vm6, %v1097_v14, 0.0  ;;  %v514_v63 = vsel %vm11225_vm0, %v481_v46, %v6178_v3  ;;  %vm11227_vm15 = vnez %v11176_v26  ;;  %v6484_v17 = vand.u32 15, %v242_v30  ;;  %v1098_v46 = vld [vmem:[#allocation2 + $0x48] sm:$0xff]  ;;  %1206 = vrot.lane.b32.xlu0 %v5797_v2, %s5752_s22 }
  0xa8   : > { %vm11226_vm10 = vmmov %vm11225_vm0  ;;  %1145 = vst [vmem:[#allocation3 + $0x108] sm:$0xf] %v1129_v23  ;;  %vm11232_vm5 = vcmp.ge.s32.totalorder %v6386_v21, 1  ;;  %v11233_v3 = vmov 0  ;;  %v11240_v25 = vmov 0  ;;  %v11243_v36 = vand.u32 15, %v6327_v12  ;;  %v499_v23 = vpop.permute.xlu0 %498 }
  0xa9   : > { %v521_v54 = vsel %vm11226_vm10, %v495_v45, %v497_v16  ;;  %11228 = vst [vmem:[#allocation60_spill] sm:$0xff] %v6484_v17  ;;  %1146 = vst [vmem:[#allocation3 + $0x110] sm:$0xf] %v1130_v47  ;;  %v11236_v47 = vshra.s32 %v6247_v32, 8  ;;  %v1114_v33 = vcombine.high %v1098_v46, %v1098_v46  ;;  %v11276_v19 = vand.u32 15, %v6402_v35 }
  0xaa   : > { %vm11229_vm6 = vmand %vm11187_vm3, %vm6318_vm11  ;;  %vm11252_vm11 = vcmask 138240   ;;  %vm11256_vm3 = vnez %v11200_v18  ;;  %v6607_v18 = vcombine.high %v5812_v5, %v5812_v5 }
  0xab   : > { %v545_v39 = vsel %vm11229_vm6, %v513_v34, 0.0  ;;  %vm11230_vm10 = vmand %vm11188_vm8, %vm6333_vm1  ;;  %v501_v34 = vpop.permute.xlu1 %500  ;;  %vm11251_vm1 = vnez %v11076_v55  ;;  %1210 = vrot.lane.b32.xlu0 %v5812_v5, %s5752_s22 }
  0xac   : > { %v546_v45 = vsel %vm11230_vm10, %v514_v63, 0.0  ;;  %vm11231_vm0 = vmand %vm11216_vm14, %vm6395_vm13  ;;  %v1113_v63 = vcombine.high %v1097_v14, %v1097_v14  ;;  %561 = vst [vmem:[#allocation3] sm:$0xf] %v545_v39  ;;  %vm6514_vm10 = vcmp.ge.s32.totalorder %v11236_v47, 1  ;;  %v11244_v14 = vmov 0 }
  0xad   : > { %v553_v30 = vsel %vm11231_vm0, %v521_v54, 0.0  ;;  %vm6508_vm6 = vmand %vm11232_vm5, %vm6447_vm4  ;;  %562 = vst [vmem:[#allocation3 + $0x8] sm:$0xf] %v546_v45  ;;  %v11237_v54 = vmov 0  ;;  %vm11239_vm0 = vcmp.ge.s32.totalorder %v6388_v22, 1  ;;  %vm6529_vm5 = vcmp.ge.s32.totalorder %v11243_v36, 1 }
  0xae   : > { %v11234_v3 = vsel %vm6508_vm6, 4294967295, %v11233_v3  ;;  %569 = vst [vmem:[#allocation3 + $0x40] sm:$0xf] %v553_v30  ;;  %v11238_v54 = vsel %vm6514_vm10, 4294967295, %v11237_v54  ;;  %vm6522_vm2 = vmand %vm11239_vm0, %vm6459_vm9  ;;  %v11245_v14 = vsel %vm6529_vm5, 4294967295, %v11244_v14  ;;  %v11247_v39 = vand.u32 15, %v6359_v31  ;;  %v503_v30 = vpop.permute.xlu0 %502 }
  0xaf   : > { %11235 = vst [vmem:[#allocation61_spill] sm:$0xff] %v11234_v3  ;;  %v11241_v25 = vsel %vm6522_vm2, 4294967295, %v11240_v25  ;;  %11246 = vst [vmem:[#allocation63_spill] sm:$0xff] %v11245_v14  ;;  %v11248_v45 = vmov 0  ;;  %v1131_v47 = vsel %vm11251_vm1, %v1113_v63, 0.0  ;;  %v522_v36 = vsel %vm11252_vm11, %v497_v16, %v499_v23  ;;  %v505_v27 = vpop.permute.xlu1 %504  ;;  %v1099_v14 = vld [vmem:[#allocation2 + $0x50] sm:$0xff]  ;;  %1214 = vrot.lane.b32.xlu0 %v5814_v6, %s5752_s22 }
  0xb0   : > { %11242 = vst [vmem:[#allocation62_spill] sm:$0xff] %v11241_v25  ;;  %vm6537_vm0 = vcmp.ge.s32.totalorder %v11247_v39, 1  ;;  %vm11253_vm9 = vmmov %vm11252_vm11  ;;  %vm11254_vm4 = vnez %v11204_v62  ;;  %v6551_v39 = vand.u32 15, %v243_v37  ;;  %v6573_v37 = vcombine.high %v5797_v2, %v5797_v2 }
  0xb1   : > { %v11249_v45 = vsel %vm6537_vm0, 4294967295, %v11248_v45  ;;  %v523_v52 = vsel %vm11253_vm9, %v499_v23, %v501_v34  ;;  %1147 = vst [vmem:[#allocation3 + $0x118] sm:$0xf] %v1131_v47  ;;  %vm11257_vm1 = vmand %vm11222_vm12, %vm11256_vm3  ;;  %v11261_v47 = vmov 0  ;;  %vm11263_vm13 = vcmp.ge.s32.totalorder %v6463_v15, 1 }
  0xb2   : > { %11250 = vst [vmem:[#allocation64_spill] sm:$0xff] %v11249_v45  ;;  %11255 = vst [vmem:[#allocation65_spill] sm:$0xff] %v6551_v39  ;;  %v554_v63 = vsel %vm11257_vm1, %v522_v36, 0.0  ;;  %vm11259_vm1 = vnez %v11083_v61  ;;  %v11264_v36 = vmov 0  ;;  %v11277_v45 = vmov 0  ;;  %1208 = vrot.lane.b32.xlu1 %v6573_v37, %s5752_s22 }
  0xb3   : > { %vm11258_vm9 = vmand %vm11227_vm15, %vm6441_vm7  ;;  %v1132_v23 = vsel %vm11259_vm1, %v1098_v46, 0.0  ;;  %570 = vst [vmem:[#allocation3 + $0x48] sm:$0xf] %v554_v63  ;;  %v11267_v63 = vshra.s32 %v6359_v31, 8  ;;  %vm11270_vm7 = vcmp.ge.s32.totalorder %v6484_v17, 1  ;;  %vm6615_vm15 = vcmp.ge.s32.totalorder %v11276_v19, 1  ;;  %1218 = vrot.lane.b32.xlu0 %v5816_v7, %s5752_s22 }
  0xb4   : > { %v555_v16 = vsel %vm11258_vm9, %v523_v52, 0.0  ;;  %v11260_v52 = vshra.s32 %v6327_v12, 8  ;;  %vm6587_vm11 = vmand %vm11263_vm13, %vm6529_vm5  ;;  %1148 = vst [vmem:[#allocation3 + $0x120] sm:$0xf] %v1132_v23  ;;  %vm11274_vm13 = vcmask 138240   ;;  %v11278_v45 = vsel %vm6615_vm15, 4294967295, %v11277_v45 }
  0xb5   : > { %571 = vst [vmem:[#allocation3 + $0x50] sm:$0xf] %v555_v16  ;;  %v11265_v36 = vsel %vm6587_vm11, 4294967295, %v11264_v36  ;;  %vm6593_vm8 = vcmp.ge.s32.totalorder %v11267_v63, 1  ;;  %v11268_v16 = vmov 0  ;;  %vm6601_vm3 = vmand %vm11270_vm7, %vm6537_vm0  ;;  %v524_v63 = vsel %vm11274_vm13, %v501_v34, %v503_v30 }
  0xb6   : > { %vm6579_vm9 = vcmp.ge.s32.totalorder %v11260_v52, 1  ;;  %11266 = vst [vmem:[#allocation66_spill] sm:$0xff] %v11265_v36  ;;  %v11269_v16 = vsel %vm6593_vm8, 4294967295, %v11268_v16  ;;  %v11271_v52 = vmov 0  ;;  %vm11275_vm5 = vmmov %vm11274_vm13  ;;  %vm11282_vm1 = vnez %v11088_v4  ;;  %1212 = vrot.lane.b32.xlu1 %v6607_v18, %s5752_s22 }
  0xb7   : > { %v11262_v47 = vsel %vm6579_vm9, 4294967295, %v11261_v47  ;;  %v11272_v52 = vsel %vm6601_vm3, 4294967295, %v11271_v52  ;;  %v525_v49 = vsel %vm11275_vm5, %v503_v30, %v505_v27  ;;  %11279 = vst [vmem:[#allocation68_spill] sm:$0xff] %v11278_v45  ;;  %vm11280_vm7 = vmand %vm11254_vm4, %vm6508_vm6  ;;  %v1133_v19 = vsel %vm11282_vm1, %v1114_v33, 0.0  ;;  %v509_v30 = vpop.permute.xlu1 %508  ;;  %v1101_v45 = vld [vmem:[#allocation2 + $0x60] sm:$0xff]  ;;  %1222 = vrot.lane.b32.xlu0 %v5827_v8, %s5752_s22 }
  0xb8   : > { %11273 = vst [vmem:[#allocation67_spill] sm:$0xff] %v11272_v52  ;;  %v556_v23 = vsel %vm11280_vm7, %v524_v63, 0.0  ;;  %vm11281_vm5 = vmand %vm6514_vm10, %vm6522_vm2  ;;  %vm11283_vm7 = vnez %v11106_v53  ;;  %v11284_v63 = vshra.s32 %v6402_v35, 8  ;;  %v11285_v25 = vmov 0 }
  0xb9   : > { %v557_v46 = vsel %vm11281_vm5, %v525_v49, 0.0  ;;  %v1134_v34 = vsel %vm11283_vm7, %v1099_v14, 0.0  ;;  %572 = vst [vmem:[#allocation3 + $0x58] sm:$0xf] %v556_v23  ;;  %vm459_vm5 = vmand %vm6593_vm8, %vm6601_vm3  ;;  %v507_v49 = vpop.permute.xlu0 %506  ;;  %vm11287_vm2 = vcmp.ge.s32.totalorder %v6551_v39, 1  ;;  %v11288_v33 = vmov 0 }
  0xba   : > { %573 = vst [vmem:[#allocation3 + $0x60] sm:$0xf] %v557_v46  ;;  %1149 = vst [vmem:[#allocation3 + $0x128] sm:$0xf] %v1133_v19  ;;  %vm6647_vm13 = vcmp.ge.s32.totalorder %v11284_v63, 1  ;;  %v1115_v23 = vcombine.high %v1099_v14, %v1099_v14  ;;  %vm11291_vm3 = vcmask 138240  }
  0xbb   : > { %1150 = vst [vmem:[#allocation3 + $0x130] sm:$0xf] %v1134_v34  ;;  %v11286_v25 = vsel %vm6647_vm13, 4294967295, %v11285_v25  ;;  %vm6655_vm6 = vmand %vm11287_vm2, %vm6615_vm15  ;;  %v526_v46 = vsel %vm11291_vm3, %v505_v27, %v507_v49  ;;  %v1197_v34 = vcombine.high %v5814_v6, %v5814_v6  ;;  %v1100_v63 = vld [vmem:[#allocation2 + $0x58] sm:$0xff]  ;;  %vm11294_vm2 = vnez %v11113_v10  ;;  %1226 = vrot.lane.b32.xlu0 %v5829_v9, %s5752_s22 }
  0xbc   : > { %v11289_v33 = vsel %vm6655_vm6, 4294967295, %v11288_v33  ;;  %vm11292_vm0 = vmmov %vm11291_vm3  ;;  %v1135_v27 = vsel %vm11294_vm2, %v1115_v23, 0.0  ;;  %v1136_v14 = vsel %vm11216_vm14, %v1100_v63, 0.0 }
  0xbd   : > { %11290 = vst [vmem:[#allocation69_spill] sm:$0xff] %v11289_v33  ;;  %v527_v19 = vsel %vm11292_vm0, %v507_v49, %v509_v30  ;;  %vm11293_vm7 = vmand %vm6579_vm9, %vm6587_vm11  ;;  %v511_v49 = vpop.permute.xlu0 %510  ;;  %1216 = vrot.lane.b32.xlu1 %v1197_v34, %s5752_s22  ;;  %vm11296_vm11 = vnez %v11124_v38 }
  0xbe   : > { %v558_v52 = vsel %vm11293_vm7, %v526_v46, 0.0  ;;  %v559_v3 = vsel %vm459_vm5, %v527_v19, 0.0  ;;  %vm460_vm3 = vmand %vm6647_vm13, %vm6655_vm6  ;;  %1151 = vst [vmem:[#allocation3 + $0x138] sm:$0xf] %v1135_v27  ;;  %v620_v46 = vpop.permute.xlu1 %619  ;;  %v1116_v19 = vcombine.high %v1100_v63, %v1100_v63  ;;  %v528_v36 = vsel %vm11292_vm0, %v509_v30, %v511_v49 }
  0xbf   : > { %574 = vst [vmem:[#allocation3 + $0x68] sm:$0xf] %v558_v52  ;;  %575 = vst [vmem:[#allocation3 + $0x70] sm:$0xf] %v559_v3  ;;  %v560_v23 = vsel %vm460_vm3, %v528_v36, 0.0  ;;  %vm11295_vm5 = vcmp.ge.s32.totalorder %v6152_v50, 1  ;;  %v1198_v52 = vcombine.high %v5816_v7, %v5816_v7  ;;  %vm11299_vm3 = vnez %v11176_v26  ;;  %1230 = vrot.lane.b32.xlu0 %v5793_v0, %s5752_s22 }
  0xc0   : > { %1152 = vst [vmem:[#allocation3 + $0x140] sm:$0xf] %v1136_v14  ;;  %vm6688_vm6 = vmand %vm11296_vm11, %vm11295_vm5  ;;  %v1137_v30 = vsel %vm11222_vm12, %v1116_v19, 0.0  ;;  %v1138_v36 = vsel %vm11299_vm3, %v1101_v45, 0.0  ;;  %vm11300_vm0 = vcmp.ge.s32.totalorder %v6154_v41, 1  ;;  %vm11301_vm7 = vnez %v11129_v60 }
  0xc1   : > { %576 = vst [vmem:[#allocation3 + $0x78] sm:$0xf] %v560_v23  ;;  %vm6702_vm15 = vmand %vm11301_vm7, %vm11300_vm0  ;;  %v622_v34 = vpop.permute.xlu0 %621  ;;  %v1117_v27 = vcombine.high %v1101_v45, %v1101_v45  ;;  %vm11304_vm5 = vcmask 130048   ;;  %v1199_v19 = vcombine.high %v5827_v8, %v5827_v8  ;;  %v1102_v23 = vld [vmem:[#allocation2 + $0x68] sm:$0xff]  ;;  %1220 = vrot.lane.b32.xlu1 %v1198_v52, %s5752_s22  ;;  %vm11306_vm0 = vcmp.ge.s32.totalorder %v6005_v40, 1 }
  0xc2   : > { %1153 = vst [vmem:[#allocation3 + $0x148] sm:$0xf] %v1137_v30  ;;  %1154 = vst [vmem:[#allocation3 + $0x150] sm:$0xf] %v1138_v36  ;;  %v624_v63 = vpop.permute.xlu1 %623  ;;  %v654_v14 = vsel %vm11304_vm5, %v620_v46, %v622_v34  ;;  %v1140_v3 = vsel %vm6514_vm10, %v1102_v23, 0.0 }
  0xc3   : > { %vm11305_vm11 = vmmov %vm11304_vm5  ;;  %v686_v33 = vsel %vm6688_vm6, %v654_v14, 0.0  ;;  %vm11307_vm5 = vnez %v11070_v51  ;;  %v1139_v46 = vsel %vm11254_vm4, %v1117_v27, 0.0  ;;  %vm11311_vm6 = vnez %v11076_v55  ;;  %1156 = vst [vmem:[#allocation3 + $0x160] sm:$0xf] %v1140_v3  ;;  %v1103_v14 = vld [vmem:[#allocation2 + $0x70] sm:$0xff] }
  0xc4   : > { %v655_v49 = vsel %vm11305_vm11, %v622_v34, %v624_v63  ;;  %vm6721_vm11 = vmand %vm11307_vm5, %vm11306_vm0  ;;  %v718_v30 = vrot.slane %v686_v33, 4  ;;  %1155 = vst [vmem:[#allocation3 + $0x158] sm:$0xf] %v1139_v46  ;;  %v1118_v34 = vcombine.high %v1102_v23, %v1102_v23  ;;  %vm11314_vm0 = vcmask 130048  }
  0xc5   : > { %v687_v24 = vsel %vm6702_vm15, %v655_v49, 0.0  ;;  %vm11310_vm15 = vcmp.ge.s32.totalorder %v6012_v44, 1  ;;  %v626_v52 = vpop.permute.xlu0 %625  ;;  %vm11315_vm5 = vmmov %vm11314_vm0  ;;  %1224 = vrot.lane.b32.xlu1 %v1199_v19, %s5752_s22  ;;  %v1142_v45 = vsel %vm6593_vm8, %v1103_v14, 0.0  ;;  %v1119_v7 = vcombine.high %v1103_v14, %v1103_v14 }
  0xc6   : > { %v719_v36 = vrot.slane %v687_v24, 4  ;;  %vm6733_vm7 = vmand %vm11311_vm6, %vm11310_vm15  ;;  %v628_v6 = vpop.permute.xlu1 %627  ;;  %750 = vst [vmem:[#allocation3] sm:$0xf0] %v718_v30  ;;  %v656_v27 = vsel %vm11314_vm0, %v624_v63, %v626_v52  ;;  %v1200_v24 = vcombine.high %v5829_v9, %v5829_v9  ;;  %vm11316_vm15 = vcmp.ge.s32.totalorder %v6054_v56, 1 }
  0xc7   : > { %v657_v33 = vsel %vm11315_vm5, %v626_v52, %v628_v6  ;;  %v688_v49 = vsel %vm6721_vm11, %v656_v27, 0.0  ;;  %vm11317_vm0 = vnez %v11083_v61  ;;  %v1141_v23 = vsel %vm6579_vm9, %v1118_v34, 0.0  ;;  %1158 = vst [vmem:[#allocation3 + $0x170] sm:$0xf] %v1142_v45 }
  0xc8   : > { %751 = vst [vmem:[#allocation3 + $0x8] sm:$0xf0] %v719_v36  ;;  %v689_v46 = vsel %vm6733_vm7, %v657_v33, 0.0  ;;  %vm6752_vm5 = vmand %vm11317_vm0, %vm11316_vm15  ;;  %v720_v3 = vrot.slane %v688_v49, 4  ;;  %vm11320_vm7 = vcmp.ge.s32.totalorder %v6058_v58, 1  ;;  %vm11323_vm15 = vcmask 130048  }
  0xc9   : > { %v721_v30 = vrot.slane %v689_v46, 4  ;;  %vm6764_vm11 = vmand %vm11282_vm1, %vm11320_vm7  ;;  %1157 = vst [vmem:[#allocation3 + $0x168] sm:$0xf] %v1141_v23  ;;  %v630_v19 = vpop.permute.xlu0 %629  ;;  %1228 = vrot.lane.b32.xlu1 %v1200_v24, %s5752_s22  ;;  %vm11325_vm7 = vcmp.ge.s32.totalorder %v6103_v13, 1  ;;  %vm11326_vm1 = vnez %v11106_v53  ;;  %v1143_v49 = vsel %vm6647_vm13, %v1119_v7, 0.0 }
  0xca   : > { %v632_v36 = vpop.permute.xlu1 %631  ;;  %752 = vst [vmem:[#allocation3 + $0x10] sm:$0xf0] %v720_v3  ;;  %v658_v52 = vsel %vm11323_vm15, %v628_v6, %v630_v19  ;;  %vm11324_vm0 = vmmov %vm11323_vm15  ;;  %v1201_v6 = vcombine.high %v5793_v0, %v5793_v0  ;;  %v1168_v7 = vld [vmem:[#allocation2 + $0x78] sm:$0xf] }
  0xcb   : > { %753 = vst [vmem:[#allocation3 + $0x18] sm:$0xf0] %v721_v30  ;;  %v659_v34 = vsel %vm11324_vm0, %v630_v19, %v632_v36  ;;  %v690_v27 = vsel %vm6752_vm5, %v658_v52, 0.0  ;;  %vm6781_vm6 = vmand %vm11326_vm1, %vm11325_vm7  ;;  %vm11329_vm0 = vcmp.ge.s32.totalorder %v6110_v28, 1  ;;  %vm11332_vm7 = vcmp.ge.s32.totalorder %v6240_v57, 1  ;;  %1234 = vrot.lane.b32.xlu0 %v1168_v7, %s5752_s22 }
  0xcc   : > { %v691_v33 = vsel %vm6764_vm11, %v659_v34, 0.0  ;;  %v722_v46 = vrot.slane %v690_v27, 4  ;;  %vm593_vm5 = vmand %vm11294_vm2, %vm11329_vm0  ;;  %1159 = vst [vmem:[#allocation3 + $0x178] sm:$0xf] %v1143_v49  ;;  %v11351_v7 = vmov 0 }
  0xcd   : > { %v723_v63 = vrot.slane %v691_v33, 4  ;;  %v634_v9 = vpop.permute.xlu0 %633  ;;  %vm11330_vm11 = vmmov %vm11323_vm15  ;;  %1232 = vrot.lane.b32.xlu1 %v1201_v6, %s5752_s22 }
  0xce   : > { %v636_v24 = vpop.permute.xlu1 %635  ;;  %754 = vst [vmem:[#allocation3 + $0x20] sm:$0xf0] %v722_v46  ;;  %v660_v23 = vsel %vm11330_vm11, %v632_v36, %v634_v9  ;;  %vm11331_vm15 = vmmov %vm11330_vm11  ;;  %vm11335_vm11 = vcmp.ge.s32.totalorder %v6259_v59, 1 }
  0xcf   : > { %755 = vst [vmem:[#allocation3 + $0x28] sm:$0xf0] %v723_v63  ;;  %v661_v45 = vsel %vm11331_vm15, %v634_v9, %v636_v24  ;;  %v692_v3 = vsel %vm6781_vm6, %v660_v23, 0.0  ;;  %vm6804_vm0 = vmand %vm11216_vm14, %vm11332_vm7  ;;  %vm11338_vm7 = vcmp.ge.s32.totalorder %v6322_v20, 1  ;;  %1393 = vrot.lane.b32.xlu0 %v6312_v43, %s5753_s23 }
  0xd0   : > { %v693_v30 = vsel %vm593_vm5, %v661_v45, 0.0  ;;  %v724_v19 = vrot.slane %v692_v3, 4  ;;  %vm595_vm6 = vmand %vm11222_vm12, %vm11335_vm11 }
  0xd1   : > { %v725_v36 = vrot.slane %v693_v30, 4  ;;  %v638_v52 = vpop.permute.xlu0 %637  ;;  %vm11336_vm5 = vmmov %vm11331_vm15  ;;  %1391 = vrot.lane.b32.xlu1 %v5795_v1, %s5753_s23 }
  0xd2   : > { %v640_v0 = vpop.permute.xlu1 %639  ;;  %756 = vst [vmem:[#allocation3 + $0x30] sm:$0xf0] %v724_v19  ;;  %v662_v34 = vsel %vm11336_vm5, %v636_v24, %v638_v52  ;;  %vm11337_vm15 = vmmov %vm11336_vm5  ;;  %vm11341_vm5 = vcmp.ge.s32.totalorder %v6386_v21, 1 }
  0xd3   : > { %757 = vst [vmem:[#allocation3 + $0x38] sm:$0xf0] %v725_v36  ;;  %v663_v27 = vsel %vm11337_vm15, %v638_v52, %v640_v0  ;;  %v694_v33 = vsel %vm6804_vm0, %v662_v34, 0.0  ;;  %vm6823_vm11 = vmand %vm11299_vm3, %vm11338_vm7  ;;  %vm11344_vm7 = vcmp.ge.s32.totalorder %v6388_v22, 1  ;;  %v11350_v36 = vand.u32 15, %v5975_v29  ;;  %1397 = vrot.lane.b32.xlu0 %v6573_v37, %s5753_s23 }
  0xd4   : > { %v695_v14 = vsel %vm595_vm6, %v663_v27, 0.0  ;;  %v726_v49 = vrot.slane %v694_v33, 4  ;;  %vm597_vm0 = vmand %vm11254_vm4, %vm11341_vm5  ;;  %v11357_v27 = vld [vmem:[#allocation15_spill] sm:$0xff]  ;;  %v11365_v37 = vmov 0  ;;  %v11381_v34 = vmov 0 }
  0xd5   : > { %v727_v46 = vrot.slane %v695_v14, 4  ;;  %v642_v63 = vpop.permute.xlu0 %641  ;;  %vm11342_vm6 = vmmov %vm11337_vm15  ;;  %1395 = vrot.lane.b32.xlu1 %v5797_v2, %s5753_s23  ;;  %v11358_v33 = vand.u32 15, %v11357_v27  ;;  %v11359_v14 = vmov 0  ;;  %vm11394_vm4 = vcmask 121856  }
  0xd6   : > { %v644_v9 = vpop.permute.xlu1 %643  ;;  %758 = vst [vmem:[#allocation3 + $0x40] sm:$0xf0] %v726_v49  ;;  %v664_v1 = vsel %vm11342_vm6, %v640_v0, %v642_v63  ;;  %vm11343_vm15 = vmmov %vm11342_vm6  ;;  %vm11347_vm6 = vcmp.ge.s32.totalorder %v6463_v15, 1  ;;  %v11413_v29 = vmov 0  ;;  %v11421_v27 = vmov 0 }
  0xd7   : > { %759 = vst [vmem:[#allocation3 + $0x48] sm:$0xf0] %v727_v46  ;;  %v665_v24 = vsel %vm11343_vm15, %v642_v63, %v644_v9  ;;  %v696_v23 = vsel %vm6823_vm11, %v664_v1, 0.0  ;;  %vm6843_vm5 = vmand %vm6514_vm10, %vm11344_vm7  ;;  %vm11354_vm10 = vcmp.ge.s32.totalorder %v6484_v17, 1  ;;  %v6893_v1 = vld [vmem:[#allocation2 + $0x50] sm:$0xff]  ;;  %1401 = vrot.lane.b32.xlu0 %v6607_v18, %s5753_s23  ;;  %v11385_v18 = vld [vmem:[#allocation7_spill] sm:$0xff] }
  0xd8   : > { %v697_v45 = vsel %vm597_vm0, %v665_v24, 0.0  ;;  %v728_v30 = vrot.slane %v696_v23, 4  ;;  %vm6851_vm11 = vmand %vm6579_vm9, %vm11347_vm6  ;;  %vm6857_vm0 = vcmp.lt.s32.totalorder %v11350_v36, 15  ;;  %vm6873_vm9 = vcmp.lt.s32.totalorder %v11358_v33, 15 }
  0xd9   : > { %v729_v8 = vrot.slane %v697_v45, 4  ;;  %v646_v43 = vpop.permute.xlu0 %645  ;;  %v11352_v7 = vsel %vm6857_vm0, 4294967295, %v11351_v7  ;;  %vm11353_vm7 = vmmov %vm11343_vm15  ;;  %v11360_v14 = vsel %vm6873_vm9, 4294967295, %v11359_v14  ;;  %1399 = vrot.lane.b32.xlu1 %v5812_v5, %s5753_s23  ;;  %v11369_v23 = vmov 0 }
  0xda   : > { %v648_v2 = vpop.permute.xlu1 %647  ;;  %760 = vst [vmem:[#allocation3 + $0x50] sm:$0xf0] %v728_v30  ;;  %v666_v52 = vsel %vm11343_vm15, %v644_v9, %v646_v43  ;;  %vm6867_vm6 = vmand %vm6593_vm8, %vm11354_vm10  ;;  %vm11361_vm10 = vcmp.ge.s32.totalorder %v6551_v39, 1  ;;  %v6915_v30 = vcombine.high %v6893_v1, %v6893_v1  ;;  %v11386_v46 = vand.u32 15, %v11385_v18 }
  0xdb   : > { %761 = vst [vmem:[#allocation3 + $0x58] sm:$0xf0] %v729_v8  ;;  %v667_v0 = vsel %vm11353_vm7, %v646_v43, %v648_v2  ;;  %v698_v6 = vsel %vm6843_vm5, %v666_v52, 0.0  ;;  %vm6889_vm15 = vmand %vm6647_vm13, %vm11361_vm10  ;;  %vm11364_vm5 = vcmp.ge.s32.totalorder %v6152_v50, 1  ;;  %vm11368_vm7 = vcmp.ge.s32.totalorder %v6154_v41, 1  ;;  %v11374_v8 = vld [vmem:[#allocation5_spill] sm:$0xff] }
  0xdc   : > { %v699_v49 = vsel %vm6851_vm11, %v667_v0, 0.0  ;;  %v730_v63 = vrot.slane %v698_v6, 4  ;;  %vm6899_vm11 = vmand %vm11364_vm5, %vm6857_vm0  ;;  %vm11372_vm13 = vcmask 130048   ;;  %v11375_v19 = vand.u32 15, %v11374_v8  ;;  %1405 = vrot.lane.b32.xlu0 %v6915_v30, %s5753_s23 }
  0xdd   : > { %v731_v9 = vrot.slane %v699_v49, 4  ;;  %v11366_v37 = vsel %vm6899_vm11, 4294967295, %v11365_v37  ;;  %v650_v5 = vpop.permute.xlu0 %649  ;;  %vm6907_vm10 = vmand %vm11368_vm7, %vm6873_vm9  ;;  %v11376_v43 = vmov 0  ;;  %1403 = vrot.lane.b32.xlu1 %v6893_v1, %s5753_s23  ;;  %v6941_v49 = vld [vmem:[#allocation2 + $0x58] sm:$0xff]  ;;  %vm6949_vm0 = vcmp.lt.s32.totalorder %v11386_v46, 15 }
  0xde   : > { %11367 = vst [vmem:[#allocation70_spill] sm:$0xff] %v11366_v37  ;;  %v652_v24 = vpop.permute.xlu1 %651  ;;  %v11370_v23 = vsel %vm6907_vm10, 4294967295, %v11369_v23  ;;  %762 = vst [vmem:[#allocation3 + $0x60] sm:$0xf0] %v730_v63  ;;  %v668_v45 = vsel %vm11372_vm13, %v648_v2, %v650_v5  ;;  %vm6919_vm5 = vcmp.lt.s32.totalorder %v11375_v19, 15  ;;  %v11379_v2 = vld [vmem:[#allocation6_spill] sm:$0xff] }
  0xdf   : > { %11371 = vst [vmem:[#allocation71_spill] sm:$0xff] %v11370_v23  ;;  %763 = vst [vmem:[#allocation3 + $0x68] sm:$0xf0] %v731_v9  ;;  %v11377_v43 = vsel %vm6919_vm5, 4294967295, %v11376_v43  ;;  %v700_v36 = vsel %vm6867_vm6, %v668_v45, 0.0  ;;  %v11380_v0 = vand.u32 15, %v11379_v2  ;;  %vm11384_vm6 = vnez %v11129_v60 }
  0xe0   : > { %vm11373_vm8 = vmmov %vm11372_vm13  ;;  %v732_v33 = vrot.slane %v700_v36, 4  ;;  %v11387_v63 = vmov 0  ;;  %vm11390_vm13 = vcmp.ge.s32.totalorder %v6005_v40, 1  ;;  %v6979_v36 = vcombine.high %v6941_v49, %v6941_v49  ;;  %v11440_v23 = vld [vmem:[#allocation22_spill] sm:$0xff] }
  0xe1   : > { %v669_v3 = vsel %vm11373_vm8, %v650_v5, %v652_v24  ;;  %vm11378_vm8 = vnez %v11124_v38  ;;  %vm6937_vm9 = vcmp.lt.s32.totalorder %v11380_v0, 15  ;;  %v11388_v63 = vsel %vm6949_vm0, 4294967295, %v11387_v63  ;;  %v809_v9 = vpop.permute.xlu0 %808  ;;  %vm6957_vm7 = vmand %vm11390_vm13, %vm6919_vm5  ;;  %1407 = vrot.lane.b32.xlu1 %v6941_v49, %s5753_s23  ;;  %v6995_v0 = vld [vmem:[#allocation2 + $0x60] sm:$0xff] }
  0xe2   : > { %v701_v52 = vsel %vm6889_vm15, %v669_v3, 0.0  ;;  %v11382_v34 = vsel %vm6937_vm9, 4294967295, %v11381_v34  ;;  %11389 = vst [vmem:[#allocation73_spill] sm:$0xff] %v11388_v63  ;;  %v811_v5 = vpop.permute.xlu1 %810  ;;  %v11391_v24 = vmov 0  ;;  %764 = vst [vmem:[#allocation3 + $0x70] sm:$0xf0] %v732_v33  ;;  %1409 = vrot.lane.b32.xlu0 %v6979_v36, %s5753_s23 }
  0xe3   : > { %11383 = vst [vmem:[#allocation72_spill] sm:$0xff] %v11382_v34  ;;  %v733_v6 = vrot.slane %v701_v52, 4  ;;  %v11392_v24 = vsel %vm6957_vm7, 4294967295, %v11391_v24  ;;  %v843_v45 = vsel %vm11394_vm4, %v809_v9, %v811_v5  ;;  %vm11395_vm15 = vcmp.ge.s32.totalorder %v6012_v44, 1  ;;  %vm11399_vm13 = vmand %vm11378_vm8, %vm6899_vm11  ;;  %v11405_v33 = vld [vmem:[#allocation8_spill] sm:$0xff] }
  0xe4   : > { %11393 = vst [vmem:[#allocation74_spill] sm:$0xff] %v11392_v24  ;;  %vm6966_vm3 = vmand %vm11395_vm15, %vm6937_vm9  ;;  %v11396_v3 = vmov 0  ;;  %v875_v19 = vsel %vm11399_vm13, %v843_v45, 0.0  ;;  %vm11400_vm4 = vcmp.ge.s32.totalorder %v6054_v56, 1  ;;  %v11401_v52 = vmov 0 }
  0xe5   : > { %765 = vst [vmem:[#allocation3 + $0x78] sm:$0xf0] %v733_v6  ;;  %v11397_v3 = vsel %vm6966_vm3, 4294967295, %v11396_v3  ;;  %vm6987_vm15 = vmand %vm11400_vm4, %vm6949_vm0  ;;  %vm11404_vm13 = vnez %v11070_v51  ;;  %v11406_v6 = vand.u32 15, %v11405_v33  ;;  %v11407_v46 = vmov 0  ;;  %v813_v9 = vpop.permute.xlu0 %812  ;;  %v11419_v33 = vld [vmem:[#allocation12_spill] sm:$0xff]  ;;  %1411 = vrot.lane.b32.xlu1 %v6995_v0, %s5753_s23 }
  0xe6   : > { %11398 = vst [vmem:[#allocation75_spill] sm:$0xff] %v11397_v3  ;;  %v11402_v52 = vsel %vm6987_vm15, 4294967295, %v11401_v52  ;;  %891 = vst [vmem:[#allocation3 + $0x80] sm:$0xf] %v875_v19  ;;  %v815_v45 = vpop.permute.xlu1 %814  ;;  %vm11410_vm4 = vnez %v11076_v55  ;;  %v11411_v19 = vld [vmem:[#allocation10_spill] sm:$0xff]  ;;  %vm11418_vm8 = vnez %v11083_v61  ;;  %v11420_v8 = vand.u32 15, %v11419_v33 }
  0xe7   : > { %11403 = vst [vmem:[#allocation76_spill] sm:$0xff] %v11402_v52  ;;  %vm777_vm11 = vmand %vm11404_vm13, %vm6957_vm7  ;;  %vm6999_vm9 = vcmp.lt.s32.totalorder %v11406_v6, 15  ;;  %v11412_v18 = vand.u32 15, %v11411_v19  ;;  %vm11416_vm7 = vcmask 121856   ;;  %v11434_v24 = vmov 0  ;;  %v11452_v52 = vld [vmem:[#allocation32_spill] sm:$0xff] }
  0xe8   : > { %v11408_v46 = vsel %vm6999_vm9, 4294967295, %v11407_v46  ;;  %v844_v2 = vsel %vm11416_vm7, %v811_v5, %v813_v9  ;;  %vm11417_vm13 = vmmov %vm11416_vm7  ;;  %vm7021_vm14 = vcmp.lt.s32.totalorder %v11420_v8, 15  ;;  %vm11425_vm7 = vcmp.ge.s32.totalorder %v6058_v58, 1 }
  0xe9   : > { %11409 = vst [vmem:[#allocation77_spill] sm:$0xff] %v11408_v46  ;;  %vm7009_vm5 = vcmp.lt.s32.totalorder %v11412_v18, 15  ;;  %v845_v6 = vsel %vm11417_vm13, %v813_v9, %v815_v45  ;;  %v11422_v27 = vsel %vm7021_vm14, 4294967295, %v11421_v27  ;;  %vm11424_vm0 = vmand %vm11384_vm6, %vm6907_vm10  ;;  %v7034_v9 = vcombine.high %v6995_v0, %v6995_v0  ;;  %v817_v33 = vpop.permute.xlu0 %816 }
  0xea   : > { %v11414_v29 = vsel %vm7009_vm5, 4294967295, %v11413_v29  ;;  %11423 = vst [vmem:[#allocation79_spill] sm:$0xff] %v11422_v27  ;;  %v876_v18 = vsel %vm11424_vm0, %v844_v2, 0.0  ;;  %v877_v5 = vsel %vm777_vm11, %v845_v6, 0.0  ;;  %vm7042_vm13 = vmand %vm11425_vm7, %vm6999_vm9  ;;  %v11426_v8 = vmov 0  ;;  %v7046_v2 = vld [vmem:[#allocation2 + $0x68] sm:$0xff]  ;;  %v819_v19 = vpop.permute.xlu1 %818 }
  0xeb   : > { %11415 = vst [vmem:[#allocation78_spill] sm:$0xff] %v11414_v29  ;;  %v11427_v8 = vsel %vm7042_vm13, 4294967295, %v11426_v8  ;;  %892 = vst [vmem:[#allocation3 + $0x88] sm:$0xf] %v876_v18  ;;  %vm11429_vm0 = vcmp.ge.s32.totalorder %v6103_v13, 1  ;;  %v11430_v6 = vmov 0  ;;  %1413 = vrot.lane.b32.xlu0 %v7034_v9, %s5753_s23  ;;  %1415 = vrot.lane.b32.xlu1 %v7046_v2, %s5753_s23 }
  0xec   : > { %11428 = vst [vmem:[#allocation80_spill] sm:$0xff] %v11427_v8  ;;  %893 = vst [vmem:[#allocation3 + $0x90] sm:$0xf] %v877_v5  ;;  %vm11433_vm7 = vcmp.ge.s32.totalorder %v6110_v28, 1  ;;  %vm11437_vm10 = vcmask 121856   ;;  %v11441_v37 = vand.u32 15, %v11440_v23 }
  0xed   : > { %vm7052_vm11 = vmand %vm11429_vm0, %vm7009_vm5  ;;  %v846_v18 = vsel %vm11437_vm10, %v815_v45, %v817_v33  ;;  %vm11439_vm0 = vnez %v11088_v4  ;;  %v11442_v13 = vmov 0  ;;  %v11447_v45 = vld [vmem:[#allocation24_spill] sm:$0xff]  ;;  %v11449_v23 = vmov 0  ;;  %v11473_v8 = vld [vmem:[#allocation38_spill] sm:$0xff] }
  0xee   : > { %v11431_v6 = vsel %vm7052_vm11, 4294967295, %v11430_v6  ;;  %vm7060_vm12 = vmand %vm11433_vm7, %vm7021_vm14  ;;  %vm7072_vm6 = vcmp.lt.s32.totalorder %v11441_v37, 15  ;;  %v7090_v37 = vcombine.high %v7046_v2, %v7046_v2  ;;  %v11454_v3 = vmov 0 }
  0xef   : > { %11432 = vst [vmem:[#allocation81_spill] sm:$0xff] %v11431_v6  ;;  %v11435_v24 = vsel %vm7060_vm12, 4294967295, %v11434_v24  ;;  %vm11438_vm9 = vmmov %vm11437_vm10  ;;  %v11443_v13 = vsel %vm7072_vm6, 4294967295, %v11442_v13  ;;  %v11453_v6 = vand.u32 15, %v11452_v52  ;;  %v11475_v56 = vmov 0 }
  0xf0   : > { %11436 = vst [vmem:[#allocation82_spill] sm:$0xff] %v11435_v24  ;;  %v847_v5 = vsel %vm11438_vm9, %v817_v33, %v819_v19  ;;  %11444 = vst [vmem:[#allocation83_spill] sm:$0xff] %v11443_v13  ;;  %1417 = vrot.lane.b32.xlu0 %v7090_v37, %s5753_s23  ;;  %v11495_v24 = vand.u32 15, %v6327_v12  ;;  %v11503_v40 = vmov 0  ;;  %v11514_v12 = vmov 0 }
  0xf1   : > { %vm11445_vm7 = vmand %vm11410_vm4, %vm6966_vm3  ;;  %vm7112_vm5 = vcmp.lt.s32.totalorder %v11453_v6, 15  ;;  %vm11461_vm3 = vcmask 121856   ;;  %v11464_v6 = vmov 0 }
  0xf2   : > { %v878_v28 = vsel %vm11445_vm7, %v846_v18, 0.0  ;;  %vm11446_vm9 = vmand %vm11418_vm8, %vm6987_vm15  ;;  %v11448_v18 = vand.u32 15, %v11447_v45  ;;  %v11455_v3 = vsel %vm7112_vm5, 4294967295, %v11454_v3  ;;  %v821_v45 = vpop.permute.xlu0 %820 }
  0xf3   : > { %v879_v33 = vsel %vm11446_vm9, %v847_v5, 0.0  ;;  %vm781_vm10 = vmand %vm11326_vm1, %vm7052_vm11  ;;  %894 = vst [vmem:[#allocation3 + $0x98] sm:$0xf] %v878_v28  ;;  %v7104_v5 = vld [vmem:[#allocation2 + $0x70] sm:$0xff]  ;;  %vm11457_vm11 = vcmp.ge.s32.totalorder %v6240_v57, 1  ;;  %v11458_v28 = vmov 0 }
  0xf4   : > { %vm7100_vm7 = vcmp.lt.s32.totalorder %v11448_v18, 15  ;;  %895 = vst [vmem:[#allocation3 + $0xa0] sm:$0xf] %v879_v33  ;;  %11456 = vst [vmem:[#allocation85_spill] sm:$0xff] %v11455_v3  ;;  %v823_v18 = vpop.permute.xlu1 %822  ;;  %v848_v33 = vsel %vm11461_vm3, %v819_v19, %v821_v45  ;;  %vm11463_vm9 = vcmp.ge.s32.totalorder %v6259_v59, 1  ;;  %v7143_v19 = vcombine.high %v7104_v5, %v7104_v5  ;;  %1419 = vrot.lane.b32.xlu1 %v7104_v5, %s5753_s23 }
  0xf5   : > { %v11450_v23 = vsel %vm7100_vm7, 4294967295, %v11449_v23  ;;  %vm7120_vm15 = vmand %vm11457_vm11, %vm7072_vm6  ;;  %v11474_v59 = vand.u32 15, %v11473_v8  ;;  %vm11485_vm6 = vnez %v11176_v26 }
  0xf6   : > { %11451 = vst [vmem:[#allocation84_spill] sm:$0xff] %v11450_v23  ;;  %v11459_v28 = vsel %vm7120_vm15, 4294967295, %v11458_v28  ;;  %vm11462_vm14 = vmmov %vm11461_vm3  ;;  %1421 = vrot.lane.b32.xlu0 %v7143_v19, %s5753_s23 }
  0xf7   : > { %11460 = vst [vmem:[#allocation86_spill] sm:$0xff] %v11459_v28  ;;  %v849_v58 = vsel %vm11462_vm14, %v821_v45, %v823_v18  ;;  %vm7130_vm1 = vmand %vm11463_vm9, %vm7100_vm7  ;;  %vm11468_vm14 = vcmp.ge.s32.totalorder %v6322_v20, 1  ;;  %v11469_v45 = vmov 0  ;;  %v825_v20 = vpop.permute.xlu0 %824 }
  0xf8   : > { %v11465_v6 = vsel %vm7130_vm1, 4294967295, %v11464_v6  ;;  %vm11467_vm11 = vmand %vm11439_vm0, %vm7042_vm13  ;;  %v881_v57 = vsel %vm781_vm10, %v849_v58, 0.0  ;;  %vm11472_vm10 = vnez %v11139_v11  ;;  %v1357_v58 = vld [vmem:[#allocation2 + $0x78] sm:$0xf]  ;;  %v827_v44 = vpop.permute.xlu1 %826 }
  0xf9   : > { %11466 = vst [vmem:[#allocation87_spill] sm:$0xff] %v11465_v6  ;;  %v880_v52 = vsel %vm11467_vm11, %v848_v33, 0.0  ;;  %vm7151_vm3 = vmand %vm11468_vm14, %vm7112_vm5  ;;  %v7159_v33 = vld [vmem:[#allocation2 + $0x38] sm:$0xff]  ;;  %vm7163_vm11 = vcmp.lt.s32.totalorder %v11474_v59, 15  ;;  %vm11478_vm14 = vnez %v11154_v48  ;;  %1423 = vrot.lane.b32.xlu1 %v1357_v58, %s5753_s23  ;;  %v7211_v58 = vld [vmem:[#allocation2 + $0x40] sm:$0xff] }
  0xfa   : > { %v11470_v45 = vsel %vm7151_vm3, 4294967295, %v11469_v45  ;;  %896 = vst [vmem:[#allocation3 + $0xa8] sm:$0xf] %v880_v52  ;;  %897 = vst [vmem:[#allocation3 + $0xb0] sm:$0xf] %v881_v57  ;;  %v11476_v56 = vsel %vm7163_vm11, 4294967295, %v11475_v56  ;;  %1532 = vrot.lane.b32.xlu0 %v7159_v33, %s5754_s24 }
  0xfb   : > { %11471 = vst [vmem:[#allocation88_spill] sm:$0xff] %v11470_v45  ;;  %vm783_vm9 = vmand %vm11472_vm10, %vm7120_vm15  ;;  %v11479_v57 = vand.u32 15, %v6247_v32  ;;  %v11480_v52 = vmov 0  ;;  %vm11483_vm15 = vcmask 121856   ;;  %vm11499_vm10 = vcmask 121856  }
  0xfc   : > { %11477 = vst [vmem:[#allocation89_spill] sm:$0xff] %v11476_v56  ;;  %v850_v28 = vsel %vm11483_vm15, %v823_v18, %v825_v20  ;;  %vm11484_vm7 = vmmov %vm11483_vm15  ;;  %vm11487_vm15 = vcmp.ge.s32.totalorder %v6386_v21, 1  ;;  %v11488_v18 = vmov 0  ;;  %v11496_v21 = vmov 0 }
  0xfd   : > { %vm7173_vm5 = vcmp.lt.s32.totalorder %v11479_v57, 15  ;;  %v851_v59 = vsel %vm11484_vm7, %v825_v20, %v827_v44  ;;  %vm11486_vm13 = vmand %vm11294_vm2, %vm7060_vm12  ;;  %v7193_v20 = vcombine.high %v7159_v33, %v7159_v33  ;;  %v829_v57 = vpop.permute.xlu0 %828  ;;  %v11520_v45 = vmov 0 }
  0xfe   : > { %v11481_v52 = vsel %vm7173_vm5, 4294967295, %v11480_v52  ;;  %v882_v8 = vsel %vm11486_vm13, %v850_v28, 0.0  ;;  %v883_v32 = vsel %vm783_vm9, %v851_v59, 0.0  ;;  %vm7199_vm7 = vmand %vm11487_vm15, %vm7163_vm11  ;;  %vm11491_vm13 = vcmp.ge.s32.totalorder %v6388_v22, 1  ;;  %v831_v59 = vpop.permute.xlu1 %830  ;;  %1536 = vrot.lane.b32.xlu0 %v7211_v58, %s5754_s24 }
  0xff   : > { %11482 = vst [vmem:[#allocation90_spill] sm:$0xff] %v11481_v52  ;;  %v11489_v18 = vsel %vm7199_vm7, 4294967295, %v11488_v18  ;;  %898 = vst [vmem:[#allocation3 + $0xb8] sm:$0xf] %v882_v8  ;;  %v11492_v28 = vmov 0  ;;  %vm7215_vm15 = vcmp.lt.s32.totalorder %v11495_v24, 15  ;;  %1534 = vrot.lane.b32.xlu1 %v7193_v20, %s5754_s24 }
 0x100   : > { %11490 = vst [vmem:[#allocation91_spill] sm:$0xff] %v11489_v18  ;;  %899 = vst [vmem:[#allocation3 + $0xc0] sm:$0xf] %v883_v32  ;;  %v11497_v21 = vsel %vm7215_vm15, 4294967295, %v11496_v21  ;;  %v852_v32 = vsel %vm11499_vm10, %v827_v44, %v829_v57  ;;  %v11502_v22 = vand.u32 15, %v6359_v31 }
 0x101   : > { %vm7207_vm9 = vmand %vm11491_vm13, %vm7173_vm5  ;;  %11498 = vst [vmem:[#allocation93_spill] sm:$0xff] %v11497_v21  ;;  %vm11501_vm13 = vnez %v11204_v62 }
 0x102   : > { %v11493_v28 = vsel %vm7207_vm9, 4294967295, %v11492_v28  ;;  %vm11500_vm12 = vmmov %vm11499_vm10  ;;  %vm7227_vm11 = vcmp.lt.s32.totalorder %v11502_v22, 15  ;;  %vm11508_vm10 = vnez %v11238_v54  ;;  %v7251_v22 = vcombine.high %v7211_v58, %v7211_v58  ;;  %v835_v31 = vpop.permute.xlu1 %834 }
 0x103   : > { %11494 = vst [vmem:[#allocation92_spill] sm:$0xff] %v11493_v28  ;;  %v853_v8 = vsel %vm11500_vm12, %v829_v57, %v831_v59  ;;  %v11504_v40 = vsel %vm7227_vm11, 4294967295, %v11503_v40  ;;  %vm11506_vm2 = vmand %vm11478_vm14, %vm7130_vm1  ;;  %v11510_v57 = vmov 0  ;;  %vm11517_vm1 = vcmask 121856  }
 0x104   : > { %11505 = vst [vmem:[#allocation94_spill] sm:$0xff] %v11504_v40  ;;  %v884_v24 = vsel %vm11506_vm2, %v852_v32, 0.0  ;;  %vm11507_vm12 = vmand %vm11485_vm6, %vm7151_vm3  ;;  %vm11509_vm2 = vcmp.ge.s32.totalorder %v6463_v15, 1  ;;  %v7261_v32 = vld [vmem:[#allocation2 + $0x48] sm:$0xff]  ;;  %v11519_v28 = vand.u32 15, %v6402_v35  ;;  %1538 = vrot.lane.b32.xlu1 %v7251_v22, %s5754_s24  ;;  %v11543_v15 = vld [vmem:[#allocation14_spill] sm:$0xff] }
 0x105   : > { %v885_v44 = vsel %vm11507_vm12, %v853_v8, 0.0  ;;  %vm787_vm5 = vmand %vm11508_vm10, %vm7207_vm9  ;;  %900 = vst [vmem:[#allocation3 + $0xc8] sm:$0xf] %v884_v24  ;;  %v833_v8 = vpop.permute.xlu0 %832  ;;  %vm11513_vm9 = vcmp.ge.s32.totalorder %v6484_v17, 1  ;;  %1540 = vrot.lane.b32.xlu0 %v7261_v32, %s5754_s24 }
 0x106   : > { %901 = vst [vmem:[#allocation3 + $0xd0] sm:$0xf] %v885_v44  ;;  %vm7257_vm12 = vmand %vm11509_vm2, %vm7215_vm15  ;;  %v854_v24 = vsel %vm11517_vm1, %v831_v59, %v833_v8  ;;  %vm7275_vm2 = vcmp.lt.s32.totalorder %v11519_v28, 15  ;;  %v7294_v28 = vcombine.high %v7261_v32, %v7261_v32 }
 0x107   : > { %v11511_v57 = vsel %vm7257_vm12, 4294967295, %v11510_v57  ;;  %vm7267_vm3 = vmand %vm11513_vm9, %vm7227_vm11  ;;  %v11521_v45 = vsel %vm7275_vm2, 4294967295, %v11520_v45 }
 0x108   : > { %11512 = vst [vmem:[#allocation95_spill] sm:$0xff] %v11511_v57  ;;  %v11515_v12 = vsel %vm7267_vm3, 4294967295, %v11514_v12  ;;  %vm11518_vm10 = vmmov %vm11517_vm1  ;;  %vm11524_vm1 = vnez %v11262_v47  ;;  %1542 = vrot.lane.b32.xlu1 %v7294_v28, %s5754_s24 }
 0x109   : > { %11516 = vst [vmem:[#allocation96_spill] sm:$0xff] %v11515_v12  ;;  %v855_v44 = vsel %vm11518_vm10, %v833_v8, %v835_v31  ;;  %11522 = vst [vmem:[#allocation97_spill] sm:$0xff] %v11521_v45  ;;  %v837_v59 = vpop.permute.xlu0 %836  ;;  %v839_v8 = vpop.permute.xlu1 %838  ;;  %vm11526_vm10 = vcmp.ge.s32.totalorder %v6551_v39, 1  ;;  %1544 = vrot.lane.b32.xlu0 %v6893_v1, %s5754_s24 }
 0x10a   : > { %vm11523_vm15 = vmand %vm11501_vm13, %vm7199_vm7  ;;  %v887_v17 = vsel %vm787_vm5, %v855_v44, 0.0  ;;  %vm11525_vm5 = vnez %v11269_v16 }
 0x10b   : > { %v886_v6 = vsel %vm11523_vm15, %v854_v24, 0.0  ;;  %vm788_vm9 = vmand %vm11524_vm1, %vm7257_vm12  ;;  %903 = vst [vmem:[#allocation3 + $0xe0] sm:$0xf] %v887_v17  ;;  %v11527_v24 = vmov 0  ;;  %vm11530_vm12 = vcmask 121856  }
 0x10c   : > { %902 = vst [vmem:[#allocation3 + $0xd8] sm:$0xf] %v886_v6  ;;  %vm789_vm15 = vmand %vm11525_vm5, %vm7267_vm3  ;;  %v856_v44 = vsel %vm11530_vm12, %v835_v31, %v837_v59  ;;  %1546 = vrot.lane.b32.xlu1 %v6915_v30, %s5754_s24 }
 0x10d   : > { %vm7304_vm7 = vmand %vm11526_vm10, %vm7275_vm2  ;;  %v888_v17 = vsel %vm788_vm9, %v856_v44, 0.0  ;;  %vm11532_vm10 = vnez %v11286_v25  ;;  %v841_v12 = vpop.permute.xlu0 %840  ;;  %v950_v57 = vpop.permute.xlu1 %949  ;;  %v11534_v44 = vld [vmem:[#allocation33_spill] sm:$0xff]  ;;  %vm11536_vm9 = vnez %v11124_v38  ;;  %vm10824_vm2 = vcmask 7168   ;;  %1548 = vrot.lane.b32.xlu0 %v6941_v49, %s5754_s24 }
 0x10e   : > { %v11528_v24 = vsel %vm7304_vm7, 4294967295, %v11527_v24  ;;  %vm11531_vm11 = vmmov %vm11530_vm12  ;;  %904 = vst [vmem:[#allocation3 + $0xe8] sm:$0xf] %v888_v17 }
 0x10f   : > { %11529 = vst [vmem:[#allocation98_spill] sm:$0xff] %v11528_v24  ;;  %v857_v6 = vsel %vm11531_vm11, %v837_v59, %v839_v8  ;;  %vm790_vm3 = vmand %vm11532_vm10, %vm7304_vm7  ;;  %vm11539_vm10 = vnez %v11129_v60 }
 0x110   : > { %v889_v35 = vsel %vm789_vm15, %v857_v6, 0.0  ;;  %vm11533_vm12 = vmmov %vm11531_vm11  ;;  %vm11535_vm11 = vnez %v11534_v44  ;;  %1550 = vrot.lane.b32.xlu1 %v6979_v36, %s5754_s24 }
 0x111   : > { %905 = vst [vmem:[#allocation3 + $0xf0] sm:$0xf] %v889_v35  ;;  %v858_v31 = vsel %vm11533_vm12, %v839_v8, %v841_v12  ;;  %vm916_vm15 = vmand %vm11536_vm9, %vm11535_vm11  ;;  %v11537_v35 = vld [vmem:[#allocation35_spill] sm:$0xff]  ;;  %v952_v12 = vpop.permute.xlu0 %951  ;;  %v954_v8 = vpop.permute.xlu1 %953  ;;  %vm11542_vm12 = vnez %v11070_v51  ;;  %1552 = vrot.lane.b32.xlu0 %v6995_v0, %s5754_s24 }
 0x112   : > { %v890_v59 = vsel %vm790_vm3, %v858_v31, 0.0  ;;  %vm11538_vm7 = vnez %v11537_v35  ;;  %v984_v6 = vsel %vm10824_vm2, %v950_v57, %v952_v12  ;;  %v985_v17 = vsel %vm10824_vm2, %v952_v12, %v954_v8 }
 0x113   : > { %906 = vst [vmem:[#allocation3 + $0xf8] sm:$0xf] %v890_v59  ;;  %vm917_vm5 = vmand %vm11539_vm10, %vm11538_vm7  ;;  %v1016_v31 = vsel %vm916_vm15, %v984_v6, 0.0  ;;  %v11540_v59 = vld [vmem:[#allocation13_spill] sm:$0xff]  ;;  %vm11544_vm7 = vnez %v11543_v15 }
 0x114   : > { %v1017_v24 = vsel %vm917_vm5, %v985_v17, 0.0  ;;  %vm11541_vm3 = vnez %v11540_v59  ;;  %v1048_v18 = vrot.slane %v1016_v31, 4  ;;  %vm919_vm2 = vmand %vm11410_vm4, %vm11544_vm7  ;;  %vm11545_vm5 = vcmask 7168   ;;  %1554 = vrot.lane.b32.xlu1 %v7034_v9, %s5754_s24 }
 0x115   : > { %vm918_vm11 = vmand %vm11542_vm12, %vm11541_vm3  ;;  %v1049_v39 = vrot.slane %v1017_v24, 4  ;;  %v956_v57 = vpop.permute.xlu0 %955  ;;  %v958_v12 = vpop.permute.xlu1 %957  ;;  %v11547_v24 = vld [vmem:[#allocation18_spill] sm:$0xff]  ;;  %1556 = vrot.lane.b32.xlu0 %v7046_v2, %s5754_s24 }
 0x116   : > { %1080 = vst [vmem:[#allocation3 + $0x80] sm:$0xf0] %v1048_v18  ;;  %v986_v6 = vsel %vm11545_vm5, %v954_v8, %v956_v57  ;;  %vm11546_vm15 = vmmov %vm11545_vm5  ;;  %vm11548_vm3 = vnez %v11547_v24 }
 0x117   : > { %1081 = vst [vmem:[#allocation3 + $0x88] sm:$0xf0] %v1049_v39  ;;  %v987_v17 = vsel %vm11546_vm15, %v956_v57, %v958_v12  ;;  %v1018_v35 = vsel %vm918_vm11, %v986_v6, 0.0  ;;  %vm920_vm7 = vmand %vm11418_vm8, %vm11548_vm3  ;;  %v11549_v39 = vld [vmem:[#allocation19_spill] sm:$0xff] }
 0x118   : > { %v1019_v59 = vsel %vm919_vm2, %v987_v17, 0.0  ;;  %v1050_v31 = vrot.slane %v1018_v35, 4  ;;  %vm11550_vm4 = vnez %v11549_v39  ;;  %vm11551_vm2 = vmmov %vm11546_vm15  ;;  %1558 = vrot.lane.b32.xlu1 %v7090_v37, %s5754_s24  ;;  %v11553_v35 = vld [vmem:[#allocation26_spill] sm:$0xff]  ;;  %v4469_v39 = vld [vmem:[#allocation3] sm:$0xff] }
 0x119   : > { %v1051_v18 = vrot.slane %v1019_v59, 4  ;;  %vm921_vm5 = vmand %vm11439_vm0, %vm11550_vm4  ;;  %v960_v8 = vpop.permute.xlu0 %959  ;;  %v962_v57 = vpop.permute.xlu1 %961  ;;  %vm11554_vm15 = vnez %v11553_v35  ;;  %vm11555_vm4 = vnez %v11106_v53  ;;  %1560 = vrot.lane.b32.xlu0 %v7104_v5, %s5754_s24 }
 0x11a   : > { %1082 = vst [vmem:[#allocation3 + $0x90] sm:$0xf0] %v1050_v31  ;;  %v988_v6 = vsel %vm11551_vm2, %v958_v12, %v960_v8  ;;  %vm11552_vm11 = vmmov %vm11551_vm2  ;;  %vm11558_vm2 = vnez %v11113_v10  ;;  %v4470_v12 = vld [vmem:[#allocation3 + $0x8] sm:$0xff] }
 0x11b   : > { %1083 = vst [vmem:[#allocation3 + $0x98] sm:$0xf0] %v1051_v18  ;;  %v989_v17 = vsel %vm11552_vm11, %v960_v8, %v962_v57  ;;  %v1020_v15 = vsel %vm920_vm7, %v988_v6, 0.0  ;;  %vm922_vm3 = vmand %vm11555_vm4, %vm11554_vm15  ;;  %v11556_v18 = vld [vmem:[#allocation27_spill] sm:$0xff]  ;;  %vm11559_vm7 = vcmask 7168  }
 0x11c   : > { %v1021_v24 = vsel %vm921_vm5, %v989_v17, 0.0  ;;  %v1052_v59 = vrot.slane %v1020_v15, 4  ;;  %vm11557_vm0 = vnez %v11556_v18  ;;  %vm11560_vm5 = vmmov %vm11559_vm7  ;;  %1562 = vrot.lane.b32.xlu1 %v7143_v19, %s5754_s24 }
 0x11d   : > { %v1053_v31 = vrot.slane %v1021_v24, 4  ;;  %vm923_vm11 = vmand %vm11558_vm2, %vm11557_vm0  ;;  %v964_v8 = vpop.permute.xlu0 %963  ;;  %v966_v6 = vpop.permute.xlu1 %965  ;;  %v4485_v44 = vld [vmem:[#allocation3 + $0x80] sm:$0xff] }
 0x11e   : > { %v4486_v17 = vld [vmem:[#allocation3 + $0x88] sm:$0xff]  ;;  %1084 = vst [vmem:[#allocation3 + $0xa0] sm:$0xf0] %v1052_v59  ;;  %v990_v45 = vsel %vm11559_vm7, %v962_v57, %v964_v8  ;;  %v991_v41 = vsel %vm11560_vm5, %v964_v8, %v966_v6  ;;  %v5385_v15 = vpack.c.bf16 %v4485_v44, %v4469_v39  ;;  %v11561_v59 = vld [vmem:[#allocation43_spill] sm:$0xff]  ;;  %vm11563_vm7 = vnez %v11139_v11  ;;  %v11564_v39 = vld [vmem:[#allocation44_spill] sm:$0xff] }
 0x11f   : > { %1085 = vst [vmem:[#allocation3 + $0xa8] sm:$0xf0] %v1053_v31  ;;  %v5383_v50 = vpack.c.bf16 %v4486_v17, %v4470_v12  ;;  %v1022_v24 = vsel %vm922_vm3, %v990_v45, 0.0  ;;  %v1023_v18 = vsel %vm923_vm11, %v991_v41, 0.0  ;;  %vm11562_vm0 = vnez %v11561_v59  ;;  %v1498_v41 = vld [vmem:[#allocation2 + $0x78] sm:$0xf]  ;;  %vm11566_vm11 = vmmov %vm11560_vm5 }
 0x120   : > { %v1054_v57 = vrot.slane %v1022_v24, 4  ;;  %v1055_v44 = vrot.slane %v1023_v18, 4  ;;  %vm11565_vm2 = vnez %v11564_v39  ;;  %v4472_v45 = vld [vmem:[#allocation3 + $0x18] sm:$0xff]  ;;  %v4471_v17 = vld [vmem:[#allocation3 + $0x10] sm:$0xff]  ;;  %vm11567_vm3 = vmand %vm11563_vm7, %vm11562_vm0  ;;  %1564 = vrot.lane.b32.xlu0 %v1498_v41, %s5754_s24  ;;  %1721 = vrot.lane.b32.xlu1 %v7159_v33, %s5755_s25 }
 0x121   : > { %5384 = vmatprep.subr.bf16.mxu0 %v5383_v50  ;;  %v968_v31 = vpop.permute.xlu0 %967  ;;  %v970_v12 = vpop.permute.xlu1 %969  ;;  %v4487_v35 = vld [vmem:[#allocation3 + $0x90] sm:$0xff]  ;;  %vm11568_vm15 = vmand %vm11478_vm14, %vm11565_vm2 }
 0x122   : > { %5386 = vmatpush1.bf16.msra.mxu0 %v5385_v15  ;;  %v4488_v8 = vld [vmem:[#allocation3 + $0x98] sm:$0xff]  ;;  %1086 = vst [vmem:[#allocation3 + $0xb0] sm:$0xf0] %v1054_v57  ;;  %1087 = vst [vmem:[#allocation3 + $0xb8] sm:$0xf0] %v1055_v44  ;;  %v992_v40 = vsel %vm11566_vm11, %v966_v6, %v968_v31  ;;  %v993_v18 = vsel %vm11560_vm5, %v968_v31, %v970_v12  ;;  %v5417_v24 = vpack.c.bf16 %v4487_v35, %v4471_v17  ;;  %v11569_v6 = vld [vmem:[#allocation49_spill] sm:$0xff] }
 0x123   : > { %v5415_v50 = vpack.c.bf16 %v4488_v8, %v4472_v45  ;;  %v1024_v21 = vsel %vm11567_vm3, %v992_v40, 0.0  ;;  %v1025_v15 = vsel %vm11568_vm15, %v993_v18, 0.0  ;;  %vm11570_vm5 = vnez %v11569_v6  ;;  %v11577_v18 = vld [vmem:[#allocation63_spill] sm:$0xff] }
 0x124   : > { %vm926_vm11 = vmand %vm11485_vm6, %vm11570_vm5  ;;  %v1056_v35 = vrot.slane %v1024_v21, 4  ;;  %v1057_v57 = vrot.slane %v1025_v15, 4  ;;  %vm11571_vm3 = vnez %v11214_v42  ;;  %vm11572_vm15 = vcmask 7168   ;;  %1723 = vrot.lane.b32.xlu0 %v7193_v20, %s5755_s25  ;;  %1725 = vrot.lane.b32.xlu1 %v7211_v58, %s5755_s25  ;;  %v11574_v21 = vld [vmem:[#allocation58_spill] sm:$0xff] }
 0x125   : > { %5416 = vmatprep.subr.bf16.mxu1 %v5415_v50  ;;  %vm927_vm2 = vmand %vm11501_vm13, %vm11571_vm3  ;;  %v972_v40 = vpop.permute.xlu0 %971  ;;  %v974_v44 = vpop.permute.xlu1 %973  ;;  %vm11575_vm5 = vnez %v11574_v21  ;;  %vm11576_vm3 = vnez %v11238_v54  ;;  %vm11578_vm6 = vnez %v11577_v18 }
 0x126   : > { %5418 = vmatpush1.bf16.msra.mxu1 %v5417_v24  ;;  %1088 = vst [vmem:[#allocation3 + $0xc0] sm:$0xf0] %v1056_v35  ;;  %1089 = vst [vmem:[#allocation3 + $0xc8] sm:$0xf0] %v1057_v57  ;;  %v994_v33 = vsel %vm11572_vm15, %v970_v12, %v972_v40  ;;  %v11581_v35 = vld [vmem:[#allocation64_spill] sm:$0xff] }
 0x127   : > { %vm11573_vm0 = vmmov %vm11572_vm15  ;;  %v1026_v45 = vsel %vm926_vm11, %v994_v33, 0.0  ;;  %v11584_v33 = vld [vmem:[#allocation68_spill] sm:$0xff] }
 0x128   : > { %v995_v41 = vsel %vm11573_vm0, %v972_v40, %v974_v44  ;;  %vm928_vm13 = vmand %vm11576_vm3, %vm11575_vm5  ;;  %v1058_v8 = vrot.slane %v1026_v45, 4  ;;  %1727 = vrot.lane.b32.xlu0 %v7251_v22, %s5755_s25  ;;  %1729 = vrot.lane.b32.xlu1 %v7261_v32, %s5755_s25 }
 0x129   : > { %v1027_v31 = vsel %vm927_vm2, %v995_v41, 0.0  ;;  %vm929_vm0 = vmand %vm11524_vm1, %vm11578_vm6  ;;  %v976_v12 = vpop.permute.xlu0 %975  ;;  %v978_v50 = vpop.permute.xlu1 %977  ;;  %vm11583_vm6 = vnez %v11269_v16  ;;  %vm11585_vm1 = vnez %v11584_v33 }
 0x12a   : > { %v1059_v17 = vrot.slane %v1027_v31, 4  ;;  %1090 = vst [vmem:[#allocation3 + $0xd0] sm:$0xf0] %v1058_v8  ;;  %vm11579_vm2 = vmmov %vm11572_vm15  ;;  %vm11582_vm15 = vnez %v11581_v35 }
 0x12b   : > { %v996_v20 = vsel %vm11579_vm2, %v974_v44, %v976_v12  ;;  %vm11580_vm11 = vmmov %vm11579_vm2  ;;  %vm11586_vm2 = vnez %v11286_v25 }
 0x12c   : > { %1091 = vst [vmem:[#allocation3 + $0xd8] sm:$0xf0] %v1059_v17  ;;  %v997_v58 = vsel %vm11580_vm11, %v976_v12, %v978_v50  ;;  %v1028_v24 = vsel %vm928_vm13, %v996_v20, 0.0  ;;  %vm930_vm5 = vmand %vm11583_vm6, %vm11582_vm15  ;;  %vm11587_vm13 = vcmask 7168   ;;  %1731 = vrot.lane.b32.xlu0 %v7294_v28, %s5755_s25  ;;  %1733 = vrot.lane.b32.xlu1 %v6893_v1, %s5755_s25  ;;  %vm10844_vm15 = vcmask 1039360  }
 0x12d   : > { %v1029_v15 = vsel %vm929_vm0, %v997_v58, 0.0  ;;  %v1060_v57 = vrot.slane %v1028_v24, 4  ;;  %vm931_vm11 = vmand %vm11586_vm2, %vm11585_vm1  ;;  %v980_v44 = vpop.permute.xlu0 %979  ;;  %v982_v41 = vpop.permute.xlu1 %981  ;;  %vm11589_vm1 = vnez %v11352_v7 }
 0x12e   : > { %v1061_v40 = vrot.slane %v1029_v15, 4  ;;  %v998_v22 = vsel %vm11587_vm13, %v978_v50, %v980_v44  ;;  %vm11588_vm0 = vmmov %vm11587_vm13  ;;  %vm11591_vm13 = vnez %v11377_v43 }
 0x12f   : > { %1092 = vst [vmem:[#allocation3 + $0xe0] sm:$0xf0] %v1060_v57  ;;  %v999_v32 = vsel %vm11588_vm0, %v980_v44, %v982_v41  ;;  %v1030_v45 = vsel %vm930_vm5, %v998_v22, 0.0  ;;  %vm1169_vm2 = vmand %vm11536_vm9, %vm11589_vm1  ;;  %vm11590_vm5 = vnez %v11360_v14  ;;  %vm11594_vm1 = vnez %v11388_v63 }
 0x130   : > { %1093 = vst [vmem:[#allocation3 + $0xe8] sm:$0xf0] %v1061_v40  ;;  %v1031_v31 = vsel %vm931_vm11, %v999_v32, 0.0  ;;  %v1062_v8 = vrot.slane %v1030_v45, 4  ;;  %1735 = vrot.lane.b32.xlu0 %v6915_v30, %s5755_s25  ;;  %1737 = vrot.lane.b32.xlu1 %v6941_v49, %s5755_s25  ;;  %vm1170_vm11 = vmand %vm11539_vm10, %vm11590_vm5  ;;  %vm11593_vm5 = vnez %v11076_v55  ;;  %v11716_v63 = vmov 0 }
 0x131   : > { %v1063_v17 = vrot.slane %v1031_v31, 4  ;;  %v1203_v12 = vpop.permute.xlu0 %1202  ;;  %v1205_v50 = vpop.permute.xlu1 %1204  ;;  %vm1171_vm0 = vmand %vm11542_vm12, %vm11591_vm13 }
 0x132   : > { %1094 = vst [vmem:[#allocation3 + $0xf0] sm:$0xf0] %v1062_v8  ;;  %v1237_v20 = vsel %vm10844_vm15, %v1203_v12, %v1205_v50 }
 0x133   : > { %1095 = vst [vmem:[#allocation3 + $0xf8] sm:$0xf0] %v1063_v17  ;;  %v1269_v58 = vsel %vm1169_vm2, %v1237_v20, 0.0  ;;  %vm11592_vm2 = vnez %v11382_v34 }
 0x134   : > { %v1301_v1 = vrot.slane %v1269_v58, 4  ;;  %1739 = vrot.lane.b32.xlu0 %v6979_v36, %s5755_s25  ;;  %1741 = vrot.lane.b32.xlu1 %v6995_v0, %s5755_s25  ;;  %vm1172_vm13 = vmand %vm11593_vm5, %vm11592_vm2  ;;  %vm11597_vm2 = vnez %v11408_v46  ;;  %vm11599_vm5 = vnez %v11414_v29  ;;  %v11694_v46 = vmov 0 }
 0x135   : > { %v1207_v28 = vpop.permute.xlu0 %1206  ;;  %v1209_v24 = vpop.permute.xlu1 %1208 }
 0x136   : > { %1333 = vst [vmem:[#allocation3 + $0x100] sm:$0xf0] %v1301_v1  ;;  %v1238_v15 = vsel %vm10844_vm15, %v1205_v50, %v1207_v28  ;;  %v1239_v30 = vsel %vm10844_vm15, %v1207_v28, %v1209_v24  ;;  %vm1173_vm15 = vmand %vm11418_vm8, %vm11594_vm1  ;;  %vm11598_vm1 = vnez %v11088_v4  ;;  %v1687_v28 = vld [vmem:[#allocation2 + $0x78] sm:$0xf] }
 0x137   : > { %v1270_v57 = vsel %vm1170_vm11, %v1238_v15, 0.0  ;;  %v1271_v49 = vsel %vm1171_vm0, %v1239_v30, 0.0  ;;  %vm11595_vm11 = vcmask 1039360   ;;  %vm1174_vm8 = vmand %vm11598_vm1, %vm11597_vm2 }
 0x138   : > { %v1302_v40 = vrot.slane %v1270_v57, 4  ;;  %v1303_v44 = vrot.slane %v1271_v49, 4  ;;  %vm11596_vm0 = vmmov %vm11595_vm11  ;;  %1743 = vrot.lane.b32.xlu0 %v7034_v9, %s5755_s25  ;;  %1745 = vrot.lane.b32.xlu1 %v7046_v2, %s5755_s25 }
 0x139   : > { %v1211_v41 = vpop.permute.xlu0 %1210  ;;  %v1213_v22 = vpop.permute.xlu1 %1212 }
 0x13a   : > { %1334 = vst [vmem:[#allocation3 + $0x108] sm:$0xf0] %v1302_v40  ;;  %1335 = vst [vmem:[#allocation3 + $0x110] sm:$0xf0] %v1303_v44  ;;  %v1240_v36 = vsel %vm11595_vm11, %v1209_v24, %v1211_v41  ;;  %v1241_v0 = vsel %vm11596_vm0, %v1211_v41, %v1213_v22  ;;  %v7508_v24 = vld [vmem:[#allocation2 + $0x3c] sm:$0xff] }
 0x13b   : > { %v1272_v32 = vsel %vm1172_vm13, %v1240_v36, 0.0  ;;  %v1273_v45 = vsel %vm1173_vm15, %v1241_v0, 0.0  ;;  %vm1175_vm11 = vmand %vm11555_vm4, %vm11599_vm5  ;;  %vm11603_vm5 = vnez %v11113_v10  ;;  %vm11604_vm4 = vnez %v11443_v13 }
 0x13c   : > { %v1304_v31 = vrot.slane %v1272_v32, 4  ;;  %v1305_v8 = vrot.slane %v1273_v45, 4  ;;  %vm11600_vm15 = vmmov %vm11596_vm0  ;;  %1747 = vrot.lane.b32.xlu0 %v7090_v37, %s5755_s25  ;;  %1749 = vrot.lane.b32.xlu1 %v7104_v5, %s5755_s25  ;;  %v7521_v40 = vcombine.high %v7508_v24, %v7508_v24 }
 0x13d   : > { %v1215_v17 = vpop.permute.xlu0 %1214  ;;  %v1217_v12 = vpop.permute.xlu1 %1216  ;;  %vm11601_vm13 = vmmov %vm11596_vm0  ;;  %vm11602_vm0 = vnez %v11422_v27  ;;  %v11684_v27 = vmov 0 }
 0x13e   : > { %1336 = vst [vmem:[#allocation3 + $0x118] sm:$0xf0] %v1304_v31  ;;  %1337 = vst [vmem:[#allocation3 + $0x120] sm:$0xf0] %v1305_v8  ;;  %v1242_v9 = vsel %vm11600_vm15, %v1213_v22, %v1215_v17  ;;  %v1243_v2 = vsel %vm11601_vm13, %v1215_v17, %v1217_v12  ;;  %v7527_v22 = vld [vmem:[#allocation2 + $0x44] sm:$0xff] }
 0x13f   : > { %v1274_v50 = vsel %vm1174_vm8, %v1242_v9, 0.0  ;;  %v1275_v20 = vsel %vm1175_vm11, %v1243_v2, 0.0  ;;  %vm1176_vm2 = vmand %vm11603_vm5, %vm11602_vm0  ;;  %vm11612_vm0 = vnez %v11204_v62  ;;  %v7541_v8 = vcombine.high %v7527_v22, %v7527_v22  ;;  %v7547_v9 = vld [vmem:[#allocation2 + $0x4c] sm:$0xff] }
 0x140   : > { %v1306_v58 = vrot.slane %v1274_v50, 4  ;;  %v1307_v1 = vrot.slane %v1275_v20, 4  ;;  %vm1177_vm15 = vmand %vm11563_vm7, %vm11604_vm4  ;;  %1751 = vrot.lane.b32.xlu0 %v7143_v19, %s5755_s25  ;;  %1753 = vrot.lane.b32.xlu1 %v1687_v28, %s5755_s25  ;;  %vm11626_vm7 = vnez %v11286_v25 }
 0x141   : > { %v1219_v15 = vpop.permute.xlu0 %1218  ;;  %v1221_v37 = vpop.permute.xlu1 %1220  ;;  %vm11605_vm8 = vmmov %vm11601_vm13  ;;  %vm11607_vm13 = vnez %v11450_v23 }
 0x142   : > { %1338 = vst [vmem:[#allocation3 + $0x128] sm:$0xf0] %v1306_v58  ;;  %1339 = vst [vmem:[#allocation3 + $0x130] sm:$0xf0] %v1307_v1  ;;  %v1244_v5 = vsel %vm11605_vm8, %v1217_v12, %v1219_v15 }
 0x143   : > { %vm11606_vm11 = vmmov %vm11605_vm8  ;;  %v1276_v57 = vsel %vm1176_vm2, %v1244_v5, 0.0  ;;  %vm11608_vm8 = vnez %v11455_v3  ;;  %vm11609_vm2 = vnez %v11176_v26 }
 0x144   : > { %v1245_v30 = vsel %vm11606_vm11, %v1219_v15, %v1221_v37  ;;  %vm1178_vm4 = vmand %vm11478_vm14, %vm11607_vm13  ;;  %v1308_v44 = vrot.slane %v1276_v57, 4  ;;  %1846 = vrot.lane.b32.xlu0 %v7508_v24, %s5748_s18  ;;  %1848 = vrot.lane.b32.xlu1 %v7521_v40, %s5748_s18  ;;  %v11615_v15 = vld [vmem:[#allocation93_spill] sm:$0xff]  ;;  %v11618_v57 = vld [vmem:[#allocation94_spill] sm:$0xff] }
 0x145   : > { %v1277_v49 = vsel %vm1177_vm15, %v1245_v30, 0.0  ;;  %vm1179_vm15 = vmand %vm11609_vm2, %vm11608_vm8  ;;  %v1223_v19 = vpop.permute.xlu0 %1222  ;;  %v1225_v36 = vpop.permute.xlu1 %1224  ;;  %vm11611_vm8 = vnez %v11476_v56  ;;  %v11662_v56 = vmov 0 }
 0x146   : > { %v1309_v41 = vrot.slane %v1277_v49, 4  ;;  %1340 = vst [vmem:[#allocation3 + $0x138] sm:$0xf0] %v1308_v44  ;;  %v1246_v0 = vsel %vm11606_vm11, %v1221_v37, %v1223_v19  ;;  %vm11610_vm13 = vmmov %vm11606_vm11  ;;  %v7561_v37 = vcombine.high %v7547_v9, %v7547_v9  ;;  %v7567_v49 = vld [vmem:[#allocation2 + $0x54] sm:$0xff]  ;;  %v11620_v44 = vld [vmem:[#allocation28_spill] sm:$0xff] }
 0x147   : > { %v1247_v32 = vsel %vm11610_vm13, %v1223_v19, %v1225_v36  ;;  %v1278_v45 = vsel %vm1178_vm4, %v1246_v0, 0.0  ;;  %vm1180_vm2 = vmand %vm11612_vm0, %vm11611_vm8  ;;  %vm11613_vm4 = vnez %v11481_v52  ;;  %vm11617_vm8 = vnez %v11262_v47  ;;  %v11659_v52 = vld [vmem:[#allocation18_spill] sm:$0xff] }
 0x148   : > { %1341 = vst [vmem:[#allocation3 + $0x140] sm:$0xf0] %v1309_v41  ;;  %v1279_v31 = vsel %vm1179_vm15, %v1247_v32, 0.0  ;;  %v1310_v17 = vrot.slane %v1278_v45, 4  ;;  %vm1181_vm13 = vmand %vm11576_vm3, %vm11613_vm4  ;;  %1850 = vrot.lane.b32.xlu0 %v7527_v22, %s5748_s18  ;;  %1852 = vrot.lane.b32.xlu1 %v7541_v8, %s5748_s18  ;;  %vm11616_vm4 = vnez %v11615_v15  ;;  %v11624_v45 = vld [vmem:[#allocation97_spill] sm:$0xff] }
 0x149   : > { %v1311_v12 = vrot.slane %v1279_v31, 4  ;;  %v1227_v2 = vpop.permute.xlu0 %1226  ;;  %v1229_v50 = vpop.permute.xlu1 %1228  ;;  %vm11614_vm15 = vmmov %vm11606_vm11  ;;  %vm11625_vm14 = vnez %v11624_v45  ;;  %v11627_v31 = vld [vmem:[#allocation9_spill] sm:$0xff]  ;;  %v11651_v45 = vld [vmem:[#allocation14_spill] sm:$0xff] }
 0x14a   : > { %1342 = vst [vmem:[#allocation3 + $0x148] sm:$0xf0] %v1310_v17  ;;  %v1248_v20 = vsel %vm11614_vm15, %v1225_v36, %v1227_v2  ;;  %v1249_v58 = vsel %vm11606_vm11, %v1227_v2, %v1229_v50  ;;  %v11621_v36 = vld [vmem:[#allocation29_spill] sm:$0xff]  ;;  %vm11622_vm3 = vmmov %vm11614_vm15  ;;  %v7589_v2 = vcombine.high %v7567_v49, %v7567_v49 }
 0x14b   : > { %1343 = vst [vmem:[#allocation3 + $0x150] sm:$0xf0] %v1311_v12  ;;  %v1280_v1 = vsel %vm1180_vm2, %v1248_v20, 0.0  ;;  %v1281_v28 = vsel %vm1181_vm13, %v1249_v58, 0.0  ;;  %vm11619_vm2 = vnez %v11618_v57  ;;  %vm10851_vm11 = vcmp.lt.s32.totalorder %v11621_v36, 15  ;;  %vm11623_vm0 = vmmov %vm11622_vm3 }
 0x14c   : > { %v1312_v5 = vrot.slane %v1280_v1, 4  ;;  %v1313_v30 = vrot.slane %v1281_v28, 4  ;;  %vm1183_vm13 = vmand %vm11583_vm6, %vm11619_vm2  ;;  %1854 = vrot.lane.b32.xlu0 %v7547_v9, %s5748_s18  ;;  %1856 = vrot.lane.b32.xlu1 %v7561_v37, %s5748_s18  ;;  %v11632_v20 = vmov 0  ;;  %v11635_v28 = vld [vmem:[#allocation35_spill] sm:$0xff]  ;;  %v11654_v57 = vmov 0 }
 0x14d   : > { %v1231_v41 = vpop.permute.xlu0 %1230  ;;  %v1233_v19 = vpop.permute.xlu1 %1232  ;;  %vm11628_vm15 = vmand %vm11617_vm8, %vm11616_vm4  ;;  %vm11646_vm4 = vcmask 1039360  }
 0x14e   : > { %1344 = vst [vmem:[#allocation3 + $0x158] sm:$0xf0] %v1312_v5  ;;  %1345 = vst [vmem:[#allocation3 + $0x160] sm:$0xf0] %v1313_v30  ;;  %v1250_v0 = vsel %vm11622_vm3, %v1229_v50, %v1231_v41  ;;  %v1251_v32 = vsel %vm11623_vm0, %v1231_v41, %v1233_v19  ;;  %v11629_v50 = vld [vmem:[#allocation33_spill] sm:$0xff]  ;;  %vm11631_vm0 = vcmp.lt.s32.totalorder %v11620_v44, 15 }
 0x14f   : > { %v1282_v17 = vsel %vm11628_vm15, %v1250_v0, 0.0  ;;  %v1283_v12 = vsel %vm1183_vm13, %v1251_v32, 0.0  ;;  %vm11630_vm3 = vnez %v11629_v50  ;;  %vm11636_vm13 = vnez %v11635_v28  ;;  %v7607_v30 = vld [vmem:[#allocation2 + $0x5c] sm:$0xff]  ;;  %v11640_v32 = vld [vmem:[#allocation13_spill] sm:$0xff]  ;;  %vm11648_vm6 = vmand %vm11626_vm7, %vm11625_vm14 }
 0x150   : > { %vm7595_vm5 = vmand %vm11631_vm0, %vm11630_vm3  ;;  %v1314_v58 = vrot.slane %v1282_v17, 4  ;;  %v1315_v1 = vrot.slane %v1283_v12, 4  ;;  %v11637_v5 = vmov 0  ;;  %vm11641_vm2 = vnez %v11640_v32  ;;  %v11647_v12 = vld [vmem:[#allocation11_spill] sm:$0xff]  ;;  %1858 = vrot.lane.b32.xlu0 %v7567_v49, %s5748_s18  ;;  %1860 = vrot.lane.b32.xlu1 %v7589_v2, %s5748_s18 }
 0x151   : > { %v11633_v20 = vsel %vm7595_vm5, 4294967295, %v11632_v20  ;;  %vm7603_vm15 = vmand %vm10851_vm11, %vm11636_vm13  ;;  %v1235_v41 = vpop.permute.xlu0 %1234  ;;  %v1392_v0 = vpop.permute.xlu1 %1391  ;;  %vm11642_vm0 = vcmp.lt.s32.totalorder %v11627_v31, 15  ;;  %v11643_v50 = vmov 0  ;;  %vm11652_vm13 = vnez %v11651_v45 }
 0x152   : > { %11634 = vst [vmem:[#allocation28_spill] sm:$0xff] %v11633_v20  ;;  %v11638_v5 = vsel %vm7603_vm15, 4294967295, %v11637_v5  ;;  %vm7613_vm3 = vmand %vm11642_vm0, %vm11641_vm2  ;;  %v1252_v17 = vsel %vm11646_vm4, %v1233_v19, %v1235_v41  ;;  %v7638_v19 = vcombine.high %v7607_v30, %v7607_v30  ;;  %v7645_v41 = vld [vmem:[#allocation2 + $0x64] sm:$0xff]  ;;  %vm11657_vm11 = vcmask 924672  }
 0x153   : > { %11639 = vst [vmem:[#allocation29_spill] sm:$0xff] %v11638_v5  ;;  %v11644_v50 = vsel %vm7613_vm3, 4294967295, %v11643_v50  ;;  %1346 = vst [vmem:[#allocation3 + $0x168] sm:$0xf0] %v1314_v58  ;;  %v1284_v32 = vsel %vm11648_vm6, %v1252_v17, 0.0  ;;  %v11649_v58 = vld [vmem:[#allocation16_spill] sm:$0xff]  ;;  %vm11660_vm6 = vnez %v11659_v52 }
 0x154   : > { %11645 = vst [vmem:[#allocation9_spill] sm:$0xff] %v11644_v50  ;;  %1347 = vst [vmem:[#allocation3 + $0x170] sm:$0xf0] %v1315_v1  ;;  %v1316_v1 = vrot.slane %v1284_v32, 4  ;;  %v11650_v17 = vld [vmem:[#allocation17_spill] sm:$0xff]  ;;  %1862 = vrot.lane.b32.xlu0 %v7607_v30, %s5748_s18  ;;  %1864 = vrot.lane.b32.xlu1 %v7638_v19, %s5748_s18  ;;  %v7735_v50 = vld [vmem:[#allocation2 + $0x74] sm:$0xff] }
 0x155   : > { %vm1359_vm0 = vmand %vm11539_vm10, %vm7603_vm15  ;;  %v1394_v5 = vpop.permute.xlu0 %1393  ;;  %v1396_v28 = vpop.permute.xlu1 %1395  ;;  %vm11653_vm15 = vcmp.lt.s32.totalorder %v11647_v12, 15  ;;  %vm11661_vm10 = vcmp.lt.s32.totalorder %v11649_v58, 15  ;;  %11692 = vst [vmem:[#allocation102_spill] sm:$0xff] %v7735_v50 }
 0x156   : > { %vm7652_vm2 = vmand %vm11653_vm15, %vm11652_vm13  ;;  %1348 = vst [vmem:[#allocation3 + $0x178] sm:$0xf0] %v1316_v1  ;;  %v1426_v32 = vsel %vm11657_vm11, %v1392_v0, %v1394_v5  ;;  %v11666_v0 = vld [vmem:[#allocation19_spill] sm:$0xff]  ;;  %v11669_v1 = vmov 0  ;;  %vm11676_vm13 = vcmask 924672  }
 0x157   : > { %v11655_v57 = vsel %vm7652_vm2, 4294967295, %v11654_v57  ;;  %vm11658_vm14 = vmmov %vm11657_vm11 }
 0x158   : > { %11656 = vst [vmem:[#allocation11_spill] sm:$0xff] %v11655_v57  ;;  %v1427_v15 = vsel %vm11658_vm14, %v1394_v5, %v1396_v28  ;;  %vm7662_vm4 = vmand %vm11661_vm10, %vm11660_vm6  ;;  %v7677_v5 = vcombine.high %v7645_v41, %v7645_v41  ;;  %vm11667_vm14 = vnez %v11666_v0  ;;  %vm11668_vm10 = vcmp.lt.s32.totalorder %v11650_v17, 15  ;;  %v11675_v0 = vld [vmem:[#allocation23_spill] sm:$0xff]  ;;  %v11678_v57 = vld [vmem:[#allocation37_spill] sm:$0xff]  ;;  %1866 = vrot.lane.b32.xlu0 %v7645_v41, %s5748_s18 }
 0x159   : > { %v11663_v56 = vsel %vm7662_vm4, 4294967295, %v11662_v56  ;;  %vm11665_vm15 = vmand %vm11536_vm9, %vm7595_vm5  ;;  %v1459_v3 = vsel %vm1359_vm0, %v1427_v15, 0.0  ;;  %vm11672_vm0 = vnez %v11076_v55  ;;  %v7691_v15 = vld [vmem:[#allocation2 + $0x6c] sm:$0xff]  ;;  %v1398_v20 = vpop.permute.xlu0 %1397  ;;  %v1400_v52 = vpop.permute.xlu1 %1399  ;;  %vm10890_vm6 = vcmp.lt.s32.totalorder %v11675_v0, 15 }
 0x15a   : > { %11664 = vst [vmem:[#allocation16_spill] sm:$0xff] %v11663_v56  ;;  %v1458_v45 = vsel %vm11665_vm15, %v1426_v32, 0.0  ;;  %vm7683_vm11 = vmand %vm11668_vm10, %vm11667_vm14  ;;  %v11673_v32 = vld [vmem:[#allocation21_spill] sm:$0xff]  ;;  %vm11674_vm10 = vnez %v11083_v61  ;;  %vm10894_vm5 = vcmp.lt.s32.totalorder %v11678_v57, 15  ;;  %1868 = vrot.lane.b32.xlu1 %v7677_v5, %s5748_s18  ;;  %vm11693_vm14 = vnez %v11561_v59 }
 0x15b   : > { %v11670_v1 = vsel %vm7683_vm11, 4294967295, %v11669_v1  ;;  %1474 = vst [vmem:[#allocation3 + $0x180] sm:$0xf] %v1458_v45  ;;  %1475 = vst [vmem:[#allocation3 + $0x188] sm:$0xf] %v1459_v3  ;;  %v1428_v3 = vsel %vm11676_vm13, %v1396_v28, %v1398_v20  ;;  %v11681_v28 = vld [vmem:[#allocation26_spill] sm:$0xff] }
 0x15c   : > { %11671 = vst [vmem:[#allocation17_spill] sm:$0xff] %v11670_v1  ;;  %vm1361_vm15 = vmand %vm11672_vm0, %vm7652_vm2  ;;  %1870 = vrot.lane.b32.xlu0 %v7691_v15, %s5748_s18  ;;  %v11709_v56 = vmov 0 }
 0x15d   : > { %vm11677_vm9 = vmmov %vm11676_vm13  ;;  %vm11683_vm13 = vcmp.lt.s32.totalorder %v11673_v32, 15  ;;  %v1402_v29 = vpop.permute.xlu0 %1401 }
 0x15e   : > { %v1429_v45 = vsel %vm11677_vm9, %v1398_v20, %v1400_v52  ;;  %vm11679_vm0 = vmand %vm11542_vm12, %vm7613_vm3  ;;  %v7717_v20 = vcombine.high %v7691_v15, %v7691_v15  ;;  %vm11682_vm9 = vnez %v11681_v28  ;;  %v1404_v28 = vpop.permute.xlu1 %1403  ;;  %vm11697_vm3 = vcmask 924672  }
 0x15f   : > { %v1460_v23 = vsel %vm11679_vm0, %v1428_v3, 0.0  ;;  %v1461_v13 = vsel %vm1361_vm15, %v1429_v45, 0.0  ;;  %vm7723_vm2 = vmand %vm11683_vm13, %vm11682_vm9  ;;  %v11687_v3 = vld [vmem:[#allocation27_spill] sm:$0xff]  ;;  %v11689_v45 = vmov 0 }
 0x160   : > { %11680 = vst [vmem:[#allocation99_spill] sm:$0xff] %v7717_v20  ;;  %v11685_v27 = vsel %vm7723_vm2, 4294967295, %v11684_v27  ;;  %1476 = vst [vmem:[#allocation3 + $0x190] sm:$0xf] %v1460_v23  ;;  %vm11688_vm0 = vnez %v11687_v3  ;;  %v11700_v3 = vld [vmem:[#allocation41_spill] sm:$0xff]  ;;  %1872 = vrot.lane.b32.xlu1 %v7717_v20, %s5748_s18  ;;  %1874 = vrot.lane.b32.xlu0 %v7735_v50, %s5748_s18 }
 0x161   : > { %11686 = vst [vmem:[#allocation100_spill] sm:$0xff] %v11685_v27  ;;  %1477 = vst [vmem:[#allocation3 + $0x198] sm:$0xf] %v1461_v13  ;;  %v1430_v13 = vsel %vm11697_vm3, %v1400_v52, %v1402_v29  ;;  %v1406_v1 = vpop.permute.xlu0 %1405 }
 0x162   : > { %vm7731_vm15 = vmand %vm10890_vm6, %vm11688_vm0  ;;  %vm11699_vm6 = vnez %v11106_v53 }
 0x163   : > { %v11690_v45 = vsel %vm7731_vm15, 4294967295, %v11689_v45  ;;  %vm7741_vm13 = vmand %vm10894_vm5, %vm11693_vm14 }
 0x164   : > { %11691 = vst [vmem:[#allocation101_spill] sm:$0xff] %v11690_v45  ;;  %v11695_v46 = vsel %vm7741_vm13, 4294967295, %v11694_v46  ;;  %vm11698_vm9 = vmmov %vm11697_vm3  ;;  %v1408_v45 = vpop.permute.xlu1 %1407 }
 0x165   : > { %11696 = vst [vmem:[#allocation103_spill] sm:$0xff] %v11695_v46  ;;  %v1431_v23 = vsel %vm11698_vm9, %v1402_v29, %v1404_v28  ;;  %vm11701_vm7 = vmand %vm11674_vm10, %vm7662_vm4  ;;  %vm11703_vm9 = vnez %v11113_v10  ;;  %v7772_v29 = vcombine.high %v7735_v50, %v7735_v50 }
 0x166   : > { %v1462_v59 = vsel %vm11701_vm7, %v1430_v13, 0.0  ;;  %vm11702_vm3 = vmand %vm11598_vm1, %vm7683_vm11  ;;  %v11704_v13 = vld [vmem:[#allocation46_spill] sm:$0xff]  ;;  %vm11707_vm11 = vnez %v11564_v39  ;;  %vm11712_vm7 = vcmask 924672  }
 0x167   : > { %v1463_v52 = vsel %vm11702_vm3, %v1431_v23, 0.0  ;;  %vm1365_vm5 = vmand %vm11703_vm9, %vm7731_vm15  ;;  %1478 = vst [vmem:[#allocation3 + $0x1a0] sm:$0xf] %v1462_v59  ;;  %vm11705_vm3 = vnez %v11139_v11  ;;  %v11706_v23 = vld [vmem:[#allocation51_spill] sm:$0xff]  ;;  %vm11708_vm15 = vcmp.lt.s32.totalorder %v11700_v3, 15  ;;  %v1432_v59 = vsel %vm11712_vm7, %v1404_v28, %v1406_v1  ;;  %1876 = vrot.lane.b32.xlu1 %v7772_v29, %s5748_s18 }
 0x168   : > { %1479 = vst [vmem:[#allocation3 + $0x1a8] sm:$0xf] %v1463_v52  ;;  %vm10917_vm12 = vcmp.lt.s32.totalorder %v11706_v23, 15  ;;  %vm7784_vm4 = vmand %vm11708_vm15, %vm11707_vm11  ;;  %vm11714_vm9 = vnez %v11569_v6  ;;  %vm11715_vm0 = vcmp.lt.s32.totalorder %v11704_v13, 15  ;;  %v1828_v28 = vld [vmem:[#allocation2 + $0x7c] sm:$0xf]  ;;  %v1412_v27 = vpop.permute.xlu1 %1411 }
 0x169   : > { %v11710_v56 = vsel %vm7784_vm4, 4294967295, %v11709_v56  ;;  %vm11713_vm14 = vmmov %vm11712_vm7  ;;  %1878 = vrot.lane.b32.xlu0 %v1828_v28, %s5748_s18 }
 0x16a   : > { %11711 = vst [vmem:[#allocation104_spill] sm:$0xff] %v11710_v56  ;;  %v1433_v52 = vsel %vm11713_vm14, %v1406_v1, %v1408_v45  ;;  %vm7794_vm1 = vmand %vm11715_vm0, %vm11714_vm9  ;;  %vm11720_vm14 = vnez %v11214_v42  ;;  %v11721_v1 = vmov 0  ;;  %v11727_v42 = vld [vmem:[#allocation59_spill] sm:$0xff]  ;;  %vm11728_vm9 = vcmask 924672  }
 0x16b   : > { %v11717_v63 = vsel %vm7794_vm1, 4294967295, %v11716_v63  ;;  %vm11719_vm15 = vmand %vm11699_vm6, %vm7723_vm2  ;;  %v1465_v34 = vsel %vm1365_vm5, %v1433_v52, 0.0  ;;  %vm11724_vm5 = vnez %v11154_v48  ;;  %v1410_v52 = vpop.permute.xlu0 %1409  ;;  %vm11726_vm2 = vnez %v11176_v26  ;;  %2018 = vrot.lane.b32.xlu1 %v7508_v24, %s5749_s19 }
 0x16c   : > { %11718 = vst [vmem:[#allocation105_spill] sm:$0xff] %v11717_v63  ;;  %v1464_v39 = vsel %vm11719_vm15, %v1432_v59, 0.0  ;;  %vm7811_vm0 = vmand %vm10917_vm12, %vm11720_vm14  ;;  %v11725_v59 = vld [vmem:[#allocation52_spill] sm:$0xff]  ;;  %vm10932_vm14 = vcmp.lt.s32.totalorder %v11727_v42, 15 }
 0x16d   : > { %v11722_v1 = vsel %vm7811_vm0, 4294967295, %v11721_v1  ;;  %1480 = vst [vmem:[#allocation3 + $0x1b0] sm:$0xf] %v1464_v39  ;;  %1481 = vst [vmem:[#allocation3 + $0x1b8] sm:$0xf] %v1465_v34  ;;  %v1434_v39 = vsel %vm11728_vm9, %v1408_v45, %v1410_v52  ;;  %v11734_v45 = vmov 0  ;;  %2020 = vrot.lane.b32.xlu0 %v7521_v40, %s5749_s19 }
 0x16e   : > { %11723 = vst [vmem:[#allocation106_spill] sm:$0xff] %v11722_v1  ;;  %vm1367_vm7 = vmand %vm11724_vm5, %vm7784_vm4  ;;  %vm11730_vm4 = vnez %v11204_v62  ;;  %vm11737_vm5 = vnez %v11577_v18 }
 0x16f   : > { %vm11729_vm11 = vmmov %vm11728_vm9  ;;  %vm11732_vm9 = vnez %v11574_v21  ;;  %v1414_v28 = vpop.permute.xlu0 %1413  ;;  %2022 = vrot.lane.b32.xlu1 %v7527_v22, %s5749_s19 }
 0x170   : > { %v1435_v34 = vsel %vm11729_vm11, %v1410_v52, %v1412_v27  ;;  %vm11731_vm15 = vmand %vm11705_vm3, %vm7741_vm13  ;;  %vm11733_vm11 = vcmp.lt.s32.totalorder %v11725_v59, 15  ;;  %v11738_v52 = vmov 0  ;;  %vm11742_vm13 = vcmask 924672  }
 0x171   : > { %v1466_v56 = vsel %vm11731_vm15, %v1434_v39, 0.0  ;;  %v1467_v6 = vsel %vm1367_vm7, %v1435_v34, 0.0  ;;  %vm7843_vm12 = vmand %vm11733_vm11, %vm11732_vm9  ;;  %v1416_v39 = vpop.permute.xlu1 %1415  ;;  %v11741_v34 = vld [vmem:[#allocation60_spill] sm:$0xff]  ;;  %v1436_v46 = vsel %vm11742_vm13, %v1412_v27, %v1414_v28  ;;  %vm11744_vm9 = vnez %v11238_v54  ;;  %2024 = vrot.lane.b32.xlu0 %v7541_v8, %s5749_s19 }
 0x172   : > { %v11735_v45 = vsel %vm7843_vm12, 4294967295, %v11734_v45  ;;  %1482 = vst [vmem:[#allocation3 + $0x1c0] sm:$0xf] %v1466_v56  ;;  %1483 = vst [vmem:[#allocation3 + $0x1c8] sm:$0xf] %v1467_v6  ;;  %vm10947_vm15 = vcmp.lt.s32.totalorder %v11741_v34, 15 }
 0x173   : > { %11736 = vst [vmem:[#allocation107_spill] sm:$0xff] %v11735_v45  ;;  %vm7851_vm7 = vmand %vm10932_vm14, %vm11737_vm5  ;;  %v11745_v56 = vld [vmem:[#allocation65_spill] sm:$0xff]  ;;  %2026 = vrot.lane.b32.xlu1 %v7547_v9, %s5749_s19 }
 0x174   : > { %v11739_v52 = vsel %vm7851_vm7, 4294967295, %v11738_v52  ;;  %vm11743_vm11 = vmmov %vm11742_vm13 }
 0x175   : > { %11740 = vst [vmem:[#allocation108_spill] sm:$0xff] %v11739_v52  ;;  %v1437_v21 = vsel %vm11743_vm11, %v1414_v28, %v1416_v39  ;;  %vm1370_vm3 = vmand %vm11744_vm9, %vm7843_vm12  ;;  %v1420_v28 = vpop.permute.xlu1 %1419  ;;  %vm11753_vm12 = vcmp.lt.s32.totalorder %v11745_v56, 15  ;;  %v11754_v52 = vmov 0  ;;  %2028 = vrot.lane.b32.xlu0 %v7561_v37, %s5749_s19 }
 0x176   : > { %vm11746_vm14 = vmand %vm11726_vm2, %vm7794_vm1 }
 0x177   : > { %v1468_v6 = vsel %vm11746_vm14, %v1436_v46, 0.0  ;;  %vm11747_vm13 = vmand %vm11730_vm4, %vm7811_vm0  ;;  %vm11748_vm14 = vnez %v11581_v35  ;;  %v11749_v46 = vmov 0  ;;  %2030 = vrot.lane.b32.xlu1 %v7567_v49, %s5749_s19 }
 0x178   : > { %v1469_v27 = vsel %vm11747_vm13, %v1437_v21, 0.0  ;;  %vm1371_vm11 = vmand %vm11617_vm8, %vm7851_vm7  ;;  %1484 = vst [vmem:[#allocation3 + $0x1d0] sm:$0xf] %v1468_v6  ;;  %v1418_v21 = vpop.permute.xlu0 %1417  ;;  %vm11752_vm13 = vnez %v11584_v33  ;;  %vm11757_vm7 = vcmask 924672  }
 0x179   : > { %1485 = vst [vmem:[#allocation3 + $0x1d8] sm:$0xf] %v1469_v27  ;;  %vm7885_vm6 = vmand %vm10947_vm15, %vm11748_vm14  ;;  %v1438_v6 = vsel %vm11757_vm7, %v1416_v39, %v1418_v21  ;;  %vm11759_vm15 = vnez %v11269_v16  ;;  %2032 = vrot.lane.b32.xlu0 %v7589_v2, %s5749_s19 }
 0x17a   : > { %v11750_v46 = vsel %vm7885_vm6, 4294967295, %v11749_v46  ;;  %vm7893_vm0 = vmand %vm11753_vm12, %vm11752_vm13  ;;  %v1470_v45 = vsel %vm1370_vm3, %v1438_v6, 0.0  ;;  %vm11761_vm3 = vcmask 924672   ;;  %vm11763_vm13 = vcmp.lt.s32.totalorder %v11620_v44, 15 }
 0x17b   : > { %11751 = vst [vmem:[#allocation109_spill] sm:$0xff] %v11750_v46  ;;  %v11755_v52 = vsel %vm7893_vm0, 4294967295, %v11754_v52  ;;  %vm11758_vm1 = vmmov %vm11757_vm7  ;;  %vm11760_vm7 = vnez %v11286_v25  ;;  %2034 = vrot.lane.b32.xlu1 %v7607_v30, %s5749_s19 }
 0x17c   : > { %11756 = vst [vmem:[#allocation110_spill] sm:$0xff] %v11755_v52  ;;  %v1439_v27 = vsel %vm11758_vm1, %v1418_v21, %v1420_v28  ;;  %vm1372_vm12 = vmand %vm11759_vm15, %vm7885_vm6  ;;  %v1422_v39 = vpop.permute.xlu0 %1421  ;;  %v1424_v21 = vpop.permute.xlu1 %1423  ;;  %vm10955_vm6 = vcmask 916480  }
 0x17d   : > { %v1471_v1 = vsel %vm1371_vm11, %v1439_v27, 0.0  ;;  %1486 = vst [vmem:[#allocation3 + $0x1e0] sm:$0xf] %v1470_v45  ;;  %vm1373_vm1 = vmand %vm11760_vm7, %vm7893_vm0  ;;  %v1440_v6 = vsel %vm11761_vm3, %v1420_v28, %v1422_v39  ;;  %vm11764_vm0 = vnez %v11124_v38  ;;  %2036 = vrot.lane.b32.xlu0 %v7638_v19, %s5749_s19 }
 0x17e   : > { %1487 = vst [vmem:[#allocation3 + $0x1e8] sm:$0xf] %v1471_v1  ;;  %vm11762_vm11 = vmmov %vm11761_vm3  ;;  %v1472_v63 = vsel %vm1372_vm12, %v1440_v6, 0.0  ;;  %vm11765_vm12 = vcmp.lt.s32.totalorder %v11621_v36, 15 }
 0x17f   : > { %v1441_v27 = vsel %vm11762_vm11, %v1422_v39, %v1424_v21  ;;  %1488 = vst [vmem:[#allocation3 + $0x1f0] sm:$0xf] %v1472_v63  ;;  %vm1499_vm14 = vmand %vm11764_vm0, %vm11763_vm13  ;;  %vm11767_vm11 = vcmp.lt.s32.totalorder %v11627_v31, 15  ;;  %vm11768_vm13 = vnez %v11070_v51  ;;  %2038 = vrot.lane.b32.xlu1 %v7645_v41, %s5749_s19 }
 0x180   : > { %v1473_v33 = vsel %vm1373_vm1, %v1441_v27, 0.0  ;;  %v1533_v1 = vpop.permute.xlu0 %1532  ;;  %v1535_v45 = vpop.permute.xlu1 %1534  ;;  %vm11766_vm1 = vnez %v11129_v60  ;;  %vm1501_vm5 = vmand %vm11768_vm13, %vm11767_vm11 }
 0x181   : > { %1489 = vst [vmem:[#allocation3 + $0x1f8] sm:$0xf] %v1473_v33  ;;  %v1567_v28 = vsel %vm10955_vm6, %v1533_v1, %v1535_v45  ;;  %vm1500_vm3 = vmand %vm11766_vm1, %vm11765_vm12  ;;  %vm11770_vm12 = vnez %v11076_v55  ;;  %2040 = vrot.lane.b32.xlu0 %v7677_v5, %s5749_s19 }
 0x182   : > { %v1599_v39 = vsel %vm1499_vm14, %v1567_v28, 0.0  ;;  %vm11769_vm14 = vcmp.lt.s32.totalorder %v11647_v12, 15 }
 0x183   : > { %v1631_v63 = vrot.slane %v1599_v39, 4  ;;  %vm7944_vm11 = vmand %vm11770_vm12, %vm11769_vm14  ;;  %2042 = vrot.lane.b32.xlu1 %v7691_v15, %s5749_s19  ;;  %vm11777_vm14 = vnez %v11088_v4 }
 0x184   : > { %v1537_v33 = vpop.permute.xlu0 %1536  ;;  %v1539_v21 = vpop.permute.xlu1 %1538 }
 0x185   : > { %1663 = vst [vmem:[#allocation3 + $0x180] sm:$0xf0] %v1631_v63  ;;  %v1568_v6 = vsel %vm10955_vm6, %v1535_v45, %v1537_v33  ;;  %v1569_v27 = vsel %vm10955_vm6, %v1537_v33, %v1539_v21  ;;  %vm11773_vm6 = vcmp.lt.s32.totalorder %v11649_v58, 15  ;;  %2044 = vrot.lane.b32.xlu0 %v7717_v20, %s5749_s19 }
 0x186   : > { %v1600_v1 = vsel %vm1500_vm3, %v1568_v6, 0.0  ;;  %v1601_v28 = vsel %vm1501_vm5, %v1569_v27, 0.0  ;;  %vm1503_vm5 = vmand %vm11674_vm10, %vm11773_vm6  ;;  %vm11774_vm3 = vcmask 916480   ;;  %vm11776_vm6 = vcmp.lt.s32.totalorder %v11650_v17, 15 }
 0x187   : > { %v1632_v63 = vrot.slane %v1600_v1, 4  ;;  %v1633_v45 = vrot.slane %v1601_v28, 4  ;;  %vm11775_vm13 = vmmov %vm11774_vm3  ;;  %2046 = vrot.lane.b32.xlu1 %v7735_v50, %s5749_s19 }
 0x188   : > { %v1541_v33 = vpop.permute.xlu0 %1540  ;;  %v1543_v6 = vpop.permute.xlu1 %1542  ;;  %vm7964_vm10 = vmand %vm11777_vm14, %vm11776_vm6  ;;  %vm11783_vm6 = vcmp.lt.s32.totalorder %v11675_v0, 15 }
 0x189   : > { %1664 = vst [vmem:[#allocation3 + $0x188] sm:$0xf0] %v1632_v63  ;;  %1665 = vst [vmem:[#allocation3 + $0x190] sm:$0xf0] %v1633_v45  ;;  %v1570_v27 = vsel %vm11774_vm3, %v1539_v21, %v1541_v33  ;;  %v1571_v52 = vsel %vm11775_vm13, %v1541_v33, %v1543_v6  ;;  %vm11780_vm13 = vcmp.lt.s32.totalorder %v11673_v32, 15  ;;  %2048 = vrot.lane.b32.xlu0 %v7772_v29, %s5749_s19 }
 0x18a   : > { %v1602_v46 = vsel %vm7944_vm11, %v1570_v27, 0.0  ;;  %v1603_v35 = vsel %vm1503_vm5, %v1571_v52, 0.0  ;;  %vm11781_vm11 = vnez %v11106_v53  ;;  %vm11782_vm12 = vmmov %vm11774_vm3 }
 0x18b   : > { %v1634_v21 = vrot.slane %v1602_v46, 4  ;;  %v1635_v28 = vrot.slane %v1603_v35, 4  ;;  %vm1505_vm5 = vmand %vm11781_vm11, %vm11780_vm13  ;;  %vm11784_vm13 = vnez %v11113_v10  ;;  %v4501_v10 = vld [vmem:[#allocation3 + $0x100] sm:$0xff] }
 0x18c   : > { %v1545_v52 = vpop.permute.xlu0 %1544  ;;  %v1547_v39 = vpop.permute.xlu1 %1546  ;;  %vm7984_vm11 = vmand %vm11784_vm13, %vm11783_vm6 }
 0x18d   : > { %1666 = vst [vmem:[#allocation3 + $0x198] sm:$0xf0] %v1634_v21  ;;  %1667 = vst [vmem:[#allocation3 + $0x1a0] sm:$0xf0] %v1635_v28  ;;  %v1572_v63 = vsel %vm11774_vm3, %v1543_v6, %v1545_v52  ;;  %v1573_v45 = vsel %vm11782_vm12, %v1545_v52, %v1547_v39  ;;  %vm11787_vm12 = vcmp.lt.s32.totalorder %v11678_v57, 15  ;;  %v4517_v28 = vld [vmem:[#allocation3 + $0x180] sm:$0xff]  ;;  %2142 = vrot.lane.b32.xlu0 %v7508_v24, %s5750_s20 }
 0x18e   : > { %v1604_v33 = vsel %vm7964_vm10, %v1572_v63, 0.0  ;;  %v1605_v27 = vsel %vm1505_vm5, %v1573_v45, 0.0  ;;  %vm11788_vm10 = vnez %v11139_v11  ;;  %v2000_v21 = vld [vmem:[#allocation2 + $0x7c] sm:$0xf]  ;;  %v4502_v45 = vld [vmem:[#allocation3 + $0x108] sm:$0xff]  ;;  %vm11791_vm6 = vmmov %vm11774_vm3 }
 0x18f   : > { %v1636_v46 = vrot.slane %v1604_v33, 4  ;;  %v1637_v6 = vrot.slane %v1605_v27, 4  ;;  %vm7992_vm5 = vmand %vm11788_vm10, %vm11787_vm12  ;;  %2050 = vrot.lane.b32.xlu1 %v2000_v21, %s5749_s19  ;;  %vm11792_vm12 = vcmp.lt.s32.totalorder %v11700_v3, 15  ;;  %vm11793_vm10 = vnez %v11154_v48 }
 0x190   : > { %v1549_v52 = vpop.permute.xlu0 %1548  ;;  %v1551_v63 = vpop.permute.xlu1 %1550  ;;  %v4518_v18 = vld [vmem:[#allocation3 + $0x188] sm:$0xff] }
 0x191   : > { %1668 = vst [vmem:[#allocation3 + $0x1a8] sm:$0xf0] %v1636_v46  ;;  %1669 = vst [vmem:[#allocation3 + $0x1b0] sm:$0xf0] %v1637_v6  ;;  %v1574_v50 = vsel %vm11774_vm3, %v1547_v39, %v1549_v52  ;;  %v1575_v33 = vsel %vm11791_vm6, %v1549_v52, %v1551_v63  ;;  %v5387_v27 = vpack.c.bf16 %v4518_v18, %v4502_v45  ;;  %v4519_v6 = vld [vmem:[#allocation3 + $0x190] sm:$0xff]  ;;  %v4504_v52 = vld [vmem:[#allocation3 + $0x118] sm:$0xff]  ;;  %2146 = vrot.lane.b32.xlu0 %v7527_v22, %s5750_s20 }
 0x192   : > { %v1606_v11 = vsel %vm7984_vm11, %v1574_v50, 0.0  ;;  %v1607_v20 = vsel %vm7992_vm5, %v1575_v33, 0.0  ;;  %vm8009_vm3 = vmand %vm11793_vm10, %vm11792_vm12  ;;  %v5389_v18 = vpack.c.bf16 %v4517_v28, %v4501_v10  ;;  %vm11796_vm11 = vcmp.lt.s32.totalorder %v11704_v13, 15  ;;  %v4503_v28 = vld [vmem:[#allocation3 + $0x110] sm:$0xff] }
 0x193   : > { %v1638_v46 = vrot.slane %v1606_v11, 4  ;;  %v1639_v35 = vrot.slane %v1607_v20, 4  ;;  %5388 = vmatprep.subr.bf16.mxu0 %v5387_v27  ;;  %vm8017_vm5 = vmand %vm11726_vm2, %vm11796_vm11  ;;  %2144 = vrot.lane.b32.xlu1 %v7521_v40, %s5750_s20  ;;  %vm11800_vm11 = vcmp.lt.s32.totalorder %v11706_v23, 15 }
 0x194   : > { %v1553_v1 = vpop.permute.xlu0 %1552  ;;  %5390 = vmatpush1.bf16.msra.mxu0 %v5389_v18  ;;  %v1555_v21 = vpop.permute.xlu1 %1554  ;;  %v4520_v45 = vld [vmem:[#allocation3 + $0x198] sm:$0xff]  ;;  %vm11799_vm12 = vmmov %vm11791_vm6  ;;  %v5421_v18 = vpack.c.bf16 %v4519_v6, %v4503_v28 }
 0x195   : > { %1670 = vst [vmem:[#allocation3 + $0x1b8] sm:$0xf0] %v1638_v46  ;;  %1671 = vst [vmem:[#allocation3 + $0x1c0] sm:$0xf0] %v1639_v35  ;;  %v1576_v10 = vsel %vm11791_vm6, %v1551_v63, %v1553_v1  ;;  %v1577_v11 = vsel %vm11799_vm12, %v1553_v1, %v1555_v21  ;;  %v5419_v20 = vpack.c.bf16 %v4520_v45, %v4504_v52  ;;  %2150 = vrot.lane.b32.xlu0 %v7547_v9, %s5750_s20 }
 0x196   : > { %v1608_v33 = vsel %vm8009_vm3, %v1576_v10, 0.0  ;;  %v1609_v27 = vsel %vm8017_vm5, %v1577_v11, 0.0  ;;  %vm8035_vm6 = vmand %vm11730_vm4, %vm11800_vm11  ;;  %vm11803_vm3 = vcmp.lt.s32.totalorder %v11725_v59, 15 }
 0x197   : > { %v1640_v39 = vrot.slane %v1608_v33, 4  ;;  %v1641_v46 = vrot.slane %v1609_v27, 4  ;;  %5420 = vmatprep.subr.bf16.mxu1 %v5419_v20  ;;  %vm1511_vm5 = vmand %vm11744_vm9, %vm11803_vm3  ;;  %2148 = vrot.lane.b32.xlu1 %v7541_v8, %s5750_s20  ;;  %vm11805_vm3 = vcmp.lt.s32.totalorder %v11727_v42, 15 }
 0x198   : > { %v1557_v35 = vpop.permute.xlu0 %1556  ;;  %5422 = vmatpush1.bf16.msra.mxu1 %v5421_v18  ;;  %v1559_v50 = vpop.permute.xlu1 %1558  ;;  %vm11804_vm11 = vmmov %vm11799_vm12 }
 0x199   : > { %1672 = vst [vmem:[#allocation3 + $0x1c8] sm:$0xf0] %v1640_v39  ;;  %1673 = vst [vmem:[#allocation3 + $0x1d0] sm:$0xf0] %v1641_v46  ;;  %v1578_v1 = vsel %vm11799_vm12, %v1555_v21, %v1557_v35  ;;  %v1579_v52 = vsel %vm11804_vm11, %v1557_v35, %v1559_v50  ;;  %vm11808_vm12 = vcmp.lt.s32.totalorder %v11741_v34, 15  ;;  %v11816_v46 = vmov 0  ;;  %2154 = vrot.lane.b32.xlu0 %v7567_v49, %s5750_s20 }
 0x19a   : > { %v1610_v6 = vsel %vm8035_vm6, %v1578_v1, 0.0  ;;  %v1611_v45 = vsel %vm1511_vm5, %v1579_v52, 0.0  ;;  %vm8055_vm9 = vmand %vm11617_vm8, %vm11805_vm3  ;;  %vm11811_vm3 = vcmp.lt.s32.totalorder %v11745_v56, 15  ;;  %v11820_v1 = vmov 0 }
 0x19b   : > { %v1642_v21 = vrot.slane %v1610_v6, 4  ;;  %v1643_v11 = vrot.slane %v1611_v45, 4  ;;  %vm1513_vm6 = vmand %vm11759_vm15, %vm11808_vm12  ;;  %2152 = vrot.lane.b32.xlu1 %v7561_v37, %s5750_s20  ;;  %vm11814_vm12 = vnez %v11352_v7  ;;  %vm11823_vm15 = vcmp.lt.s32.totalorder %v11627_v31, 15 }
 0x19c   : > { %v1561_v20 = vpop.permute.xlu0 %1560  ;;  %v1563_v28 = vpop.permute.xlu1 %1562  ;;  %vm11809_vm5 = vmmov %vm11804_vm11  ;;  %v11824_v45 = vmov 0 }
 0x19d   : > { %1674 = vst [vmem:[#allocation3 + $0x1d8] sm:$0xf0] %v1642_v21  ;;  %1675 = vst [vmem:[#allocation3 + $0x1e0] sm:$0xf0] %v1643_v11  ;;  %v1580_v33 = vsel %vm11809_vm5, %v1559_v50, %v1561_v20  ;;  %2158 = vrot.lane.b32.xlu0 %v7607_v30, %s5750_s20 }
 0x19e   : > { %vm11810_vm11 = vmmov %vm11809_vm5  ;;  %v1612_v18 = vsel %vm8055_vm9, %v1580_v33, 0.0  ;;  %vm11815_vm5 = vcmp.lt.s32.totalorder %v11620_v44, 15  ;;  %vm11819_vm9 = vcmp.lt.s32.totalorder %v11621_v36, 15  ;;  %v11828_v33 = vld [vmem:[#allocation72_spill] sm:$0xff] }
 0x19f   : > { %v1581_v27 = vsel %vm11810_vm11, %v1561_v20, %v1563_v28  ;;  %vm8069_vm8 = vmand %vm11760_vm7, %vm11811_vm3  ;;  %v1644_v35 = vrot.slane %v1612_v18, 4  ;;  %vm11818_vm3 = vnez %v11360_v14  ;;  %vm11822_vm7 = vnez %v11377_v43  ;;  %2156 = vrot.lane.b32.xlu1 %v7589_v2, %s5750_s20  ;;  %v11833_v18 = vld [vmem:[#allocation73_spill] sm:$0xff] }
 0x1a0   : > { %v1613_v39 = vsel %vm1513_vm6, %v1581_v27, 0.0  ;;  %vm8083_vm11 = vmand %vm11815_vm5, %vm11814_vm12  ;;  %v1565_v52 = vpop.permute.xlu0 %1564  ;;  %v1722_v6 = vpop.permute.xlu1 %1721  ;;  %vm11826_vm12 = vcmask 916480   ;;  %v11831_v27 = vmov 0 }
 0x1a1   : > { %v11817_v46 = vsel %vm8083_vm11, 4294967295, %v11816_v46  ;;  %v1645_v50 = vrot.slane %v1613_v39, 4  ;;  %vm8091_vm6 = vmand %vm11819_vm9, %vm11818_vm3  ;;  %1676 = vst [vmem:[#allocation3 + $0x1e8] sm:$0xf0] %v1644_v35  ;;  %v1582_v10 = vsel %vm11826_vm12, %v1563_v28, %v1565_v52  ;;  %vm11827_vm9 = vnez %v11070_v51  ;;  %v11840_v52 = vld [vmem:[#allocation77_spill] sm:$0xff]  ;;  %2162 = vrot.lane.b32.xlu0 %v7645_v41, %s5750_s20  ;;  %v11856_v51 = vld [vmem:[#allocation79_spill] sm:$0xff] }
 0x1a2   : > { %v11821_v1 = vsel %vm8091_vm6, 4294967295, %v11820_v1  ;;  %vm8099_vm5 = vmand %vm11823_vm15, %vm11822_vm7  ;;  %v1614_v21 = vsel %vm8069_vm8, %v1582_v10, 0.0  ;;  %vm10977_vm15 = vcmask 908288   ;;  %vm11829_vm8 = vnez %v11828_v33 }
 0x1a3   : > { %v11825_v45 = vsel %vm8099_vm5, 4294967295, %v11824_v45  ;;  %1677 = vst [vmem:[#allocation3 + $0x1f0] sm:$0xf0] %v1645_v50  ;;  %vm1689_vm12 = vmand %vm11766_vm1, %vm8091_vm6  ;;  %v1646_v11 = vrot.slane %v1614_v21, 4  ;;  %vm11830_vm3 = vcmp.lt.s32.totalorder %v11647_v12, 15  ;;  %vm11834_vm1 = vnez %v11833_v18  ;;  %2160 = vrot.lane.b32.xlu1 %v7638_v19, %s5750_s20 }
 0x1a4   : > { %v1724_v20 = vpop.permute.xlu0 %1723  ;;  %v1726_v28 = vpop.permute.xlu1 %1725  ;;  %vm8126_vm4 = vmand %vm11830_vm3, %vm11829_vm8  ;;  %vm11835_vm6 = vcmp.lt.s32.totalorder %v11649_v58, 15  ;;  %v11836_v39 = vmov 0  ;;  %vm11848_vm8 = vcmask 908288  }
 0x1a5   : > { %v11832_v27 = vsel %vm8126_vm4, 4294967295, %v11831_v27  ;;  %1678 = vst [vmem:[#allocation3 + $0x1f8] sm:$0xf0] %v1646_v11  ;;  %v1756_v60 = vsel %vm10977_vm15, %v1722_v6, %v1724_v20  ;;  %v1757_v63 = vsel %vm10977_vm15, %v1724_v20, %v1726_v28  ;;  %vm8136_vm7 = vmand %vm11835_vm6, %vm11834_vm1  ;;  %vm11841_vm15 = vnez %v11840_v52  ;;  %2166 = vrot.lane.b32.xlu0 %v7691_v15, %s5750_s20 }
 0x1a6   : > { %v11837_v39 = vsel %vm8136_vm7, 4294967295, %v11836_v39  ;;  %vm11839_vm3 = vmand %vm11764_vm0, %vm8083_vm11  ;;  %v1789_v50 = vsel %vm1689_vm12, %v1757_v63, 0.0  ;;  %vm11842_vm6 = vcmp.lt.s32.totalorder %v11650_v17, 15  ;;  %v11843_v6 = vmov 0 }
 0x1a7   : > { %11838 = vst [vmem:[#allocation72_spill] sm:$0xff] %v11837_v39  ;;  %v1788_v35 = vsel %vm11839_vm3, %v1756_v60, 0.0  ;;  %vm8153_vm1 = vmand %vm11842_vm6, %vm11841_vm15  ;;  %vm11846_vm0 = vnez %v11076_v55  ;;  %vm11847_vm3 = vnez %v11083_v61  ;;  %2164 = vrot.lane.b32.xlu1 %v7677_v5, %s5750_s20  ;;  %v11854_v60 = vmov 0  ;;  %v11875_v61 = vld [vmem:[#allocation40_spill] sm:$0xff] }
 0x1a8   : > { %v11844_v6 = vsel %vm8153_vm1, 4294967295, %v11843_v6  ;;  %1804 = vst [vmem:[#allocation3 + $0x200] sm:$0xf] %v1788_v35  ;;  %1805 = vst [vmem:[#allocation3 + $0x208] sm:$0xf] %v1789_v50  ;;  %v1728_v38 = vpop.permute.xlu0 %1727  ;;  %v1730_v10 = vpop.permute.xlu1 %1729  ;;  %v11859_v63 = vmov 0 }
 0x1a9   : > { %11845 = vst [vmem:[#allocation73_spill] sm:$0xff] %v11844_v6  ;;  %vm1691_vm12 = vmand %vm11846_vm0, %vm8126_vm4  ;;  %v1758_v21 = vsel %vm11848_vm8, %v1726_v28, %v1728_v38  ;;  %v11851_v28 = vld [vmem:[#allocation78_spill] sm:$0xff]  ;;  %vm11864_vm4 = vcmp.lt.s32.totalorder %v11678_v57, 15  ;;  %v11880_v6 = vmov 0 }
 0x1aa   : > { %vm11849_vm6 = vmmov %vm11848_vm8  ;;  %vm11852_vm8 = vnez %v11851_v28 }
 0x1ab   : > { %v1759_v11 = vsel %vm11849_vm6, %v1728_v38, %v1730_v10  ;;  %vm11850_vm0 = vmand %vm11827_vm9, %vm8099_vm5  ;;  %vm11853_vm6 = vcmp.lt.s32.totalorder %v11673_v32, 15  ;;  %vm11857_vm9 = vnez %v11856_v51  ;;  %v11862_v38 = vld [vmem:[#allocation83_spill] sm:$0xff] }
 0x1ac   : > { %v1790_v55 = vsel %vm11850_vm0, %v1758_v21, 0.0  ;;  %v1791_v20 = vsel %vm1691_vm12, %v1759_v11, 0.0  ;;  %vm8184_vm11 = vmand %vm11853_vm6, %vm11852_vm8  ;;  %vm11858_vm12 = vcmp.lt.s32.totalorder %v11675_v0, 15  ;;  %v1732_v35 = vpop.permute.xlu0 %1731  ;;  %v1734_v50 = vpop.permute.xlu1 %1733  ;;  %vm11863_vm15 = vnez %v11862_v38 }
 0x1ad   : > { %v11855_v60 = vsel %vm8184_vm11, 4294967295, %v11854_v60  ;;  %1806 = vst [vmem:[#allocation3 + $0x210] sm:$0xf] %v1790_v55  ;;  %1807 = vst [vmem:[#allocation3 + $0x218] sm:$0xf] %v1791_v20  ;;  %v11865_v21 = vmov 0 }
 0x1ae   : > { %vm8192_vm0 = vmand %vm11858_vm12, %vm11857_vm9  ;;  %vm11868_vm8 = vcmask 908288   ;;  %vm11870_vm12 = vnez %v11106_v53  ;;  %v5731_v20 = vld [vmem:[#allocation2 + $0x40] sm:$0xff]  ;;  %vm11883_vm9 = vcmask 908288   ;;  %v2124_v53 = vld [vmem:[#allocation2 + $0x7c] sm:$0xf] }
 0x1af   : > { %v11860_v63 = vsel %vm8192_vm0, 4294967295, %v11859_v63  ;;  %vm8200_vm6 = vmand %vm11864_vm4, %vm11863_vm15  ;;  %v1760_v11 = vsel %vm11868_vm8, %v1730_v10, %v1732_v35  ;;  %v2420_v51 = vcombine.low %v5731_v20, %v5731_v20 }
 0x1b0   : > { %11861 = vst [vmem:[#allocation77_spill] sm:$0xff] %v11860_v63  ;;  %v11866_v21 = vsel %vm8200_vm6, 4294967295, %v11865_v21  ;;  %vm11869_vm5 = vmmov %vm11868_vm8  ;;  %v1736_v4 = vpop.permute.xlu0 %1735  ;;  %vm11879_vm8 = vcmp.lt.s32.totalorder %v11700_v3, 15  ;;  %v5732_v63 = vld [vmem:[#allocation2 + $0x48] sm:$0xff] }
 0x1b1   : > { %11867 = vst [vmem:[#allocation111_spill] sm:$0xff] %v11866_v21  ;;  %v1761_v55 = vsel %vm11869_vm5, %v1732_v35, %v1734_v50  ;;  %vm11871_vm2 = vmand %vm11847_vm3, %vm8136_vm7  ;;  %v11873_v35 = vld [vmem:[#allocation99_spill] sm:$0xff]  ;;  %v1762_v20 = vsel %vm11883_vm9, %v1734_v50, %v1736_v4  ;;  %v11892_v50 = vld [vmem:[#allocation102_spill] sm:$0xff] }
 0x1b2   : > { %v1792_v38 = vsel %vm11871_vm2, %v1760_v11, 0.0  ;;  %vm11872_vm4 = vmand %vm11777_vm14, %vm8153_vm1  ;;  %2168 = vrot.lane.b32.xlu1 %v11873_v35, %s5750_s20  ;;  %vm11876_vm2 = vnez %v11875_v61  ;;  %2436 = vst [vmem:[#allocation3 + $0x300] sm:$0xf0] %v2420_v51  ;;  %v1738_v11 = vpop.permute.xlu1 %1737  ;;  %v11888_v51 = vmov 0  ;;  %2170 = vrot.lane.b32.xlu0 %v11892_v50, %s5750_s20  ;;  %v11910_v61 = vld [vmem:[#allocation93_spill] sm:$0xff] }
 0x1b3   : > { %v1793_v10 = vsel %vm11872_vm4, %v1761_v55, 0.0  ;;  %vm1695_vm5 = vmand %vm11784_vm13, %vm8192_vm0  ;;  %1808 = vst [vmem:[#allocation3 + $0x220] sm:$0xf] %v1792_v38  ;;  %v11877_v55 = vld [vmem:[#allocation84_spill] sm:$0xff]  ;;  %vm11887_vm0 = vcmp.lt.s32.totalorder %v11704_v13, 15 }
 0x1b4   : > { %1809 = vst [vmem:[#allocation3 + $0x228] sm:$0xf] %v1793_v10  ;;  %vm11878_vm14 = vnez %v11877_v55  ;;  %vm11884_vm13 = vmmov %vm11883_vm9  ;;  %v11885_v10 = vld [vmem:[#allocation85_spill] sm:$0xff]  ;;  %v2421_v55 = vcombine.low %v5732_v63, %v5732_v63  ;;  %v1740_v63 = vpop.permute.xlu0 %1739 }
 0x1b5   : > { %vm8236_vm4 = vmand %vm11879_vm8, %vm11878_vm14  ;;  %v1763_v38 = vsel %vm11884_vm13, %v1736_v4, %v1738_v11  ;;  %vm11886_vm15 = vnez %v11885_v10  ;;  %v11893_v4 = vld [vmem:[#allocation89_spill] sm:$0xff]  ;;  %v11896_v10 = vmov 0  ;;  %vm11911_vm14 = vnez %v11910_v61 }
 0x1b6   : > { %v11881_v6 = vsel %vm8236_vm4, 4294967295, %v11880_v6  ;;  %vm8246_vm3 = vmand %vm11887_vm0, %vm11886_vm15  ;;  %v1795_v28 = vsel %vm1695_vm5, %v1763_v38, 0.0  ;;  %2172 = vrot.lane.b32.xlu1 %v7772_v29, %s5750_s20  ;;  %vm11894_vm9 = vnez %v11893_v4  ;;  %vm11895_vm0 = vcmp.lt.s32.totalorder %v11706_v23, 15  ;;  %2438 = vst [vmem:[#allocation3 + $0x310] sm:$0xf0] %v2421_v55  ;;  %2174 = vrot.lane.b32.xlu0 %v2124_v53, %s5750_s20 }
 0x1b7   : > { %11882 = vst [vmem:[#allocation99_spill] sm:$0xff] %v11881_v6  ;;  %v11889_v51 = vsel %vm8246_vm3, 4294967295, %v11888_v51  ;;  %vm11891_vm8 = vmand %vm11870_vm12, %vm8184_vm11  ;;  %vm11899_vm5 = vnez %v11176_v26  ;;  %vm11902_vm15 = vnez %v11204_v62  ;;  %v11913_v55 = vmov 0  ;;  %v11922_v26 = vld [vmem:[#allocation94_spill] sm:$0xff] }
 0x1b8   : > { %11890 = vst [vmem:[#allocation31_spill] sm:$0xff] %v11889_v51  ;;  %v1794_v39 = vsel %vm11891_vm8, %v1762_v20, 0.0  ;;  %vm8263_vm13 = vmand %vm11895_vm0, %vm11894_vm9  ;;  %v1742_v20 = vpop.permute.xlu1 %1741  ;;  %vm11900_vm0 = vcmask 908288   ;;  %v1744_v53 = vpop.permute.xlu0 %1743  ;;  %v11925_v62 = vmov 0  ;;  %v12041_v51 = vld [vmem:[#allocation6_spill] sm:$0xff] }
 0x1b9   : > { %v11897_v10 = vsel %vm8263_vm13, 4294967295, %v11896_v10  ;;  %1810 = vst [vmem:[#allocation3 + $0x230] sm:$0xf] %v1794_v39  ;;  %1811 = vst [vmem:[#allocation3 + $0x238] sm:$0xf] %v1795_v28  ;;  %v1764_v38 = vsel %vm11900_vm0, %v1738_v11, %v1740_v63  ;;  %v11904_v28 = vld [vmem:[#allocation90_spill] sm:$0xff] }
 0x1ba   : > { %11898 = vst [vmem:[#allocation40_spill] sm:$0xff] %v11897_v10  ;;  %vm1697_vm12 = vmand %vm11793_vm10, %vm8236_vm4  ;;  %2314 = vrot.lane.b32.xlu1 %v7508_v24, %s5751_s21  ;;  %v11907_v11 = vmov 0  ;;  %2316 = vrot.lane.b32.xlu0 %v7521_v40, %s5751_s21  ;;  %v12042_v6 = vshra.s32 %v12041_v51, 8 }
 0x1bb   : > { %vm11901_vm9 = vmmov %vm11900_vm0  ;;  %vm11905_vm0 = vnez %v11904_v28 }
 0x1bc   : > { %v1765_v4 = vsel %vm11901_vm9, %v1740_v63, %v1742_v20  ;;  %vm11903_vm10 = vmand %vm11876_vm2, %vm8200_vm6  ;;  %vm11906_vm9 = vcmp.lt.s32.totalorder %v11725_v59, 15  ;;  %vm11912_vm2 = vcmp.lt.s32.totalorder %v11727_v42, 15  ;;  %v1746_v63 = vpop.permute.xlu1 %1745  ;;  %vm11986_vm6 = vcmp.ge.s32.totalorder %v11620_v44, 1 }
 0x1bd   : > { %v1796_v48 = vsel %vm11903_vm10, %v1764_v38, 0.0  ;;  %v1797_v39 = vsel %vm1697_vm12, %v1765_v4, 0.0  ;;  %vm8293_vm8 = vmand %vm11906_vm9, %vm11905_vm0  ;;  %v5733_v4 = vld [vmem:[#allocation2 + $0x50] sm:$0xff]  ;;  %vm11916_vm10 = vcmask 908288   ;;  %vm11918_vm0 = vnez %v11238_v54  ;;  %v5735_v54 = vld [vmem:[#allocation2 + $0x60] sm:$0xff] }
 0x1be   : > { %v11908_v11 = vsel %vm8293_vm8, 4294967295, %v11907_v11  ;;  %1812 = vst [vmem:[#allocation3 + $0x240] sm:$0xf] %v1796_v48  ;;  %1813 = vst [vmem:[#allocation3 + $0x248] sm:$0xf] %v1797_v39  ;;  %v2422_v24 = vcombine.low %v5733_v4, %v5733_v4  ;;  %v1766_v38 = vsel %vm11916_vm10, %v1742_v20, %v1744_v53  ;;  %2318 = vrot.lane.b32.xlu1 %v7527_v22, %s5751_s21  ;;  %v5734_v39 = vld [vmem:[#allocation2 + $0x58] sm:$0xff]  ;;  %2320 = vrot.lane.b32.xlu0 %v7541_v8, %s5751_s21 }
 0x1bf   : > { %11909 = vst [vmem:[#allocation102_spill] sm:$0xff] %v11908_v11  ;;  %vm8301_vm12 = vmand %vm11912_vm2, %vm11911_vm14  ;;  %v2423_v40 = vcombine.low %v5734_v39, %v5734_v39  ;;  %v11928_v22 = vld [vmem:[#allocation97_spill] sm:$0xff] }
 0x1c0   : > { %v11914_v55 = vsel %vm8301_vm12, 4294967295, %v11913_v55  ;;  %vm11917_vm9 = vmmov %vm11916_vm10  ;;  %2440 = vst [vmem:[#allocation3 + $0x320] sm:$0xf0] %v2422_v24  ;;  %vm11921_vm10 = vnez %v11262_v47  ;;  %v1750_v4 = vpop.permute.xlu1 %1749  ;;  %v11931_v47 = vmov 0 }
 0x1c1   : > { %11915 = vst [vmem:[#allocation112_spill] sm:$0xff] %v11914_v55  ;;  %v1767_v28 = vsel %vm11917_vm9, %v1744_v53, %v1746_v63  ;;  %vm11919_vm2 = vmand %vm11899_vm5, %vm8246_vm3  ;;  %vm11923_vm5 = vnez %v11922_v26  ;;  %v11979_v55 = vld [vmem:[#allocation67_spill] sm:$0xff] }
 0x1c2   : > { %v1798_v48 = vsel %vm11919_vm2, %v1766_v38, 0.0  ;;  %vm11920_vm14 = vmand %vm11902_vm15, %vm8263_vm13  ;;  %vm11924_vm2 = vcmp.lt.s32.totalorder %v11741_v34, 15  ;;  %vm11929_vm15 = vnez %v11928_v22  ;;  %2442 = vst [vmem:[#allocation3 + $0x330] sm:$0xf0] %v2423_v40  ;;  %2322 = vrot.lane.b32.xlu1 %v7547_v9, %s5751_s21  ;;  %2324 = vrot.lane.b32.xlu0 %v7561_v37, %s5751_s21 }
 0x1c3   : > { %v1799_v20 = vsel %vm11920_vm14, %v1767_v28, 0.0  ;;  %vm1701_vm9 = vmand %vm11921_vm10, %vm8301_vm12  ;;  %1814 = vst [vmem:[#allocation3 + $0x250] sm:$0xf] %v1798_v48  ;;  %v1748_v28 = vpop.permute.xlu0 %1747  ;;  %vm11930_vm14 = vcmp.lt.s32.totalorder %v11745_v56, 15  ;;  %vm11934_vm10 = vcmask 908288  }
 0x1c4   : > { %1815 = vst [vmem:[#allocation3 + $0x258] sm:$0xf] %v1799_v20  ;;  %vm8333_vm4 = vmand %vm11924_vm2, %vm11923_vm5  ;;  %v1768_v24 = vsel %vm11934_vm10, %v1746_v63, %v1748_v28  ;;  %v2424_v63 = vcombine.low %v5735_v54, %v5735_v54  ;;  %v1754_v39 = vpop.permute.xlu1 %1753 }
 0x1c5   : > { %v11926_v62 = vsel %vm8333_vm4, 4294967295, %v11925_v62  ;;  %vm8341_vm13 = vmand %vm11930_vm14, %vm11929_vm15  ;;  %vm11937_vm14 = vnez %v11269_v16 }
 0x1c6   : > { %11927 = vst [vmem:[#allocation113_spill] sm:$0xff] %v11926_v62  ;;  %v11932_v47 = vsel %vm8341_vm13, 4294967295, %v11931_v47  ;;  %vm11935_vm12 = vmmov %vm11934_vm10  ;;  %2326 = vrot.lane.b32.xlu1 %v7567_v49, %s5751_s21  ;;  %2328 = vrot.lane.b32.xlu0 %v7589_v2, %s5751_s21 }
 0x1c7   : > { %11933 = vst [vmem:[#allocation114_spill] sm:$0xff] %v11932_v47  ;;  %v1769_v53 = vsel %vm11935_vm12, %v1748_v28, %v1750_v4  ;;  %vm11936_vm2 = vmand %vm11918_vm0, %vm8293_vm8  ;;  %vm11938_vm12 = vnez %v11286_v25  ;;  %v1752_v20 = vpop.permute.xlu0 %1751  ;;  %v5736_v25 = vld [vmem:[#allocation2 + $0x68] sm:$0xff]  ;;  %v11974_v47 = vld [vmem:[#allocation62_spill] sm:$0xff] }
 0x1c8   : > { %v1800_v38 = vsel %vm11936_vm2, %v1768_v24, 0.0  ;;  %v1801_v48 = vsel %vm1701_vm9, %v1769_v53, 0.0  ;;  %vm1702_vm10 = vmand %vm11937_vm14, %vm8333_vm4  ;;  %vm11939_vm9 = vcmask 908288   ;;  %2444 = vst [vmem:[#allocation3 + $0x340] sm:$0xf0] %v2424_v63  ;;  %v2425_v16 = vcombine.low %v5736_v25, %v5736_v25  ;;  %v1849_v53 = vpop.permute.xlu1 %1848 }
 0x1c9   : > { %1816 = vst [vmem:[#allocation3 + $0x260] sm:$0xf] %v1800_v38  ;;  %1817 = vst [vmem:[#allocation3 + $0x268] sm:$0xf] %v1801_v48  ;;  %v1770_v8 = vsel %vm11939_vm9, %v1750_v4, %v1752_v20  ;;  %vm11941_vm14 = vcmask 138240   ;;  %v11942_v4 = vld [vmem:[#allocation45_spill] sm:$0xff] }
 0x1ca   : > { %vm1703_vm0 = vmand %vm11938_vm12, %vm8341_vm13  ;;  %v1802_v40 = vsel %vm1702_vm10, %v1770_v8, 0.0  ;;  %2446 = vst [vmem:[#allocation3 + $0x350] sm:$0xf0] %v2425_v16  ;;  %vm11943_vm12 = vnez %v11942_v4  ;;  %2330 = vrot.lane.b32.xlu1 %v7607_v30, %s5751_s21  ;;  %2332 = vrot.lane.b32.xlu0 %v7638_v19, %s5751_s21  ;;  %v12177_v4 = vld [vmem:[#allocation12_spill] sm:$0xff] }
 0x1cb   : > { %vm11940_vm2 = vmmov %vm11939_vm9  ;;  %1818 = vst [vmem:[#allocation3 + $0x270] sm:$0xf] %v1802_v40  ;;  %v1847_v24 = vpop.permute.xlu0 %1846 }
 0x1cc   : > { %v1771_v9 = vsel %vm11940_vm2, %v1752_v20, %v1754_v39  ;;  %v1880_v38 = vsel %vm11941_vm14, %v1847_v24, %v1849_v53  ;;  %v1853_v54 = vpop.permute.xlu1 %1852  ;;  %vm11944_vm10 = vmmov %vm11941_vm14  ;;  %v11946_v39 = vld [vmem:[#allocation48_spill] sm:$0xff] }
 0x1cd   : > { %v1803_v28 = vsel %vm1703_vm0, %v1771_v9, 0.0  ;;  %v1912_v48 = vsel %vm11943_vm12, %v1880_v38, 0.0  ;;  %vm11945_vm0 = vmmov %vm11944_vm10  ;;  %vm11947_vm9 = vnez %v11946_v39  ;;  %v11948_v9 = vld [vmem:[#allocation20_spill] sm:$0xff]  ;;  %v3702_v39 = vld [vmem:[#allocation2 + $0x18] sm:$0xff] }
 0x1ce   : > { %1819 = vst [vmem:[#allocation3 + $0x278] sm:$0xf] %v1803_v28  ;;  %v1944_v37 = vrot.slane %v1912_v48, 4  ;;  %vm11949_vm2 = vnez %v11948_v9  ;;  %2334 = vrot.lane.b32.xlu1 %v7645_v41, %s5751_s21  ;;  %vm11950_vm14 = vmmov %vm11945_vm0  ;;  %v11954_v48 = vld [vmem:[#allocation30_spill] sm:$0xff]  ;;  %2336 = vrot.lane.b32.xlu0 %v7677_v5, %s5751_s21  ;;  %v12163_v9 = vld [vmem:[#allocation7_spill] sm:$0xff] }
 0x1cf   : > { %v1851_v49 = vpop.permute.xlu0 %1850  ;;  %vm11955_vm13 = vnez %v11954_v48 }
 0x1d0   : > { %1976 = vst [vmem:[#allocation3 + $0x200] sm:$0xf0] %v1944_v37  ;;  %v1881_v63 = vsel %vm11944_vm10, %v1849_v53, %v1851_v49  ;;  %v1882_v20 = vsel %vm11945_vm0, %v1851_v49, %v1853_v54  ;;  %v1857_v25 = vpop.permute.xlu1 %1856  ;;  %vm11951_vm10 = vmmov %vm11945_vm0  ;;  %v11952_v53 = vld [vmem:[#allocation25_spill] sm:$0xff] }
 0x1d1   : > { %v1913_v8 = vsel %vm11947_vm9, %v1881_v63, 0.0  ;;  %v1914_v40 = vsel %vm11949_vm2, %v1882_v20, 0.0  ;;  %vm11953_vm0 = vnez %v11952_v53  ;;  %v12167_v53 = vld [vmem:[#allocation8_spill] sm:$0xff] }
 0x1d2   : > { %v1945_v2 = vrot.slane %v1913_v8, 4  ;;  %v1946_v30 = vrot.slane %v1914_v40, 4  ;;  %2338 = vrot.lane.b32.xlu1 %v7691_v15, %s5751_s21  ;;  %v11957_v8 = vld [vmem:[#allocation34_spill] sm:$0xff]  ;;  %2340 = vrot.lane.b32.xlu0 %v11873_v35, %s5751_s21  ;;  %v11964_v35 = vld [vmem:[#allocation53_spill] sm:$0xff] }
 0x1d3   : > { %v1855_v28 = vpop.permute.xlu0 %1854  ;;  %vm11958_vm4 = vnez %v11957_v8  ;;  %vm11965_vm5 = vnez %v11964_v35  ;;  %v12035_v35 = vld [vmem:[#allocation81_spill] sm:$0xff] }
 0x1d4   : > { %1977 = vst [vmem:[#allocation3 + $0x208] sm:$0xf0] %v1945_v2  ;;  %1978 = vst [vmem:[#allocation3 + $0x210] sm:$0xf0] %v1946_v30  ;;  %v1883_v16 = vsel %vm11950_vm14, %v1853_v54, %v1855_v28  ;;  %v1884_v24 = vsel %vm11951_vm10, %v1855_v28, %v1857_v25  ;;  %v1861_v63 = vpop.permute.xlu1 %1860  ;;  %v11959_v2 = vld [vmem:[#allocation36_spill] sm:$0xff] }
 0x1d5   : > { %v1915_v38 = vsel %vm11953_vm0, %v1883_v16, 0.0  ;;  %v1916_v37 = vsel %vm11955_vm13, %v1884_v24, 0.0  ;;  %vm11956_vm14 = vmmov %vm11951_vm10  ;;  %vm11960_vm8 = vnez %v11959_v2  ;;  %v2296_v28 = vld [vmem:[#allocation2 + $0x7c] sm:$0xf]  ;;  %v8407_v16 = vld [vmem:[#allocation2] sm:$0xff]  ;;  %vm12036_vm13 = vnez %v12035_v35 }
 0x1d6   : > { %v1947_v19 = vrot.slane %v1915_v38, 4  ;;  %v1948_v41 = vrot.slane %v1916_v37, 4  ;;  %2342 = vrot.lane.b32.xlu1 %v11892_v50, %s5751_s21  ;;  %2344 = vrot.lane.b32.xlu0 %v7772_v29, %s5751_s21  ;;  %v8420_v50 = vcombine.high %v8407_v16, %v8407_v16 }
 0x1d7   : > { %v1859_v49 = vpop.permute.xlu0 %1858 }
 0x1d8   : > { %1979 = vst [vmem:[#allocation3 + $0x218] sm:$0xf0] %v1947_v19  ;;  %1980 = vst [vmem:[#allocation3 + $0x220] sm:$0xf0] %v1948_v41  ;;  %v1885_v54 = vsel %vm11956_vm14, %v1857_v25, %v1859_v49  ;;  %v1886_v20 = vsel %vm11951_vm10, %v1859_v49, %v1861_v63  ;;  %v1865_v24 = vpop.permute.xlu1 %1864  ;;  %v11962_v19 = vld [vmem:[#allocation42_spill] sm:$0xff] }
 0x1d9   : > { %v1917_v40 = vsel %vm11958_vm4, %v1885_v54, 0.0  ;;  %v1918_v30 = vsel %vm11960_vm8, %v1886_v20, 0.0  ;;  %vm11961_vm14 = vmmov %vm11951_vm10  ;;  %vm11963_vm15 = vnez %v11962_v19 }
 0x1da   : > { %v1949_v5 = vrot.slane %v1917_v40, 4  ;;  %v1950_v15 = vrot.slane %v1918_v30, 4  ;;  %2346 = vrot.lane.b32.xlu1 %v2296_v28, %s5751_s21  ;;  %v11969_v28 = vld [vmem:[#allocation56_spill] sm:$0xff]  ;;  %2478 = vrot.lane.b32.xlu0 %v8407_v16, %s5752_s22 }
 0x1db   : > { %v1863_v25 = vpop.permute.xlu0 %1862  ;;  %vm11970_vm3 = vnez %v11969_v28 }
 0x1dc   : > { %1981 = vst [vmem:[#allocation3 + $0x228] sm:$0xf0] %v1949_v5  ;;  %1982 = vst [vmem:[#allocation3 + $0x230] sm:$0xf0] %v1950_v15  ;;  %v1887_v38 = vsel %vm11961_vm14, %v1861_v63, %v1863_v25  ;;  %v1888_v37 = vsel %vm11951_vm10, %v1863_v25, %v1865_v24  ;;  %v8422_v63 = vld [vmem:[#allocation2 + $0x8] sm:$0xff]  ;;  %v1869_v30 = vpop.permute.xlu1 %1868  ;;  %v11967_v25 = vld [vmem:[#allocation55_spill] sm:$0xff] }
 0x1dd   : > { %v1919_v41 = vsel %vm11963_vm15, %v1887_v38, 0.0  ;;  %v1920_v49 = vsel %vm11965_vm5, %v1888_v37, 0.0  ;;  %vm11966_vm14 = vmmov %vm11951_vm10  ;;  %vm11968_vm5 = vnez %v11967_v25  ;;  %v8436_v37 = vcombine.high %v8422_v63, %v8422_v63 }
 0x1de   : > { %v1951_v54 = vrot.slane %v1919_v41, 4  ;;  %v1952_v20 = vrot.slane %v1920_v49, 4  ;;  %2480 = vrot.lane.b32.xlu1 %v8420_v50, %s5752_s22  ;;  %2482 = vrot.lane.b32.xlu0 %v8422_v63, %s5752_s22 }
 0x1df   : > { %v1867_v40 = vpop.permute.xlu0 %1866 }
 0x1e0   : > { %1983 = vst [vmem:[#allocation3 + $0x238] sm:$0xf0] %v1951_v54  ;;  %1984 = vst [vmem:[#allocation3 + $0x240] sm:$0xf0] %v1952_v20  ;;  %v1889_v5 = vsel %vm11966_vm14, %v1865_v24, %v1867_v40  ;;  %v1890_v15 = vsel %vm11951_vm10, %v1867_v40, %v1869_v30  ;;  %v1873_v54 = vpop.permute.xlu1 %1872 }
 0x1e1   : > { %v1921_v29 = vsel %vm11968_vm5, %v1889_v5, 0.0  ;;  %v1922_v38 = vsel %vm11970_vm3, %v1890_v15, 0.0  ;;  %vm11971_vm14 = vmmov %vm11951_vm10  ;;  %v11972_v5 = vld [vmem:[#allocation61_spill] sm:$0xff]  ;;  %vm11975_vm5 = vnez %v11974_v47  ;;  %v11977_v47 = vld [vmem:[#allocation66_spill] sm:$0xff] }
 0x1e2   : > { %v1953_v41 = vrot.slane %v1921_v29, 4  ;;  %v1954_v24 = vrot.slane %v1922_v38, 4  ;;  %vm11973_vm3 = vnez %v11972_v5  ;;  %2484 = vrot.lane.b32.xlu1 %v8436_v37, %s5752_s22  ;;  %v12028_v5 = vld [vmem:[#allocation15_spill] sm:$0xff] }
 0x1e3   : > { %v1871_v49 = vpop.permute.xlu0 %1870 }
 0x1e4   : > { %1985 = vst [vmem:[#allocation3 + $0x248] sm:$0xf0] %v1953_v41  ;;  %1986 = vst [vmem:[#allocation3 + $0x250] sm:$0xf0] %v1954_v24  ;;  %v1891_v20 = vsel %vm11971_vm14, %v1869_v30, %v1871_v49  ;;  %v1892_v40 = vsel %vm11951_vm10, %v1871_v49, %v1873_v54  ;;  %v8448_v41 = vld [vmem:[#allocation2 + $0x10] sm:$0xff]  ;;  %v1877_v30 = vpop.permute.xlu1 %1876 }
 0x1e5   : > { %v1923_v15 = vsel %vm11973_vm3, %v1891_v20, 0.0  ;;  %v1924_v62 = vsel %vm11975_vm5, %v1892_v40, 0.0  ;;  %vm11976_vm14 = vmmov %vm11951_vm10  ;;  %vm11978_vm5 = vnez %v11977_v47  ;;  %vm11980_vm3 = vnez %v11979_v55  ;;  %2486 = vrot.lane.b32.xlu0 %v8448_v41, %s5752_s22 }
 0x1e6   : > { %v1955_v29 = vrot.slane %v1923_v15, 4  ;;  %v1956_v38 = vrot.slane %v1924_v62, 4  ;;  %2604 = vrot.lane.b32.xlu1 %v8420_v50, %s5753_s23 }
 0x1e7   : > { %v1875_v24 = vpop.permute.xlu0 %1874 }
 0x1e8   : > { %1987 = vst [vmem:[#allocation3 + $0x258] sm:$0xf0] %v1955_v29  ;;  %1988 = vst [vmem:[#allocation3 + $0x260] sm:$0xf0] %v1956_v38  ;;  %v1893_v49 = vsel %vm11976_vm14, %v1873_v54, %v1875_v24  ;;  %v1894_v20 = vsel %vm11951_vm10, %v1875_v24, %v1877_v30  ;;  %v2019_v38 = vpop.permute.xlu1 %2018  ;;  %v11982_v24 = vld [vmem:[#allocation69_spill] sm:$0xff] }
 0x1e9   : > { %v1925_v40 = vsel %vm11978_vm5, %v1893_v49, 0.0  ;;  %v1926_v11 = vsel %vm11980_vm3, %v1894_v20, 0.0  ;;  %vm11981_vm14 = vmmov %vm11951_vm10  ;;  %vm11983_vm10 = vnez %v11982_v24  ;;  %2606 = vrot.lane.b32.xlu0 %v8422_v63, %s5753_s23  ;;  %vm11984_vm3 = vcmask 130048  }
 0x1ea   : > { %v1957_v62 = vrot.slane %v1925_v40, 4  ;;  %v1958_v15 = vrot.slane %v1926_v11, 4  ;;  %2608 = vrot.lane.b32.xlu1 %v8436_v37, %s5753_s23  ;;  %vm11985_vm5 = vmmov %vm11984_vm3 }
 0x1eb   : > { %v1879_v29 = vpop.permute.xlu0 %1878 }
 0x1ec   : > { %1989 = vst [vmem:[#allocation3 + $0x268] sm:$0xf0] %v1957_v62  ;;  %1990 = vst [vmem:[#allocation3 + $0x270] sm:$0xf0] %v1958_v15  ;;  %v1895_v54 = vsel %vm11981_vm14, %v1877_v30, %v1879_v29  ;;  %v2023_v47 = vpop.permute.xlu1 %2022  ;;  %vm11987_vm14 = vcmp.ge.s32.totalorder %v11621_v36, 1 }
 0x1ed   : > { %v1927_v49 = vsel %vm11983_vm10, %v1895_v54, 0.0  ;;  %2610 = vrot.lane.b32.xlu0 %v8448_v41, %s5753_s23  ;;  %vm11988_vm10 = vmmov %vm11984_vm3 }
 0x1ee   : > { %v1959_v20 = vrot.slane %v1927_v49, 4  ;;  %2602 = vrot.lane.b32.xlu1 %v8407_v16, %s5753_s23 }
 0x1ef   : > { %v2021_v55 = vpop.permute.xlu0 %2020 }
 0x1f0   : > { %1991 = vst [vmem:[#allocation3 + $0x278] sm:$0xf0] %v1959_v20  ;;  %v2052_v11 = vsel %vm11984_vm3, %v2019_v38, %v2021_v55  ;;  %v2053_v40 = vsel %vm11985_vm5, %v2021_v55, %v2023_v47  ;;  %v2027_v29 = vpop.permute.xlu1 %2026  ;;  %vm11989_vm5 = vcmp.ge.s32.totalorder %v11627_v31, 1  ;;  %v8487_v20 = vld [vmem:[#allocation2 + $0x4] sm:$0xff] }
 0x1f1   : > { %v2084_v30 = vsel %vm11986_vm6, %v2052_v11, 0.0  ;;  %v2085_v62 = vsel %vm11987_vm14, %v2053_v40, 0.0  ;;  %vm11990_vm6 = vcmp.ge.s32.totalorder %v11647_v12, 1  ;;  %2900 = vrot.lane.b32.xlu0 %v8420_v50, %s5755_s25  ;;  %vm11992_vm14 = vmmov %vm11984_vm3 }
 0x1f2   : > { %2100 = vst [vmem:[#allocation3 + $0x280] sm:$0xf] %v2084_v30  ;;  %2101 = vst [vmem:[#allocation3 + $0x288] sm:$0xf] %v2085_v62  ;;  %2902 = vrot.lane.b32.xlu1 %v8422_v63, %s5755_s25 }
 0x1f3   : > { %v2025_v15 = vpop.permute.xlu0 %2024 }
 0x1f4   : > { %v2054_v38 = vsel %vm11988_vm10, %v2023_v47, %v2025_v15  ;;  %v2055_v55 = vsel %vm11984_vm3, %v2025_v15, %v2027_v29  ;;  %v2031_v47 = vpop.permute.xlu1 %2030  ;;  %vm11991_vm10 = vmmov %vm11984_vm3  ;;  %vm11993_vm3 = vcmp.ge.s32.totalorder %v11649_v58, 1 }
 0x1f5   : > { %v2086_v54 = vsel %vm11989_vm5, %v2054_v38, 0.0  ;;  %v2087_v49 = vsel %vm11990_vm6, %v2055_v55, 0.0  ;;  %vm11994_vm5 = vcmp.ge.s32.totalorder %v11650_v17, 1  ;;  %2904 = vrot.lane.b32.xlu0 %v8436_v37, %s5755_s25  ;;  %v8501_v38 = vcombine.high %v8487_v20, %v8487_v20  ;;  %vm11995_vm6 = vmmov %vm11991_vm10 }
 0x1f6   : > { %2102 = vst [vmem:[#allocation3 + $0x290] sm:$0xf] %v2086_v54  ;;  %2103 = vst [vmem:[#allocation3 + $0x298] sm:$0xf] %v2087_v49  ;;  %2906 = vrot.lane.b32.xlu1 %v8448_v41, %s5755_s25 }
 0x1f7   : > { %v2029_v11 = vpop.permute.xlu0 %2028 }
 0x1f8   : > { %v2056_v40 = vsel %vm11991_vm10, %v2027_v29, %v2029_v11  ;;  %v2057_v30 = vsel %vm11992_vm14, %v2029_v11, %v2031_v47  ;;  %v8503_v29 = vld [vmem:[#allocation2 + $0xc] sm:$0xff]  ;;  %v2035_v54 = vpop.permute.xlu1 %2034  ;;  %vm11996_vm10 = vmmov %vm11995_vm6  ;;  %vm11997_vm14 = vcmp.ge.s32.totalorder %v11673_v32, 1 }
 0x1f9   : > { %v2088_v62 = vsel %vm11993_vm3, %v2056_v40, 0.0  ;;  %v2089_v15 = vsel %vm11994_vm5, %v2057_v30, 0.0  ;;  %vm11998_vm3 = vcmp.ge.s32.totalorder %v11675_v0, 1  ;;  %3228 = vrot.lane.b32.xlu0 %v8501_v38, %s5749_s19  ;;  %vm11999_vm5 = vmmov %vm11995_vm6 }
 0x1fa   : > { %2104 = vst [vmem:[#allocation3 + $0x2a0] sm:$0xf] %v2088_v62  ;;  %2105 = vst [vmem:[#allocation3 + $0x2a8] sm:$0xf] %v2089_v15  ;;  %v8515_v62 = vcombine.high %v8503_v29, %v8503_v29  ;;  %3230 = vrot.lane.b32.xlu1 %v8503_v29, %s5749_s19 }
 0x1fb   : > { %v2033_v55 = vpop.permute.xlu0 %2032 }
 0x1fc   : > { %v2058_v49 = vsel %vm11995_vm6, %v2031_v47, %v2033_v55  ;;  %v2059_v11 = vsel %vm11996_vm10, %v2033_v55, %v2035_v54  ;;  %v8519_v47 = vld [vmem:[#allocation2 + $0x14] sm:$0xff]  ;;  %v2039_v55 = vpop.permute.xlu1 %2038  ;;  %vm12000_vm6 = vmmov %vm11999_vm5  ;;  %vm12001_vm10 = vcmp.ge.s32.totalorder %v11678_v57, 1  ;;  %v12037_v57 = vld [vmem:[#allocation5_spill] sm:$0xff] }
 0x1fd   : > { %v2090_v40 = vsel %vm11997_vm14, %v2058_v49, 0.0  ;;  %v2091_v30 = vsel %vm11998_vm3, %v2059_v11, 0.0  ;;  %vm12002_vm14 = vcmp.ge.s32.totalorder %v11700_v3, 1  ;;  %3232 = vrot.lane.b32.xlu0 %v8515_v62, %s5749_s19  ;;  %vm12003_vm3 = vmmov %vm11999_vm5  ;;  %v12038_v10 = vshra.s32 %v12037_v57, 8 }
 0x1fe   : > { %2106 = vst [vmem:[#allocation3 + $0x2b0] sm:$0xf] %v2090_v40  ;;  %2107 = vst [vmem:[#allocation3 + $0x2b8] sm:$0xf] %v2091_v30  ;;  %3234 = vrot.lane.b32.xlu1 %v8519_v47, %s5749_s19 }
 0x1ff   : > { %v2037_v15 = vpop.permute.xlu0 %2036 }
 0x200   : > { %v2060_v49 = vsel %vm11999_vm5, %v2035_v54, %v2037_v15  ;;  %v2061_v11 = vsel %vm12000_vm6, %v2037_v15, %v2039_v55  ;;  %v2043_v30 = vpop.permute.xlu1 %2042  ;;  %vm12004_vm5 = vmmov %vm12003_vm3  ;;  %vm12005_vm6 = vcmp.ge.s32.totalorder %v11704_v13, 1  ;;  %v4534_v13 = vld [vmem:[#allocation3 + $0x208] sm:$0xff] }
 0x201   : > { %v2092_v24 = vsel %vm12001_vm10, %v2060_v49, 0.0  ;;  %v2093_v22 = vsel %vm12002_vm14, %v2061_v11, 0.0  ;;  %vm12006_vm10 = vcmp.ge.s32.totalorder %v11706_v23, 1  ;;  %2898 = vrot.lane.b32.xlu0 %v8407_v16, %s5755_s25  ;;  %vm12007_vm14 = vmmov %vm12003_vm3 }
 0x202   : > { %2108 = vst [vmem:[#allocation3 + $0x2c0] sm:$0xf] %v2092_v24  ;;  %2109 = vst [vmem:[#allocation3 + $0x2c8] sm:$0xf] %v2093_v22  ;;  %3226 = vrot.lane.b32.xlu1 %v8487_v20, %s5749_s19 }
 0x203   : > { %v2041_v40 = vpop.permute.xlu0 %2040 }
 0x204   : > { %v2062_v54 = vsel %vm12003_vm3, %v2039_v55, %v2041_v40  ;;  %v2063_v15 = vsel %vm12004_vm5, %v2041_v40, %v2043_v30  ;;  %v2047_v24 = vpop.permute.xlu1 %2046  ;;  %vm12008_vm5 = vcmp.ge.s32.totalorder %v11725_v59, 1 }
 0x205   : > { %v2094_v49 = vsel %vm12005_vm6, %v2062_v54, 0.0  ;;  %v2095_v11 = vsel %vm12006_vm10, %v2063_v15, 0.0  ;;  %vm12009_vm6 = vcmp.ge.s32.totalorder %v11727_v42, 1  ;;  %2776 = vrot.lane.b32.xlu0 %v8420_v50, %s5754_s24  ;;  %vm12010_vm10 = vmmov %vm12003_vm3 }
 0x206   : > { %2110 = vst [vmem:[#allocation3 + $0x2d0] sm:$0xf] %v2094_v49  ;;  %2111 = vst [vmem:[#allocation3 + $0x2d8] sm:$0xf] %v2095_v11  ;;  %2778 = vrot.lane.b32.xlu1 %v8422_v63, %s5754_s24 }
 0x207   : > { %v2045_v22 = vpop.permute.xlu0 %2044 }
 0x208   : > { %v2064_v55 = vsel %vm12007_vm14, %v2043_v30, %v2045_v22  ;;  %v2065_v40 = vsel %vm12003_vm3, %v2045_v22, %v2047_v24  ;;  %v2051_v11 = vpop.permute.xlu1 %2050  ;;  %vm12011_vm14 = vmmov %vm12003_vm3  ;;  %vm12012_vm3 = vcmp.ge.s32.totalorder %v11741_v34, 1  ;;  %v12021_v34 = vld [vmem:[#allocation74_spill] sm:$0xff] }
 0x209   : > { %v2096_v54 = vsel %vm12008_vm5, %v2064_v55, 0.0  ;;  %v2097_v15 = vsel %vm12009_vm6, %v2065_v40, 0.0  ;;  %vm12013_vm5 = vcmp.ge.s32.totalorder %v11745_v56, 1  ;;  %2780 = vrot.lane.b32.xlu0 %v8436_v37, %s5754_s24  ;;  %vm12014_vm6 = vcmask 121856   ;;  %v12019_v56 = vld [vmem:[#allocation71_spill] sm:$0xff] }
 0x20a   : > { %2112 = vst [vmem:[#allocation3 + $0x2e0] sm:$0xf] %v2096_v54  ;;  %2113 = vst [vmem:[#allocation3 + $0x2e8] sm:$0xf] %v2097_v15  ;;  %2782 = vrot.lane.b32.xlu1 %v8448_v41, %s5754_s24  ;;  %v12015_v15 = vld [vmem:[#allocation70_spill] sm:$0xff] }
 0x20b   : > { %v2049_v49 = vpop.permute.xlu0 %2048 }
 0x20c   : > { %v2066_v30 = vsel %vm12010_vm10, %v2047_v24, %v2049_v49  ;;  %v2067_v22 = vsel %vm12011_vm14, %v2049_v49, %v2051_v11  ;;  %v2145_v54 = vpop.permute.xlu1 %2144  ;;  %vm12016_vm10 = vnez %v12015_v15  ;;  %vm12017_vm14 = vmmov %vm12014_vm6 }
 0x20d   : > { %v2098_v55 = vsel %vm12012_vm3, %v2066_v30, 0.0  ;;  %v2099_v40 = vsel %vm12013_vm5, %v2067_v22, 0.0  ;;  %3088 = vrot.lane.b32.xlu0 %v8501_v38, %s5748_s18  ;;  %vm12018_vm3 = vmmov %vm12014_vm6  ;;  %vm12020_vm5 = vnez %v12019_v56 }
 0x20e   : > { %2114 = vst [vmem:[#allocation3 + $0x2f0] sm:$0xf] %v2098_v55  ;;  %2115 = vst [vmem:[#allocation3 + $0x2f8] sm:$0xf] %v2099_v40  ;;  %3090 = vrot.lane.b32.xlu1 %v8503_v29, %s5748_s18 }
 0x20f   : > { %v2143_v50 = vpop.permute.xlu0 %2142 }
 0x210   : > { %v2176_v24 = vsel %vm12014_vm6, %v2143_v50, %v2145_v54  ;;  %v2149_v22 = vpop.permute.xlu1 %2148  ;;  %vm12022_vm6 = vnez %v12021_v34 }
 0x211   : > { %v2208_v49 = vsel %vm12016_vm10, %v2176_v24, 0.0  ;;  %3092 = vrot.lane.b32.xlu0 %v8515_v62, %s5748_s18 }
 0x212   : > { %v2240_v11 = vrot.slane %v2208_v49, 4  ;;  %3094 = vrot.lane.b32.xlu1 %v8519_v47, %s5748_s18 }
 0x213   : > { %v2147_v30 = vpop.permute.xlu0 %2146 }
 0x214   : > { %2272 = vst [vmem:[#allocation3 + $0x280] sm:$0xf0] %v2240_v11  ;;  %v2177_v55 = vsel %vm12017_vm14, %v2145_v54, %v2147_v30  ;;  %v2178_v40 = vsel %vm12018_vm3, %v2147_v30, %v2149_v22  ;;  %v2153_v11 = vpop.permute.xlu1 %2152  ;;  %vm12023_vm14 = vmmov %vm12018_vm3 }
 0x215   : > { %v2209_v50 = vsel %vm12020_vm5, %v2177_v55, 0.0  ;;  %v2210_v24 = vsel %vm12022_vm6, %v2178_v40, 0.0  ;;  %v12024_v55 = vld [vmem:[#allocation75_spill] sm:$0xff]  ;;  %v12026_v40 = vld [vmem:[#allocation76_spill] sm:$0xff]  ;;  %2774 = vrot.lane.b32.xlu0 %v8407_v16, %s5754_s24 }
 0x216   : > { %v2241_v49 = vrot.slane %v2209_v50, 4  ;;  %v2242_v42 = vrot.slane %v2210_v24, 4  ;;  %vm12025_vm15 = vnez %v12024_v55  ;;  %vm12027_vm8 = vnez %v12026_v40  ;;  %3086 = vrot.lane.b32.xlu1 %v8487_v20, %s5748_s18  ;;  %v8588_v50 = vld [vmem:[#allocation2 + $0x8] sm:$0xff] }
 0x217   : > { %v2151_v59 = vpop.permute.xlu0 %2150 }
 0x218   : > { %2273 = vst [vmem:[#allocation3 + $0x288] sm:$0xf0] %v2241_v49  ;;  %2274 = vst [vmem:[#allocation3 + $0x290] sm:$0xf0] %v2242_v42  ;;  %v2179_v54 = vsel %vm12023_vm14, %v2149_v22, %v2151_v59  ;;  %v2180_v30 = vsel %vm12018_vm3, %v2151_v59, %v2153_v11  ;;  %v3716_v22 = vcombine.high %v8588_v50, %v8588_v50  ;;  %v2157_v49 = vpop.permute.xlu1 %2156 }
 0x219   : > { %v2211_v26 = vsel %vm12025_vm15, %v2179_v54, 0.0  ;;  %v2212_v61 = vsel %vm12027_vm8, %v2180_v30, 0.0  ;;  %v12029_v54 = vshra.s32 %v12028_v5, 8  ;;  %vm12032_vm8 = vmmov %vm12018_vm3  ;;  %3556 = vrot.lane.b32.xlu0 %v8501_v38, %s5751_s21 }
 0x21a   : > { %v2243_v24 = vrot.slane %v2211_v26, 4  ;;  %v2244_v42 = vrot.slane %v2212_v61, 4  ;;  %v12033_v26 = vld [vmem:[#allocation80_spill] sm:$0xff]  ;;  %3558 = vrot.lane.b32.xlu1 %v8503_v29, %s5751_s21 }
 0x21b   : > { %v2155_v59 = vpop.permute.xlu0 %2154  ;;  %vm8594_vm14 = vcmp.lt.s32.totalorder %v12029_v54, 7  ;;  %vm12034_vm4 = vnez %v12033_v26  ;;  %v4549_v5 = vld [vmem:[#allocation3 + $0x280] sm:$0xff]  ;;  %v12047_v26 = vld [vmem:[#allocation82_spill] sm:$0xff] }
 0x21c   : > { %2275 = vst [vmem:[#allocation3 + $0x298] sm:$0xf0] %v2243_v24  ;;  %2276 = vst [vmem:[#allocation3 + $0x2a0] sm:$0xf0] %v2244_v42  ;;  %v2181_v16 = vsel %vm12018_vm3, %v2153_v11, %v2155_v59  ;;  %v2182_v30 = vsel %vm12032_vm8, %v2155_v59, %v2157_v49  ;;  %v3733_v61 = vsel %vm8594_vm14, %v3716_v22, 0.0  ;;  %v3701_v11 = vld [vmem:[#allocation2 + $0x10] sm:$0xff]  ;;  %v2161_v22 = vpop.permute.xlu1 %2160  ;;  %vm12048_vm11 = vnez %v12047_v26 }
 0x21d   : > { %v2213_v25 = vsel %vm12034_vm4, %v2181_v16, 0.0  ;;  %v2214_v23 = vsel %vm12036_vm13, %v2182_v30, 0.0  ;;  %3749 = vst [vmem:[#allocation3 + $0x588] sm:$0xf] %v3733_v61  ;;  %v3717_v59 = vcombine.high %v3701_v11, %v3701_v11  ;;  %v4533_v16 = vld [vmem:[#allocation3 + $0x200] sm:$0xff]  ;;  %vm8612_vm8 = vcmp.lt.s32.totalorder %v12038_v10, 7  ;;  %3560 = vrot.lane.b32.xlu0 %v8515_v62, %s5751_s21 }
 0x21e   : > { %v2245_v24 = vrot.slane %v2213_v25, 4  ;;  %v2246_v42 = vrot.slane %v2214_v23, 4  ;;  %vm8618_vm3 = vcmp.lt.s32.totalorder %v12042_v6, 7  ;;  %vm12045_vm13 = vcmask 121856   ;;  %v12049_v10 = vld [vmem:[#allocation86_spill] sm:$0xff]  ;;  %3562 = vrot.lane.b32.xlu1 %v8519_v47, %s5751_s21  ;;  %v12133_v26 = vld [vmem:[#allocation28_spill] sm:$0xff] }
 0x21f   : > { %v2159_v54 = vpop.permute.xlu0 %2158  ;;  %v4550_v3 = vld [vmem:[#allocation3 + $0x288] sm:$0xff]  ;;  %vm12046_vm4 = vmmov %vm12045_vm13  ;;  %v5393_v35 = vpack.c.bf16 %v4549_v5, %v4533_v16  ;;  %vm12050_vm1 = vnez %v12049_v10  ;;  %v3735_v6 = vsel %vm8618_vm3, %v3717_v59, 0.0  ;;  %v3734_v51 = vsel %vm8612_vm8, %v3701_v11, 0.0  ;;  %v12051_v16 = vld [vmem:[#allocation4_spill] sm:$0xff] }
 0x220   : > { %2277 = vst [vmem:[#allocation3 + $0x2a8] sm:$0xf0] %v2245_v24  ;;  %2278 = vst [vmem:[#allocation3 + $0x2b0] sm:$0xf0] %v2246_v42  ;;  %v2183_v23 = vsel %vm12045_vm13, %v2157_v49, %v2159_v54  ;;  %v2184_v25 = vsel %vm12046_vm4, %v2159_v54, %v2161_v22  ;;  %v5391_v61 = vpack.c.bf16 %v4550_v3, %v4534_v13  ;;  %v4551_v49 = vld [vmem:[#allocation3 + $0x290] sm:$0xff]  ;;  %v2165_v24 = vpop.permute.xlu1 %2164  ;;  %v4536_v42 = vld [vmem:[#allocation3 + $0x218] sm:$0xff] }
 0x221   : > { %v2215_v57 = vsel %vm12048_vm11, %v2183_v23, 0.0  ;;  %v2216_v40 = vsel %vm12050_vm1, %v2184_v25, 0.0  ;;  %3751 = vst [vmem:[#allocation3 + $0x598] sm:$0xf] %v3735_v6  ;;  %3750 = vst [vmem:[#allocation3 + $0x590] sm:$0xf] %v3734_v51  ;;  %3808 = vrot.lane.b32.xlu0 %v8436_v37, %s5752_s22 }
 0x222   : > { %v2247_v3 = vrot.slane %v2215_v57, 4  ;;  %v2248_v13 = vrot.slane %v2216_v40, 4  ;;  %5392 = vmatprep.subr.bf16.mxu0 %v5391_v61  ;;  %v12052_v23 = vshra.s32 %v12051_v16, 8  ;;  %vm12055_vm1 = vmmov %vm12045_vm13  ;;  %v4535_v61 = vld [vmem:[#allocation3 + $0x210] sm:$0xff]  ;;  %v8649_v57 = vcombine.high %v8448_v41, %v8448_v41  ;;  %v12056_v6 = vld [vmem:[#allocation87_spill] sm:$0xff]  ;;  %3810 = vrot.lane.b32.xlu1 %v8448_v41, %s5752_s22 }
 0x223   : > { %v2163_v5 = vpop.permute.xlu0 %2162  ;;  %5394 = vmatpush1.bf16.msra.mxu0 %v5393_v35  ;;  %v4552_v54 = vld [vmem:[#allocation3 + $0x298] sm:$0xff]  ;;  %vm12057_vm11 = vnez %v12056_v6  ;;  %v12058_v16 = vld [vmem:[#allocation88_spill] sm:$0xff]  ;;  %v12107_v10 = vld [vmem:[#allocation58_spill] sm:$0xff] }
 0x224   : > { %vm8638_vm4 = vcmp.lt.s32.totalorder %v12052_v23, 7  ;;  %2279 = vst [vmem:[#allocation3 + $0x2b8] sm:$0xf0] %v2247_v3  ;;  %2280 = vst [vmem:[#allocation3 + $0x2c0] sm:$0xf0] %v2248_v13  ;;  %v2185_v11 = vsel %vm12045_vm13, %v2161_v22, %v2163_v5  ;;  %v2186_v40 = vsel %vm12055_vm1, %v2163_v5, %v2165_v24  ;;  %v5423_v59 = vpack.c.bf16 %v4552_v54, %v4536_v42  ;;  %v8659_v5 = vld [vmem:[#allocation2 + $0x18] sm:$0xff]  ;;  %v2169_v54 = vpop.permute.xlu1 %2168 }
 0x225   : > { %v3732_v35 = vsel %vm8638_vm4, %v8588_v50, 0.0  ;;  %v2217_v51 = vsel %vm12057_vm11, %v2185_v11, 0.0  ;;  %vm12059_vm7 = vnez %v12058_v16  ;;  %v5425_v22 = vpack.c.bf16 %v4551_v49, %v4535_v61  ;;  %vm12060_vm13 = vmmov %vm12055_vm1  ;;  %v12063_v6 = vld [vmem:[#allocation92_spill] sm:$0xff]  ;;  %3812 = vrot.lane.b32.xlu0 %v8649_v57, %s5752_s22 }
 0x226   : > { %v2218_v3 = vsel %vm12059_vm7, %v2186_v40, 0.0  ;;  %3748 = vst [vmem:[#allocation3 + $0x580] sm:$0xf] %v3732_v35  ;;  %v2249_v13 = vrot.slane %v2217_v51, 4  ;;  %5424 = vmatprep.subr.bf16.mxu1 %v5423_v59  ;;  %v12061_v40 = vld [vmem:[#allocation91_spill] sm:$0xff]  ;;  %vm12064_vm11 = vnez %v12063_v6  ;;  %3814 = vrot.lane.b32.xlu1 %v8659_v5, %s5752_s22  ;;  %v12102_v6 = vld [vmem:[#allocation49_spill] sm:$0xff] }
 0x227   : > { %v2250_v50 = vrot.slane %v2218_v3, 4  ;;  %v2167_v42 = vpop.permute.xlu0 %2166  ;;  %5426 = vmatpush1.bf16.msra.mxu1 %v5425_v22  ;;  %vm12062_vm7 = vnez %v12061_v40  ;;  %v12066_v22 = vld [vmem:[#allocation95_spill] sm:$0xff]  ;;  %v12104_v40 = vld [vmem:[#allocation57_spill] sm:$0xff] }
 0x228   : > { %2281 = vst [vmem:[#allocation3 + $0x2c8] sm:$0xf0] %v2249_v13  ;;  %v2187_v23 = vsel %vm12055_vm1, %v2165_v24, %v2167_v42  ;;  %v2188_v11 = vsel %vm12060_vm13, %v2167_v42, %v2169_v54  ;;  %v2173_v51 = vpop.permute.xlu1 %2172  ;;  %vm12065_vm13 = vmmov %vm12055_vm1 }
 0x229   : > { %2282 = vst [vmem:[#allocation3 + $0x2d0] sm:$0xf0] %v2250_v50  ;;  %v2219_v16 = vsel %vm12062_vm7, %v2187_v23, 0.0  ;;  %v2220_v49 = vsel %vm12064_vm11, %v2188_v11, 0.0  ;;  %vm12067_vm7 = vnez %v12066_v22  ;;  %v12068_v50 = vld [vmem:[#allocation96_spill] sm:$0xff]  ;;  %3554 = vrot.lane.b32.xlu0 %v8487_v20, %s5751_s21 }
 0x22a   : > { %v2251_v59 = vrot.slane %v2219_v16, 4  ;;  %v2252_v61 = vrot.slane %v2220_v49, 4  ;;  %vm12069_vm11 = vnez %v12068_v50  ;;  %3806 = vrot.lane.b32.xlu1 %v8422_v63, %s5752_s22  ;;  %v5756_v50 = vmov 0.0  }
 0x22b   : > { %v2171_v35 = vpop.permute.xlu0 %2170  ;;  %4421 = vst [vmem:[#allocation3 + $0x688] sm:$0xf0] %v5756_v50  ;;  %4420 = vst [vmem:[#allocation3 + $0x680] sm:$0xf0] %v5756_v50  ;;  %4866 = vmatprep.mubr.f32.mxu1 %v5756_v50  ;;  %4795 = vmatprep.mubr.f32.mxu0 %v5756_v50 }
 0x22c   : > { %2283 = vst [vmem:[#allocation3 + $0x2d8] sm:$0xf0] %v2251_v59  ;;  %2284 = vst [vmem:[#allocation3 + $0x2e0] sm:$0xf0] %v2252_v61  ;;  %v2189_v24 = vsel %vm12055_vm1, %v2169_v54, %v2171_v35  ;;  %v2190_v3 = vsel %vm12065_vm13, %v2171_v35, %v2173_v51  ;;  %v2315_v49 = vpop.permute.xlu1 %2314  ;;  %v12070_v59 = vld [vmem:[#allocation98_spill] sm:$0xff] }
 0x22d   : > { %v2221_v13 = vsel %vm12067_vm7, %v2189_v24, 0.0  ;;  %v2222_v42 = vsel %vm12069_vm11, %v2190_v3, 0.0  ;;  %vm12071_vm13 = vnez %v12070_v59  ;;  %3416 = vrot.lane.b32.xlu0 %v8501_v38, %s5750_s20  ;;  %vm12072_vm11 = vcmask 7168   ;;  %v12093_v59 = vld [vmem:[#allocation27_spill] sm:$0xff]  ;;  %4422 = vst [vmem:[#allocation3 + $0x690] sm:$0xf0] %v5756_v50 }
 0x22e   : > { %v2253_v16 = vrot.slane %v2221_v13, 4  ;;  %v2254_v23 = vrot.slane %v2222_v42, 4  ;;  %3418 = vrot.lane.b32.xlu1 %v8503_v29, %s5750_s20  ;;  %vm12073_vm7 = vmmov %vm12072_vm11  ;;  %4423 = vst [vmem:[#allocation3 + $0x698] sm:$0xf0] %v5756_v50 }
 0x22f   : > { %v2175_v11 = vpop.permute.xlu0 %2174  ;;  %4424 = vst [vmem:[#allocation3 + $0x6a0] sm:$0xf0] %v5756_v50  ;;  %4425 = vst [vmem:[#allocation3 + $0x6a8] sm:$0xf0] %v5756_v50 }
 0x230   : > { %2285 = vst [vmem:[#allocation3 + $0x2e8] sm:$0xf0] %v2253_v16  ;;  %2286 = vst [vmem:[#allocation3 + $0x2f0] sm:$0xf0] %v2254_v23  ;;  %v2191_v54 = vsel %vm12055_vm1, %v2173_v51, %v2175_v11  ;;  %v2319_v3 = vpop.permute.xlu1 %2318  ;;  %v12074_v16 = vld [vmem:[#allocation33_spill] sm:$0xff]  ;;  %v12076_v23 = vld [vmem:[#allocation35_spill] sm:$0xff] }
 0x231   : > { %v2223_v61 = vsel %vm12071_vm13, %v2191_v54, 0.0  ;;  %vm12075_vm10 = vnez %v12074_v16  ;;  %vm12077_vm1 = vnez %v12076_v23  ;;  %3420 = vrot.lane.b32.xlu0 %v8515_v62, %s5750_s20  ;;  %vm12078_vm13 = vmmov %vm12073_vm7  ;;  %4426 = vst [vmem:[#allocation3 + $0x6b0] sm:$0xf0] %v5756_v50 }
 0x232   : > { %v2255_v35 = vrot.slane %v2223_v61, 4  ;;  %3422 = vrot.lane.b32.xlu1 %v8519_v47, %s5750_s20  ;;  %v12080_v61 = vld [vmem:[#allocation13_spill] sm:$0xff]  ;;  %4427 = vst [vmem:[#allocation3 + $0x6b8] sm:$0xf0] %v5756_v50  ;;  %4428 = vst [vmem:[#allocation3 + $0x6c0] sm:$0xf0] %v5756_v50 }
 0x233   : > { %v2317_v24 = vpop.permute.xlu0 %2316  ;;  %4429 = vst [vmem:[#allocation3 + $0x6c8] sm:$0xf0] %v5756_v50  ;;  %4430 = vst [vmem:[#allocation3 + $0x6d0] sm:$0xf0] %v5756_v50 }
 0x234   : > { %2287 = vst [vmem:[#allocation3 + $0x2f8] sm:$0xf0] %v2255_v35  ;;  %v2348_v13 = vsel %vm12072_vm11, %v2315_v49, %v2317_v24  ;;  %v2349_v42 = vsel %vm12073_vm7, %v2317_v24, %v2319_v3  ;;  %v2323_v29 = vpop.permute.xlu1 %2322  ;;  %vm12079_vm11 = vmmov %vm12073_vm7  ;;  %vm12081_vm7 = vnez %v12080_v61  ;;  %v12082_v24 = vld [vmem:[#allocation14_spill] sm:$0xff] }
 0x235   : > { %v2380_v51 = vsel %vm12075_vm10, %v2348_v13, 0.0  ;;  %v2381_v11 = vsel %vm12077_vm1, %v2349_v42, 0.0  ;;  %vm12083_vm15 = vnez %v12082_v24  ;;  %3414 = vrot.lane.b32.xlu0 %v8487_v20, %s5750_s20  ;;  %vm12084_vm6 = vmmov %vm12079_vm11  ;;  %4431 = vst [vmem:[#allocation3 + $0x6d8] sm:$0xf0] %v5756_v50 }
 0x236   : > { %2396 = vst [vmem:[#allocation3 + $0x300] sm:$0xf] %v2380_v51  ;;  %2397 = vst [vmem:[#allocation3 + $0x308] sm:$0xf] %v2381_v11  ;;  %4136 = vrot.lane.b32.xlu1 %v8436_v37, %s5754_s24  ;;  %v12086_v11 = vld [vmem:[#allocation18_spill] sm:$0xff] }
 0x237   : > { %v2321_v38 = vpop.permute.xlu0 %2320  ;;  %vm12090_vm10 = vmmov %vm12084_vm6  ;;  %4432 = vst [vmem:[#allocation3 + $0x6e0] sm:$0xf0] %v5756_v50 }
 0x238   : > { %v2350_v49 = vsel %vm12078_vm13, %v2319_v3, %v2321_v38  ;;  %v2351_v54 = vsel %vm12079_vm11, %v2321_v38, %v2323_v29  ;;  %v2327_v42 = vpop.permute.xlu1 %2326  ;;  %vm12085_vm13 = vmmov %vm12084_vm6  ;;  %vm12087_vm11 = vnez %v12086_v11  ;;  %4433 = vst [vmem:[#allocation3 + $0x6e8] sm:$0xf0] %v5756_v50 }
 0x239   : > { %v2382_v35 = vsel %vm12081_vm7, %v2350_v49, 0.0  ;;  %v2383_v13 = vsel %vm12083_vm15, %v2351_v54, 0.0  ;;  %v12088_v49 = vld [vmem:[#allocation19_spill] sm:$0xff]  ;;  %4138 = vrot.lane.b32.xlu0 %v8448_v41, %s5754_s24  ;;  %4434 = vst [vmem:[#allocation3 + $0x6f0] sm:$0xf0] %v5756_v50  ;;  %4436 = vst [vmem:[#allocation3 + $0x700] sm:$0xff] %v5756_v50 }
 0x23a   : > { %2398 = vst [vmem:[#allocation3 + $0x310] sm:$0xf] %v2382_v35  ;;  %2399 = vst [vmem:[#allocation3 + $0x318] sm:$0xf] %v2383_v13  ;;  %vm12089_vm5 = vnez %v12088_v49  ;;  %4140 = vrot.lane.b32.xlu1 %v8649_v57, %s5754_s24 }
 0x23b   : > { %v2325_v62 = vpop.permute.xlu0 %2324  ;;  %4435 = vst [vmem:[#allocation3 + $0x6f8] sm:$0xf0] %v5756_v50 }
 0x23c   : > { %v2352_v3 = vsel %vm12084_vm6, %v2323_v29, %v2325_v62  ;;  %v2353_v51 = vsel %vm12085_vm13, %v2325_v62, %v2327_v42  ;;  %v2331_v35 = vpop.permute.xlu1 %2330  ;;  %v12091_v62 = vld [vmem:[#allocation26_spill] sm:$0xff] }
 0x23d   : > { %v2384_v38 = vsel %vm12087_vm11, %v2352_v3, 0.0  ;;  %v2385_v54 = vsel %vm12089_vm5, %v2353_v51, 0.0  ;;  %vm12092_vm13 = vnez %v12091_v62  ;;  %vm12094_vm11 = vnez %v12093_v59  ;;  %4142 = vrot.lane.b32.xlu0 %v8659_v5, %s5754_s24  ;;  %vm12100_vm5 = vmmov %vm12084_vm6 }
 0x23e   : > { %2400 = vst [vmem:[#allocation3 + $0x320] sm:$0xf] %v2384_v38  ;;  %2401 = vst [vmem:[#allocation3 + $0x328] sm:$0xf] %v2385_v54  ;;  %4134 = vrot.lane.b32.xlu1 %v8422_v63, %s5754_s24 }
 0x23f   : > { %v2329_v20 = vpop.permute.xlu0 %2328 }
 0x240   : > { %v2354_v29 = vsel %vm12090_vm10, %v2327_v42, %v2329_v20  ;;  %v2355_v13 = vsel %vm12084_vm6, %v2329_v20, %v2331_v35  ;;  %v2335_v54 = vpop.permute.xlu1 %2334  ;;  %vm12095_vm10 = vmmov %vm12084_vm6 }
 0x241   : > { %v2386_v3 = vsel %vm12092_vm13, %v2354_v29, 0.0  ;;  %v2387_v51 = vsel %vm12094_vm11, %v2355_v13, 0.0  ;;  %v12096_v29 = vld [vmem:[#allocation43_spill] sm:$0xff]  ;;  %3996 = vrot.lane.b32.xlu0 %v8436_v37, %s5753_s23  ;;  %v4567_v32 = vld [vmem:[#allocation3 + $0x310] sm:$0xff] }
 0x242   : > { %2402 = vst [vmem:[#allocation3 + $0x330] sm:$0xf] %v2386_v3  ;;  %2403 = vst [vmem:[#allocation3 + $0x338] sm:$0xf] %v2387_v51  ;;  %vm12097_vm11 = vnez %v12096_v29  ;;  %v12098_v3 = vld [vmem:[#allocation44_spill] sm:$0xff]  ;;  %3998 = vrot.lane.b32.xlu1 %v8448_v41, %s5753_s23  ;;  %v12131_v29 = vld [vmem:[#allocation11_spill] sm:$0xff] }
 0x243   : > { %v2333_v38 = vpop.permute.xlu0 %2332  ;;  %vm12099_vm13 = vnez %v12098_v3  ;;  %v4568_v19 = vld [vmem:[#allocation3 + $0x318] sm:$0xff] }
 0x244   : > { %v2356_v42 = vsel %vm12095_vm10, %v2331_v35, %v2333_v38  ;;  %v2357_v20 = vsel %vm12084_vm6, %v2333_v38, %v2335_v54  ;;  %v2339_v50 = vpop.permute.xlu1 %2338  ;;  %vm12101_vm10 = vmmov %vm12100_vm5  ;;  %vm12103_vm6 = vnez %v12102_v6  ;;  %v12109_v6 = vld [vmem:[#allocation63_spill] sm:$0xff] }
 0x245   : > { %v2388_v13 = vsel %vm12097_vm11, %v2356_v42, 0.0  ;;  %v2389_v51 = vsel %vm12099_vm13, %v2357_v20, 0.0  ;;  %vm12105_vm11 = vnez %v12104_v40  ;;  %4000 = vrot.lane.b32.xlu0 %v8649_v57, %s5753_s23  ;;  %vm12106_vm13 = vmmov %vm12100_vm5  ;;  %v12113_v40 = vld [vmem:[#allocation64_spill] sm:$0xff] }
 0x246   : > { %2404 = vst [vmem:[#allocation3 + $0x340] sm:$0xf] %v2388_v13  ;;  %2405 = vst [vmem:[#allocation3 + $0x348] sm:$0xf] %v2389_v51  ;;  %4002 = vrot.lane.b32.xlu1 %v8659_v5, %s5753_s23 }
 0x247   : > { %v2337_v22 = vpop.permute.xlu0 %2336 }
 0x248   : > { %v2358_v35 = vsel %vm12100_vm5, %v2335_v54, %v2337_v22  ;;  %v2359_v38 = vsel %vm12101_vm10, %v2337_v22, %v2339_v50  ;;  %v2343_v51 = vpop.permute.xlu1 %2342  ;;  %vm12108_vm10 = vnez %v12107_v10  ;;  %v12115_v10 = vld [vmem:[#allocation68_spill] sm:$0xff] }
 0x249   : > { %v2390_v42 = vsel %vm12103_vm6, %v2358_v35, 0.0  ;;  %v2391_v20 = vsel %vm12105_vm11, %v2359_v38, 0.0  ;;  %vm12110_vm6 = vnez %v12109_v6  ;;  %4324 = vrot.lane.b32.xlu0 %v8436_v37, %s5755_s25  ;;  %vm12111_vm11 = vmmov %vm12100_vm5 }
 0x24a   : > { %2406 = vst [vmem:[#allocation3 + $0x350] sm:$0xf] %v2390_v42  ;;  %2407 = vst [vmem:[#allocation3 + $0x358] sm:$0xf] %v2391_v20  ;;  %4326 = vrot.lane.b32.xlu1 %v8448_v41, %s5755_s25 }
 0x24b   : > { %v2341_v13 = vpop.permute.xlu0 %2340 }
 0x24c   : > { %v2360_v54 = vsel %vm12106_vm13, %v2339_v50, %v2341_v13  ;;  %v2361_v22 = vsel %vm12100_vm5, %v2341_v13, %v2343_v51  ;;  %v2347_v20 = vpop.permute.xlu1 %2346  ;;  %vm12112_vm13 = vmmov %vm12100_vm5  ;;  %vm12114_vm5 = vnez %v12113_v40 }
 0x24d   : > { %v2392_v35 = vsel %vm12108_vm10, %v2360_v54, 0.0  ;;  %v2393_v38 = vsel %vm12110_vm6, %v2361_v22, 0.0  ;;  %vm12116_vm10 = vnez %v12115_v10  ;;  %4328 = vrot.lane.b32.xlu0 %v8649_v57, %s5755_s25  ;;  %vm12117_vm6 = vcmask 1039360  }
 0x24e   : > { %2408 = vst [vmem:[#allocation3 + $0x360] sm:$0xf] %v2392_v35  ;;  %2409 = vst [vmem:[#allocation3 + $0x368] sm:$0xf] %v2393_v38  ;;  %4330 = vrot.lane.b32.xlu1 %v8659_v5, %s5755_s25 }
 0x24f   : > { %v2345_v42 = vpop.permute.xlu0 %2344 }
 0x250   : > { %v2362_v50 = vsel %vm12111_vm11, %v2343_v51, %v2345_v42  ;;  %v2363_v13 = vsel %vm12112_vm13, %v2345_v42, %v2347_v20  ;;  %v2481_v41 = vpop.permute.xlu1 %2480  ;;  %vm12118_vm11 = vnez %v11352_v7  ;;  %vm12119_vm13 = vmmov %vm12117_vm6 }
 0x251   : > { %v2394_v54 = vsel %vm12114_vm5, %v2362_v50, 0.0  ;;  %v2395_v22 = vsel %vm12116_vm10, %v2363_v13, 0.0  ;;  %3994 = vrot.lane.b32.xlu0 %v8422_v63, %s5753_s23  ;;  %vm12120_vm10 = vmmov %vm12117_vm6  ;;  %v8779_v13 = vcombine.high %v8659_v5, %v8659_v5  ;;  %vm12122_vm5 = vnez %v11377_v43 }
 0x252   : > { %2410 = vst [vmem:[#allocation3 + $0x370] sm:$0xf] %v2394_v54  ;;  %2411 = vst [vmem:[#allocation3 + $0x378] sm:$0xf] %v2395_v22  ;;  %4322 = vrot.lane.b32.xlu1 %v8422_v63, %s5755_s25  ;;  %v8789_v63 = vld [vmem:[#allocation2 + $0x20] sm:$0xff] }
 0x253   : > { %v2479_v37 = vpop.permute.xlu0 %2478  ;;  %v9014_v23 = vcombine.high %v8789_v63, %v8789_v63 }
 0x254   : > { %v2512_v51 = vsel %vm12117_vm6, %v2479_v37, %v2481_v41  ;;  %v2485_v42 = vpop.permute.xlu1 %2484  ;;  %vm12121_vm6 = vnez %v11360_v14 }
 0x255   : > { %v2544_v35 = vsel %vm12118_vm11, %v2512_v51, 0.0  ;;  %2612 = vrot.lane.b32.xlu0 %v8649_v57, %s5753_s23  ;;  %vm12124_vm11 = vcmask 924672  }
 0x256   : > { %2560 = vst [vmem:[#allocation3 + $0x380] sm:$0xf] %v2544_v35  ;;  %2614 = vrot.lane.b32.xlu1 %v8659_v5, %s5753_s23 }
 0x257   : > { %v2483_v38 = vpop.permute.xlu0 %2482 }
 0x258   : > { %v2513_v20 = vsel %vm12119_vm13, %v2481_v41, %v2483_v38  ;;  %v2514_v50 = vsel %vm12120_vm10, %v2483_v38, %v2485_v42  ;;  %v2605_v41 = vpop.permute.xlu1 %2604  ;;  %vm12123_vm13 = vnez %v11828_v33 }
 0x259   : > { %v2545_v54 = vsel %vm12121_vm6, %v2513_v20, 0.0  ;;  %v2546_v22 = vsel %vm12122_vm5, %v2514_v50, 0.0  ;;  %2616 = vrot.lane.b32.xlu0 %v8779_v13, %s5753_s23  ;;  %vm12125_vm5 = vmmov %vm12124_vm11 }
 0x25a   : > { %2561 = vst [vmem:[#allocation3 + $0x388] sm:$0xf] %v2545_v54  ;;  %2562 = vst [vmem:[#allocation3 + $0x390] sm:$0xf] %v2546_v22  ;;  %2618 = vrot.lane.b32.xlu1 %v8789_v63, %s5753_s23  ;;  %v12126_v22 = vld [vmem:[#allocation29_spill] sm:$0xff] }
 0x25b   : > { %v8791_v37 = vpop.permute.xlu0 %2486  ;;  %vm12127_vm6 = vnez %v12126_v22 }
 0x25c   : > { %v2515_v51 = vsel %vm12120_vm10, %v2485_v42, %v8791_v37  ;;  %v2609_v20 = vpop.permute.xlu1 %2608  ;;  %v12128_v42 = vld [vmem:[#allocation9_spill] sm:$0xff] }
 0x25d   : > { %v2547_v35 = vsel %vm12123_vm13, %v2515_v51, 0.0  ;;  %vm12129_vm10 = vnez %v12128_v42  ;;  %2488 = vrot.lane.b32.xlu0 %v8649_v57, %s5752_s22 }
 0x25e   : > { %2563 = vst [vmem:[#allocation3 + $0x398] sm:$0xf] %v2547_v35  ;;  %2490 = vrot.lane.b32.xlu1 %v8659_v5, %s5752_s22 }
 0x25f   : > { %v2607_v38 = vpop.permute.xlu0 %2606 }
 0x260   : > { %v2637_v50 = vsel %vm12124_vm11, %v2605_v41, %v2607_v38  ;;  %v2638_v54 = vsel %vm12125_vm5, %v2607_v38, %v2609_v20  ;;  %v2603_v3 = vpop.permute.xlu1 %2602  ;;  %vm12130_vm11 = vmmov %vm12125_vm5 }
 0x261   : > { %v2669_v10 = vsel %vm12127_vm6, %v2637_v50, 0.0  ;;  %v2670_v40 = vsel %vm12129_vm10, %v2638_v54, 0.0  ;;  %v2636_v50 = vsel %vm12130_vm11, %v2603_v3, %v2605_v41  ;;  %vm12132_vm10 = vnez %v12131_v29  ;;  %2492 = vrot.lane.b32.xlu0 %v8779_v13, %s5752_s22 }
 0x262   : > { %v2701_v51 = vrot.slane %v2669_v10, 4  ;;  %v2702_v35 = vrot.slane %v2670_v40, 4  ;;  %vm12134_vm6 = vnez %v12133_v26  ;;  %2494 = vrot.lane.b32.xlu1 %v8789_v63, %s5752_s22  ;;  %vm12136_vm11 = vnez %v11821_v1 }
 0x263   : > { %v8811_v6 = vpop.permute.xlu0 %2610  ;;  %v2668_v59 = vsel %vm12134_vm6, %v2636_v50, 0.0  ;;  %v4566_v50 = vld [vmem:[#allocation3 + $0x308] sm:$0xff] }
 0x264   : > { %2733 = vst [vmem:[#allocation3 + $0x388] sm:$0xf0] %v2701_v51  ;;  %2734 = vst [vmem:[#allocation3 + $0x390] sm:$0xf0] %v2702_v35  ;;  %v2639_v38 = vsel %vm12125_vm5, %v2609_v20, %v8811_v6  ;;  %v2700_v40 = vrot.slane %v2668_v59, 4  ;;  %v2903_v35 = vpop.permute.xlu1 %2902  ;;  %vm12135_vm5 = vcmask 908288  }
 0x265   : > { %v2671_v54 = vsel %vm12132_vm10, %v2639_v38, 0.0  ;;  %2908 = vrot.lane.b32.xlu0 %v8649_v57, %s5755_s25  ;;  %vm12137_vm6 = vmmov %vm12135_vm5  ;;  %vm12139_vm10 = vnez %v11832_v27 }
 0x266   : > { %v2703_v10 = vrot.slane %v2671_v54, 4  ;;  %2732 = vst [vmem:[#allocation3 + $0x380] sm:$0xf0] %v2700_v40  ;;  %2910 = vrot.lane.b32.xlu1 %v8659_v5, %s5755_s25 }
 0x267   : > { %v8824_v51 = vpop.permute.xlu0 %2900 }
 0x268   : > { %2735 = vst [vmem:[#allocation3 + $0x398] sm:$0xf0] %v2703_v10  ;;  %v2933_v3 = vsel %vm12135_vm5, %v8824_v51, %v2903_v35  ;;  %v8834_v59 = vpop.permute.xlu1 %2906 }
 0x269   : > { %v2965_v41 = vsel %vm12136_vm11, %v2933_v3, 0.0  ;;  %v8841_v3 = vcombine.high %v8519_v47, %v8519_v47  ;;  %vm12138_vm11 = vnez %v11825_v45  ;;  %2912 = vrot.lane.b32.xlu0 %v8779_v13, %s5755_s25 }
 0x26a   : > { %v2997_v20 = vrot.slane %v2965_v41, 4  ;;  %2914 = vrot.lane.b32.xlu1 %v8789_v63, %s5755_s25 }
 0x26b   : > { %v2905_v38 = vpop.permute.xlu0 %2904  ;;  %v4582_v54 = vld [vmem:[#allocation3 + $0x388] sm:$0xff] }
 0x26c   : > { %3029 = vst [vmem:[#allocation3 + $0x408] sm:$0xf0] %v2997_v20  ;;  %v2934_v10 = vsel %vm12137_vm6, %v2903_v35, %v2905_v38  ;;  %v2935_v40 = vsel %vm12135_vm5, %v2905_v38, %v8834_v59  ;;  %v5395_v62 = vpack.c.bf16 %v4582_v54, %v4566_v50  ;;  %vm12140_vm6 = vcmp.ge.s32.totalorder %v11621_v36, 1  ;;  %v8859_v38 = vld [vmem:[#allocation2 + $0x1c] sm:$0xff]  ;;  %v4583_v54 = vld [vmem:[#allocation3 + $0x390] sm:$0xff] }
 0x26d   : > { %v2966_v49 = vsel %vm12138_vm11, %v2934_v10, 0.0  ;;  %v2967_v41 = vsel %vm12139_vm10, %v2935_v40, 0.0  ;;  %vm8855_vm5 = vmand %vm8594_vm14, %vm12140_vm6  ;;  %v4565_v50 = vld [vmem:[#allocation3 + $0x300] sm:$0xff]  ;;  %v3231_v40 = vpop.permute.xlu1 %3230  ;;  %vm12143_vm10 = vcmask 130048   ;;  %3236 = vrot.lane.b32.xlu0 %v8841_v3, %s5749_s19  ;;  %vm12144_vm6 = vcmp.ge.s32.totalorder %v11627_v31, 1 }
 0x26e   : > { %v2998_v47 = vrot.slane %v2966_v49, 4  ;;  %v2999_v20 = vrot.slane %v2967_v41, 4  ;;  %5396 = vmatprep.subr.bf16.mxu0 %v5395_v62  ;;  %v4581_v11 = vld [vmem:[#allocation3 + $0x380] sm:$0xff]  ;;  %v8868_v62 = vcombine.high %v8859_v38, %v8859_v38  ;;  %3238 = vrot.lane.b32.xlu1 %v8859_v38, %s5749_s19 }
 0x26f   : > { %v3229_v10 = vpop.permute.xlu0 %3228  ;;  %v4584_v2 = vld [vmem:[#allocation3 + $0x398] sm:$0xff]  ;;  %v5397_v48 = vpack.c.bf16 %v4581_v11, %v4565_v50  ;;  %v8884_v11 = vld [vmem:[#allocation2 + $0x24] sm:$0xff] }
 0x270   : > { %3030 = vst [vmem:[#allocation3 + $0x410] sm:$0xf0] %v2998_v47  ;;  %3031 = vst [vmem:[#allocation3 + $0x418] sm:$0xf0] %v2999_v20  ;;  %v3261_v8 = vsel %vm12143_vm10, %v3229_v10, %v3231_v40  ;;  %v5427_v0 = vpack.c.bf16 %v4584_v2, %v4568_v19  ;;  %v5429_v19 = vpack.c.bf16 %v4583_v54, %v4567_v32 }
 0x271   : > { %v3293_v49 = vsel %vm8855_vm5, %v3261_v8, 0.0  ;;  %vm8876_vm10 = vmand %vm8612_vm8, %vm12144_vm6  ;;  %5398 = vmatpush1.bf16.msra.mxu0 %v5397_v48  ;;  %vm12147_vm5 = vcmp.ge.s32.totalorder %v11647_v12, 1  ;;  %v8886_v35 = vpop.permute.xlu1 %3234  ;;  %vm12148_vm6 = vcmask 130048   ;;  %3240 = vrot.lane.b32.xlu0 %v8868_v62, %s5749_s19 }
 0x272   : > { %v3325_v8 = vrot.slane %v3293_v49, 4  ;;  %5428 = vmatprep.subr.bf16.mxu1 %v5427_v0  ;;  %vm3196_vm11 = vmand %vm8618_vm3, %vm12147_vm5  ;;  %3242 = vrot.lane.b32.xlu1 %v8884_v11, %s5749_s19  ;;  %vm12150_vm5 = vcmp.ge.s32.totalorder %v11620_v44, 1 }
 0x273   : > { %v3233_v41 = vpop.permute.xlu0 %3232  ;;  %5430 = vmatpush1.bf16.msra.mxu1 %v5429_v19  ;;  %vm12149_vm13 = vmmov %vm12148_vm6 }
 0x274   : > { %3357 = vst [vmem:[#allocation3 + $0x488] sm:$0xf0] %v3325_v8  ;;  %v3262_v47 = vsel %vm12148_vm6, %v3231_v40, %v3233_v41  ;;  %v3263_v32 = vsel %vm12149_vm13, %v3233_v41, %v8886_v35  ;;  %vm3193_vm6 = vmand %vm8638_vm4, %vm12150_vm5  ;;  %vm12151_vm13 = vcmask 908288   ;;  %vm12154_vm5 = vcmask 916480  }
 0x275   : > { %v3294_v0 = vsel %vm8876_vm10, %v3262_v47, 0.0  ;;  %v3295_v48 = vsel %vm3196_vm11, %v3263_v32, 0.0  ;;  %v3227_v40 = vpop.permute.xlu1 %3226  ;;  %vm12152_vm11 = vcmask 130048   ;;  %vm12153_vm10 = vnez %v11817_v46  ;;  %2784 = vrot.lane.b32.xlu0 %v8649_v57, %s5754_s24 }
 0x276   : > { %v3326_v20 = vrot.slane %v3294_v0, 4  ;;  %v3327_v50 = vrot.slane %v3295_v48, 4  ;;  %v3260_v2 = vsel %vm12152_vm11, %v3227_v40, %v3229_v10  ;;  %2786 = vrot.lane.b32.xlu1 %v8659_v5, %s5754_s24  ;;  %vm12157_vm11 = vmmov %vm12154_vm5 }
 0x277   : > { %v2899_v54 = vpop.permute.xlu0 %2898  ;;  %v3292_v8 = vsel %vm3193_vm6, %v3260_v2, 0.0  ;;  %vm12156_vm6 = vmmov %vm12154_vm5 }
 0x278   : > { %3358 = vst [vmem:[#allocation3 + $0x490] sm:$0xf0] %v3326_v20  ;;  %3359 = vst [vmem:[#allocation3 + $0x498] sm:$0xf0] %v3327_v50  ;;  %v2932_v49 = vsel %vm12151_vm13, %v2899_v54, %v8824_v51  ;;  %v3324_v47 = vrot.slane %v3292_v8, 4  ;;  %vm12155_vm13 = vcmp.lt.s32.totalorder %v11621_v36, 15 }
 0x279   : > { %v2964_v19 = vsel %vm12153_vm10, %v2932_v49, 0.0  ;;  %v2779_v0 = vpop.permute.xlu1 %2778  ;;  %2788 = vrot.lane.b32.xlu0 %v8779_v13, %s5754_s24 }
 0x27a   : > { %v2996_v41 = vrot.slane %v2964_v19, 4  ;;  %3356 = vst [vmem:[#allocation3 + $0x480] sm:$0xf0] %v3324_v47  ;;  %2790 = vrot.lane.b32.xlu1 %v8789_v63, %s5754_s24  ;;  %v3718_v47 = vcombine.high %v3702_v39, %v3702_v39 }
 0x27b   : > { %v2777_v32 = vpop.permute.xlu0 %2776 }
 0x27c   : > { %3028 = vst [vmem:[#allocation3 + $0x400] sm:$0xf0] %v2996_v41  ;;  %v2809_v51 = vsel %vm12154_vm5, %v2777_v32, %v2779_v0  ;;  %vm12158_vm5 = vcmp.lt.s32.totalorder %v11627_v31, 15 }
 0x27d   : > { %v2841_v10 = vsel %vm12155_vm13, %v2809_v51, 0.0  ;;  %v8917_v5 = vpop.permute.xlu1 %2782  ;;  %vm12159_vm13 = vcmp.lt.s32.totalorder %v11647_v12, 15  ;;  %3096 = vrot.lane.b32.xlu0 %v8841_v3, %s5748_s18 }
 0x27e   : > { %2857 = vst [vmem:[#allocation3 + $0x408] sm:$0xf] %v2841_v10  ;;  %3098 = vrot.lane.b32.xlu1 %v8859_v38, %s5748_s18  ;;  %v12164_v10 = vshra.s32 %v12163_v9, 8 }
 0x27f   : > { %v2781_v57 = vpop.permute.xlu0 %2780 }
 0x280   : > { %v2810_v48 = vsel %vm12156_vm6, %v2779_v0, %v2781_v57  ;;  %v2811_v20 = vsel %vm12157_vm11, %v2781_v57, %v8917_v5  ;;  %vm3054_vm6 = vmand %vm8594_vm14, %vm11947_vm9  ;;  %vm12160_vm11 = vcmask 138240  }
 0x281   : > { %v2842_v50 = vsel %vm12158_vm5, %v2810_v48, 0.0  ;;  %v2843_v54 = vsel %vm12159_vm13, %v2811_v20, 0.0  ;;  %v3091_v49 = vpop.permute.xlu1 %3090  ;;  %3100 = vrot.lane.b32.xlu0 %v8868_v62, %s5748_s18  ;;  %vm3055_vm5 = vmand %vm8612_vm8, %vm11949_vm2  ;;  %v12168_v48 = vshra.s32 %v12167_v53, 8 }
 0x282   : > { %2858 = vst [vmem:[#allocation3 + $0x410] sm:$0xf] %v2842_v50  ;;  %2859 = vst [vmem:[#allocation3 + $0x418] sm:$0xf] %v2843_v54  ;;  %3102 = vrot.lane.b32.xlu1 %v8884_v11, %s5748_s18 }
 0x283   : > { %v3089_v40 = vpop.permute.xlu0 %3088  ;;  %vm3056_vm9 = vmand %vm8618_vm3, %vm11953_vm0  ;;  %vm8960_vm2 = vcmp.lt.s32.totalorder %v12168_v48, 7  ;;  %v12178_v48 = vshra.s32 %v12177_v4, 8 }
 0x284   : > { %v3121_v2 = vsel %vm12160_vm11, %v3089_v40, %v3091_v49  ;;  %vm12161_vm13 = vmmov %vm12160_vm11 }
 0x285   : > { %v3153_v19 = vsel %vm3054_vm6, %v3121_v2, 0.0  ;;  %v8947_v41 = vpop.permute.xlu1 %3094  ;;  %vm12162_vm6 = vmmov %vm12160_vm11  ;;  %vm8954_vm11 = vcmp.lt.s32.totalorder %v12164_v10, 7  ;;  %3564 = vrot.lane.b32.xlu0 %v8841_v3, %s5751_s21  ;;  %v12173_v10 = vld [vmem:[#allocation10_spill] sm:$0xff] }
 0x286   : > { %3169 = vst [vmem:[#allocation3 + $0x488] sm:$0xf] %v3153_v19  ;;  %3566 = vrot.lane.b32.xlu1 %v8859_v38, %s5751_s21  ;;  %v3736_v2 = vsel %vm8954_vm11, %v3702_v39, 0.0  ;;  %vm3053_vm0 = vmand %vm8638_vm4, %vm11943_vm12  ;;  %v3703_v19 = vld [vmem:[#allocation2 + $0x20] sm:$0xff]  ;;  %v12174_v53 = vshra.s32 %v12173_v10, 8  ;;  %vm12181_vm12 = vcmp.lt.s32.totalorder %v11620_v44, 15 }
 0x287   : > { %v3093_v8 = vpop.permute.xlu0 %3092  ;;  %3752 = vst [vmem:[#allocation3 + $0x5a0] sm:$0xf] %v3736_v2  ;;  %v2880_v39 = vld [vmem:[#allocation2 + $0x40] sm:$0xf] }
 0x288   : > { %v3122_v0 = vsel %vm12161_vm13, %v3091_v49, %v3093_v8  ;;  %v3123_v51 = vsel %vm12162_vm6, %v3093_v8, %v8947_v41  ;;  %v3737_v49 = vsel %vm8960_vm2, %v3718_v47, 0.0  ;;  %vm8980_vm13 = vcmp.lt.s32.totalorder %v12174_v53, 7 }
 0x289   : > { %v3154_v50 = vsel %vm3055_vm5, %v3122_v0, 0.0  ;;  %v3155_v54 = vsel %vm3056_vm9, %v3123_v51, 0.0  ;;  %3753 = vst [vmem:[#allocation3 + $0x5a8] sm:$0xf] %v3737_v49  ;;  %v3087_v0 = vpop.permute.xlu1 %3086  ;;  %v3719_v51 = vcombine.high %v3703_v19, %v3703_v19  ;;  %vm12171_vm5 = vcmask 916480   ;;  %vm12172_vm9 = vmmov %vm12162_vm6  ;;  %3568 = vrot.lane.b32.xlu0 %v8868_v62, %s5751_s21  ;;  %v4599_v4 = vld [vmem:[#allocation3 + $0x410] sm:$0xff] }
 0x28a   : > { %3170 = vst [vmem:[#allocation3 + $0x490] sm:$0xf] %v3154_v50  ;;  %3171 = vst [vmem:[#allocation3 + $0x498] sm:$0xf] %v3155_v54  ;;  %v3120_v47 = vsel %vm12172_vm9, %v3087_v0, %v3089_v40  ;;  %vm8986_vm6 = vcmp.lt.s32.totalorder %v12178_v48, 7  ;;  %3570 = vrot.lane.b32.xlu1 %v8884_v11, %s5751_s21 }
 0x28b   : > { %v2775_v8 = vpop.permute.xlu0 %2774  ;;  %v3152_v49 = vsel %vm3053_vm0, %v3120_v47, 0.0  ;;  %v3739_v2 = vsel %vm8986_vm6, %v3719_v51, 0.0  ;;  %vm3522_vm0 = vmand %vm8594_vm14, %vm12077_vm1 }
 0x28c   : > { %v2808_v9 = vsel %vm12171_vm5, %v2775_v8, %v2777_v32  ;;  %v4598_v32 = vld [vmem:[#allocation3 + $0x408] sm:$0xff]  ;;  %v3738_v8 = vsel %vm8980_vm13, %v3703_v19, 0.0  ;;  %3168 = vst [vmem:[#allocation3 + $0x480] sm:$0xf] %v3152_v49  ;;  %3755 = vst [vmem:[#allocation3 + $0x5b8] sm:$0xf] %v3739_v2 }
 0x28d   : > { %v2840_v54 = vsel %vm12181_vm12, %v2808_v9, 0.0  ;;  %v4614_v40 = vld [vmem:[#allocation3 + $0x488] sm:$0xff]  ;;  %3754 = vst [vmem:[#allocation3 + $0x5b0] sm:$0xf] %v3738_v8  ;;  %v3559_v47 = vpop.permute.xlu1 %3558  ;;  %vm12182_vm5 = vcmask 7168   ;;  %vm3523_vm9 = vmand %vm8612_vm8, %vm12081_vm7  ;;  %v4600_v19 = vld [vmem:[#allocation3 + $0x418] sm:$0xff]  ;;  %3816 = vrot.lane.b32.xlu0 %v8779_v13, %s5752_s22 }
 0x28e   : > { %2856 = vst [vmem:[#allocation3 + $0x400] sm:$0xf] %v2840_v54  ;;  %v5399_v0 = vpack.c.bf16 %v4614_v40, %v4598_v32  ;;  %3818 = vrot.lane.b32.xlu1 %v8789_v63, %s5752_s22  ;;  %vm3524_vm1 = vmand %vm8618_vm3, %vm12083_vm15  ;;  %v9024_v32 = vld [vmem:[#allocation2 + $0x28] sm:$0xff]  ;;  %vm12185_vm15 = vnez %v11360_v14  ;;  %vm12186_vm7 = vcmask 1039360  }
 0x28f   : > { %v9004_v9 = vpop.permute.xlu0 %3556  ;;  %vm12183_vm12 = vmmov %vm12182_vm5 }
 0x290   : > { %v3589_v10 = vsel %vm12182_vm5, %v9004_v9, %v3559_v47  ;;  %5400 = vmatprep.subr.bf16.mxu0 %v5399_v0 }
 0x291   : > { %v3621_v51 = vsel %vm3522_vm0, %v3589_v10, 0.0  ;;  %v4616_v53 = vld [vmem:[#allocation3 + $0x498] sm:$0xff]  ;;  %v4615_v48 = vld [vmem:[#allocation3 + $0x490] sm:$0xff]  ;;  %v9026_v8 = vpop.permute.xlu1 %3562  ;;  %vm12184_vm0 = vmmov %vm12182_vm5  ;;  %3820 = vrot.lane.b32.xlu0 %v9014_v23, %s5752_s22 }
 0x292   : > { %v3653_v54 = vrot.slane %v3621_v51, 4  ;;  %v5431_v49 = vpack.c.bf16 %v4616_v53, %v4600_v19  ;;  %v5433_v40 = vpack.c.bf16 %v4615_v48, %v4599_v4  ;;  %3822 = vrot.lane.b32.xlu1 %v9024_v32, %s5752_s22  ;;  %vm3774_vm5 = vmand %vm8594_vm14, %vm12185_vm15 }
 0x293   : > { %v3561_v2 = vpop.permute.xlu0 %3560  ;;  %v4613_v53 = vld [vmem:[#allocation3 + $0x480] sm:$0xff]  ;;  %vm12189_vm15 = vmmov %vm12186_vm7 }
 0x294   : > { %3685 = vst [vmem:[#allocation3 + $0x508] sm:$0xf0] %v3653_v54  ;;  %v3590_v0 = vsel %vm12183_vm12, %v3559_v47, %v3561_v2  ;;  %v3591_v10 = vsel %vm12184_vm0, %v3561_v2, %v9026_v8  ;;  %5432 = vmatprep.subr.bf16.mxu1 %v5431_v49  ;;  %vm12188_vm12 = vnez %v11828_v33 }
 0x295   : > { %v3622_v24 = vsel %vm3523_vm9, %v3590_v0, 0.0  ;;  %v3623_v19 = vsel %vm3524_vm1, %v3591_v10, 0.0  ;;  %v4597_v51 = vld [vmem:[#allocation3 + $0x400] sm:$0xff]  ;;  %5434 = vmatpush1.bf16.msra.mxu1 %v5433_v40  ;;  %v3811_v54 = vpop.permute.xlu1 %3810  ;;  %3424 = vrot.lane.b32.xlu0 %v8841_v3, %s5750_s20  ;;  %vm12187_vm9 = vnez %v11377_v43  ;;  %vm3776_vm0 = vmand %vm8618_vm3, %vm12188_vm12  ;;  %vm12192_vm12 = vnez %v11352_v7 }
 0x296   : > { %v3654_v47 = vrot.slane %v3622_v24, 4  ;;  %v3655_v4 = vrot.slane %v3623_v19, 4  ;;  %v5401_v61 = vpack.c.bf16 %v4613_v53, %v4597_v51  ;;  %3426 = vrot.lane.b32.xlu1 %v8859_v38, %s5750_s20  ;;  %vm3775_vm1 = vmand %vm8612_vm8, %vm12187_vm9 }
 0x297   : > { %v3809_v48 = vpop.permute.xlu0 %3808 }
 0x298   : > { %3686 = vst [vmem:[#allocation3 + $0x510] sm:$0xf0] %v3654_v47  ;;  %3687 = vst [vmem:[#allocation3 + $0x518] sm:$0xf0] %v3655_v4  ;;  %v3841_v49 = vsel %vm12186_vm7, %v3809_v48, %v3811_v54  ;;  %5402 = vmatpush1.bf16.msra.mxu0 %v5401_v61 }
 0x299   : > { %v3873_v2 = vsel %vm3774_vm5, %v3841_v49, 0.0  ;;  %v9057_v0 = vpop.permute.xlu1 %3814  ;;  %vm12190_vm5 = vmmov %vm12186_vm7  ;;  %3428 = vrot.lane.b32.xlu0 %v8868_v62, %s5750_s20  ;;  %vm12191_vm7 = vnez %v12074_v16 }
 0x29a   : > { %v3905_v14 = vrot.slane %v3873_v2, 4  ;;  %3430 = vrot.lane.b32.xlu1 %v8884_v11, %s5750_s20  ;;  %vm3521_vm9 = vmand %vm8638_vm4, %vm12191_vm7 }
 0x29b   : > { %v3813_v40 = vpop.permute.xlu0 %3812 }
 0x29c   : > { %3937 = vst [vmem:[#allocation3 + $0x588] sm:$0xf0] %v3905_v14  ;;  %v3842_v3 = vsel %vm12189_vm15, %v3811_v54, %v3813_v40  ;;  %v3843_v38 = vsel %vm12190_vm5, %v3813_v40, %v9057_v0  ;;  %vm3773_vm15 = vmand %vm8638_vm4, %vm12192_vm12  ;;  %vm12196_vm12 = vcmask 121856  }
 0x29d   : > { %v3874_v10 = vsel %vm3775_vm1, %v3842_v3, 0.0  ;;  %v3875_v43 = vsel %vm3776_vm0, %v3843_v38, 0.0  ;;  %v3807_v51 = vpop.permute.xlu1 %3806  ;;  %vm12193_vm1 = vcmask 7168   ;;  %vm12194_vm0 = vmmov %vm12190_vm5  ;;  %4144 = vrot.lane.b32.xlu0 %v8779_v13, %s5754_s24  ;;  %vm12195_vm5 = vnez %v12019_v56 }
 0x29e   : > { %v3906_v33 = vrot.slane %v3874_v10, 4  ;;  %v3907_v24 = vrot.slane %v3875_v43, 4  ;;  %v3840_v53 = vsel %vm12194_vm0, %v3807_v51, %v3809_v48  ;;  %4146 = vrot.lane.b32.xlu1 %v8789_v63, %s5754_s24  ;;  %vm3382_vm7 = vmand %vm8594_vm14, %vm12195_vm5 }
 0x29f   : > { %v3555_v19 = vpop.permute.xlu0 %3554  ;;  %v3872_v47 = vsel %vm3773_vm15, %v3840_v53, 0.0  ;;  %vm12199_vm5 = vmmov %vm12196_vm12 }
 0x2a0   : > { %3938 = vst [vmem:[#allocation3 + $0x590] sm:$0xf0] %v3906_v33  ;;  %3939 = vst [vmem:[#allocation3 + $0x598] sm:$0xf0] %v3907_v24  ;;  %v3588_v62 = vsel %vm12193_vm1, %v3555_v19, %v9004_v9  ;;  %v3904_v4 = vrot.slane %v3872_v47, 4  ;;  %vm12198_vm1 = vnez %v12024_v55 }
 0x2a1   : > { %v3620_v16 = vsel %vm3521_vm9, %v3588_v62, 0.0  ;;  %v3419_v54 = vpop.permute.xlu1 %3418  ;;  %4148 = vrot.lane.b32.xlu0 %v9014_v23, %s5754_s24  ;;  %vm12197_vm9 = vnez %v12021_v34  ;;  %vm3384_vm0 = vmand %vm8618_vm3, %vm12198_vm1 }
 0x2a2   : > { %v3652_v7 = vrot.slane %v3620_v16, 4  ;;  %3936 = vst [vmem:[#allocation3 + $0x580] sm:$0xf0] %v3904_v4  ;;  %4150 = vrot.lane.b32.xlu1 %v9024_v32, %s5754_s24  ;;  %vm3383_vm15 = vmand %vm8612_vm8, %vm12197_vm9 }
 0x2a3   : > { %v3417_v61 = vpop.permute.xlu0 %3416  ;;  %vm12202_vm1 = vmmov %vm12199_vm5  ;;  %v4646_v33 = vld [vmem:[#allocation3 + $0x588] sm:$0xff] }
 0x2a4   : > { %3684 = vst [vmem:[#allocation3 + $0x500] sm:$0xf0] %v3652_v7  ;;  %v3449_v9 = vsel %vm12196_vm12, %v3417_v61, %v3419_v54  ;;  %vm12201_vm12 = vnez %v12015_v15 }
 0x2a5   : > { %v3481_v48 = vsel %vm3382_vm7, %v3449_v9, 0.0  ;;  %v9098_v49 = vpop.permute.xlu1 %3422  ;;  %vm12200_vm7 = vmmov %vm12199_vm5  ;;  %4004 = vrot.lane.b32.xlu0 %v8779_v13, %s5753_s23 }
 0x2a6   : > { %3497 = vst [vmem:[#allocation3 + $0x508] sm:$0xf] %v3481_v48  ;;  %4006 = vrot.lane.b32.xlu1 %v8789_v63, %s5753_s23  ;;  %vm3381_vm9 = vmand %vm8638_vm4, %vm12201_vm12  ;;  %vm12209_vm12 = vcmask 916480  }
 0x2a7   : > { %v3421_v56 = vpop.permute.xlu0 %3420  ;;  %v4648_v16 = vld [vmem:[#allocation3 + $0x598] sm:$0xff] }
 0x2a8   : > { %v3450_v2 = vsel %vm12199_vm5, %v3419_v54, %v3421_v56  ;;  %v3451_v14 = vsel %vm12200_vm7, %v3421_v56, %v9098_v49  ;;  %vm12206_vm5 = vcmp.lt.s32.totalorder %v11627_v31, 15 }
 0x2a9   : > { %v3482_v40 = vsel %vm3383_vm15, %v3450_v2, 0.0  ;;  %v3483_v3 = vsel %vm3384_vm0, %v3451_v14, 0.0  ;;  %v4137_v55 = vpop.permute.xlu1 %4136  ;;  %4008 = vrot.lane.b32.xlu0 %v9014_v23, %s5753_s23  ;;  %vm12203_vm15 = vcmp.lt.s32.totalorder %v11621_v36, 15  ;;  %vm9128_vm7 = vmand %vm8612_vm8, %vm12206_vm5  ;;  %vm12214_vm5 = vcmp.lt.s32.totalorder %v11620_v44, 15 }
 0x2aa   : > { %3498 = vst [vmem:[#allocation3 + $0x510] sm:$0xf] %v3482_v40  ;;  %3499 = vst [vmem:[#allocation3 + $0x518] sm:$0xf] %v3483_v3  ;;  %4010 = vrot.lane.b32.xlu1 %v9024_v32, %s5753_s23 }
 0x2ab   : > { %v3415_v34 = vpop.permute.xlu0 %3414  ;;  %vm9120_vm0 = vmand %vm8594_vm14, %vm12203_vm15 }
 0x2ac   : > { %v3448_v38 = vsel %vm12202_vm1, %v3415_v34, %v3417_v61  ;;  %vm12211_vm1 = vcmp.lt.s32.totalorder %v11647_v12, 15  ;;  %v4647_v61 = vld [vmem:[#allocation3 + $0x590] sm:$0xff] }
 0x2ad   : > { %v3480_v10 = vsel %vm3381_vm9, %v3448_v38, 0.0  ;;  %v4630_v43 = vld [vmem:[#allocation3 + $0x508] sm:$0xff]  ;;  %v4141_v36 = vpop.permute.xlu1 %4140  ;;  %vm12210_vm9 = vmmov %vm12209_vm12  ;;  %4332 = vrot.lane.b32.xlu0 %v8779_v13, %s5755_s25  ;;  %v4645_v38 = vld [vmem:[#allocation3 + $0x580] sm:$0xff] }
 0x2ae   : > { %3496 = vst [vmem:[#allocation3 + $0x500] sm:$0xf] %v3480_v10  ;;  %v5403_v19 = vpack.c.bf16 %v4646_v33, %v4630_v43  ;;  %vm9138_vm15 = vmand %vm8618_vm3, %vm12211_vm1  ;;  %4334 = vrot.lane.b32.xlu1 %v8789_v63, %s5755_s25 }
 0x2af   : > { %v4139_v51 = vpop.permute.xlu0 %4138 }
 0x2b0   : > { %v4169_v62 = vsel %vm12209_vm12, %v4137_v55, %v4139_v51  ;;  %v4170_v53 = vsel %vm12210_vm9, %v4139_v51, %v4141_v36  ;;  %5404 = vmatprep.subr.bf16.mxu0 %v5403_v19  ;;  %vm9154_vm12 = vmand %vm8638_vm4, %vm12214_vm5  ;;  %v9178_v19 = vcombine.high %v9024_v32, %v9024_v32  ;;  %vm12221_vm5 = vnez %v12128_v42 }
 0x2b1   : > { %v4201_v47 = vsel %vm9120_vm0, %v4169_v62, 0.0  ;;  %v4202_v7 = vsel %vm9128_vm7, %v4170_v53, 0.0  ;;  %v4632_v12 = vld [vmem:[#allocation3 + $0x518] sm:$0xff]  ;;  %v4631_v4 = vld [vmem:[#allocation3 + $0x510] sm:$0xff]  ;;  %v4135_v13 = vpop.permute.xlu1 %4134  ;;  %vm12217_vm0 = vmmov %vm12210_vm9  ;;  %4336 = vrot.lane.b32.xlu0 %v9014_v23, %s5755_s25  ;;  %vm12219_vm9 = vnez %v12126_v22 }
 0x2b2   : > { %v4233_v54 = vrot.slane %v4201_v47, 4  ;;  %v4234_v9 = vrot.slane %v4202_v7, 4  ;;  %v5435_v56 = vpack.c.bf16 %v4648_v16, %v4632_v12  ;;  %v5437_v2 = vpack.c.bf16 %v4647_v61, %v4631_v4  ;;  %vm12218_vm7 = vmmov %vm12217_vm0  ;;  %4338 = vrot.lane.b32.xlu1 %v9024_v32, %s5755_s25  ;;  %v9192_v22 = vld [vmem:[#allocation2 + $0x30] sm:$0xff] }
 0x2b3   : > { %v9158_v14 = vpop.permute.xlu0 %4142  ;;  %v4168_v40 = vsel %vm12218_vm7, %v4135_v13, %v4137_v55  ;;  %vm3962_vm1 = vmand %vm8594_vm14, %vm12219_vm9 }
 0x2b4   : > { %4265 = vst [vmem:[#allocation3 + $0x608] sm:$0xf0] %v4233_v54  ;;  %4266 = vst [vmem:[#allocation3 + $0x610] sm:$0xf0] %v4234_v9  ;;  %v4171_v63 = vsel %vm12217_vm0, %v4141_v36, %v9158_v14  ;;  %5436 = vmatprep.subr.bf16.mxu1 %v5435_v56  ;;  %v4200_v3 = vsel %vm9154_vm12, %v4168_v40, 0.0  ;;  %vm12222_vm0 = vnez %v12131_v29 }
 0x2b5   : > { %v4203_v44 = vsel %vm9138_vm15, %v4171_v63, 0.0  ;;  %v4629_v34 = vld [vmem:[#allocation3 + $0x500] sm:$0xff]  ;;  %v4232_v15 = vrot.slane %v4200_v3, 4  ;;  %5438 = vmatpush1.bf16.msra.mxu1 %v5437_v2  ;;  %v3999_v33 = vpop.permute.xlu1 %3998  ;;  %vm12220_vm15 = vcmask 924672   ;;  %2620 = vrot.lane.b32.xlu0 %v9014_v23, %s5753_s23  ;;  %vm3963_vm12 = vmand %vm8612_vm8, %vm12221_vm5  ;;  %v9248_v3 = vcombine.high %v8884_v11, %v8884_v11  ;;  %v9258_v11 = vld [vmem:[#allocation2 + $0x2c] sm:$0xff] }
 0x2b6   : > { %v4235_v10 = vrot.slane %v4203_v44, 4  ;;  %v5405_v55 = vpack.c.bf16 %v4645_v38, %v4629_v34  ;;  %2622 = vrot.lane.b32.xlu1 %v9024_v32, %s5753_s23  ;;  %vm3964_vm7 = vmand %vm8618_vm3, %vm12222_vm0  ;;  %vm12226_vm0 = vcmask 908288   ;;  %v12236_v34 = vld [vmem:[#allocation16_spill] sm:$0xff] }
 0x2b7   : > { %v3997_v43 = vpop.permute.xlu0 %3996  ;;  %4264 = vst [vmem:[#allocation3 + $0x600] sm:$0xf0] %v4232_v15  ;;  %vm12223_vm9 = vmmov %vm12220_vm15 }
 0x2b8   : > { %4267 = vst [vmem:[#allocation3 + $0x618] sm:$0xf0] %v4235_v10  ;;  %v4029_v24 = vsel %vm12220_vm15, %v3997_v43, %v3999_v33  ;;  %5406 = vmatpush1.bf16.msra.mxu0 %v5405_v55  ;;  %vm12225_vm15 = vnez %v11821_v1  ;;  %v12238_v10 = vld [vmem:[#allocation17_spill] sm:$0xff] }
 0x2b9   : > { %v4061_v51 = vsel %vm3962_vm1, %v4029_v24, 0.0  ;;  %v9194_v62 = vpop.permute.xlu1 %4002  ;;  %vm12224_vm1 = vmmov %vm12223_vm9  ;;  %2624 = vrot.lane.b32.xlu0 %v9178_v19, %s5753_s23 }
 0x2ba   : > { %4077 = vst [vmem:[#allocation3 + $0x608] sm:$0xf] %v4061_v51  ;;  %2626 = vrot.lane.b32.xlu1 %v9192_v22, %s5753_s23  ;;  %vm4290_vm5 = vmand %vm8594_vm14, %vm12225_vm15 }
 0x2bb   : > { %v4001_v36 = vpop.permute.xlu0 %4000  ;;  %vm12230_vm15 = vmmov %vm12226_vm0 }
 0x2bc   : > { %v4030_v53 = vsel %vm12223_vm9, %v3999_v33, %v4001_v36  ;;  %v4031_v31 = vsel %vm12224_vm1, %v4001_v36, %v9194_v62  ;;  %vm12228_vm9 = vnez %v11832_v27  ;;  %vm12229_vm1 = vmmov %vm12226_vm0 }
 0x2bd   : > { %v4062_v42 = vsel %vm3963_vm12, %v4030_v53, 0.0  ;;  %v4063_v16 = vsel %vm3964_vm7, %v4031_v31, 0.0  ;;  %v4327_v47 = vpop.permute.xlu1 %4326  ;;  %2496 = vrot.lane.b32.xlu0 %v9014_v23, %s5752_s22  ;;  %vm12227_vm12 = vnez %v11825_v45  ;;  %vm4292_vm14 = vmand %vm8618_vm3, %vm12228_vm9  ;;  %vm12239_vm9 = vnez %v12238_v10 }
 0x2be   : > { %4078 = vst [vmem:[#allocation3 + $0x610] sm:$0xf] %v4062_v42  ;;  %4079 = vst [vmem:[#allocation3 + $0x618] sm:$0xf] %v4063_v16  ;;  %2498 = vrot.lane.b32.xlu1 %v9024_v32, %s5752_s22 }
 0x2bf   : > { %v4325_v29 = vpop.permute.xlu0 %4324  ;;  %vm4291_vm7 = vmand %vm8612_vm8, %vm12227_vm12  ;;  %vm12231_vm8 = vnez %v12133_v26 }
 0x2c0   : > { %v4357_v7 = vsel %vm12226_vm0, %v4325_v29, %v4327_v47  ;;  %vm3961_vm3 = vmand %vm8638_vm4, %vm12231_vm8  ;;  %vm12232_vm0 = vcmask 924672  }
 0x2c1   : > { %v4389_v12 = vsel %vm4290_vm5, %v4357_v7, 0.0  ;;  %v9220_v28 = vpop.permute.xlu1 %4330  ;;  %2500 = vrot.lane.b32.xlu0 %v9178_v19, %s5752_s22  ;;  %vm4289_vm5 = vmand %vm8638_vm4, %vm12153_vm10  ;;  %v4662_v26 = vld [vmem:[#allocation3 + $0x608] sm:$0xff] }
 0x2c2   : > { %4405 = vst [vmem:[#allocation3 + $0x688] sm:$0xf] %v4389_v12  ;;  %2502 = vrot.lane.b32.xlu1 %v9192_v22, %s5752_s22  ;;  %vm12233_vm12 = vmmov %vm12229_vm1  ;;  %v12244_v7 = vld [vmem:[#allocation101_spill] sm:$0xff] }
 0x2c3   : > { %v4329_v1 = vpop.permute.xlu0 %4328  ;;  %vm12234_vm4 = vmmov %vm12232_vm0  ;;  %vm12245_vm8 = vnez %v12244_v7 }
 0x2c4   : > { %v4358_v4 = vsel %vm12229_vm1, %v4327_v47, %v4329_v1  ;;  %v4359_v61 = vsel %vm12230_vm15, %v4329_v1, %v9220_v28  ;;  %vm12235_vm10 = vmmov %vm12232_vm0  ;;  %v9273_v1 = vcombine.high %v9258_v11, %v9258_v11 }
 0x2c5   : > { %v4390_v54 = vsel %vm4291_vm7, %v4358_v4, 0.0  ;;  %v4391_v9 = vsel %vm4292_vm14, %v4359_v61, 0.0  ;;  %v4323_v27 = vpop.permute.xlu1 %4322  ;;  %2916 = vrot.lane.b32.xlu0 %v9014_v23, %s5755_s25  ;;  %v4664_v44 = vld [vmem:[#allocation3 + $0x618] sm:$0xff]  ;;  %vm12237_vm7 = vnez %v12236_v34  ;;  %v4663_v55 = vld [vmem:[#allocation3 + $0x610] sm:$0xff]  ;;  %vm12240_vm14 = vmmov %vm12232_vm0 }
 0x2c6   : > { %4406 = vst [vmem:[#allocation3 + $0x690] sm:$0xf] %v4390_v54  ;;  %4407 = vst [vmem:[#allocation3 + $0x698] sm:$0xf] %v4391_v9  ;;  %v4356_v30 = vsel %vm12233_vm12, %v4323_v27, %v4325_v29  ;;  %2918 = vrot.lane.b32.xlu1 %v9024_v32, %s5755_s25  ;;  %v12242_v29 = vld [vmem:[#allocation100_spill] sm:$0xff]  ;;  %v9277_v27 = vld [vmem:[#allocation2 + $0x34] sm:$0xff]  ;;  %vm12249_vm12 = vnez %v11840_v52 }
 0x2c7   : > { %v3995_v45 = vpop.permute.xlu0 %3994  ;;  %v4388_v56 = vsel %vm4289_vm5, %v4356_v30, 0.0  ;;  %vm12241_vm1 = vmmov %vm12232_vm0  ;;  %vm12243_vm15 = vnez %v12242_v29 }
 0x2c8   : > { %v4028_v21 = vsel %vm12232_vm0, %v3995_v45, %v3997_v43  ;;  %4404 = vst [vmem:[#allocation3 + $0x680] sm:$0xf] %v4388_v56  ;;  %v5757_v56 = vmov 0.0|0.0   ;;  %vm12248_vm0 = vnez %v11833_v18 }
 0x2c9   : > { %v4060_v48 = vsel %vm3961_vm3, %v4028_v21, 0.0  ;;  %v4678_v2 = vld [vmem:[#allocation3 + $0x688] sm:$0xff]  ;;  %v2615_v13 = vpop.permute.xlu1 %2614  ;;  %2920 = vrot.lane.b32.xlu0 %v9178_v19, %s5755_s25  ;;  %v4492_v21 = vld [vmem:[#allocation3 + $0xb8] sm:$0xff]  ;;  %vm12246_vm3 = vcmask 1039360  }
 0x2ca   : > { %4076 = vst [vmem:[#allocation3 + $0x600] sm:$0xf] %v4060_v48  ;;  %v5407_v46 = vpack.c.bf16 %v4678_v2, %v4662_v26  ;;  %2922 = vrot.lane.b32.xlu1 %v9192_v22, %s5755_s25  ;;  %vm12247_vm5 = vmmov %vm12246_vm3 }
 0x2cb   : > { %v2613_v25 = vpop.permute.xlu0 %2612 }
 0x2cc   : > { %v2640_v63 = vsel %vm12234_vm4, %v8811_v6, %v2613_v25  ;;  %v2641_v40 = vsel %vm12235_vm10, %v2613_v25, %v2615_v13  ;;  %5408 = vmatprep.subr.bf16.mxu0 %v5407_v46  ;;  %v4476_v46 = vld [vmem:[#allocation3 + $0x38] sm:$0xff]  ;;  %vm12250_vm4 = vmmov %vm12246_vm3 }
 0x2cd   : > { %v2672_v38 = vsel %vm12237_vm7, %v2640_v63, 0.0  ;;  %v2673_v15 = vsel %vm12239_vm9, %v2641_v40, 0.0  ;;  %v4680_v6 = vld [vmem:[#allocation3 + $0x698] sm:$0xff]  ;;  %v4679_v43 = vld [vmem:[#allocation3 + $0x690] sm:$0xff]  ;;  %v9260_v31 = vpop.permute.xlu1 %2618  ;;  %3244 = vrot.lane.b32.xlu0 %v9248_v3, %s5749_s19  ;;  %v5479_v63 = vpack.c.bf16 %v4492_v21, %v4476_v46  ;;  %v4490_v40 = vld [vmem:[#allocation3 + $0xa8] sm:$0xff] }
 0x2ce   : > { %v2704_v33 = vrot.slane %v2672_v38, 4  ;;  %v2705_v24 = vrot.slane %v2673_v15, 4  ;;  %v5439_v51 = vpack.c.bf16 %v4680_v6, %v4664_v44  ;;  %v5441_v36 = vpack.c.bf16 %v4679_v43, %v4663_v55  ;;  %3246 = vrot.lane.b32.xlu1 %v9258_v11, %s5749_s19  ;;  %v4491_v44 = vld [vmem:[#allocation3 + $0xb0] sm:$0xff]  ;;  %v9298_v6 = vld [vmem:[%s10489_s1] sm:$0xff]  ;;  %v4524_v55 = vld [vmem:[#allocation3 + $0x1b8] sm:$0xff] }
 0x2cf   : > { %v2617_v53 = vpop.permute.xlu0 %2616  ;;  %v4677_v61 = vld [vmem:[#allocation3 + $0x680] sm:$0xff]  ;;  %vm12251_vm10 = vmmov %vm12246_vm3  ;;  %v4523_v21 = vld [vmem:[#allocation3 + $0x1b0] sm:$0xff] }
 0x2d0   : > { %2736 = vst [vmem:[#allocation3 + $0x3a0] sm:$0xf0] %v2704_v33  ;;  %2737 = vst [vmem:[#allocation3 + $0x3a8] sm:$0xf0] %v2705_v24  ;;  %v2642_v42 = vsel %vm12240_vm14, %v2615_v13, %v2617_v53  ;;  %v2643_v16 = vsel %vm12241_vm1, %v2617_v53, %v9260_v31  ;;  %5440 = vmatprep.subr.bf16.mxu1 %v5439_v51  ;;  %v4489_v43 = vld [vmem:[#allocation3 + $0xa0] sm:$0xff]  ;;  %v12252_v53 = vld [vmem:[#allocation78_spill] sm:$0xff] }
 0x2d1   : > { %v2674_v47 = vsel %vm12243_vm15, %v2642_v42, 0.0  ;;  %v2675_v12 = vsel %vm12245_vm8, %v2643_v16, 0.0  ;;  %v4661_v4 = vld [vmem:[#allocation3 + $0x600] sm:$0xff]  ;;  %5442 = vmatpush1.bf16.msra.mxu1 %v5441_v36  ;;  %v2491_v48 = vpop.permute.xlu1 %2490  ;;  %3248 = vrot.lane.b32.xlu0 %v9273_v1, %s5749_s19  ;;  %v4475_v36 = vld [vmem:[#allocation3 + $0x30] sm:$0xff]  ;;  %vm12253_vm14 = vnez %v12252_v53  ;;  %v12254_v16 = vld [vmem:[#allocation79_spill] sm:$0xff]  ;;  %vm12266_vm8 = vnez %v11855_v60 }
 0x2d2   : > { %v2706_v54 = vrot.slane %v2674_v47, 4  ;;  %v2707_v9 = vrot.slane %v2675_v12, 4  ;;  %v5409_v45 = vpack.c.bf16 %v4677_v61, %v4661_v4  ;;  %5444 = vmatprep.subr.bf16.mxu1 %v5757_v56  ;;  %3250 = vrot.lane.b32.xlu1 %v9277_v27, %s5749_s19  ;;  %vm12255_vm1 = vnez %v12254_v16  ;;  %v4508_v4 = vld [vmem:[#allocation3 + $0x138] sm:$0xff]  ;;  %v4473_v61 = vld [vmem:[#allocation3 + $0x20] sm:$0xff] }
 0x2d3   : > { %v2489_v30 = vpop.permute.xlu0 %2488  ;;  %v5481_v12 = vpack.c.bf16 %v4491_v44, %v4475_v36  ;;  %v12336_v16 = vld [vmem:[#allocation76_spill] sm:$0xff] }
 0x2d4   : > { %2738 = vst [vmem:[#allocation3 + $0x3b0] sm:$0xf0] %v2706_v54  ;;  %2739 = vst [vmem:[#allocation3 + $0x3b8] sm:$0xf0] %v2707_v9  ;;  %v2516_v26 = vsel %vm12246_vm3, %v8791_v37, %v2489_v30  ;;  %v2517_v2 = vsel %vm12247_vm5, %v2489_v30, %v2491_v48  ;;  %5410 = vmatpush1.bf16.msra.mxu0 %v5409_v45  ;;  %v4474_v37 = vld [vmem:[#allocation3 + $0x28] sm:$0xff]  ;;  %v5483_v9 = vpack.c.bf16 %v4524_v55, %v4508_v4  ;;  %vm12256_vm3 = vcmask 908288  }
 0x2d5   : > { %v2548_v25 = vsel %vm12248_vm0, %v2516_v26, 0.0  ;;  %v2549_v13 = vsel %vm12249_vm12, %v2517_v2, 0.0  ;;  %5446 = vmatpush1.bf16.msra.mxu1 %v5757_v56  ;;  %5412 = vmatprep.subr.bf16.mxu0 %v5757_v56  ;;  %v9293_v15 = vpop.permute.xlu1 %2494  ;;  %v5447_v51 = vpack.c.bf16 %v4490_v40, %v4474_v37  ;;  %v4522_v54 = vld [vmem:[#allocation3 + $0x1a8] sm:$0xff]  ;;  %v5449_v45 = vpack.c.bf16 %v4489_v43, %v4473_v61  ;;  %v4556_v26 = vld [vmem:[#allocation3 + $0x2b8] sm:$0xff]  ;;  %vm12257_vm5 = vmmov %vm12256_vm3 }
 0x2d6   : > { %2564 = vst [vmem:[#allocation3 + $0x3a0] sm:$0xf] %v2548_v25  ;;  %2565 = vst [vmem:[#allocation3 + $0x3a8] sm:$0xf] %v2549_v13  ;;  %5480 = vmatprep.subr.bf16.mxu1 %v5479_v63  ;;  %2792 = vrot.lane.b32.xlu0 %v9014_v23, %s5754_s24  ;;  %v4506_v23 = vld [vmem:[#allocation3 + $0x128] sm:$0xff]  ;;  %v4507_v13 = vld [vmem:[#allocation3 + $0x130] sm:$0xff] }
 0x2d7   : > { %v2493_v38 = vpop.permute.xlu0 %2492  ;;  %2794 = vrot.lane.b32.xlu1 %v9024_v32, %s5754_s24  ;;  %v4521_v32 = vld [vmem:[#allocation3 + $0x1a0] sm:$0xff]  ;;  %v5451_v25 = vpack.c.bf16 %v4522_v54, %v4506_v23  ;;  %v12260_v37 = vld [vmem:[#allocation73_spill] sm:$0xff]  ;;  %v4540_v55 = vld [vmem:[#allocation3 + $0x238] sm:$0xff] }
 0x2d8   : > { %v2518_v33 = vsel %vm12250_vm4, %v2491_v48, %v2493_v38  ;;  %v2519_v24 = vsel %vm12251_vm10, %v2493_v38, %v9293_v15  ;;  %5414 = vmatpush1.bf16.msra.mxu0 %v5757_v56  ;;  %4867 = vmatmul.mubr.f32.vlgmr.msra.gmra.mrb[0].mxu1 %v9298_v6  ;;  %v12258_v63 = vld [vmem:[#allocation72_spill] sm:$0xff]  ;;  %vm12261_vm10 = vnez %v12260_v37  ;;  %v5485_v38 = vpack.c.bf16 %v4523_v21, %v4507_v13  ;;  %v4554_v43 = vld [vmem:[#allocation3 + $0x2a8] sm:$0xff]  ;;  %v4539_v23 = vld [vmem:[#allocation3 + $0x230] sm:$0xff] }
 0x2d9   : > { %v2550_v42 = vsel %vm12253_vm14, %v2518_v33, 0.0  ;;  %v2551_v47 = vsel %vm12255_vm1, %v2519_v24, 0.0  ;;  %5448 = vmatprep.subr.bf16.mxu0 %v5447_v51  ;;  %5482 = vmatpush1.bf16.msra.mxu1 %v5481_v12  ;;  %v2911_v48 = vpop.permute.xlu1 %2910  ;;  %vm12259_vm4 = vnez %v12258_v63  ;;  %v5487_v51 = vpack.c.bf16 %v4556_v26, %v4540_v55  ;;  %v4538_v61 = vld [vmem:[#allocation3 + $0x228] sm:$0xff]  ;;  %v4537_v54 = vld [vmem:[#allocation3 + $0x220] sm:$0xff] }
 0x2da   : > { %2566 = vst [vmem:[#allocation3 + $0x3b0] sm:$0xf] %v2550_v42  ;;  %2567 = vst [vmem:[#allocation3 + $0x3b8] sm:$0xf] %v2551_v47  ;;  %5484 = vmatprep.subr.bf16.mxu1 %v5483_v9  ;;  %2796 = vrot.lane.b32.xlu0 %v9178_v19, %s5754_s24  ;;  %v4555_v42 = vld [vmem:[#allocation3 + $0x2b0] sm:$0xff]  ;;  %v9325_v47 = vld [vmem:[#allocation3 + $0x700] sm:$0xff] }
 0x2db   : > { %v2909_v30 = vpop.permute.xlu0 %2908  ;;  %4796 = vmatmul.mubr.f32.vlgmr.msra.gmra.mrb[0].mxu0 %v9298_v6  ;;  %2798 = vrot.lane.b32.xlu1 %v9192_v22, %s5754_s24  ;;  %v4553_v9 = vld [vmem:[#allocation3 + $0x2a0] sm:$0xff] }
 0x2dc   : > { %v2936_v2 = vsel %vm12256_vm3, %v8834_v59, %v2909_v30  ;;  %v2937_v46 = vsel %vm12257_vm5, %v2909_v30, %v2911_v48  ;;  %5450 = vmatpush1.bf16.msra.mxu0 %v5449_v45  ;;  %v4505_v59 = vld [vmem:[#allocation3 + $0x120] sm:$0xff]  ;;  %4937 = vmatprep.mubr.f32.mxu0 %v9325_v47  ;;  %vm12262_vm5 = vmmov %vm12256_vm3  ;;  %v5455_v30 = vpack.c.bf16 %v4554_v43, %v4538_v61 }
 0x2dd   : > { %v2968_v40 = vsel %vm12259_vm4, %v2936_v2, 0.0  ;;  %v2969_v44 = vsel %vm12261_vm10, %v2937_v46, 0.0  ;;  %5452 = vmatprep.subr.bf16.mxu0 %v5451_v25  ;;  %v5453_v36 = vpack.c.bf16 %v4521_v32, %v4505_v59  ;;  %5486 = vmatpush1.bf16.msra.mxu1 %v5485_v38  ;;  %v9328_v4 = vpop.permute.xlu1 %2914  ;;  %vm12263_vm10 = vcmp.ge.s32.totalorder %v11649_v58, 1  ;;  %v4572_v32 = vld [vmem:[#allocation3 + $0x338] sm:$0xff]  ;;  %v12267_v46 = vld [vmem:[#allocation77_spill] sm:$0xff]  ;;  %v4585_v61 = vld [vmem:[#allocation3 + $0x3a0] sm:$0xff] }
 0x2de   : > { %v3000_v33 = vrot.slane %v2968_v40, 4  ;;  %v3001_v24 = vrot.slane %v2969_v44, 4  ;;  %5008 = vmatprep.mubr.f32.mxu1 %v9325_v47  ;;  %5488 = vmatprep.subr.bf16.mxu1 %v5487_v51  ;;  %vm9338_vm4 = vmand %vm8954_vm11, %vm12263_vm10  ;;  %v5489_v25 = vpack.c.bf16 %v4555_v42, %v4539_v23  ;;  %v4586_v40 = vld [vmem:[#allocation3 + $0x3a8] sm:$0xff]  ;;  %vm12269_vm10 = vcmp.ge.s32.totalorder %v11650_v17, 1 }
 0x2df   : > { %v2913_v12 = vpop.permute.xlu0 %2912  ;;  %3104 = vrot.lane.b32.xlu0 %v9248_v3, %s5748_s18  ;;  %3106 = vrot.lane.b32.xlu1 %v9258_v11, %s5748_s18  ;;  %v5457_v43 = vpack.c.bf16 %v4553_v9, %v4537_v54  ;;  %v4570_v42 = vld [vmem:[#allocation3 + $0x328] sm:$0xff] }
 0x2e0   : > { %3032 = vst [vmem:[#allocation3 + $0x420] sm:$0xf0] %v3000_v33  ;;  %3033 = vst [vmem:[#allocation3 + $0x428] sm:$0xf0] %v3001_v24  ;;  %v2938_v45 = vsel %vm12256_vm3, %v2911_v48, %v2913_v12  ;;  %v2939_v21 = vsel %vm12262_vm5, %v2913_v12, %v9328_v4  ;;  %5454 = vmatpush1.bf16.msra.mxu0 %v5453_v36  ;;  %vm12268_vm3 = vnez %v12267_v46  ;;  %v4571_v24 = vld [vmem:[#allocation3 + $0x330] sm:$0xff]  ;;  %v12274_v23 = vld [vmem:[#allocation21_spill] sm:$0xff] }
 0x2e1   : > { %v2970_v2 = vsel %vm12266_vm8, %v2938_v45, 0.0  ;;  %v2971_v48 = vsel %vm12268_vm3, %v2939_v21, 0.0  ;;  %v4588_v13 = vld [vmem:[#allocation3 + $0x3b8] sm:$0xff]  ;;  %v4587_v44 = vld [vmem:[#allocation3 + $0x3b0] sm:$0xff]  ;;  %5456 = vmatprep.subr.bf16.mxu0 %v5455_v30  ;;  %vm9354_vm5 = vmand %vm8960_vm2, %vm12269_vm10  ;;  %5490 = vmatpush1.bf16.msra.mxu1 %v5489_v25  ;;  %v3239_v36 = vpop.permute.xlu1 %3238  ;;  %vm12272_vm3 = vcmask 130048   ;;  %v5459_v30 = vpack.c.bf16 %v4586_v40, %v4570_v42 }
 0x2e2   : > { %v3002_v38 = vrot.slane %v2970_v2, 4  ;;  %v3003_v55 = vrot.slane %v2971_v48, 4  ;;  %v5491_v33 = vpack.c.bf16 %v4588_v13, %v4572_v32  ;;  %v5493_v12 = vpack.c.bf16 %v4587_v44, %v4571_v24  ;;  %vm12273_vm8 = vmmov %vm12272_vm3  ;;  %v4569_v32 = vld [vmem:[#allocation3 + $0x320] sm:$0xff]  ;;  %v12278_v48 = vld [vmem:[#allocation23_spill] sm:$0xff] }
 0x2e3   : > { %v3237_v51 = vpop.permute.xlu0 %3236  ;;  %3108 = vrot.lane.b32.xlu0 %v9273_v1, %s5748_s18  ;;  %3110 = vrot.lane.b32.xlu1 %v9277_v27, %s5748_s18  ;;  %vm12275_vm10 = vcmp.ge.s32.totalorder %v12274_v23, 1  ;;  %v5461_v13 = vpack.c.bf16 %v4585_v61, %v4569_v32  ;;  %v3704_v40 = vld [vmem:[#allocation2 + $0x28] sm:$0xff]  ;;  %v12288_v42 = vld [vmem:[#allocation24_spill] sm:$0xff]  ;;  %v12290_v61 = vmov 0 }
 0x2e4   : > { %3034 = vst [vmem:[#allocation3 + $0x430] sm:$0xf0] %v3002_v38  ;;  %3035 = vst [vmem:[#allocation3 + $0x438] sm:$0xf0] %v3003_v55  ;;  %v3264_v45 = vsel %vm12272_vm3, %v8886_v35, %v3237_v51  ;;  %v3265_v21 = vsel %vm12273_vm8, %v3237_v51, %v3239_v36  ;;  %5458 = vmatpush1.bf16.msra.mxu0 %v5457_v43  ;;  %5492 = vmatprep.subr.bf16.mxu1 %v5491_v33  ;;  %v12284_v33 = vld [vmem:[#allocation22_spill] sm:$0xff]  ;;  %v12286_v51 = vmov 0 }
 0x2e5   : > { %v3296_v54 = vsel %vm9338_vm4, %v3264_v45, 0.0  ;;  %v3297_v9 = vsel %vm9354_vm5, %v3265_v21, 0.0  ;;  %vm9373_vm8 = vmand %vm8980_vm13, %vm12275_vm10  ;;  %5460 = vmatprep.subr.bf16.mxu0 %v5459_v30  ;;  %vm12279_vm4 = vcmp.ge.s32.totalorder %v12278_v48, 1  ;;  %5494 = vmatpush1.bf16.msra.mxu1 %v5493_v12  ;;  %v9385_v38 = vpop.permute.xlu1 %3242  ;;  %v3720_v55 = vcombine.high %v3704_v40, %v3704_v40  ;;  %v3705_v35 = vld [vmem:[#allocation2 + $0x30] sm:$0xff] }
 0x2e6   : > { %v3328_v26 = vrot.slane %v3296_v54, 4  ;;  %v3329_v2 = vrot.slane %v3297_v9, 4  ;;  %vm9381_vm3 = vmand %vm8986_vm6, %vm12279_vm4  ;;  %vm12282_vm5 = vcmask 130048   ;;  %v12285_v24 = vshra.s32 %v12284_v33, 8 }
 0x2e7   : > { %v3241_v44 = vpop.permute.xlu0 %3240  ;;  %vm12283_vm10 = vmmov %vm12282_vm5  ;;  %v12289_v12 = vshra.s32 %v12288_v42, 8  ;;  %3572 = vrot.lane.b32.xlu0 %v9248_v3, %s5751_s21  ;;  %3574 = vrot.lane.b32.xlu1 %v9258_v11, %s5751_s21  ;;  %v12300_v33 = vmov 0 }
 0x2e8   : > { %3360 = vst [vmem:[#allocation3 + $0x4a0] sm:$0xf0] %v3328_v26  ;;  %3361 = vst [vmem:[#allocation3 + $0x4a8] sm:$0xf0] %v3329_v2  ;;  %v3266_v59 = vsel %vm12282_vm5, %v3239_v36, %v3241_v44  ;;  %v3267_v43 = vsel %vm12283_vm10, %v3241_v44, %v9385_v38  ;;  %5462 = vmatpush1.bf16.msra.mxu0 %v5461_v13  ;;  %vm9392_vm4 = vcmp.lt.s32.totalorder %v12285_v24, 7  ;;  %v12294_v44 = vld [vmem:[#allocation32_spill] sm:$0xff] }
 0x2e9   : > { %v12287_v51 = vsel %vm9392_vm4, 4294967295, %v12286_v51  ;;  %vm9398_vm15 = vcmp.lt.s32.totalorder %v12289_v12, 7  ;;  %v3298_v45 = vsel %vm9373_vm8, %v3266_v59, 0.0  ;;  %v3299_v36 = vsel %vm9381_vm3, %v3267_v43, 0.0  ;;  %v2787_v26 = vpop.permute.xlu1 %2786 }
 0x2ea   : > { %v12291_v61 = vsel %vm9398_vm15, 4294967295, %v12290_v61  ;;  %v3741_v21 = vsel %vm9398_vm15, %v3720_v55, 0.0  ;;  %v3740_v30 = vsel %vm9392_vm4, %v3704_v40, 0.0  ;;  %v3330_v54 = vrot.slane %v3298_v45, 4  ;;  %v12298_v40 = vld [vmem:[#allocation38_spill] sm:$0xff] }
 0x2eb   : > { %v3331_v9 = vrot.slane %v3299_v36, 4  ;;  %3757 = vst [vmem:[#allocation3 + $0x5c8] sm:$0xf] %v3741_v21  ;;  %3756 = vst [vmem:[#allocation3 + $0x5c0] sm:$0xf] %v3740_v30  ;;  %v2785_v32 = vpop.permute.xlu0 %2784  ;;  %v3721_v2 = vcombine.high %v3705_v35, %v3705_v35  ;;  %vm12292_vm8 = vcmask 916480   ;;  %3576 = vrot.lane.b32.xlu0 %v9273_v1, %s5751_s21  ;;  %3578 = vrot.lane.b32.xlu1 %v9277_v27, %s5751_s21 }
 0x2ec   : > { %3362 = vst [vmem:[#allocation3 + $0x4b0] sm:$0xf0] %v3330_v54  ;;  %v2812_v25 = vsel %vm12292_vm8, %v8917_v5, %v2785_v32  ;;  %vm12293_vm3 = vmmov %vm12292_vm8  ;;  %v12295_v55 = vshra.s32 %v12294_v44, 8  ;;  %v12296_v59 = vmov 0  ;;  %v12299_v43 = vshra.s32 %v12298_v40, 8 }
 0x2ed   : > { %3363 = vst [vmem:[#allocation3 + $0x4b8] sm:$0xf0] %v3331_v9  ;;  %v2813_v13 = vsel %vm12293_vm3, %v2785_v32, %v2787_v26  ;;  %vm12302_vm15 = vcmp.lt.s32.totalorder %v11649_v58, 15  ;;  %vm12303_vm4 = vcmp.lt.s32.totalorder %v11650_v17, 15  ;;  %v9441_v36 = vpop.permute.xlu1 %2790  ;;  %v9448_v54 = vcombine.high %v9192_v22, %v9192_v22  ;;  %v12308_v32 = vld [vmem:[#allocation30_spill] sm:$0xff] }
 0x2ee   : > { %vm9419_vm5 = vcmp.lt.s32.totalorder %v12295_v55, 7  ;;  %vm9425_vm10 = vcmp.lt.s32.totalorder %v12299_v43, 7  ;;  %v2844_v24 = vsel %vm12302_vm15, %v2812_v25, 0.0  ;;  %v2845_v5 = vsel %vm12303_vm4, %v2813_v13, 0.0  ;;  %vm12304_vm15 = vmmov %vm12293_vm3 }
 0x2ef   : > { %v12297_v59 = vsel %vm9419_vm5, 4294967295, %v12296_v59  ;;  %v12301_v33 = vsel %vm9425_vm10, 4294967295, %v12300_v33  ;;  %v3743_v42 = vsel %vm9425_vm10, %v3721_v2, 0.0  ;;  %v3742_v12 = vsel %vm9419_vm5, %v3705_v35, 0.0  ;;  %2860 = vst [vmem:[#allocation3 + $0x420] sm:$0xf] %v2844_v24  ;;  %v2789_v45 = vpop.permute.xlu0 %2788  ;;  %vm12305_vm4 = vmmov %vm12293_vm3  ;;  %3824 = vrot.lane.b32.xlu0 %v9178_v19, %s5752_s22  ;;  %3826 = vrot.lane.b32.xlu1 %v9192_v22, %s5752_s22 }
 0x2f0   : > { %2861 = vst [vmem:[#allocation3 + $0x428] sm:$0xf] %v2845_v5  ;;  %3759 = vst [vmem:[#allocation3 + $0x5d8] sm:$0xf] %v3743_v42  ;;  %v2814_v21 = vsel %vm12304_vm15, %v2787_v26, %v2789_v45  ;;  %v2815_v30 = vsel %vm12305_vm4, %v2789_v45, %v9441_v36  ;;  %vm12306_vm8 = vcmp.lt.s32.totalorder %v12274_v23, 15  ;;  %vm12307_vm3 = vcmp.lt.s32.totalorder %v12278_v48, 15 }
 0x2f1   : > { %3758 = vst [vmem:[#allocation3 + $0x5d0] sm:$0xf] %v3742_v12  ;;  %v2846_v9 = vsel %vm12306_vm8, %v2814_v21, 0.0  ;;  %v2847_v35 = vsel %vm12307_vm3, %v2815_v30, 0.0  ;;  %vm12309_vm15 = vnez %v12308_v32  ;;  %v12310_v26 = vld [vmem:[#allocation34_spill] sm:$0xff]  ;;  %v9466_v2 = vld [vmem:[#allocation2 + $0x38] sm:$0xff]  ;;  %v3099_v13 = vpop.permute.xlu1 %3098 }
 0x2f2   : > { %vm3057_vm4 = vmand %vm8954_vm11, %vm12309_vm15  ;;  %2862 = vst [vmem:[#allocation3 + $0x430] sm:$0xf] %v2846_v9  ;;  %vm12311_vm10 = vnez %v12310_v26  ;;  %vm12312_vm3 = vcmask 138240   ;;  %v12314_v24 = vld [vmem:[#allocation36_spill] sm:$0xff]  ;;  %v12316_v5 = vld [vmem:[#allocation42_spill] sm:$0xff] }
 0x2f3   : > { %2863 = vst [vmem:[#allocation3 + $0x438] sm:$0xf] %v2847_v35  ;;  %vm3058_vm8 = vmand %vm8960_vm2, %vm12311_vm10  ;;  %v3097_v25 = vpop.permute.xlu0 %3096  ;;  %3828 = vrot.lane.b32.xlu0 %v9448_v54, %s5752_s22  ;;  %3830 = vrot.lane.b32.xlu1 %v9466_v2, %s5752_s22  ;;  %vm12315_vm15 = vnez %v12314_v24  ;;  %vm12317_vm9 = vnez %v12316_v5  ;;  %v12320_v9 = vld [vmem:[#allocation18_spill] sm:$0xff]  ;;  %v12322_v35 = vld [vmem:[#allocation19_spill] sm:$0xff] }
 0x2f4   : > { %v3124_v44 = vsel %vm12312_vm3, %v8947_v41, %v3097_v25  ;;  %vm12313_vm5 = vmmov %vm12312_vm3 }
 0x2f5   : > { %v3125_v55 = vsel %vm12313_vm5, %v3097_v25, %v3099_v13  ;;  %v3156_v40 = vsel %vm3057_vm4, %v3124_v44, 0.0  ;;  %vm3059_vm10 = vmand %vm8980_vm13, %vm12315_vm15  ;;  %v9483_v42 = vpop.permute.xlu1 %3102  ;;  %vm12323_vm15 = vnez %v12322_v35 }
 0x2f6   : > { %v3157_v43 = vsel %vm3058_vm8, %v3125_v55, 0.0  ;;  %3172 = vst [vmem:[#allocation3 + $0x4a0] sm:$0xf] %v3156_v40  ;;  %vm3060_vm5 = vmand %vm8986_vm6, %vm12317_vm9 }
 0x2f7   : > { %3173 = vst [vmem:[#allocation3 + $0x4a8] sm:$0xf] %v3157_v43  ;;  %v3101_v41 = vpop.permute.xlu0 %3100  ;;  %vm12318_vm4 = vmmov %vm12312_vm3  ;;  %3432 = vrot.lane.b32.xlu0 %v9248_v3, %s5750_s20  ;;  %3434 = vrot.lane.b32.xlu1 %v9258_v11, %s5750_s20  ;;  %v12326_v11 = vld [vmem:[#allocation26_spill] sm:$0xff]  ;;  %v4601_v43 = vld [vmem:[#allocation3 + $0x420] sm:$0xff] }
 0x2f8   : > { %v3126_v12 = vsel %vm12318_vm4, %v3099_v13, %v3101_v41  ;;  %vm12319_vm8 = vmmov %vm12312_vm3  ;;  %vm12321_vm3 = vnez %v12320_v9  ;;  %v4602_v13 = vld [vmem:[#allocation3 + $0x428] sm:$0xff] }
 0x2f9   : > { %v3127_v45 = vsel %vm12319_vm8, %v3101_v41, %v9483_v42  ;;  %v3158_v21 = vsel %vm3059_vm10, %v3126_v12, 0.0  ;;  %vm3525_vm9 = vmand %vm8954_vm11, %vm12321_vm3  ;;  %v3567_v26 = vpop.permute.xlu1 %3566  ;;  %vm12324_vm10 = vcmask 7168   ;;  %vm12327_vm8 = vnez %v12326_v11  ;;  %v12328_v41 = vld [vmem:[#allocation27_spill] sm:$0xff] }
 0x2fa   : > { %v3159_v30 = vsel %vm3060_vm5, %v3127_v45, 0.0  ;;  %3174 = vst [vmem:[#allocation3 + $0x4b0] sm:$0xf] %v3158_v21  ;;  %vm3526_vm4 = vmand %vm8960_vm2, %vm12323_vm15  ;;  %vm12329_vm3 = vnez %v12328_v41  ;;  %v4604_v35 = vld [vmem:[#allocation3 + $0x438] sm:$0xff] }
 0x2fb   : > { %3175 = vst [vmem:[#allocation3 + $0x4b8] sm:$0xf] %v3159_v30  ;;  %v3565_v32 = vpop.permute.xlu0 %3564  ;;  %vm12325_vm5 = vmmov %vm12324_vm10  ;;  %3436 = vrot.lane.b32.xlu0 %v9273_v1, %s5750_s20  ;;  %3438 = vrot.lane.b32.xlu1 %v9277_v27, %s5750_s20 }
 0x2fc   : > { %v3592_v3 = vsel %vm12324_vm10, %v9026_v8, %v3565_v32  ;;  %v3593_v25 = vsel %vm12325_vm5, %v3565_v32, %v3567_v26  ;;  %vm3527_vm7 = vmand %vm8980_vm13, %vm12327_vm8 }
 0x2fd   : > { %v3624_v44 = vsel %vm3525_vm9, %v3592_v3, 0.0  ;;  %v3625_v55 = vsel %vm3526_vm4, %v3593_v25, 0.0  ;;  %v4617_v24 = vld [vmem:[#allocation3 + $0x4a0] sm:$0xff]  ;;  %vm3528_vm15 = vmand %vm8986_vm6, %vm12329_vm3  ;;  %v9515_v30 = vpop.permute.xlu1 %3570  ;;  %v4603_v25 = vld [vmem:[#allocation3 + $0x430] sm:$0xff] }
 0x2fe   : > { %v4618_v40 = vld [vmem:[#allocation3 + $0x4a8] sm:$0xff]  ;;  %v3656_v8 = vrot.slane %v3624_v44, 4  ;;  %v3657_v5 = vrot.slane %v3625_v55, 4  ;;  %v5465_v45 = vpack.c.bf16 %v4617_v24, %v4601_v43  ;;  %vm12330_vm9 = vmmov %vm12325_vm5 }
 0x2ff   : > { %v5463_v12 = vpack.c.bf16 %v4618_v40, %v4602_v13  ;;  %v3569_v21 = vpop.permute.xlu0 %3568  ;;  %vm12331_vm4 = vmmov %vm12325_vm5  ;;  %4152 = vrot.lane.b32.xlu0 %v9178_v19, %s5754_s24  ;;  %4154 = vrot.lane.b32.xlu1 %v9192_v22, %s5754_s24 }
 0x300   : > { %3688 = vst [vmem:[#allocation3 + $0x520] sm:$0xf0] %v3656_v8  ;;  %3689 = vst [vmem:[#allocation3 + $0x528] sm:$0xf0] %v3657_v5  ;;  %v3594_v1 = vsel %vm12330_vm9, %v3567_v26, %v3569_v21  ;;  %v3595_v9 = vsel %vm12331_vm4, %v3569_v21, %v9515_v30 }
 0x301   : > { %5464 = vmatprep.subr.bf16.mxu0 %v5463_v12  ;;  %vm3777_vm10 = vmand %vm8954_vm11, %vm12248_vm0  ;;  %v3626_v32 = vsel %vm3527_vm7, %v3594_v1, 0.0  ;;  %v3627_v3 = vsel %vm3528_vm15, %v3595_v9, 0.0  ;;  %v4619_v13 = vld [vmem:[#allocation3 + $0x4b0] sm:$0xff]  ;;  %v3819_v24 = vpop.permute.xlu1 %3818  ;;  %vm12332_vm7 = vcmask 1039360  }
 0x302   : > { %v4620_v26 = vld [vmem:[#allocation3 + $0x4b8] sm:$0xff]  ;;  %v3658_v44 = vrot.slane %v3626_v32, 4  ;;  %v3659_v55 = vrot.slane %v3627_v3, 4  ;;  %5466 = vmatpush1.bf16.msra.mxu0 %v5465_v45  ;;  %vm3778_vm5 = vmand %vm8960_vm2, %vm12249_vm12  ;;  %v5497_v40 = vpack.c.bf16 %v4619_v13, %v4603_v25  ;;  %v12338_v3 = vld [vmem:[#allocation80_spill] sm:$0xff] }
 0x303   : > { %v5495_v11 = vpack.c.bf16 %v4620_v26, %v4604_v35  ;;  %v3817_v43 = vpop.permute.xlu0 %3816  ;;  %vm12333_vm8 = vmmov %vm12332_vm7  ;;  %4156 = vrot.lane.b32.xlu0 %v9448_v54, %s5754_s24  ;;  %4158 = vrot.lane.b32.xlu1 %v9466_v2, %s5754_s24  ;;  %vm12339_vm9 = vnez %v12338_v3 }
 0x304   : > { %3690 = vst [vmem:[#allocation3 + $0x530] sm:$0xf0] %v3658_v44  ;;  %3691 = vst [vmem:[#allocation3 + $0x538] sm:$0xf0] %v3659_v55  ;;  %v3844_v8 = vsel %vm12332_vm7, %v9057_v0, %v3817_v43  ;;  %v3845_v5 = vsel %vm12333_vm8, %v3817_v43, %v3819_v24  ;;  %v12344_v43 = vld [vmem:[#allocation82_spill] sm:$0xff] }
 0x305   : > { %5496 = vmatprep.subr.bf16.mxu1 %v5495_v11  ;;  %v3876_v52 = vsel %vm3777_vm10, %v3844_v8, 0.0  ;;  %v3877_v41 = vsel %vm3778_vm5, %v3845_v5, 0.0  ;;  %vm3779_vm12 = vmand %vm8980_vm13, %vm12253_vm14  ;;  %v9557_v45 = vpop.permute.xlu1 %3822  ;;  %vm12337_vm14 = vnez %v12336_v16  ;;  %vm12340_vm10 = vcmask 121856  }
 0x306   : > { %v3908_v0 = vrot.slane %v3876_v52, 4  ;;  %v3909_v12 = vrot.slane %v3877_v41, 4  ;;  %5498 = vmatpush1.bf16.msra.mxu1 %v5497_v40  ;;  %vm3780_vm0 = vmand %vm8986_vm6, %vm12255_vm1  ;;  %v12342_v40 = vld [vmem:[#allocation81_spill] sm:$0xff] }
 0x307   : > { %v3821_v18 = vpop.permute.xlu0 %3820  ;;  %vm12334_vm3 = vmmov %vm12332_vm7  ;;  %4012 = vrot.lane.b32.xlu0 %v9178_v19, %s5753_s23  ;;  %4014 = vrot.lane.b32.xlu1 %v9192_v22, %s5753_s23  ;;  %vm12343_vm7 = vnez %v12342_v40 }
 0x308   : > { %3940 = vst [vmem:[#allocation3 + $0x5a0] sm:$0xf0] %v3908_v0  ;;  %3941 = vst [vmem:[#allocation3 + $0x5a8] sm:$0xf0] %v3909_v12  ;;  %v3846_v21 = vsel %vm12334_vm3, %v3819_v24, %v3821_v18  ;;  %v2584_v0 = vld [vmem:[#allocation2 + $0x40] sm:$0xf] }
 0x309   : > { %vm12335_vm15 = vmmov %vm12334_vm3  ;;  %v3878_v1 = vsel %vm3779_vm12, %v3846_v21, 0.0  ;;  %v3427_v25 = vpop.permute.xlu1 %3426  ;;  %vm12345_vm12 = vnez %v12344_v43 }
 0x30a   : > { %v3847_v53 = vsel %vm12335_vm15, %v3821_v18, %v9557_v45  ;;  %vm3385_vm1 = vmand %vm8954_vm11, %vm12337_vm14  ;;  %v3910_v35 = vrot.slane %v3878_v1, 4  ;;  %vm12348_vm14 = vcmp.lt.s32.totalorder %v11649_v58, 15 }
 0x30b   : > { %v3879_v9 = vsel %vm3780_vm0, %v3847_v53, 0.0  ;;  %vm3386_vm4 = vmand %vm8960_vm2, %vm12339_vm9  ;;  %v3425_v26 = vpop.permute.xlu0 %3424  ;;  %4016 = vrot.lane.b32.xlu0 %v9448_v54, %s5753_s23  ;;  %4018 = vrot.lane.b32.xlu1 %v9466_v2, %s5753_s23  ;;  %vm12351_vm9 = vcmp.lt.s32.totalorder %v11650_v17, 15 }
 0x30c   : > { %v3911_v32 = vrot.slane %v3879_v9, 4  ;;  %3942 = vst [vmem:[#allocation3 + $0x5b0] sm:$0xf0] %v3910_v35  ;;  %v3452_v13 = vsel %vm12340_vm10, %v9098_v49, %v3425_v26  ;;  %vm12341_vm5 = vmmov %vm12340_vm10  ;;  %vm12352_vm10 = vcmask 916480  }
 0x30d   : > { %v3453_v44 = vsel %vm12341_vm5, %v3425_v26, %v3427_v25  ;;  %v3484_v55 = vsel %vm3385_vm1, %v3452_v13, 0.0  ;;  %vm3387_vm8 = vmand %vm8980_vm13, %vm12343_vm7  ;;  %v9589_v24 = vpop.permute.xlu1 %3430  ;;  %vm12354_vm7 = vcmp.lt.s32.totalorder %v12274_v23, 15 }
 0x30e   : > { %3943 = vst [vmem:[#allocation3 + $0x5b8] sm:$0xf0] %v3911_v32  ;;  %v3485_v11 = vsel %vm3386_vm4, %v3453_v44, 0.0  ;;  %3500 = vst [vmem:[#allocation3 + $0x520] sm:$0xf] %v3484_v55  ;;  %v9646_v55 = vcombine.high %v9466_v2, %v9466_v2 }
 0x30f   : > { %3501 = vst [vmem:[#allocation3 + $0x528] sm:$0xf] %v3485_v11  ;;  %vm3388_vm0 = vmand %vm8986_vm6, %vm12345_vm12  ;;  %v3429_v49 = vpop.permute.xlu0 %3428  ;;  %4340 = vrot.lane.b32.xlu0 %v9178_v19, %s5755_s25  ;;  %4342 = vrot.lane.b32.xlu1 %v9192_v22, %s5755_s25  ;;  %v4650_v21 = vld [vmem:[#allocation3 + $0x5a8] sm:$0xff]  ;;  %v4649_v23 = vld [vmem:[#allocation3 + $0x5a0] sm:$0xff]  ;;  %vm12357_vm12 = vcmp.lt.s32.totalorder %v12278_v48, 15 }
 0x310   : > { %vm12346_vm3 = vmmov %vm12341_vm5 }
 0x311   : > { %v3454_v8 = vsel %vm12346_vm3, %v3427_v25, %v3429_v49  ;;  %vm12347_vm15 = vmmov %vm12346_vm3  ;;  %v4147_v19 = vpop.permute.xlu1 %4146 }
 0x312   : > { %v3455_v5 = vsel %vm12347_vm15, %v3429_v49, %v9589_v24  ;;  %v3486_v52 = vsel %vm3387_vm8, %v3454_v8, 0.0  ;;  %vm9602_vm1 = vmand %vm8954_vm11, %vm12348_vm14  ;;  %vm12362_vm14 = vnez %v12236_v34 }
 0x313   : > { %v3487_v41 = vsel %vm3388_vm0, %v3455_v5, 0.0  ;;  %3502 = vst [vmem:[#allocation3 + $0x530] sm:$0xf] %v3486_v52  ;;  %vm4106_vm4 = vmand %vm8960_vm2, %vm12351_vm9  ;;  %v4145_v12 = vpop.permute.xlu0 %4144  ;;  %4344 = vrot.lane.b32.xlu0 %v9448_v54, %s5755_s25  ;;  %4346 = vrot.lane.b32.xlu1 %v9466_v2, %s5755_s25  ;;  %v4651_v8 = vld [vmem:[#allocation3 + $0x5b0] sm:$0xff]  ;;  %vm12363_vm9 = vnez %v12238_v10 }
 0x314   : > { %3503 = vst [vmem:[#allocation3 + $0x538] sm:$0xf] %v3487_v41  ;;  %v4172_v22 = vsel %vm12352_vm10, %v9158_v14, %v4145_v12  ;;  %vm12353_vm5 = vmmov %vm12352_vm10  ;;  %vm12364_vm10 = vcmask 924672  }
 0x315   : > { %v4173_v58 = vsel %vm12353_vm5, %v4145_v12, %v4147_v19  ;;  %vm9617_vm8 = vmand %vm8980_vm13, %vm12354_vm7  ;;  %v4204_v17 = vsel %vm9602_vm1, %v4172_v22, 0.0  ;;  %v4633_v1 = vld [vmem:[#allocation3 + $0x520] sm:$0xff]  ;;  %v9635_v25 = vpop.permute.xlu1 %4150  ;;  %v4652_v48 = vld [vmem:[#allocation3 + $0x5b8] sm:$0xff]  ;;  %vm12366_vm7 = vnez %v12242_v29 }
 0x316   : > { %v4205_v53 = vsel %vm4106_vm4, %v4173_v58, 0.0  ;;  %v4634_v14 = vld [vmem:[#allocation3 + $0x528] sm:$0xff]  ;;  %v4236_v9 = vrot.slane %v4204_v17, 4  ;;  %vm9631_vm0 = vmand %vm8986_vm6, %vm12357_vm12  ;;  %v5469_v3 = vpack.c.bf16 %v4649_v23, %v4633_v1  ;;  %vm12367_vm12 = vnez %v12244_v7  ;;  %v2460_v7 = vld [vmem:[#allocation2 + $0x40] sm:$0xf] }
 0x317   : > { %v4237_v16 = vrot.slane %v4205_v53, 4  ;;  %v5467_v32 = vpack.c.bf16 %v4650_v21, %v4634_v14  ;;  %v4149_v26 = vpop.permute.xlu0 %4148  ;;  %vm12360_vm3 = vmmov %vm12353_vm5  ;;  %2628 = vrot.lane.b32.xlu0 %v9448_v54, %s5753_s23  ;;  %2630 = vrot.lane.b32.xlu1 %v9466_v2, %s5753_s23 }
 0x318   : > { %4268 = vst [vmem:[#allocation3 + $0x620] sm:$0xf0] %v4236_v9  ;;  %v4174_v13 = vsel %vm12360_vm3, %v4147_v19, %v4149_v26  ;;  %vm12361_vm15 = vmmov %vm12360_vm3 }
 0x319   : > { %4269 = vst [vmem:[#allocation3 + $0x628] sm:$0xf0] %v4237_v16  ;;  %v4175_v44 = vsel %vm12361_vm15, %v4149_v26, %v9635_v25  ;;  %5468 = vmatprep.subr.bf16.mxu0 %v5467_v32  ;;  %vm3965_vm1 = vmand %vm8954_vm11, %vm12362_vm14  ;;  %v4206_v11 = vsel %vm9617_vm8, %v4174_v13, 0.0  ;;  %v4007_v22 = vpop.permute.xlu1 %4006  ;;  %vm12370_vm14 = vnez %v12258_v63 }
 0x31a   : > { %v4207_v40 = vsel %vm9631_vm0, %v4175_v44, 0.0  ;;  %v4635_v49 = vld [vmem:[#allocation3 + $0x530] sm:$0xff]  ;;  %v4238_v5 = vrot.slane %v4206_v11, 4  ;;  %5470 = vmatpush1.bf16.msra.mxu0 %v5469_v3  ;;  %vm3966_vm4 = vmand %vm8960_vm2, %vm12363_vm9  ;;  %vm12371_vm9 = vnez %v12260_v37  ;;  %v9724_v44 = vcombine.high %v9277_v27, %v9277_v27 }
 0x31b   : > { %v4636_v43 = vld [vmem:[#allocation3 + $0x538] sm:$0xff]  ;;  %v4239_v52 = vrot.slane %v4207_v40, 4  ;;  %v5501_v12 = vpack.c.bf16 %v4651_v8, %v4635_v49  ;;  %v4005_v19 = vpop.permute.xlu0 %4004  ;;  %vm12365_vm5 = vmmov %vm12364_vm10  ;;  %2632 = vrot.lane.b32.xlu0 %v9646_v55, %s5753_s23  ;;  %2634 = vrot.lane.b32.xlu1 %v2584_v0, %s5753_s23  ;;  %v12382_v40 = vld [vmem:[#allocation104_spill] sm:$0xff] }
 0x31c   : > { %v5499_v41 = vpack.c.bf16 %v4652_v48, %v4636_v43  ;;  %4270 = vst [vmem:[#allocation3 + $0x630] sm:$0xf0] %v4238_v5  ;;  %v4032_v58 = vsel %vm12364_vm10, %v9194_v62, %v4005_v19  ;;  %v4033_v18 = vsel %vm12365_vm5, %v4005_v19, %v4007_v22  ;;  %vm3967_vm8 = vmand %vm8980_vm13, %vm12366_vm7  ;;  %vm12372_vm10 = vcmask 908288   ;;  %v12380_v48 = vld [vmem:[#allocation103_spill] sm:$0xff] }
 0x31d   : > { %4271 = vst [vmem:[#allocation3 + $0x638] sm:$0xf0] %v4239_v52  ;;  %v4064_v10 = vsel %vm3965_vm1, %v4032_v58, 0.0  ;;  %v4065_v21 = vsel %vm3966_vm4, %v4033_v18, 0.0  ;;  %vm3968_vm0 = vmand %vm8986_vm6, %vm12367_vm12  ;;  %v9679_v34 = vpop.permute.xlu1 %4010  ;;  %vm12375_vm7 = vnez %v12267_v46  ;;  %v9733_v0 = vld [vmem:[#allocation2 + $0x3c] sm:$0xff] }
 0x31e   : > { %5500 = vmatprep.subr.bf16.mxu1 %v5499_v41  ;;  %4080 = vst [vmem:[#allocation3 + $0x620] sm:$0xf] %v4064_v10  ;;  %4081 = vst [vmem:[#allocation3 + $0x628] sm:$0xf] %v4065_v21  ;;  %v12386_v10 = vld [vmem:[#allocation105_spill] sm:$0xff] }
 0x31f   : > { %5502 = vmatpush1.bf16.msra.mxu1 %v5501_v12  ;;  %v4009_v62 = vpop.permute.xlu0 %4008  ;;  %vm12368_vm3 = vmmov %vm12365_vm5  ;;  %2504 = vrot.lane.b32.xlu0 %v9448_v54, %s5752_s22 }
 0x320   : > { %v4034_v17 = vsel %vm12368_vm3, %v4007_v22, %v4009_v62  ;;  %vm12369_vm15 = vmmov %vm12368_vm3  ;;  %2506 = vrot.lane.b32.xlu1 %v9466_v2, %s5752_s22 }
 0x321   : > { %v4035_v53 = vsel %vm12369_vm15, %v4009_v62, %v9679_v34  ;;  %v4066_v29 = vsel %vm3967_vm8, %v4034_v17, 0.0  ;;  %vm4293_vm1 = vmand %vm8954_vm11, %vm12370_vm14  ;;  %v4335_v23 = vpop.permute.xlu1 %4334  ;;  %vm12374_vm11 = vnez %v11855_v60  ;;  %vm12383_vm15 = vnez %v12382_v40  ;;  %v12388_v62 = vld [vmem:[#allocation106_spill] sm:$0xff] }
 0x322   : > { %v4067_v14 = vsel %vm3968_vm0, %v4035_v53, 0.0  ;;  %4082 = vst [vmem:[#allocation3 + $0x630] sm:$0xf] %v4066_v29  ;;  %vm4294_vm4 = vmand %vm8960_vm2, %vm12371_vm9  ;;  %vm12387_vm9 = vnez %v12386_v10  ;;  %v9748_v53 = vcombine.high %v9733_v0, %v9733_v0 }
 0x323   : > { %4083 = vst [vmem:[#allocation3 + $0x638] sm:$0xf] %v4067_v14  ;;  %v4333_v1 = vpop.permute.xlu0 %4332  ;;  %vm12373_vm5 = vmmov %vm12372_vm10  ;;  %2508 = vrot.lane.b32.xlu0 %v9646_v55, %s5752_s22 }
 0x324   : > { %v4360_v9 = vsel %vm12372_vm10, %v9220_v28, %v4333_v1  ;;  %v4361_v16 = vsel %vm12373_vm5, %v4333_v1, %v4335_v23  ;;  %2510 = vrot.lane.b32.xlu1 %v2460_v7, %s5752_s22  ;;  %vm4295_vm2 = vmand %vm8980_vm13, %vm12374_vm11  ;;  %vm12390_vm10 = vcmask 1039360  }
 0x325   : > { %v4392_v35 = vsel %vm4293_vm1, %v4360_v9, 0.0  ;;  %v4393_v63 = vsel %vm4294_vm4, %v4361_v16, 0.0  ;;  %vm4296_vm8 = vmand %vm8986_vm6, %vm12375_vm7  ;;  %v9710_v20 = vpop.permute.xlu1 %4338  ;;  %v4666_v13 = vld [vmem:[#allocation3 + $0x628] sm:$0xff]  ;;  %vm12389_vm4 = vnez %v12388_v62  ;;  %v3192_v16 = vld [vmem:[#allocation2 + $0x44] sm:$0xf] }
 0x326   : > { %4408 = vst [vmem:[#allocation3 + $0x6a0] sm:$0xf] %v4392_v35  ;;  %4409 = vst [vmem:[#allocation3 + $0x6a8] sm:$0xf] %v4393_v63  ;;  %v4494_v63 = vld [vmem:[#allocation3 + $0xc8] sm:$0xff] }
 0x327   : > { %v4337_v57 = vpop.permute.xlu0 %4336  ;;  %vm12376_vm12 = vmmov %vm12373_vm5  ;;  %2924 = vrot.lane.b32.xlu0 %v9448_v54, %s5755_s25 }
 0x328   : > { %v4362_v28 = vsel %vm12376_vm12, %v4335_v23, %v4337_v57  ;;  %vm12377_vm0 = vmmov %vm12373_vm5  ;;  %2926 = vrot.lane.b32.xlu1 %v9466_v2, %s5755_s25 }
 0x329   : > { %v4363_v37 = vsel %vm12377_vm0, %v4337_v57, %v9710_v20  ;;  %v4394_v32 = vsel %vm4295_vm2, %v4362_v28, 0.0  ;;  %v2623_v46 = vpop.permute.xlu1 %2622  ;;  %vm12378_vm13 = vmmov %vm12368_vm3  ;;  %v4667_v14 = vld [vmem:[#allocation3 + $0x630] sm:$0xff] }
 0x32a   : > { %v4395_v60 = vsel %vm4296_vm8, %v4363_v37, 0.0  ;;  %4410 = vst [vmem:[#allocation3 + $0x6b0] sm:$0xf] %v4394_v32  ;;  %vm12379_vm6 = vmmov %vm12368_vm3  ;;  %vm12381_vm3 = vnez %v12380_v48  ;;  %v4668_v18 = vld [vmem:[#allocation3 + $0x638] sm:$0xff]  ;;  %v9755_v37 = vpack.c.bf16 %v9325_v47, %v9325_v47 }
 0x32b   : > { %4411 = vst [vmem:[#allocation3 + $0x6b8] sm:$0xf] %v4395_v60  ;;  %v2621_v50 = vpop.permute.xlu0 %2620  ;;  %2928 = vrot.lane.b32.xlu0 %v9646_v55, %s5755_s25  ;;  %vm12384_vm14 = vmmov %vm12379_vm6 }
 0x32c   : > { %v2644_v3 = vsel %vm12378_vm13, %v9260_v31, %v2621_v50  ;;  %v2645_v26 = vsel %vm12379_vm6, %v2621_v50, %v2623_v46  ;;  %2930 = vrot.lane.b32.xlu1 %v2880_v39, %s5755_s25  ;;  %v4665_v31 = vld [vmem:[#allocation3 + $0x620] sm:$0xff]  ;;  %vm12385_vm1 = vmmov %vm12379_vm6  ;;  %v4478_v39 = vld [vmem:[#allocation3 + $0x48] sm:$0xff]  ;;  %vm12402_vm13 = vcmask 908288  }
 0x32d   : > { %v2676_v11 = vsel %vm12381_vm3, %v2644_v3, 0.0  ;;  %v2677_v43 = vsel %vm12383_vm15, %v2645_v26, 0.0  ;;  %v4682_v49 = vld [vmem:[#allocation3 + $0x6a8] sm:$0xff]  ;;  %v4681_v8 = vld [vmem:[#allocation3 + $0x6a0] sm:$0xff]  ;;  %v9735_v19 = vpop.permute.xlu1 %2626  ;;  %vm12391_vm5 = vmmov %vm12390_vm10 }
 0x32e   : > { %v2708_v5 = vrot.slane %v2676_v11, 4  ;;  %v2709_v52 = vrot.slane %v2677_v43, 4  ;;  %v5471_v41 = vpack.c.bf16 %v4682_v49, %v4666_v13  ;;  %v5473_v27 = vpack.c.bf16 %v4681_v8, %v4665_v31  ;;  %v12392_v50 = vld [vmem:[#allocation83_spill] sm:$0xff]  ;;  %v12394_v3 = vld [vmem:[#allocation84_spill] sm:$0xff]  ;;  %v4526_v31 = vld [vmem:[#allocation3 + $0x1c8] sm:$0xff] }
 0x32f   : > { %v2625_v12 = vpop.permute.xlu0 %2624  ;;  %3252 = vrot.lane.b32.xlu0 %v9724_v44, %s5749_s19  ;;  %vm12393_vm11 = vnez %v12392_v50  ;;  %vm12395_vm2 = vnez %v12394_v3  ;;  %v5511_v13 = vpack.c.bf16 %v4494_v63, %v4478_v39  ;;  %v4496_v11 = vld [vmem:[#allocation3 + $0xd8] sm:$0xff]  ;;  %vm12396_vm7 = vmmov %vm12391_vm5  ;;  %v4479_v63 = vld [vmem:[#allocation3 + $0x50] sm:$0xff] }
 0x330   : > { %2740 = vst [vmem:[#allocation3 + $0x3c0] sm:$0xf0] %v2708_v5  ;;  %2741 = vst [vmem:[#allocation3 + $0x3c8] sm:$0xf0] %v2709_v52  ;;  %v2646_v22 = vsel %vm12384_vm14, %v2623_v46, %v2625_v12  ;;  %v2647_v58 = vsel %vm12385_vm1, %v2625_v12, %v9735_v19  ;;  %5472 = vmatprep.subr.bf16.mxu0 %v5471_v41  ;;  %3254 = vrot.lane.b32.xlu1 %v9733_v0, %s5749_s19  ;;  %v4477_v52 = vld [vmem:[#allocation3 + $0x40] sm:$0xff]  ;;  %v4480_v41 = vld [vmem:[#allocation3 + $0x58] sm:$0xff] }
 0x331   : > { %v2678_v21 = vsel %vm12387_vm9, %v2646_v22, 0.0  ;;  %v2679_v17 = vsel %vm12389_vm4, %v2647_v58, 0.0  ;;  %v4683_v7 = vld [vmem:[#allocation3 + $0x6b0] sm:$0xff]  ;;  %5474 = vmatpush1.bf16.msra.mxu0 %v5473_v27  ;;  %v2499_v28 = vpop.permute.xlu1 %2498  ;;  %vm12397_vm8 = vmmov %vm12391_vm5  ;;  %v12398_v27 = vld [vmem:[#allocation85_spill] sm:$0xff] }
 0x332   : > { %v4684_v29 = vld [vmem:[#allocation3 + $0x6b8] sm:$0xff]  ;;  %v2710_v1 = vrot.slane %v2678_v21, 4  ;;  %v2711_v23 = vrot.slane %v2679_v17, 4  ;;  %v5505_v35 = vpack.c.bf16 %v4683_v7, %v4667_v14  ;;  %5476 = vmatprep.subr.bf16.mxu0 %v5757_v56  ;;  %vm12399_vm12 = vnez %v12398_v27  ;;  %v12400_v12 = vld [vmem:[#allocation89_spill] sm:$0xff]  ;;  %v4525_v14 = vld [vmem:[#allocation3 + $0x1c0] sm:$0xff] }
 0x333   : > { %v5503_v9 = vpack.c.bf16 %v4684_v29, %v4668_v18  ;;  %v2497_v57 = vpop.permute.xlu0 %2496  ;;  %3256 = vrot.lane.b32.xlu0 %v9748_v53, %s5749_s19  ;;  %vm12401_vm0 = vnez %v12400_v12  ;;  %v4510_v18 = vld [vmem:[#allocation3 + $0x148] sm:$0xff]  ;;  %v5543_v21 = vpack.c.bf16 %v4496_v11, %v4480_v41  ;;  %v2756_v29 = vld [vmem:[#allocation2 + $0x40] sm:$0xf]  ;;  %v4495_v7 = vld [vmem:[#allocation3 + $0xd0] sm:$0xff] }
 0x334   : > { %2742 = vst [vmem:[#allocation3 + $0x3d0] sm:$0xf0] %v2710_v1  ;;  %2743 = vst [vmem:[#allocation3 + $0x3d8] sm:$0xf0] %v2711_v23  ;;  %v2520_v32 = vsel %vm12390_vm10, %v9293_v15, %v2497_v57  ;;  %v2521_v60 = vsel %vm12391_vm5, %v2497_v57, %v2499_v28  ;;  %3258 = vrot.lane.b32.xlu1 %v3192_v16, %s5749_s19  ;;  %v4493_v15 = vld [vmem:[#allocation3 + $0xc0] sm:$0xff]  ;;  %v5515_v17 = vpack.c.bf16 %v4526_v31, %v4510_v18  ;;  %v4558_v23 = vld [vmem:[#allocation3 + $0x2c8] sm:$0xff] }
 0x335   : > { %5504 = vmatprep.subr.bf16.mxu1 %v5503_v9  ;;  %v2552_v46 = vsel %vm12393_vm11, %v2520_v32, 0.0  ;;  %v2553_v26 = vsel %vm12395_vm2, %v2521_v60, 0.0  ;;  %5478 = vmatpush1.bf16.msra.mxu0 %v5757_v56  ;;  %v9768_v49 = vpop.permute.xlu1 %2502  ;;  %v5513_v58 = vpack.c.bf16 %v4493_v15, %v4477_v52  ;;  %v4528_v9 = vld [vmem:[#allocation3 + $0x1d8] sm:$0xff]  ;;  %vm12403_vm6 = vmmov %vm12402_vm13  ;;  %v4557_v31 = vld [vmem:[#allocation3 + $0x2c0] sm:$0xff] }
 0x336   : > { %2568 = vst [vmem:[#allocation3 + $0x3c0] sm:$0xf] %v2552_v46  ;;  %2569 = vst [vmem:[#allocation3 + $0x3c8] sm:$0xf] %v2553_v26  ;;  %5506 = vmatpush1.bf16.msra.mxu1 %v5505_v35  ;;  %5512 = vmatprep.subr.bf16.mxu0 %v5511_v13  ;;  %v4509_v35 = vld [vmem:[#allocation3 + $0x140] sm:$0xff]  ;;  %v12404_v57 = vld [vmem:[#allocation111_spill] sm:$0xff]  ;;  %v5545_v46 = vpack.c.bf16 %v4495_v7, %v4479_v63 }
 0x337   : > { %v2501_v43 = vpop.permute.xlu0 %2500  ;;  %5508 = vmatprep.subr.bf16.mxu1 %v9755_v37  ;;  %2800 = vrot.lane.b32.xlu0 %v9448_v54, %s5754_s24  ;;  %vm12405_vm14 = vnez %v12404_v57  ;;  %v12406_v32 = vld [vmem:[#allocation99_spill] sm:$0xff]  ;;  %v5517_v39 = vpack.c.bf16 %v4525_v14, %v4509_v35  ;;  %vm12408_vm10 = vmmov %vm12403_vm6  ;;  %v4511_v18 = vld [vmem:[#allocation3 + $0x150] sm:$0xff] }
 0x338   : > { %v2522_v8 = vsel %vm12396_vm7, %v2499_v28, %v2501_v43  ;;  %v2523_v5 = vsel %vm12397_vm8, %v2501_v43, %v9768_v49  ;;  %2802 = vrot.lane.b32.xlu1 %v9466_v2, %s5754_s24  ;;  %4938 = vmatmul.mubr.f32.vlgmr.msra.gmra.mrb[2].mxu0 %v9298_v6  ;;  %vm12407_vm1 = vnez %v12406_v32  ;;  %v4512_v26 = vld [vmem:[#allocation3 + $0x158] sm:$0xff]  ;;  %vm12409_vm5 = vmmov %vm12403_vm6  ;;  %v12412_v14 = vld [vmem:[#allocation40_spill] sm:$0xff] }
 0x339   : > { %v2554_v56 = vsel %vm12399_vm12, %v2522_v8, 0.0  ;;  %v2555_v22 = vsel %vm12401_vm0, %v2523_v5, 0.0  ;;  %5514 = vmatpush1.bf16.msra.mxu0 %v5513_v58  ;;  %v2919_v54 = vpop.permute.xlu1 %2918  ;;  %5079 = vmatprep.mubr.f32.mxu0 %v9325_v47  ;;  %v5547_v43 = vpack.c.bf16 %v4528_v9, %v4512_v26  ;;  %v4527_v8 = vld [vmem:[#allocation3 + $0x1d0] sm:$0xff]  ;;  %v4541_v58 = vld [vmem:[#allocation3 + $0x240] sm:$0xff]  ;;  %vm12413_vm8 = vnez %v12412_v14  ;;  %v12414_v9 = vld [vmem:[#allocation37_spill] sm:$0xff] }
 0x33a   : > { %2570 = vst [vmem:[#allocation3 + $0x3d0] sm:$0xf] %v2554_v56  ;;  %2571 = vst [vmem:[#allocation3 + $0x3d8] sm:$0xf] %v2555_v22  ;;  %5510 = vmatpush1.bf16.msra.mxu1 %v9755_v37  ;;  %5516 = vmatprep.subr.bf16.mxu0 %v5515_v17  ;;  %v4560_v56 = vld [vmem:[#allocation3 + $0x2d8] sm:$0xff]  ;;  %v12489_v12 = vld [vmem:[#allocation86_spill] sm:$0xff] }
 0x33b   : > { %5544 = vmatprep.subr.bf16.mxu1 %v5543_v21  ;;  %v2917_v1 = vpop.permute.xlu0 %2916  ;;  %2804 = vrot.lane.b32.xlu0 %v9646_v55, %s5754_s24  ;;  %v4544_v21 = vld [vmem:[#allocation3 + $0x258] sm:$0xff] }
 0x33c   : > { %v2940_v2 = vsel %vm12402_vm13, %v9328_v4, %v2917_v1  ;;  %v2941_v16 = vsel %vm12403_vm6, %v2917_v1, %v2919_v54  ;;  %2806 = vrot.lane.b32.xlu1 %v2756_v29, %s5754_s24  ;;  %v4542_v4 = vld [vmem:[#allocation3 + $0x248] sm:$0xff]  ;;  %v12410_v17 = vld [vmem:[#allocation31_spill] sm:$0xff]  ;;  %v5521_v1 = vpack.c.bf16 %v4557_v31, %v4541_v58  ;;  %vm12415_vm13 = vcmp.ge.s32.totalorder %v12414_v9, 1  ;;  %v12426_v58 = vld [vmem:[#allocation46_spill] sm:$0xff] }
 0x33d   : > { %v2972_v28 = vsel %vm12405_vm14, %v2940_v2, 0.0  ;;  %v2973_v60 = vsel %vm12407_vm1, %v2941_v16, 0.0  ;;  %5009 = vmatmul.mubr.f32.vlgmr.msra.gmra.mrb[2].mxu1 %v9298_v6  ;;  %v5519_v11 = vpack.c.bf16 %v4558_v23, %v4542_v4  ;;  %5518 = vmatpush1.bf16.msra.mxu0 %v5517_v39  ;;  %v9796_v52 = vpop.permute.xlu1 %2922  ;;  %v4590_v41 = vld [vmem:[#allocation3 + $0x3c8] sm:$0xff]  ;;  %vm12411_vm7 = vnez %v12410_v17  ;;  %v4559_v16 = vld [vmem:[#allocation3 + $0x2d0] sm:$0xff]  ;;  %v3052_v4 = vld [vmem:[#allocation2 + $0x44] sm:$0xf] }
 0x33e   : > { %v3004_v13 = vrot.slane %v2972_v28, 4  ;;  %v3005_v15 = vrot.slane %v2973_v60, 4  ;;  %5546 = vmatpush1.bf16.msra.mxu1 %v5545_v46  ;;  %v4574_v23 = vld [vmem:[#allocation3 + $0x348] sm:$0xff]  ;;  %vm12416_vm6 = vnez %v12287_v51  ;;  %v5551_v60 = vpack.c.bf16 %v4560_v56, %v4544_v21  ;;  %v4589_v26 = vld [vmem:[#allocation3 + $0x3c0] sm:$0xff]  ;;  %5150 = vmatprep.mubr.f32.mxu1 %v9325_v47 }
 0x33f   : > { %v2921_v5 = vpop.permute.xlu0 %2920  ;;  %5520 = vmatprep.subr.bf16.mxu0 %v5519_v11  ;;  %5548 = vmatprep.subr.bf16.mxu1 %v5547_v43  ;;  %v5523_v28 = vpack.c.bf16 %v4590_v41, %v4574_v23  ;;  %v12419_v39 = vld [vmem:[#allocation41_spill] sm:$0xff]  ;;  %v3706_v23 = vld [vmem:[#allocation2 + $0x38] sm:$0xff] }
 0x340   : > { %3036 = vst [vmem:[#allocation3 + $0x440] sm:$0xf0] %v3004_v13  ;;  %3037 = vst [vmem:[#allocation3 + $0x448] sm:$0xf0] %v3005_v15  ;;  %v2942_v22 = vsel %vm12408_vm10, %v2919_v54, %v2921_v5  ;;  %v2943_v6 = vsel %vm12409_vm5, %v2921_v5, %v9796_v52  ;;  %3112 = vrot.lane.b32.xlu0 %v9724_v44, %s5748_s18  ;;  %3114 = vrot.lane.b32.xlu1 %v9733_v0, %s5748_s18  ;;  %vm12420_vm5 = vcmp.ge.s32.totalorder %v12419_v39, 1  ;;  %v4543_v5 = vld [vmem:[#allocation3 + $0x250] sm:$0xff] }
 0x341   : > { %v2974_v29 = vsel %vm12411_vm7, %v2942_v22, 0.0  ;;  %v2975_v7 = vsel %vm12413_vm8, %v2943_v6, 0.0  ;;  %v5549_v54 = vpack.c.bf16 %v4527_v8, %v4511_v18  ;;  %vm9813_vm10 = vmand %vm12416_vm6, %vm12415_vm13  ;;  %vm12421_vm8 = vnez %v12291_v61  ;;  %5522 = vmatpush1.bf16.msra.mxu0 %v5521_v1  ;;  %v3247_v15 = vpop.permute.xlu1 %3246  ;;  %v4592_v11 = vld [vmem:[#allocation3 + $0x3d8] sm:$0xff]  ;;  %v4573_v8 = vld [vmem:[#allocation3 + $0x340] sm:$0xff] }
 0x342   : > { %v3006_v35 = vrot.slane %v2974_v29, 4  ;;  %v3007_v63 = vrot.slane %v2975_v7, 4  ;;  %vm9821_vm7 = vmand %vm12421_vm8, %vm12420_vm5  ;;  %5524 = vmatprep.subr.bf16.mxu0 %v5523_v28  ;;  %vm12424_vm13 = vcmask 130048   ;;  %v5525_v56 = vpack.c.bf16 %v4589_v26, %v4573_v8  ;;  %v4576_v6 = vld [vmem:[#allocation3 + $0x358] sm:$0xff]  ;;  %v4591_v18 = vld [vmem:[#allocation3 + $0x3d0] sm:$0xff] }
 0x343   : > { %5550 = vmatpush1.bf16.msra.mxu1 %v5549_v54  ;;  %v3245_v13 = vpop.permute.xlu0 %3244  ;;  %vm12425_vm5 = vmmov %vm12424_vm13  ;;  %v5553_v22 = vpack.c.bf16 %v4559_v16, %v4543_v5  ;;  %v5555_v7 = vpack.c.bf16 %v4592_v11, %v4576_v6  ;;  %v12431_v1 = vld [vmem:[#allocation51_spill] sm:$0xff]  ;;  %v3722_v46 = vcombine.high %v3706_v23, %v3706_v23  ;;  %v3707_v6 = vld [vmem:[#allocation2 + $0x40] sm:$0xff] }
 0x344   : > { %3038 = vst [vmem:[#allocation3 + $0x450] sm:$0xf0] %v3006_v35  ;;  %3039 = vst [vmem:[#allocation3 + $0x458] sm:$0xf0] %v3007_v63  ;;  %5552 = vmatprep.subr.bf16.mxu1 %v5551_v60  ;;  %v3268_v43 = vsel %vm12424_vm13, %v9385_v38, %v3245_v13  ;;  %v3269_v31 = vsel %vm12425_vm5, %v3245_v13, %v3247_v15  ;;  %3116 = vrot.lane.b32.xlu0 %v9748_v53, %s5748_s18  ;;  %vm12427_vm13 = vcmp.ge.s32.totalorder %v12426_v58, 1  ;;  %v4575_v35 = vld [vmem:[#allocation3 + $0x350] sm:$0xff] }
 0x345   : > { %v3300_v41 = vsel %vm9813_vm10, %v3268_v43, 0.0  ;;  %v3301_v47 = vsel %vm9821_vm7, %v3269_v31, 0.0  ;;  %3118 = vrot.lane.b32.xlu1 %v3052_v4, %s5748_s18  ;;  %vm12428_vm5 = vnez %v12297_v59  ;;  %vm12432_vm7 = vcmp.ge.s32.totalorder %v12431_v1, 1  ;;  %5526 = vmatpush1.bf16.msra.mxu0 %v5525_v56  ;;  %v9852_v16 = vpop.permute.xlu1 %3250  ;;  %v12436_v63 = vld [vmem:[#allocation39_spill] sm:$0xff]  ;;  %v12448_v54 = vld [vmem:[#allocation50_spill] sm:$0xff] }
 0x346   : > { %vm9840_vm1 = vmand %vm12428_vm5, %vm12427_vm13  ;;  %v3332_v21 = vrot.slane %v3300_v41, 4  ;;  %v3333_v29 = vrot.slane %v3301_v47, 4  ;;  %vm12433_vm10 = vnez %v12301_v33  ;;  %v12437_v28 = vshra.s32 %v12436_v63, 8  ;;  %v12442_v11 = vld [vmem:[#allocation47_spill] sm:$0xff] }
 0x347   : > { %vm9848_vm14 = vmand %vm12433_vm10, %vm12432_vm7  ;;  %5554 = vmatpush1.bf16.msra.mxu1 %v5553_v22  ;;  %v3249_v2 = vpop.permute.xlu0 %3248  ;;  %v12438_v60 = vmov 0  ;;  %vm12440_vm7 = vcmask 130048   ;;  %v5557_v13 = vpack.c.bf16 %v4591_v18, %v4575_v35  ;;  %v12443_v43 = vshra.s32 %v12442_v11, 8  ;;  %v3520_v22 = vld [vmem:[#allocation2 + $0x44] sm:$0xf]  ;;  %v12452_v35 = vld [vmem:[#allocation54_spill] sm:$0xff] }
 0x348   : > { %vm9856_vm13 = vcmp.lt.s32.totalorder %v12437_v28, 7  ;;  %3364 = vst [vmem:[#allocation3 + $0x4c0] sm:$0xf0] %v3332_v21  ;;  %3365 = vst [vmem:[#allocation3 + $0x4c8] sm:$0xf0] %v3333_v29  ;;  %5556 = vmatprep.subr.bf16.mxu1 %v5555_v7  ;;  %v3270_v4 = vsel %vm12440_vm7, %v3247_v15, %v3249_v2  ;;  %v12444_v31 = vmov 0  ;;  %3580 = vrot.lane.b32.xlu0 %v9724_v44, %s5751_s21  ;;  %v3723_v21 = vcombine.high %v3707_v6, %v3707_v6 }
 0x349   : > { %v12439_v60 = vsel %vm9856_vm13, 4294967295, %v12438_v60  ;;  %vm12441_vm4 = vmmov %vm12440_vm7  ;;  %vm9865_vm9 = vcmp.lt.s32.totalorder %v12443_v43, 7  ;;  %v3302_v8 = vsel %vm9840_vm1, %v3270_v4, 0.0  ;;  %3582 = vrot.lane.b32.xlu1 %v9733_v0, %s5751_s21  ;;  %v3744_v41 = vsel %vm9856_vm13, %v3706_v23, 0.0  ;;  %v2795_v18 = vpop.permute.xlu1 %2794 }
 0x34a   : > { %v3271_v26 = vsel %vm12441_vm4, %v3249_v2, %v9852_v16  ;;  %v12445_v31 = vsel %vm9865_vm9, 4294967295, %v12444_v31  ;;  %v3745_v15 = vsel %vm9865_vm9, %v3722_v46, 0.0  ;;  %v3334_v47 = vrot.slane %v3302_v8, 4  ;;  %3760 = vst [vmem:[#allocation3 + $0x5e0] sm:$0xf] %v3744_v41 }
 0x34b   : > { %v3303_v5 = vsel %vm9848_vm14, %v3271_v26, 0.0  ;;  %3761 = vst [vmem:[#allocation3 + $0x5e8] sm:$0xf] %v3745_v15  ;;  %5558 = vmatpush1.bf16.msra.mxu1 %v5557_v13  ;;  %v2793_v38 = vpop.permute.xlu0 %2792  ;;  %vm12446_vm4 = vcmask 916480   ;;  %v12449_v2 = vshra.s32 %v12448_v54, 8  ;;  %v12450_v23 = vmov 0 }
 0x34c   : > { %v3335_v56 = vrot.slane %v3303_v5, 4  ;;  %3366 = vst [vmem:[#allocation3 + $0x4d0] sm:$0xf0] %v3334_v47  ;;  %v2816_v29 = vsel %vm12446_vm4, %v9441_v36, %v2793_v38  ;;  %vm12447_vm14 = vmmov %vm12446_vm4  ;;  %v12453_v63 = vshra.s32 %v12452_v35, 8  ;;  %v12454_v28 = vmov 0  ;;  %3584 = vrot.lane.b32.xlu0 %v9748_v53, %s5751_s21  ;;  %v9907_v13 = vld [vmem:[#allocation2 + $0x40] sm:$0xff] }
 0x34d   : > { %v2817_v7 = vsel %vm12447_vm14, %v2793_v38, %v2795_v18  ;;  %vm9886_vm1 = vcmp.lt.s32.totalorder %v12449_v2, 7  ;;  %vm12456_vm9 = vcmp.lt.s32.totalorder %v12414_v9, 15  ;;  %vm12457_vm13 = vcmp.lt.s32.totalorder %v12419_v39, 15  ;;  %3586 = vrot.lane.b32.xlu1 %v3520_v22, %s5751_s21  ;;  %v9909_v43 = vpop.permute.xlu1 %2798  ;;  %v12464_v22 = vld [vmem:[#allocation55_spill] sm:$0xff]  ;;  %v12468_v2 = vld [vmem:[#allocation56_spill] sm:$0xff]  ;;  %v12470_v35 = vld [vmem:[#allocation61_spill] sm:$0xff] }
 0x34e   : > { %3367 = vst [vmem:[#allocation3 + $0x4d8] sm:$0xf0] %v3335_v56  ;;  %v12451_v23 = vsel %vm9886_vm1, 4294967295, %v12450_v23  ;;  %vm9892_vm7 = vcmp.lt.s32.totalorder %v12453_v63, 7  ;;  %v2848_v46 = vsel %vm12456_vm9, %v2816_v29, 0.0  ;;  %v2849_v36 = vsel %vm12457_vm13, %v2817_v7, 0.0  ;;  %vm12458_vm9 = vmmov %vm12446_vm4 }
 0x34f   : > { %v12455_v28 = vsel %vm9892_vm7, 4294967295, %v12454_v28  ;;  %v3747_v4 = vsel %vm9892_vm7, %v3723_v21, 0.0  ;;  %v3746_v26 = vsel %vm9886_vm1, %v3707_v6, 0.0  ;;  %2864 = vst [vmem:[#allocation3 + $0x440] sm:$0xf] %v2848_v46  ;;  %v2797_v11 = vpop.permute.xlu0 %2796  ;;  %vm12459_vm13 = vmmov %vm12446_vm4  ;;  %vm12460_vm4 = vcmp.lt.s32.totalorder %v12426_v58, 15 }
 0x350   : > { %2865 = vst [vmem:[#allocation3 + $0x448] sm:$0xf] %v2849_v36  ;;  %3763 = vst [vmem:[#allocation3 + $0x5f8] sm:$0xf] %v3747_v4  ;;  %v2818_v8 = vsel %vm12458_vm9, %v2795_v18, %v2797_v11  ;;  %v2819_v5 = vsel %vm12459_vm13, %v2797_v11, %v9909_v43  ;;  %vm12461_vm14 = vcmp.lt.s32.totalorder %v12431_v1, 15  ;;  %3832 = vrot.lane.b32.xlu0 %v9646_v55, %s5752_s22  ;;  %v12462_v56 = vld [vmem:[#allocation53_spill] sm:$0xff]  ;;  %vm12471_vm15 = vnez %v12470_v35 }
 0x351   : > { %3762 = vst [vmem:[#allocation3 + $0x5f0] sm:$0xf] %v3746_v26  ;;  %v2850_v15 = vsel %vm12460_vm4, %v2818_v8, 0.0  ;;  %v2851_v41 = vsel %vm12461_vm14, %v2819_v5, 0.0  ;;  %v9922_v47 = vcombine.high %v9907_v13, %v9907_v13  ;;  %3834 = vrot.lane.b32.xlu1 %v9907_v13, %s5752_s22  ;;  %vm12463_vm9 = vnez %v12462_v56  ;;  %v3772_v6 = vld [vmem:[#allocation2 + $0x48] sm:$0xf]  ;;  %v3107_v18 = vpop.permute.xlu1 %3106 }
 0x352   : > { %vm3061_vm13 = vmand %vm12416_vm6, %vm12463_vm9  ;;  %2866 = vst [vmem:[#allocation3 + $0x450] sm:$0xf] %v2850_v15  ;;  %vm12465_vm4 = vnez %v12464_v22  ;;  %vm12466_vm7 = vcmask 138240   ;;  %vm12469_vm9 = vnez %v12468_v2  ;;  %v12473_v11 = vld [vmem:[#allocation43_spill] sm:$0xff]  ;;  %v12475_v8 = vld [vmem:[#allocation44_spill] sm:$0xff] }
 0x353   : > { %2867 = vst [vmem:[#allocation3 + $0x458] sm:$0xf] %v2851_v41  ;;  %vm3062_vm14 = vmand %vm12421_vm8, %vm12465_vm4  ;;  %v3105_v38 = vpop.permute.xlu0 %3104  ;;  %v3380_v5 = vld [vmem:[#allocation2 + $0x44] sm:$0xf]  ;;  %v12479_v56 = vld [vmem:[#allocation49_spill] sm:$0xff] }
 0x354   : > { %v3128_v21 = vsel %vm12466_vm7, %v9483_v42, %v3105_v38  ;;  %vm12467_vm1 = vmmov %vm12466_vm7  ;;  %3836 = vrot.lane.b32.xlu0 %v9922_v47, %s5752_s22 }
 0x355   : > { %v3129_v29 = vsel %vm12467_vm1, %v3105_v38, %v3107_v18  ;;  %v3160_v7 = vsel %vm3061_vm13, %v3128_v21, 0.0  ;;  %3838 = vrot.lane.b32.xlu1 %v3772_v6, %s5752_s22  ;;  %vm3063_vm4 = vmand %vm12428_vm5, %vm12469_vm9  ;;  %v9948_v63 = vpop.permute.xlu1 %3110  ;;  %vm12476_vm9 = vnez %v12475_v8 }
 0x356   : > { %v3161_v54 = vsel %vm3062_vm14, %v3129_v29, 0.0  ;;  %3176 = vst [vmem:[#allocation3 + $0x4c0] sm:$0xf] %v3160_v7  ;;  %vm3064_vm7 = vmand %vm12433_vm10, %vm12471_vm15  ;;  %vm12474_vm14 = vnez %v12473_v11  ;;  %v4605_v21 = vld [vmem:[#allocation3 + $0x440] sm:$0xff] }
 0x357   : > { %3177 = vst [vmem:[#allocation3 + $0x4c8] sm:$0xf] %v3161_v54  ;;  %v3109_v42 = vpop.permute.xlu0 %3108  ;;  %vm12472_vm13 = vmmov %vm12467_vm1  ;;  %v4606_v22 = vld [vmem:[#allocation3 + $0x448] sm:$0xff] }
 0x358   : > { %v3130_v46 = vsel %vm12467_vm1, %v3107_v18, %v3109_v42  ;;  %v3131_v36 = vsel %vm12472_vm13, %v3109_v42, %v9948_v63  ;;  %3440 = vrot.lane.b32.xlu0 %v9724_v44, %s5750_s20  ;;  %vm3529_vm15 = vmand %vm12416_vm6, %vm12474_vm14  ;;  %vm12480_vm13 = vnez %v12479_v56  ;;  %v12481_v54 = vld [vmem:[#allocation57_spill] sm:$0xff] }
 0x359   : > { %v3162_v4 = vsel %vm3063_vm4, %v3130_v46, 0.0  ;;  %v3163_v26 = vsel %vm3064_vm7, %v3131_v36, 0.0  ;;  %3442 = vrot.lane.b32.xlu1 %v9733_v0, %s5750_s20  ;;  %vm3530_vm1 = vmand %vm12421_vm8, %vm12476_vm9  ;;  %v3575_v41 = vpop.permute.xlu1 %3574  ;;  %vm12477_vm4 = vcmask 7168   ;;  %vm12482_vm9 = vnez %v12481_v54  ;;  %v4100_v56 = vld [vmem:[#allocation2 + $0x48] sm:$0xf] }
 0x35a   : > { %3178 = vst [vmem:[#allocation3 + $0x4d0] sm:$0xf] %v3162_v4  ;;  %3179 = vst [vmem:[#allocation3 + $0x4d8] sm:$0xf] %v3163_v26  ;;  %v4608_v4 = vld [vmem:[#allocation3 + $0x458] sm:$0xff] }
 0x35b   : > { %v3573_v15 = vpop.permute.xlu0 %3572  ;;  %vm12478_vm7 = vmmov %vm12477_vm4 }
 0x35c   : > { %v3596_v44 = vsel %vm12477_vm4, %v9515_v30, %v3573_v15  ;;  %v3597_v0 = vsel %vm12478_vm7, %v3573_v15, %v3575_v41  ;;  %vm3531_vm14 = vmand %vm12428_vm5, %vm12480_vm13  ;;  %3444 = vrot.lane.b32.xlu0 %v9748_v53, %s5750_s20  ;;  %vm12485_vm13 = vcmask 1039360  }
 0x35d   : > { %v3628_v6 = vsel %vm3529_vm15, %v3596_v44, 0.0  ;;  %v3629_v38 = vsel %vm3530_vm1, %v3597_v0, 0.0  ;;  %3446 = vrot.lane.b32.xlu1 %v3380_v5, %s5750_s20  ;;  %v4621_v29 = vld [vmem:[#allocation3 + $0x4c0] sm:$0xff]  ;;  %vm3532_vm4 = vmand %vm12433_vm10, %vm12482_vm9  ;;  %v9979_v46 = vpop.permute.xlu1 %3578  ;;  %v4607_v5 = vld [vmem:[#allocation3 + $0x450] sm:$0xff] }
 0x35e   : > { %v4622_v18 = vld [vmem:[#allocation3 + $0x4c8] sm:$0xff]  ;;  %v3660_v7 = vrot.slane %v3628_v6, 4  ;;  %v3661_v30 = vrot.slane %v3629_v38, 4  ;;  %v5529_v35 = vpack.c.bf16 %v4621_v29, %v4605_v21  ;;  %vm12483_vm15 = vmmov %vm12478_vm7 }
 0x35f   : > { %v5527_v2 = vpack.c.bf16 %v4622_v18, %v4606_v22  ;;  %v3577_v42 = vpop.permute.xlu0 %3576  ;;  %vm12484_vm1 = vmmov %vm12478_vm7 }
 0x360   : > { %3692 = vst [vmem:[#allocation3 + $0x540] sm:$0xf0] %v3660_v7  ;;  %3693 = vst [vmem:[#allocation3 + $0x548] sm:$0xf0] %v3661_v30  ;;  %v3598_v53 = vsel %vm12483_vm15, %v3575_v41, %v3577_v42  ;;  %v3599_v36 = vsel %vm12484_vm1, %v3577_v42, %v9979_v46  ;;  %4160 = vrot.lane.b32.xlu0 %v9646_v55, %s5754_s24 }
 0x361   : > { %5528 = vmatprep.subr.bf16.mxu0 %v5527_v2  ;;  %vm3781_vm7 = vmand %vm12416_vm6, %vm12393_vm11  ;;  %v3630_v26 = vsel %vm3531_vm14, %v3598_v53, 0.0  ;;  %v3631_v11 = vsel %vm3532_vm4, %v3599_v36, 0.0  ;;  %4162 = vrot.lane.b32.xlu1 %v9907_v13, %s5754_s24  ;;  %v4624_v8 = vld [vmem:[#allocation3 + $0x4d8] sm:$0xff]  ;;  %v4623_v15 = vld [vmem:[#allocation3 + $0x4d0] sm:$0xff]  ;;  %v3827_v38 = vpop.permute.xlu1 %3826 }
 0x362   : > { %v3662_v41 = vrot.slane %v3630_v26, 4  ;;  %v3663_v44 = vrot.slane %v3631_v11, 4  ;;  %5530 = vmatpush1.bf16.msra.mxu0 %v5529_v35  ;;  %vm3782_vm9 = vmand %vm12421_vm8, %vm12395_vm2  ;;  %v5559_v0 = vpack.c.bf16 %v4624_v8, %v4608_v4  ;;  %v5561_v22 = vpack.c.bf16 %v4623_v15, %v4607_v5  ;;  %v12491_v36 = vld [vmem:[#allocation87_spill] sm:$0xff]  ;;  %v3960_v4 = vld [vmem:[#allocation2 + $0x48] sm:$0xf] }
 0x363   : > { %v3825_v6 = vpop.permute.xlu0 %3824  ;;  %vm12486_vm14 = vmmov %vm12485_vm13  ;;  %vm12492_vm1 = vnez %v12491_v36  ;;  %v5758_v8 = vmov 0  }
 0x364   : > { %3694 = vst [vmem:[#allocation3 + $0x550] sm:$0xf0] %v3662_v41  ;;  %3695 = vst [vmem:[#allocation3 + $0x558] sm:$0xf0] %v3663_v44  ;;  %v3848_v18 = vsel %vm12485_vm13, %v9557_v45, %v3825_v6  ;;  %v3849_v21 = vsel %vm12486_vm14, %v3825_v6, %v3827_v38  ;;  %5560 = vmatprep.subr.bf16.mxu1 %v5559_v0  ;;  %4164 = vrot.lane.b32.xlu0 %v9922_v47, %s5754_s24  ;;  %v12495_v0 = vld [vmem:[#allocation88_spill] sm:$0xff] }
 0x365   : > { %v3880_v3 = vsel %vm3781_vm7, %v3848_v18, 0.0  ;;  %v3881_v29 = vsel %vm3782_vm9, %v3849_v21, 0.0  ;;  %4166 = vrot.lane.b32.xlu1 %v4100_v56, %s5754_s24  ;;  %vm3783_vm2 = vmand %vm12428_vm5, %vm12399_vm12  ;;  %5562 = vmatpush1.bf16.msra.mxu1 %v5561_v22  ;;  %v10020_v30 = vpop.permute.xlu1 %3830  ;;  %vm12490_vm12 = vnez %v12489_v12  ;;  %vm12493_vm9 = vcmask 121856   ;;  %v12497_v56 = vld [vmem:[#allocation91_spill] sm:$0xff] }
 0x366   : > { %v3912_v45 = vrot.slane %v3880_v3, 4  ;;  %v3913_v7 = vrot.slane %v3881_v29, 4  ;;  %vm3784_vm11 = vmand %vm12433_vm10, %vm12401_vm0  ;;  %5657 = vset.pattern.permute.xlu0 %v5758_v8  ;;  %vm12496_vm14 = vnez %v12495_v0 }
 0x367   : > { %v3829_v50 = vpop.permute.xlu0 %3828  ;;  %vm12487_vm4 = vmmov %vm12485_vm13 }
 0x368   : > { %3944 = vst [vmem:[#allocation3 + $0x5c0] sm:$0xf0] %v3912_v45  ;;  %3945 = vst [vmem:[#allocation3 + $0x5c8] sm:$0xf0] %v3913_v7  ;;  %v3850_v54 = vsel %vm12487_vm4, %v3827_v38, %v3829_v50  ;;  %4020 = vrot.lane.b32.xlu0 %v9646_v55, %s5753_s23 }
 0x369   : > { %vm12488_vm15 = vmmov %vm12487_vm4  ;;  %v3882_v2 = vsel %vm3783_vm2, %v3850_v54, 0.0  ;;  %4022 = vrot.lane.b32.xlu1 %v9907_v13, %s5753_s23  ;;  %v3435_v11 = vpop.permute.xlu1 %3434 }
 0x36a   : > { %v3851_v27 = vsel %vm12488_vm15, %v3829_v50, %v10020_v30  ;;  %vm3389_vm0 = vmand %vm12416_vm6, %vm12490_vm12  ;;  %v3914_v42 = vrot.slane %v3882_v2, 4 }
 0x36b   : > { %v3883_v35 = vsel %vm3784_vm11, %v3851_v27, 0.0  ;;  %vm3390_vm7 = vmand %vm12421_vm8, %vm12492_vm1  ;;  %v3433_v26 = vpop.permute.xlu0 %3432  ;;  %vm12498_vm11 = vnez %v12497_v56 }
 0x36c   : > { %v3915_v53 = vrot.slane %v3883_v35, 4  ;;  %3946 = vst [vmem:[#allocation3 + $0x5d0] sm:$0xf0] %v3914_v42  ;;  %v3456_v5 = vsel %vm12493_vm9, %v9589_v24, %v3433_v26  ;;  %vm12494_vm13 = vmmov %vm12493_vm9  ;;  %4024 = vrot.lane.b32.xlu0 %v9922_v47, %s5753_s23 }
 0x36d   : > { %v3457_v15 = vsel %vm12494_vm13, %v3433_v26, %v3435_v11  ;;  %v3488_v41 = vsel %vm3389_vm0, %v3456_v5, 0.0  ;;  %4026 = vrot.lane.b32.xlu1 %v3960_v4, %s5753_s23  ;;  %vm3391_vm2 = vmand %vm12428_vm5, %vm12496_vm14  ;;  %v10051_v22 = vpop.permute.xlu1 %3438  ;;  %vm12501_vm0 = vcmp.lt.s32.totalorder %v12414_v9, 15  ;;  %vm12507_vm13 = vcmask 916480  }
 0x36e   : > { %3947 = vst [vmem:[#allocation3 + $0x5d8] sm:$0xf0] %v3915_v53  ;;  %v3489_v44 = vsel %vm3390_vm7, %v3457_v15, 0.0  ;;  %3504 = vst [vmem:[#allocation3 + $0x540] sm:$0xf] %v3488_v41  ;;  %vm12504_vm7 = vcmp.lt.s32.totalorder %v12419_v39, 15 }
 0x36f   : > { %3505 = vst [vmem:[#allocation3 + $0x548] sm:$0xf] %v3489_v44  ;;  %vm3392_vm4 = vmand %vm12433_vm10, %vm12498_vm11  ;;  %v3437_v24 = vpop.permute.xlu0 %3436  ;;  %v4654_v50 = vld [vmem:[#allocation3 + $0x5c8] sm:$0xff]  ;;  %v4653_v2 = vld [vmem:[#allocation3 + $0x5c0] sm:$0xff] }
 0x370   : > { %vm12499_vm15 = vmmov %vm12493_vm9  ;;  %4348 = vrot.lane.b32.xlu0 %v9646_v55, %s5755_s25  ;;  %v4288_v55 = vld [vmem:[#allocation2 + $0x48] sm:$0xf] }
 0x371   : > { %v3458_v6 = vsel %vm12499_vm15, %v3435_v11, %v3437_v24  ;;  %vm12500_vm12 = vmmov %vm12493_vm9  ;;  %4350 = vrot.lane.b32.xlu1 %v9907_v13, %s5755_s25  ;;  %v4155_v45 = vpop.permute.xlu1 %4154 }
 0x372   : > { %v3459_v38 = vsel %vm12500_vm12, %v3437_v24, %v10051_v22  ;;  %v3490_v18 = vsel %vm3391_vm2, %v3458_v6, 0.0  ;;  %vm10064_vm1 = vmand %vm12416_vm6, %vm12501_vm0  ;;  %vm12509_vm2 = vcmp.lt.s32.totalorder %v12426_v58, 15 }
 0x373   : > { %v3491_v21 = vsel %vm3392_vm4, %v3459_v38, 0.0  ;;  %3506 = vst [vmem:[#allocation3 + $0x550] sm:$0xf] %v3490_v18  ;;  %vm10072_vm9 = vmand %vm12421_vm8, %vm12504_vm7  ;;  %v4153_v13 = vpop.permute.xlu0 %4152  ;;  %vm12512_vm4 = vcmp.lt.s32.totalorder %v12431_v1, 15  ;;  %v4655_v0 = vld [vmem:[#allocation3 + $0x5d0] sm:$0xff]  ;;  %vm12517_vm7 = vnez %v12382_v40 }
 0x374   : > { %3507 = vst [vmem:[#allocation3 + $0x558] sm:$0xf] %v3491_v21  ;;  %v4176_v9 = vsel %vm12507_vm13, %v9635_v25, %v4153_v13  ;;  %vm12508_vm14 = vmmov %vm12507_vm13  ;;  %4352 = vrot.lane.b32.xlu0 %v9922_v47, %s5755_s25  ;;  %v4725_v47 = vld [vmem:[%s10490_s2] sm:$0xff] }
 0x375   : > { %v4177_v7 = vsel %vm12508_vm14, %v4153_v13, %v4155_v45  ;;  %vm10083_vm11 = vmand %vm12428_vm5, %vm12509_vm2  ;;  %v4208_v54 = vsel %vm10064_vm1, %v4176_v9, 0.0  ;;  %4354 = vrot.lane.b32.xlu1 %v4288_v55, %s5755_s25  ;;  %v4637_v58 = vld [vmem:[#allocation3 + $0x540] sm:$0xff]  ;;  %v10105_v26 = vpop.permute.xlu1 %4158  ;;  %v4656_v8 = vld [vmem:[#allocation3 + $0x5d8] sm:$0xff]  ;;  %vm12520_vm2 = vnez %v12386_v10 }
 0x376   : > { %v4209_v27 = vsel %vm10072_vm9, %v4177_v7, 0.0  ;;  %v4638_v25 = vld [vmem:[#allocation3 + $0x548] sm:$0xff]  ;;  %v4240_v35 = vrot.slane %v4208_v54, 4  ;;  %vm10098_vm15 = vmand %vm12433_vm10, %vm12512_vm4  ;;  %v5533_v36 = vpack.c.bf16 %v4653_v2, %v4637_v58  ;;  %vm12521_vm4 = vnez %v12388_v62  ;;  %v12534_v2 = vld [vmem:[#allocation107_spill] sm:$0xff] }
 0x377   : > { %v4241_v12 = vrot.slane %v4209_v27, 4  ;;  %v5531_v53 = vpack.c.bf16 %v4654_v50, %v4638_v25  ;;  %v4157_v4 = vpop.permute.xlu0 %4156  ;;  %vm12515_vm12 = vmmov %vm12507_vm13  ;;  %vm12518_vm13 = vcmask 924672  }
 0x378   : > { %4272 = vst [vmem:[#allocation3 + $0x640] sm:$0xf0] %v4240_v35  ;;  %v4178_v11 = vsel %vm12515_vm12, %v4155_v45, %v4157_v4  ;;  %vm12516_vm0 = vmmov %vm12515_vm12  ;;  %4728 = vperm.xlu0 %5657, %v4725_v47  }
 0x379   : > { %4273 = vst [vmem:[#allocation3 + $0x648] sm:$0xf0] %v4241_v12  ;;  %v4179_v1 = vsel %vm12516_vm0, %v4157_v4, %v10105_v26  ;;  %5532 = vmatprep.subr.bf16.mxu0 %v5531_v53  ;;  %vm3969_vm1 = vmand %vm12416_vm6, %vm12381_vm3  ;;  %v4210_v5 = vsel %vm10083_vm11, %v4178_v11, 0.0  ;;  %v4015_v21 = vpop.permute.xlu1 %4014  ;;  %vm12524_vm0 = vnez %v12404_v57  ;;  %v12536_v12 = vld [vmem:[#allocation108_spill] sm:$0xff] }
 0x37a   : > { %v4211_v15 = vsel %vm10098_vm15, %v4179_v1, 0.0  ;;  %5534 = vmatpush1.bf16.msra.mxu0 %v5533_v36  ;;  %v4639_v44 = vld [vmem:[#allocation3 + $0x550] sm:$0xff]  ;;  %v4242_v56 = vrot.slane %v4210_v5, 4  ;;  %vm3970_vm9 = vmand %vm12421_vm8, %vm12517_vm7  ;;  %vm12525_vm7 = vnez %v12406_v32 }
 0x37b   : > { %v4640_v41 = vld [vmem:[#allocation3 + $0x558] sm:$0xff]  ;;  %v4243_v24 = vrot.slane %v4211_v15, 4  ;;  %v5565_v38 = vpack.c.bf16 %v4655_v0, %v4639_v44  ;;  %v4013_v18 = vpop.permute.xlu0 %4012  ;;  %vm12519_vm14 = vmmov %vm12518_vm13  ;;  %v4498_v0 = vld [vmem:[#allocation3 + $0xe8] sm:$0xff] }
 0x37c   : > { %v5563_v6 = vpack.c.bf16 %v4656_v8, %v4640_v41  ;;  %4274 = vst [vmem:[#allocation3 + $0x650] sm:$0xf0] %v4242_v56  ;;  %v4036_v3 = vsel %vm12518_vm13, %v9679_v34, %v4013_v18  ;;  %v4037_v29 = vsel %vm12519_vm14, %v4013_v18, %v4015_v21  ;;  %vm3971_vm11 = vmand %vm12428_vm5, %vm12520_vm2  ;;  %vm12528_vm2 = vnez %v12410_v17  ;;  %v12540_v56 = vld [vmem:[#allocation109_spill] sm:$0xff] }
 0x37d   : > { %4275 = vst [vmem:[#allocation3 + $0x658] sm:$0xf0] %v4243_v24  ;;  %v4068_v40 = vsel %vm3969_vm1, %v4036_v3, 0.0  ;;  %v4069_v55 = vsel %vm3970_vm9, %v4037_v29, 0.0  ;;  %vm3972_vm15 = vmand %vm12433_vm10, %vm12521_vm4  ;;  %v10138_v13 = vpop.permute.xlu1 %4018 }
 0x37e   : > { %5564 = vmatprep.subr.bf16.mxu1 %v5563_v6  ;;  %4084 = vst [vmem:[#allocation3 + $0x640] sm:$0xf] %v4068_v40  ;;  %4085 = vst [vmem:[#allocation3 + $0x648] sm:$0xf] %v4069_v55  ;;  %v12542_v6 = vld [vmem:[#allocation110_spill] sm:$0xff] }
 0x37f   : > { %5566 = vmatpush1.bf16.msra.mxu1 %v5565_v38  ;;  %v4017_v34 = vpop.permute.xlu0 %4016  ;;  %vm12522_vm12 = vmmov %vm12518_vm13  ;;  %vm12526_vm13 = vcmask 908288  }
 0x380   : > { %v4038_v48 = vsel %vm12522_vm12, %v4015_v21, %v4017_v34  ;;  %vm12523_vm3 = vmmov %vm12522_vm12 }
 0x381   : > { %v4039_v45 = vsel %vm12523_vm3, %v4017_v34, %v10138_v13  ;;  %v4070_v9 = vsel %vm3971_vm11, %v4038_v48, 0.0  ;;  %vm4297_vm1 = vmand %vm12416_vm6, %vm12524_vm0  ;;  %v4343_v7 = vpop.permute.xlu1 %4342  ;;  %vm12529_vm11 = vnez %v12412_v14 }
 0x382   : > { %v4071_v10 = vsel %vm3972_vm15, %v4039_v45, 0.0  ;;  %4086 = vst [vmem:[#allocation3 + $0x650] sm:$0xf] %v4070_v9  ;;  %vm4298_vm9 = vmand %vm12421_vm8, %vm12525_vm7  ;;  %vm12541_vm7 = vnez %v12540_v56  ;;  %v4482_v9 = vld [vmem:[#allocation3 + $0x68] sm:$0xff] }
 0x383   : > { %4087 = vst [vmem:[#allocation3 + $0x658] sm:$0xf] %v4071_v10  ;;  %v4341_v62 = vpop.permute.xlu0 %4340  ;;  %vm12527_vm14 = vmmov %vm12526_vm13 }
 0x384   : > { %v4364_v39 = vsel %vm12526_vm13, %v9710_v20, %v4341_v62  ;;  %v4365_v50 = vsel %vm12527_vm14, %v4341_v62, %v4343_v7  ;;  %vm4299_vm6 = vmand %vm12428_vm5, %vm12528_vm2 }
 0x385   : > { %v4396_v54 = vsel %vm4297_vm1, %v4364_v39, 0.0  ;;  %v4397_v27 = vsel %vm4298_vm9, %v4365_v50, 0.0  ;;  %vm4300_vm8 = vmand %vm12433_vm10, %vm12529_vm11  ;;  %v10162_v61 = vpop.permute.xlu1 %4346  ;;  %v4670_v58 = vld [vmem:[#allocation3 + $0x648] sm:$0xff]  ;;  %vm12535_vm10 = vnez %v12534_v2  ;;  %v4669_v36 = vld [vmem:[#allocation3 + $0x640] sm:$0xff]  ;;  %vm12543_vm9 = vnez %v12542_v6 }
 0x386   : > { %4412 = vst [vmem:[#allocation3 + $0x6c0] sm:$0xf] %v4396_v54  ;;  %4413 = vst [vmem:[#allocation3 + $0x6c8] sm:$0xf] %v4397_v27  ;;  %v4497_v39 = vld [vmem:[#allocation3 + $0xe0] sm:$0xff]  ;;  %v12546_v50 = vld [vmem:[#allocation90_spill] sm:$0xff] }
 0x387   : > { %v4345_v51 = vpop.permute.xlu0 %4344  ;;  %vm12530_vm4 = vmmov %vm12526_vm13  ;;  %vm12544_vm13 = vcmask 1039360   ;;  %vm12547_vm2 = vnez %v12546_v50  ;;  %v12548_v27 = vld [vmem:[#allocation93_spill] sm:$0xff] }
 0x388   : > { %v4366_v20 = vsel %vm12530_vm4, %v4343_v7, %v4345_v51  ;;  %vm12531_vm15 = vmmov %vm12530_vm4  ;;  %v5575_v7 = vpack.c.bf16 %v4498_v0, %v4482_v9 }
 0x389   : > { %v4367_v57 = vsel %vm12531_vm15, %v4345_v51, %v10162_v61  ;;  %v4398_v32 = vsel %vm4299_vm6, %v4366_v20, 0.0  ;;  %v2631_v25 = vpop.permute.xlu1 %2630  ;;  %vm12532_vm5 = vmmov %vm12523_vm3  ;;  %v4671_v21 = vld [vmem:[#allocation3 + $0x650] sm:$0xff]  ;;  %vm12549_vm6 = vnez %v12548_v27  ;;  %v4530_v20 = vld [vmem:[#allocation3 + $0x1e8] sm:$0xff] }
 0x38a   : > { %v4399_v17 = vsel %vm4300_vm8, %v4367_v57, 0.0  ;;  %4414 = vst [vmem:[#allocation3 + $0x6d0] sm:$0xf] %v4398_v32  ;;  %vm12533_vm12 = vmmov %vm12523_vm3  ;;  %vm12537_vm3 = vnez %v12536_v12  ;;  %v4672_v44 = vld [vmem:[#allocation3 + $0x658] sm:$0xff] }
 0x38b   : > { %4415 = vst [vmem:[#allocation3 + $0x6d8] sm:$0xf] %v4399_v17  ;;  %v2629_v59 = vpop.permute.xlu0 %2628  ;;  %vm12538_vm0 = vmmov %vm12532_vm5  ;;  %v4500_v57 = vld [vmem:[#allocation3 + $0xf8] sm:$0xff] }
 0x38c   : > { %v2648_v14 = vsel %vm12532_vm5, %v9735_v19, %v2629_v59  ;;  %v2649_v33 = vsel %vm12533_vm12, %v2629_v59, %v2631_v25  ;;  %vm12539_vm1 = vmmov %vm12538_vm0  ;;  %vm12556_vm5 = vcmask 908288  }
 0x38d   : > { %v2680_v35 = vsel %vm12535_vm10, %v2648_v14, 0.0  ;;  %v2681_v42 = vsel %vm12537_vm3, %v2649_v33, 0.0  ;;  %v4686_v53 = vld [vmem:[#allocation3 + $0x6c8] sm:$0xff]  ;;  %v4685_v47 = vld [vmem:[#allocation3 + $0x6c0] sm:$0xff]  ;;  %v2635_v15 = vpop.permute.xlu1 %2634  ;;  %vm12545_vm14 = vmmov %vm12544_vm13 }
 0x38e   : > { %v2712_v4 = vrot.slane %v2680_v35, 4  ;;  %v2713_v11 = vrot.slane %v2681_v42, 4  ;;  %v5535_v1 = vpack.c.bf16 %v4686_v53, %v4670_v58  ;;  %v5537_v8 = vpack.c.bf16 %v4685_v47, %v4669_v36  ;;  %v4484_v14 = vld [vmem:[#allocation3 + $0x78] sm:$0xff]  ;;  %vm12550_vm11 = vmmov %vm12544_vm13  ;;  %v10195_v35 = vld [vmem:[%s10489_s1] sm:$0xff] }
 0x38f   : > { %v2633_v5 = vpop.permute.xlu0 %2632  ;;  %vm12551_vm8 = vmmov %vm12550_vm11  ;;  %v5607_v53 = vpack.c.bf16 %v4500_v57, %v4484_v14  ;;  %v4529_v36 = vld [vmem:[#allocation3 + $0x1e0] sm:$0xff]  ;;  %v4499_v47 = vld [vmem:[#allocation3 + $0xf0] sm:$0xff] }
 0x390   : > { %2744 = vst [vmem:[#allocation3 + $0x3e0] sm:$0xf0] %v2712_v4  ;;  %2745 = vst [vmem:[#allocation3 + $0x3e8] sm:$0xf0] %v2713_v11  ;;  %v2650_v19 = vsel %vm12538_vm0, %v2631_v25, %v2633_v5  ;;  %v2651_v41 = vsel %vm12539_vm1, %v2633_v5, %v2635_v15  ;;  %5536 = vmatprep.subr.bf16.mxu0 %v5535_v1  ;;  %v4514_v25 = vld [vmem:[#allocation3 + $0x168] sm:$0xff]  ;;  %v12552_v4 = vld [vmem:[#allocation94_spill] sm:$0xff] }
 0x391   : > { %v2682_v24 = vsel %vm12541_vm7, %v2650_v19, 0.0  ;;  %v2683_v38 = vsel %vm12543_vm9, %v2651_v41, 0.0  ;;  %5538 = vmatpush1.bf16.msra.mxu0 %v5537_v8  ;;  %v4687_v3 = vld [vmem:[#allocation3 + $0x6d0] sm:$0xff]  ;;  %v5579_v42 = vpack.c.bf16 %v4530_v20, %v4514_v25  ;;  %vm12553_vm4 = vnez %v12552_v4  ;;  %v12554_v1 = vld [vmem:[#allocation97_spill] sm:$0xff]  ;;  %v4532_v15 = vld [vmem:[#allocation3 + $0x1f8] sm:$0xff] }
 0x392   : > { %v4688_v18 = vld [vmem:[#allocation3 + $0x6d8] sm:$0xff]  ;;  %v2714_v29 = vrot.slane %v2682_v24, 4  ;;  %v2715_v40 = vrot.slane %v2683_v38, 4  ;;  %5540 = vmatprep.subr.bf16.mxu0 %v9755_v37  ;;  %v5569_v34 = vpack.c.bf16 %v4687_v3, %v4671_v21  ;;  %v2507_v45 = vpop.permute.xlu1 %2506  ;;  %vm12555_vm15 = vnez %v12554_v1  ;;  %v4562_v5 = vld [vmem:[#allocation3 + $0x2e8] sm:$0xff]  ;;  %v4513_v19 = vld [vmem:[#allocation3 + $0x160] sm:$0xff] }
 0x393   : > { %v5567_v55 = vpack.c.bf16 %v4688_v18, %v4672_v44  ;;  %v2505_v48 = vpop.permute.xlu0 %2504  ;;  %v4483_v41 = vld [vmem:[#allocation3 + $0x70] sm:$0xff]  ;;  %v5581_v24 = vpack.c.bf16 %v4529_v36, %v4513_v19  ;;  %v4546_v18 = vld [vmem:[#allocation3 + $0x268] sm:$0xff]  ;;  %v4516_v21 = vld [vmem:[#allocation3 + $0x178] sm:$0xff] }
 0x394   : > { %2746 = vst [vmem:[#allocation3 + $0x3f0] sm:$0xf0] %v2714_v29  ;;  %2747 = vst [vmem:[#allocation3 + $0x3f8] sm:$0xf0] %v2715_v40  ;;  %v2524_v10 = vsel %vm12544_vm13, %v9768_v49, %v2505_v48  ;;  %v2525_v62 = vsel %vm12545_vm14, %v2505_v48, %v2507_v45  ;;  %v4481_v49 = vld [vmem:[#allocation3 + $0x60] sm:$0xff]  ;;  %v5609_v38 = vpack.c.bf16 %v4499_v47, %v4483_v41  ;;  %v4531_v48 = vld [vmem:[#allocation3 + $0x1f0] sm:$0xff] }
 0x395   : > { %5568 = vmatprep.subr.bf16.mxu1 %v5567_v55  ;;  %v2556_v54 = vsel %vm12547_vm2, %v2524_v10, 0.0  ;;  %v2557_v51 = vsel %vm12549_vm6, %v2525_v62, 0.0  ;;  %5542 = vmatpush1.bf16.msra.mxu0 %v9755_v37  ;;  %v5577_v59 = vpack.c.bf16 %v4497_v39, %v4481_v49  ;;  %v10203_v3 = vld [vmem:[#allocation3 + $0x700] sm:$0xff]  ;;  %vm12557_vm12 = vmmov %vm12556_vm5  ;;  %v5583_v40 = vpack.c.bf16 %v4562_v5, %v4546_v18  ;;  %v4564_v39 = vld [vmem:[#allocation3 + $0x2f8] sm:$0xff] }
 0x396   : > { %5570 = vmatpush1.bf16.msra.mxu1 %v5569_v34  ;;  %2572 = vst [vmem:[#allocation3 + $0x3e0] sm:$0xf] %v2556_v54  ;;  %2573 = vst [vmem:[#allocation3 + $0x3e8] sm:$0xf] %v2557_v51  ;;  %5576 = vmatprep.subr.bf16.mxu0 %v5575_v7  ;;  %v2511_v17 = vpop.permute.xlu1 %2510  ;;  %v5611_v55 = vpack.c.bf16 %v4532_v15, %v4516_v21  ;;  %v4561_v34 = vld [vmem:[#allocation3 + $0x2e0] sm:$0xff]  ;;  %v4515_v20 = vld [vmem:[#allocation3 + $0x170] sm:$0xff] }
 0x397   : > { %5572 = vmatprep.subr.bf16.mxu1 %v9755_v37  ;;  %v2509_v32 = vpop.permute.xlu0 %2508  ;;  %v12560_v10 = vld [vmem:[#allocation112_spill] sm:$0xff]  ;;  %v4548_v25 = vld [vmem:[#allocation3 + $0x278] sm:$0xff]  ;;  %vm12562_vm13 = vmmov %vm12556_vm5 }
 0x398   : > { %v2526_v33 = vsel %vm12550_vm11, %v2507_v45, %v2509_v32  ;;  %v2527_v58 = vsel %vm12551_vm8, %v2509_v32, %v2511_v17  ;;  %5080 = vmatmul.mubr.f32.vlgmr.msra.gmra.mrb[4].mxu0 %v10195_v35  ;;  %v12558_v45 = vld [vmem:[#allocation102_spill] sm:$0xff]  ;;  %vm12561_vm1 = vnez %v12560_v10  ;;  %v4545_v51 = vld [vmem:[#allocation3 + $0x260] sm:$0xff]  ;;  %v5613_v17 = vpack.c.bf16 %v4531_v48, %v4515_v20  ;;  %vm12563_vm14 = vmmov %vm12556_vm5 }
 0x399   : > { %v2558_v11 = vsel %vm12553_vm4, %v2526_v33, 0.0  ;;  %v2559_v8 = vsel %vm12555_vm15, %v2527_v58, 0.0  ;;  %5578 = vmatpush1.bf16.msra.mxu0 %v5577_v59  ;;  %5221 = vmatprep.mubr.f32.mxu0 %v10203_v3  ;;  %vm12559_vm0 = vnez %v12558_v45  ;;  %v5585_v32 = vpack.c.bf16 %v4561_v34, %v4545_v51  ;;  %v4578_v59 = vld [vmem:[#allocation3 + $0x368] sm:$0xff]  ;;  %v4563_v36 = vld [vmem:[#allocation3 + $0x2f0] sm:$0xff]  ;;  %v12568_v15 = vld [vmem:[#allocation52_spill] sm:$0xff] }
 0x39a   : > { %5574 = vmatpush1.bf16.msra.mxu1 %v9755_v37  ;;  %2574 = vst [vmem:[#allocation3 + $0x3f0] sm:$0xf] %v2558_v11  ;;  %2575 = vst [vmem:[#allocation3 + $0x3f8] sm:$0xf] %v2559_v8  ;;  %5580 = vmatprep.subr.bf16.mxu0 %v5579_v42  ;;  %v2927_v0 = vpop.permute.xlu1 %2926  ;;  %v5615_v42 = vpack.c.bf16 %v4564_v39, %v4548_v25  ;;  %v12564_v47 = vld [vmem:[#allocation113_spill] sm:$0xff]  ;;  %v12566_v8 = vld [vmem:[#allocation114_spill] sm:$0xff] }
 0x39b   : > { %5608 = vmatprep.subr.bf16.mxu1 %v5607_v53  ;;  %v2925_v44 = vpop.permute.xlu0 %2924  ;;  %vm12565_vm11 = vnez %v12564_v47  ;;  %vm12567_vm8 = vnez %v12566_v8  ;;  %v4577_v18 = vld [vmem:[#allocation3 + $0x360] sm:$0xff]  ;;  %v4547_v21 = vld [vmem:[#allocation3 + $0x270] sm:$0xff]  ;;  %v4580_v34 = vld [vmem:[#allocation3 + $0x378] sm:$0xff] }
 0x39c   : > { %v2944_v37 = vsel %vm12556_vm5, %v9796_v52, %v2925_v44  ;;  %v2945_v29 = vsel %vm12557_vm12, %v2925_v44, %v2927_v0  ;;  %vm12569_vm5 = vcmp.ge.s32.totalorder %v12568_v15, 1  ;;  %vm12570_vm12 = vnez %v12439_v60 }
 0x39d   : > { %5151 = vmatmul.mubr.f32.vlgmr.msra.gmra.mrb[4].mxu1 %v10195_v35  ;;  %v2976_v9 = vsel %vm12559_vm0, %v2944_v37, 0.0  ;;  %v2977_v62 = vsel %vm12561_vm1, %v2945_v29, 0.0  ;;  %5582 = vmatpush1.bf16.msra.mxu0 %v5581_v24  ;;  %v4594_v7 = vld [vmem:[#allocation3 + $0x3e8] sm:$0xff]  ;;  %v4593_v53 = vld [vmem:[#allocation3 + $0x3e0] sm:$0xff]  ;;  %vm10225_vm1 = vmand %vm12570_vm12, %vm12569_vm5  ;;  %vm12578_vm5 = vcmask 130048   ;;  %vm12582_vm0 = vnez %v12451_v23 }
 0x39e   : > { %5610 = vmatpush1.bf16.msra.mxu1 %v5609_v38  ;;  %v3008_v54 = vrot.slane %v2976_v9, 4  ;;  %v3009_v52 = vrot.slane %v2977_v62, 4  ;;  %5584 = vmatprep.subr.bf16.mxu0 %v5583_v40  ;;  %v2931_v49 = vpop.permute.xlu1 %2930  ;;  %v5587_v58 = vpack.c.bf16 %v4594_v7, %v4578_v59  ;;  %v12573_v24 = vld [vmem:[#allocation59_spill] sm:$0xff]  ;;  %v5589_v40 = vpack.c.bf16 %v4593_v53, %v4577_v18 }
 0x39f   : > { %5612 = vmatprep.subr.bf16.mxu1 %v5611_v55  ;;  %v2929_v57 = vpop.permute.xlu0 %2928  ;;  %5292 = vmatprep.mubr.f32.mxu1 %v10203_v3  ;;  %v5617_v55 = vpack.c.bf16 %v4563_v36, %v4547_v21 }
 0x3a0   : > { %3040 = vst [vmem:[#allocation3 + $0x460] sm:$0xf0] %v3008_v54  ;;  %3041 = vst [vmem:[#allocation3 + $0x468] sm:$0xf0] %v3009_v52  ;;  %v2946_v14 = vsel %vm12562_vm13, %v2927_v0, %v2929_v57  ;;  %v2947_v33 = vsel %vm12563_vm14, %v2929_v57, %v2931_v49  ;;  %vm12574_vm13 = vcmp.ge.s32.totalorder %v12573_v24, 1  ;;  %vm12575_vm14 = vnez %v12445_v31  ;;  %v12580_v52 = vld [vmem:[#allocation60_spill] sm:$0xff] }
 0x3a1   : > { %v2978_v11 = vsel %vm12565_vm11, %v2946_v14, 0.0  ;;  %v2979_v5 = vsel %vm12567_vm8, %v2947_v33, 0.0  ;;  %5586 = vmatpush1.bf16.msra.mxu0 %v5585_v32  ;;  %v4596_v41 = vld [vmem:[#allocation3 + $0x3f8] sm:$0xff]  ;;  %vm10233_vm8 = vmand %vm12575_vm14, %vm12574_vm13  ;;  %v4595_v7 = vld [vmem:[#allocation3 + $0x3f0] sm:$0xff]  ;;  %vm12581_vm13 = vcmp.ge.s32.totalorder %v12580_v52, 1 }
 0x3a2   : > { %5614 = vmatpush1.bf16.msra.mxu1 %v5613_v17  ;;  %v3010_v44 = vrot.slane %v2978_v11, 4  ;;  %v3011_v0 = vrot.slane %v2979_v5, 4  ;;  %5588 = vmatprep.subr.bf16.mxu0 %v5587_v58  ;;  %v3255_v29 = vpop.permute.xlu1 %3254  ;;  %vm12579_vm11 = vmmov %vm12578_vm5  ;;  %v5619_v62 = vpack.c.bf16 %v4596_v41, %v4580_v34  ;;  %v12585_v57 = vld [vmem:[#allocation65_spill] sm:$0xff]  ;;  %v4579_v49 = vld [vmem:[#allocation3 + $0x370] sm:$0xff] }
 0x3a3   : > { %5616 = vmatprep.subr.bf16.mxu1 %v5615_v42  ;;  %v3253_v37 = vpop.permute.xlu0 %3252  ;;  %vm10248_vm9 = vmand %vm12582_vm0, %vm12581_vm13  ;;  %v5621_v59 = vpack.c.bf16 %v4595_v7, %v4579_v49  ;;  %v12606_v49 = vld [vmem:[#allocation69_spill] sm:$0xff] }
 0x3a4   : > { %3042 = vst [vmem:[#allocation3 + $0x470] sm:$0xf0] %v3010_v44  ;;  %3043 = vst [vmem:[#allocation3 + $0x478] sm:$0xf0] %v3011_v0  ;;  %v3272_v48 = vsel %vm12578_vm5, %v9852_v16, %v3253_v37  ;;  %v3273_v9 = vsel %vm12579_vm11, %v3253_v37, %v3255_v29  ;;  %vm12586_vm11 = vcmp.ge.s32.totalorder %v12585_v57, 1  ;;  %vm12607_vm10 = vnez %v12606_v49 }
 0x3a5   : > { %v3304_v39 = vsel %vm10225_vm1, %v3272_v48, 0.0  ;;  %v3305_v54 = vsel %vm10233_vm8, %v3273_v9, 0.0  ;;  %5590 = vmatpush1.bf16.msra.mxu0 %v5589_v40  ;;  %vm12587_vm1 = vnez %v12455_v28  ;;  %vm12588_vm8 = vcmask 130048   ;;  %v12598_v48 = vld [vmem:[#allocation62_spill] sm:$0xff] }
 0x3a6   : > { %5618 = vmatpush1.bf16.msra.mxu1 %v5617_v55  ;;  %v3336_v16 = vrot.slane %v3304_v39, 4  ;;  %v3337_v20 = vrot.slane %v3305_v54, 4  ;;  %vm3208_vm5 = vmand %vm12587_vm1, %vm12586_vm11  ;;  %v3259_v17 = vpop.permute.xlu1 %3258  ;;  %vm12590_vm11 = vcmask 916480   ;;  %v12600_v9 = vld [vmem:[#allocation66_spill] sm:$0xff]  ;;  %v5603_v28 = vpack.c.bf16 %v10203_v3, %v10203_v3 }
 0x3a7   : > { %5620 = vmatprep.subr.bf16.mxu1 %v5619_v62  ;;  %v3257_v32 = vpop.permute.xlu0 %3256  ;;  %vm12589_vm13 = vmmov %vm12588_vm8  ;;  %vm12601_vm3 = vnez %v12600_v9 }
 0x3a8   : > { %3368 = vst [vmem:[#allocation3 + $0x4e0] sm:$0xf0] %v3336_v16  ;;  %3369 = vst [vmem:[#allocation3 + $0x4e8] sm:$0xf0] %v3337_v20  ;;  %v3274_v25 = vsel %vm12588_vm8, %v3255_v29, %v3257_v32  ;;  %v3275_v14 = vsel %vm12589_vm13, %v3257_v32, %v3259_v17  ;;  %vm12592_vm8 = vcmp.lt.s32.totalorder %v12568_v15, 15  ;;  %vm12593_vm13 = vcmp.lt.s32.totalorder %v12573_v24, 15 }
 0x3a9   : > { %v3306_v33 = vsel %vm10248_vm9, %v3274_v25, 0.0  ;;  %v3307_v58 = vsel %vm3208_vm5, %v3275_v14, 0.0  ;;  %vm12591_vm7 = vmmov %vm12590_vm11  ;;  %v12604_v20 = vld [vmem:[#allocation67_spill] sm:$0xff] }
 0x3aa   : > { %5622 = vmatpush1.bf16.msra.mxu1 %v5621_v59  ;;  %v3338_v42 = vrot.slane %v3306_v33, 4  ;;  %v3339_v53 = vrot.slane %v3307_v58, 4  ;;  %v2803_v11 = vpop.permute.xlu1 %2802  ;;  %vm12594_vm9 = vmmov %vm12591_vm7  ;;  %v12609_v33 = vld [vmem:[#allocation58_spill] sm:$0xff]  ;;  %v12611_v58 = vld [vmem:[#allocation63_spill] sm:$0xff] }
 0x3ab   : > { %v2801_v36 = vpop.permute.xlu0 %2800  ;;  %v10267_v0 = vpop.f32.mrb[0].mxu1  ;;  %vm12595_vm5 = vmmov %vm12591_vm7 }
 0x3ac   : > { %3370 = vst [vmem:[#allocation3 + $0x4f0] sm:$0xf0] %v3338_v42  ;;  %3371 = vst [vmem:[#allocation3 + $0x4f8] sm:$0xf0] %v3339_v53  ;;  %v2820_v5 = vsel %vm12590_vm11, %v9909_v43, %v2801_v36  ;;  %v2821_v19 = vsel %vm12591_vm7, %v2801_v36, %v2803_v11  ;;  %v10271_v18 = vpop.f32.mrb[1].mxu1  ;;  %vm12596_vm7 = vcmp.lt.s32.totalorder %v12580_v52, 15 }
 0x3ad   : > { %v2852_v41 = vsel %vm12592_vm8, %v2820_v5, 0.0  ;;  %v2853_v44 = vsel %vm12593_vm13, %v2821_v19, 0.0  ;;  %vm12597_vm11 = vcmp.lt.s32.totalorder %v12585_v57, 15  ;;  %vm12599_vm8 = vnez %v12598_v48  ;;  %v12615_v5 = vld [vmem:[#allocation64_spill] sm:$0xff] }
 0x3ae   : > { %2868 = vst [vmem:[#allocation3 + $0x460] sm:$0xf] %v2852_v41  ;;  %2869 = vst [vmem:[#allocation3 + $0x468] sm:$0xf] %v2853_v44  ;;  %v10269_v38 = vpop.f32.mrb[0].mxu0  ;;  %v2807_v37 = vpop.permute.xlu1 %2806 }
 0x3af   : > { %v2805_v21 = vpop.permute.xlu0 %2804  ;;  %v10275_v40 = vpop.f32.mrb[1].mxu0  ;;  %vm3065_vm13 = vmand %vm12570_vm12, %vm12599_vm8 }
 0x3b0   : > { %v2822_v43 = vsel %vm12594_vm9, %v2803_v11, %v2805_v21  ;;  %v2823_v29 = vsel %vm12595_vm5, %v2805_v21, %v2807_v37  ;;  %vm3066_vm9 = vmand %vm12575_vm14, %vm12601_vm3  ;;  %vm12602_vm5 = vcmask 138240  }
 0x3b1   : > { %v2854_v55 = vsel %vm12596_vm7, %v2822_v43, 0.0  ;;  %v2855_v34 = vsel %vm12597_vm11, %v2823_v29, 0.0  ;;  %vm12603_vm7 = vmmov %vm12602_vm5  ;;  %vm12605_vm11 = vnez %v12604_v20 }
 0x3b2   : > { %2870 = vst [vmem:[#allocation3 + $0x470] sm:$0xf] %v2854_v55  ;;  %2871 = vst [vmem:[#allocation3 + $0x478] sm:$0xf] %v2855_v34  ;;  %v3115_v7 = vpop.permute.xlu1 %3114  ;;  %v12617_v34 = vld [vmem:[#allocation68_spill] sm:$0xff] }
 0x3b3   : > { %v3113_v62 = vpop.permute.xlu0 %3112  ;;  %vm3067_vm8 = vmand %vm12582_vm0, %vm12605_vm11 }
 0x3b4   : > { %v3132_v39 = vsel %vm12602_vm5, %v9948_v63, %v3113_v62  ;;  %v3133_v54 = vsel %vm12603_vm7, %v3113_v62, %v3115_v7  ;;  %vm3068_vm3 = vmand %vm12587_vm1, %vm12607_vm10  ;;  %vm12612_vm7 = vnez %v12611_v58 }
 0x3b5   : > { %v3164_v51 = vsel %vm3065_vm13, %v3132_v39, 0.0  ;;  %v3165_v16 = vsel %vm3066_vm9, %v3133_v54, 0.0  ;;  %vm12608_vm15 = vmmov %vm12602_vm5  ;;  %vm12610_vm13 = vnez %v12609_v33  ;;  %v4610_v19 = vld [vmem:[#allocation3 + $0x468] sm:$0xff]  ;;  %v4609_v37 = vld [vmem:[#allocation3 + $0x460] sm:$0xff] }
 0x3b6   : > { %3180 = vst [vmem:[#allocation3 + $0x4e0] sm:$0xf] %v3164_v51  ;;  %3181 = vst [vmem:[#allocation3 + $0x4e8] sm:$0xf] %v3165_v16 }
 0x3b7   : > { %v3117_v32 = vpop.permute.xlu0 %3116  ;;  %v3119_v17 = vpop.permute.xlu1 %3118  ;;  %vm3533_vm9 = vmand %vm12570_vm12, %vm12610_vm13 }
 0x3b8   : > { %v3134_v63 = vsel %vm12608_vm15, %v3115_v7, %v3117_v32  ;;  %v3135_v59 = vsel %vm12602_vm5, %v3117_v32, %v3119_v17  ;;  %vm3534_vm10 = vmand %vm12575_vm14, %vm12612_vm7  ;;  %vm12613_vm15 = vcmask 7168   ;;  %vm12618_vm5 = vnez %v12617_v34 }
 0x3b9   : > { %v3166_v25 = vsel %vm3067_vm8, %v3134_v63, 0.0  ;;  %v3167_v14 = vsel %vm3068_vm3, %v3135_v59, 0.0  ;;  %vm12614_vm11 = vmmov %vm12613_vm15  ;;  %vm12616_vm8 = vnez %v12615_v5  ;;  %v4612_v54 = vld [vmem:[#allocation3 + $0x478] sm:$0xff]  ;;  %v4611_v49 = vld [vmem:[#allocation3 + $0x470] sm:$0xff] }
 0x3ba   : > { %3182 = vst [vmem:[#allocation3 + $0x4f0] sm:$0xf] %v3166_v25  ;;  %3183 = vst [vmem:[#allocation3 + $0x4f8] sm:$0xf] %v3167_v14 }
 0x3bb   : > { %v3581_v42 = vpop.permute.xlu0 %3580  ;;  %v3583_v53 = vpop.permute.xlu1 %3582  ;;  %vm3535_vm3 = vmand %vm12582_vm0, %vm12616_vm8 }
 0x3bc   : > { %v3600_v36 = vsel %vm12613_vm15, %v9979_v46, %v3581_v42  ;;  %v3601_v11 = vsel %vm12614_vm11, %v3581_v42, %v3583_v53  ;;  %vm3536_vm13 = vmand %vm12587_vm1, %vm12618_vm5 }
 0x3bd   : > { %v3632_v41 = vsel %vm3533_vm9, %v3600_v36, 0.0  ;;  %v3633_v44 = vsel %vm3534_vm10, %v3601_v11, 0.0  ;;  %v4626_v21 = vld [vmem:[#allocation3 + $0x4e8] sm:$0xff]  ;;  %v4625_v43 = vld [vmem:[#allocation3 + $0x4e0] sm:$0xff]  ;;  %vm12619_vm7 = vmmov %vm12614_vm11  ;;  %vm12621_vm11 = vcmask 1039360  }
 0x3be   : > { %v3664_v29 = vrot.slane %v3632_v41, 4  ;;  %v3665_v55 = vrot.slane %v3633_v44, 4  ;;  %v5591_v46 = vpack.c.bf16 %v4626_v21, %v4610_v19  ;;  %v5593_v48 = vpack.c.bf16 %v4625_v43, %v4609_v37  ;;  %vm12620_vm9 = vmmov %vm12619_vm7  ;;  %v12626_v44 = vld [vmem:[#allocation92_spill] sm:$0xff]  ;;  %v12628_v37 = vld [vmem:[#allocation95_spill] sm:$0xff] }
 0x3bf   : > { %v3585_v9 = vpop.permute.xlu0 %3584  ;;  %v3587_v62 = vpop.permute.xlu1 %3586  ;;  %vm3785_vm10 = vmand %vm12570_vm12, %vm12547_vm2 }
 0x3c0   : > { %3696 = vst [vmem:[#allocation3 + $0x560] sm:$0xf0] %v3664_v29  ;;  %3697 = vst [vmem:[#allocation3 + $0x568] sm:$0xf0] %v3665_v55  ;;  %v3602_v7 = vsel %vm12619_vm7, %v3583_v53, %v3585_v9  ;;  %v3603_v39 = vsel %vm12620_vm9, %v3585_v9, %v3587_v62  ;;  %5592 = vmatprep.subr.bf16.mxu0 %v5591_v46  ;;  %vm12627_vm7 = vnez %v12626_v44  ;;  %vm12629_vm9 = vnez %v12628_v37  ;;  %v12632_v9 = vld [vmem:[#allocation96_spill] sm:$0xff]  ;;  %v12634_v62 = vld [vmem:[#allocation98_spill] sm:$0xff] }
 0x3c1   : > { %v3634_v51 = vsel %vm3535_vm3, %v3602_v7, 0.0  ;;  %v3635_v16 = vsel %vm3536_vm13, %v3603_v39, 0.0  ;;  %5594 = vmatpush1.bf16.msra.mxu0 %v5593_v48  ;;  %v4628_v20 = vld [vmem:[#allocation3 + $0x4f8] sm:$0xff]  ;;  %v4627_v32 = vld [vmem:[#allocation3 + $0x4f0] sm:$0xff]  ;;  %vm3786_vm15 = vmand %vm12575_vm14, %vm12549_vm6  ;;  %vm12623_vm3 = vnez %v12554_v1 }
 0x3c2   : > { %v3666_v17 = vrot.slane %v3634_v51, 4  ;;  %v3667_v63 = vrot.slane %v3635_v16, 4  ;;  %v5623_v59 = vpack.c.bf16 %v4628_v20, %v4612_v54  ;;  %v5625_v25 = vpack.c.bf16 %v4627_v32, %v4611_v49  ;;  %vm12622_vm8 = vmmov %vm12621_vm11 }
 0x3c3   : > { %v3833_v14 = vpop.permute.xlu0 %3832  ;;  %v3835_v33 = vpop.permute.xlu1 %3834  ;;  %vm3787_vm6 = vmand %vm12582_vm0, %vm12553_vm4 }
 0x3c4   : > { %3698 = vst [vmem:[#allocation3 + $0x570] sm:$0xf0] %v3666_v17  ;;  %3699 = vst [vmem:[#allocation3 + $0x578] sm:$0xf0] %v3667_v63  ;;  %v3852_v58 = vsel %vm12621_vm11, %v10020_v30, %v3833_v14  ;;  %v3853_v42 = vsel %vm12622_vm8, %v3833_v14, %v3835_v33  ;;  %5624 = vmatprep.subr.bf16.mxu1 %v5623_v59 }
 0x3c5   : > { %v3884_v27 = vsel %vm3785_vm10, %v3852_v58, 0.0  ;;  %v3885_v53 = vsel %vm3786_vm15, %v3853_v42, 0.0  ;;  %5626 = vmatpush1.bf16.msra.mxu1 %v5625_v25  ;;  %vm3788_vm5 = vmand %vm12587_vm1, %vm12623_vm3  ;;  %vm12630_vm15 = vcmask 121856   ;;  %vm12635_vm3 = vnez %v12634_v62 }
 0x3c6   : > { %v3916_v36 = vrot.slane %v3884_v27, 4  ;;  %v3917_v11 = vrot.slane %v3885_v53, 4  ;;  %vm12624_vm2 = vmmov %vm12622_vm8  ;;  %vm12633_vm8 = vnez %v12632_v9 }
 0x3c7   : > { %v3837_v30 = vpop.permute.xlu0 %3836  ;;  %v3839_v5 = vpop.permute.xlu1 %3838  ;;  %vm12625_vm13 = vmmov %vm12624_vm2 }
 0x3c8   : > { %3948 = vst [vmem:[#allocation3 + $0x5e0] sm:$0xf0] %v3916_v36  ;;  %3949 = vst [vmem:[#allocation3 + $0x5e8] sm:$0xf0] %v3917_v11  ;;  %v3854_v50 = vsel %vm12624_vm2, %v3835_v33, %v3837_v30  ;;  %v3855_v19 = vsel %vm12625_vm13, %v3837_v30, %v3839_v5 }
 0x3c9   : > { %v3886_v41 = vsel %vm3787_vm6, %v3854_v50, 0.0  ;;  %v3887_v4 = vsel %vm3788_vm5, %v3855_v19, 0.0  ;;  %vm3393_vm4 = vmand %vm12570_vm12, %vm12627_vm7  ;;  %vm12638_vm7 = vcmp.lt.s32.totalorder %v12568_v15, 15 }
 0x3ca   : > { %v3918_v21 = vrot.slane %v3886_v41, 4  ;;  %v3919_v1 = vrot.slane %v3887_v4, 4  ;;  %vm3394_vm10 = vmand %vm12575_vm14, %vm12629_vm9  ;;  %vm12639_vm9 = vcmp.lt.s32.totalorder %v12573_v24, 15 }
 0x3cb   : > { %v3441_v43 = vpop.permute.xlu0 %3440  ;;  %v3443_v29 = vpop.permute.xlu1 %3442  ;;  %vm12631_vm11 = vmmov %vm12630_vm15 }
 0x3cc   : > { %3950 = vst [vmem:[#allocation3 + $0x5f0] sm:$0xf0] %v3918_v21  ;;  %3951 = vst [vmem:[#allocation3 + $0x5f8] sm:$0xf0] %v3919_v1  ;;  %v3460_v55 = vsel %vm12630_vm15, %v10051_v22, %v3441_v43  ;;  %v3461_v34 = vsel %vm12631_vm11, %v3441_v43, %v3443_v29  ;;  %vm12640_vm15 = vcmask 916480  }
 0x3cd   : > { %v3492_v46 = vsel %vm3393_vm4, %v3460_v55, 0.0  ;;  %v3493_v48 = vsel %vm3394_vm10, %v3461_v34, 0.0  ;;  %vm3395_vm6 = vmand %vm12582_vm0, %vm12633_vm8  ;;  %vm12642_vm8 = vcmp.lt.s32.totalorder %v12580_v52, 15 }
 0x3ce   : > { %3508 = vst [vmem:[#allocation3 + $0x560] sm:$0xf] %v3492_v46  ;;  %3509 = vst [vmem:[#allocation3 + $0x568] sm:$0xf] %v3493_v48 }
 0x3cf   : > { %vm3396_vm5 = vmand %vm12587_vm1, %vm12635_vm3  ;;  %v3445_v7 = vpop.permute.xlu0 %3444  ;;  %v3447_v39 = vpop.permute.xlu1 %3446  ;;  %v4658_v63 = vld [vmem:[#allocation3 + $0x5e8] sm:$0xff]  ;;  %v4657_v33 = vld [vmem:[#allocation3 + $0x5e0] sm:$0xff]  ;;  %vm12645_vm3 = vcmp.lt.s32.totalorder %v12585_v57, 15 }
 0x3d0   : > { %vm12636_vm2 = vmmov %vm12631_vm11 }
 0x3d1   : > { %v3462_v22 = vsel %vm12636_vm2, %v3443_v29, %v3445_v7  ;;  %vm12637_vm13 = vmmov %vm12636_vm2 }
 0x3d2   : > { %v3463_v54 = vsel %vm12637_vm13, %v3445_v7, %v3447_v39  ;;  %v3494_v51 = vsel %vm3395_vm6, %v3462_v22, 0.0  ;;  %vm4113_vm4 = vmand %vm12570_vm12, %vm12638_vm7  ;;  %vm12650_vm7 = vnez %v12534_v2 }
 0x3d3   : > { %v3495_v16 = vsel %vm3396_vm5, %v3463_v54, 0.0  ;;  %3510 = vst [vmem:[#allocation3 + $0x570] sm:$0xf] %v3494_v51  ;;  %vm4114_vm10 = vmand %vm12575_vm14, %vm12639_vm9  ;;  %v4161_v20 = vpop.permute.xlu0 %4160  ;;  %v4163_v49 = vpop.permute.xlu1 %4162  ;;  %v4660_v57 = vld [vmem:[#allocation3 + $0x5f8] sm:$0xff]  ;;  %v4659_v4 = vld [vmem:[#allocation3 + $0x5f0] sm:$0xff]  ;;  %vm12651_vm9 = vnez %v12536_v12 }
 0x3d4   : > { %3511 = vst [vmem:[#allocation3 + $0x578] sm:$0xf] %v3495_v16  ;;  %v4180_v32 = vsel %vm12640_vm15, %v10105_v26, %v4161_v20  ;;  %vm12641_vm11 = vmmov %vm12640_vm15  ;;  %vm12652_vm15 = vcmask 924672  }
 0x3d5   : > { %v4181_v17 = vsel %vm12641_vm11, %v4161_v20, %v4163_v49  ;;  %vm10390_vm6 = vmand %vm12582_vm0, %vm12642_vm8  ;;  %v4212_v24 = vsel %vm4113_vm4, %v4180_v32, 0.0  ;;  %v4642_v25 = vld [vmem:[#allocation3 + $0x568] sm:$0xff]  ;;  %v4641_v14 = vld [vmem:[#allocation3 + $0x560] sm:$0xff]  ;;  %vm12654_vm8 = vnez %v12540_v56 }
 0x3d6   : > { %v4213_v59 = vsel %vm4114_vm10, %v4181_v17, 0.0  ;;  %v4244_v58 = vrot.slane %v4212_v24, 4  ;;  %vm10398_vm5 = vmand %vm12587_vm1, %vm12645_vm3  ;;  %v5595_v52 = vpack.c.bf16 %v4658_v63, %v4642_v25  ;;  %v5597_v27 = vpack.c.bf16 %v4657_v33, %v4641_v14 }
 0x3d7   : > { %v4245_v42 = vrot.slane %v4213_v59, 4  ;;  %v4165_v53 = vpop.permute.xlu0 %4164  ;;  %v4167_v36 = vpop.permute.xlu1 %4166  ;;  %vm12648_vm2 = vmmov %vm12641_vm11  ;;  %vm12655_vm3 = vnez %v12542_v6 }
 0x3d8   : > { %4276 = vst [vmem:[#allocation3 + $0x660] sm:$0xf0] %v4244_v58  ;;  %v4182_v11 = vsel %vm12648_vm2, %v4163_v49, %v4165_v53  ;;  %vm12649_vm13 = vmmov %vm12648_vm2  ;;  %5596 = vmatprep.subr.bf16.mxu0 %v5595_v52 }
 0x3d9   : > { %4277 = vst [vmem:[#allocation3 + $0x668] sm:$0xf0] %v4245_v42  ;;  %v4183_v30 = vsel %vm12649_vm13, %v4165_v53, %v4167_v36  ;;  %vm3973_vm4 = vmand %vm12570_vm12, %vm12650_vm7  ;;  %v4214_v5 = vsel %vm10390_vm6, %v4182_v11, 0.0  ;;  %5598 = vmatpush1.bf16.msra.mxu0 %v5597_v27  ;;  %vm12658_vm7 = vnez %v12558_v45 }
 0x3da   : > { %v4215_v50 = vsel %vm10398_vm5, %v4183_v30, 0.0  ;;  %v4643_v41 = vld [vmem:[#allocation3 + $0x570] sm:$0xff]  ;;  %v4246_v44 = vrot.slane %v4214_v5, 4  ;;  %vm3974_vm10 = vmand %vm12575_vm14, %vm12651_vm9  ;;  %vm12659_vm9 = vnez %v12560_v10 }
 0x3db   : > { %v4644_v19 = vld [vmem:[#allocation3 + $0x578] sm:$0xff]  ;;  %v4247_v21 = vrot.slane %v4215_v50, 4  ;;  %v5629_v37 = vpack.c.bf16 %v4659_v4, %v4643_v41  ;;  %v4021_v43 = vpop.permute.xlu0 %4020  ;;  %v4023_v29 = vpop.permute.xlu1 %4022  ;;  %vm12653_vm11 = vmmov %vm12652_vm15 }
 0x3dc   : > { %v5627_v1 = vpack.c.bf16 %v4660_v57, %v4644_v19  ;;  %4278 = vst [vmem:[#allocation3 + $0x670] sm:$0xf0] %v4246_v44  ;;  %v4040_v55 = vsel %vm12652_vm15, %v10138_v13, %v4021_v43  ;;  %v4041_v34 = vsel %vm12653_vm11, %v4021_v43, %v4023_v29  ;;  %vm3975_vm6 = vmand %vm12582_vm0, %vm12654_vm8  ;;  %vm12660_vm15 = vcmask 908288  }
 0x3dd   : > { %4279 = vst [vmem:[#allocation3 + $0x678] sm:$0xf0] %v4247_v21  ;;  %v4072_v12 = vsel %vm3973_vm4, %v4040_v55, 0.0  ;;  %v4073_v46 = vsel %vm3974_vm10, %v4041_v34, 0.0  ;;  %vm3976_vm5 = vmand %vm12587_vm1, %vm12655_vm3  ;;  %vm12662_vm8 = vnez %v12564_v47 }
 0x3de   : > { %5628 = vmatprep.subr.bf16.mxu1 %v5627_v1  ;;  %4088 = vst [vmem:[#allocation3 + $0x660] sm:$0xf] %v4072_v12  ;;  %4089 = vst [vmem:[#allocation3 + $0x668] sm:$0xf] %v4073_v46 }
 0x3df   : > { %5630 = vmatpush1.bf16.msra.mxu1 %v5629_v37  ;;  %v4025_v13 = vpop.permute.xlu0 %4024  ;;  %v4027_v48 = vpop.permute.xlu1 %4026  ;;  %vm12656_vm2 = vmmov %vm12653_vm11 }
 0x3e0   : > { %v4042_v2 = vsel %vm12656_vm2, %v4023_v29, %v4025_v13  ;;  %vm12657_vm13 = vmmov %vm12656_vm2 }
 0x3e1   : > { %v4043_v9 = vsel %vm12657_vm13, %v4025_v13, %v4027_v48  ;;  %v4074_v62 = vsel %vm3975_vm6, %v4042_v2, 0.0  ;;  %vm4301_vm4 = vmand %vm12570_vm12, %vm12658_vm7  ;;  %vm12663_vm6 = vnez %v12566_v8 }
 0x3e2   : > { %v4075_v7 = vsel %vm3976_vm5, %v4043_v9, 0.0  ;;  %4090 = vst [vmem:[#allocation3 + $0x670] sm:$0xf] %v4074_v62  ;;  %vm4302_vm10 = vmand %vm12575_vm14, %vm12659_vm9 }
 0x3e3   : > { %4091 = vst [vmem:[#allocation3 + $0x678] sm:$0xf] %v4075_v7  ;;  %v4349_v56 = vpop.permute.xlu0 %4348  ;;  %v4351_v6 = vpop.permute.xlu1 %4350  ;;  %vm12661_vm11 = vmmov %vm12660_vm15 }
 0x3e4   : > { %v4368_v39 = vsel %vm12660_vm15, %v10162_v61, %v4349_v56  ;;  %v4369_v22 = vsel %vm12661_vm11, %v4349_v56, %v4351_v6  ;;  %vm4303_vm12 = vmand %vm12582_vm0, %vm12662_vm8 }
 0x3e5   : > { %v4400_v54 = vsel %vm4301_vm4, %v4368_v39, 0.0  ;;  %v4401_v51 = vsel %vm4302_vm10, %v4369_v22, 0.0  ;;  %vm4304_vm14 = vmand %vm12587_vm1, %vm12663_vm6  ;;  %v4674_v47 = vld [vmem:[#allocation3 + $0x668] sm:$0xff]  ;;  %v4673_v20 = vld [vmem:[#allocation3 + $0x660] sm:$0xff] }
 0x3e6   : > { %4416 = vst [vmem:[#allocation3 + $0x6e0] sm:$0xf] %v4400_v54  ;;  %4417 = vst [vmem:[#allocation3 + $0x6e8] sm:$0xf] %v4401_v51 }
 0x3e7   : > { %v4353_v60 = vpop.permute.xlu0 %4352  ;;  %v4355_v31 = vpop.permute.xlu1 %4354  ;;  %vm12664_vm3 = vmmov %vm12661_vm11 }
 0x3e8   : > { %v4370_v61 = vsel %vm12664_vm3, %v4351_v6, %v4353_v60  ;;  %vm12665_vm5 = vmmov %vm12664_vm3 }
 0x3e9   : > { %v4371_v45 = vsel %vm12665_vm5, %v4353_v60, %v4355_v31  ;;  %v4402_v10 = vsel %vm4303_vm12, %v4370_v61, 0.0  ;;  %v4675_v63 = vld [vmem:[#allocation3 + $0x670] sm:$0xff] }
 0x3ea   : > { %v4403_v16 = vsel %vm4304_vm14, %v4371_v45, 0.0  ;;  %4418 = vst [vmem:[#allocation3 + $0x6f0] sm:$0xf] %v4402_v10  ;;  %v4676_v17 = vld [vmem:[#allocation3 + $0x678] sm:$0xff] }
 0x3eb   : > { %4419 = vst [vmem:[#allocation3 + $0x6f8] sm:$0xf] %v4403_v16 }
 0x3ed   : > { %v4690_v23 = vld [vmem:[#allocation3 + $0x6e8] sm:$0xff]  ;;  %v4689_v49 = vld [vmem:[#allocation3 + $0x6e0] sm:$0xff] }
 0x3ee   : > { %v5599_v32 = vpack.c.bf16 %v4690_v23, %v4674_v47  ;;  %v5601_v8 = vpack.c.bf16 %v4689_v49, %v4673_v20 }
 0x3f0   : > { %5600 = vmatprep.subr.bf16.mxu0 %v5599_v32 }
 0x3f1   : > { %5602 = vmatpush1.bf16.msra.mxu0 %v5601_v8  ;;  %v4691_v24 = vld [vmem:[#allocation3 + $0x6f0] sm:$0xff] }
 0x3f2   : > { %v4692_v15 = vld [vmem:[#allocation3 + $0x6f8] sm:$0xff]  ;;  %v5633_v25 = vpack.c.bf16 %v4691_v24, %v4675_v63  ;;  %5604 = vmatprep.subr.bf16.mxu0 %v5603_v28 }
 0x3f3   : > { %v5631_v59 = vpack.c.bf16 %v4692_v15, %v4676_v17 }
 0x3f5   : > { %5632 = vmatprep.subr.bf16.mxu1 %v5631_v59  ;;  %5606 = vmatpush1.bf16.msra.mxu0 %v5603_v28 }
 0x3f6   : > { %5634 = vmatpush1.bf16.msra.mxu1 %v5633_v25 }
 0x3f7   : > { %5636 = vmatprep.subr.bf16.mxu1 %v5603_v28  ;;  %v4729_v3 = vpop.permute.xlu0 %4728 }
 0x3f8   : > { %5222 = vmatmul.mubr.f32.vlgmr.msra.gmra.mrb[6].mxu0 %v10195_v35  ;;  %v4798_v14 = vadd.f32 %v10269_v38, %v4729_v3  ;;  %v4869_v33 = vadd.f32 %v10267_v0, %v4729_v3  ;;  %v4800_v58 = vadd.f32 %v10275_v40, %v4729_v3  ;;  %v4871_v42 = vadd.f32 %v10271_v18, %v4729_v3 }
 0x3fa   : > { %5638 = vmatpush1.bf16.msra.mxu1 %v5603_v28  ;;  %5299 = vst [vmem:[%s10461_s8] sm:$0xff] %v4798_v14  ;;  %5301 = vst [vmem:[%s10461_s8 + $0x10] sm:$0xff] %v4869_v33 }
 0x3fb   : > { %5300 = vst [vmem:[%s10461_s8 + $0x8] sm:$0xff] %v4800_v58  ;;  %5302 = vst [vmem:[%s10461_s8 + $0x18] sm:$0xff] %v4871_v42 }
 0x3fd   : > { %5293 = vmatmul.mubr.f32.vlgmr.msra.gmra.mrb[6].mxu1 %v10195_v35 }
 0x40b   : > { %v4939_v26 = vpop.f32.mrb[2].mxu0 }
 0x40c   : > { %v4940_v52 = vadd.f32 %v4939_v26, %v4729_v3  ;;  %v4941_v27 = vpop.f32.mrb[3].mxu0 }
 0x40d   : > { %v4942_v38 = vadd.f32 %v4941_v27, %v4729_v3 }
 0x40e   : > { %5303 = vst [vmem:[%s10461_s8 + $0x20] sm:$0xff] %v4940_v52 }
 0x40f   : > { %5304 = vst [vmem:[%s10461_s8 + $0x28] sm:$0xff] %v4942_v38 }
 0x410   : > { %v5010_v0 = vpop.f32.mrb[2].mxu1 }
 0x411   : > { %v5011_v40 = vadd.f32 %v5010_v0, %v4729_v3  ;;  %v5012_v18 = vpop.f32.mrb[3].mxu1 }
 0x412   : > { %v5013_v53 = vadd.f32 %v5012_v18, %v4729_v3 }
 0x413   : > { %5305 = vst [vmem:[%s10461_s8 + $0x30] sm:$0xff] %v5011_v40 }
 0x414   : > { %5306 = vst [vmem:[%s10461_s8 + $0x38] sm:$0xff] %v5013_v53 }
 0x46b   : > { %v5081_v36 = vpop.f32.mrb[4].mxu0 }
 0x46c   : > { %v5082_v11 = vadd.f32 %v5081_v36, %v4729_v3  ;;  %v5083_v35 = vpop.f32.mrb[5].mxu0 }
 0x46d   : > { %v5084_v30 = vadd.f32 %v5083_v35, %v4729_v3 }
 0x46e   : > { %5307 = vst [vmem:[%s10461_s8 + $0x40] sm:$0xff] %v5082_v11 }
 0x46f   : > { %5308 = vst [vmem:[%s10461_s8 + $0x48] sm:$0xff] %v5084_v30 }
 0x470   : > { %v5152_v57 = vpop.f32.mrb[4].mxu1 }
 0x471   : > { %v5153_v5 = vadd.f32 %v5152_v57, %v4729_v3  ;;  %v5154_v50 = vpop.f32.mrb[5].mxu1 }
 0x472   : > { %v5155_v19 = vadd.f32 %v5154_v50, %v4729_v3 }
 0x473   : > { %5309 = vst [vmem:[%s10461_s8 + $0x50] sm:$0xff] %v5153_v5 }
 0x474   : > { %5310 = vst [vmem:[%s10461_s8 + $0x58] sm:$0xff] %v5155_v19 }
 0x4cb   : > { %v5223_v41 = vpop.f32.mrb[6].mxu0 }
 0x4cc   : > { %v5224_v4 = vadd.f32 %v5223_v41, %v4729_v3  ;;  %v5225_v44 = vpop.f32.mrb[7].mxu0 }
 0x4cd   : > { %v5226_v21 = vadd.f32 %v5225_v44, %v4729_v3 }
 0x4ce   : > { %5311 = vst [vmem:[%s10461_s8 + $0x60] sm:$0xff] %v5224_v4 }
 0x4cf   : > { %5312 = vst [vmem:[%s10461_s8 + $0x68] sm:$0xff] %v5226_v21 }
 0x4d0   : > { %v5294_v1 = vpop.f32.mrb[6].mxu1 }
 0x4d1   : > { %v5295_v37 = vadd.f32 %v5294_v1, %v4729_v3  ;;  %v5296_v43 = vpop.f32.mrb[7].mxu1 }
 0x4d2   : > { %v5297_v29 = vadd.f32 %v5296_v43, %v4729_v3 }
 0x4d3   : > { %5313 = vst [vmem:[%s10461_s8 + $0x70] sm:$0xff] %v5295_v37 }
 0x4d4   : > { %5314 = vst [vmem:[%s10461_s8 + $0x78] sm:$0xff] %v5297_v29 }
 0x4d5 PF: > { %s13_s12 = sadd.s32 1, %s5746_s12  }
 0x4d6   : > { %p10_p4 = scmp.ge.s32.totalorder %s13_s12, 4  }
 0x4d8   :  { %12 = sbr.rel (!%p10_p4) target bundleno = 1 (0x1), region = 62 }

</bundles_post_ra>
